<compile_context>
chip_gen: v7x
topology: tpu7x:2x2x1
jax: 0.10.0
libtpu: 0.0.40
codegen_flags: <defaults>
</compile_context>

<pallas_src>
import functools

import jax
import jax.numpy as jnp
import numpy as np
from jax import lax
from jax.experimental import pallas as pl
from jax.experimental.pallas import tpu as pltpu

_EPS = 1e-5
_LANE = 128                       # channel axis padded to a multiple of this
_COMPUTE_DTYPE = jnp.bfloat16     # MXU operand / activation storage dtype


def _round_up(x, m):
  return (x + m - 1) // m * m


@functools.lru_cache(maxsize=1)
def _vmem_limit():
  """Per-generation scoped-VMEM limit with headroom (None -> compiler default)."""
  try:
    cap = int(pltpu.get_tpu_info().vmem_capacity_bytes)
    return int(min(max(cap - 16 * 1024 * 1024, cap * 3 // 4),
                   96 * 1024 * 1024))
  except Exception:
    return None


# ---------------------------------------------------------------------------
# conv pass: optional per-channel affine(+relu) on the input tile -> 3x3 conv
# -> raw conv tile (bf16) + per-tile BN partial statistics (f32).
# ---------------------------------------------------------------------------
def _conv3x3_stats_kernel(x_blk_ref, x_hbm_ref, w_ref, s_ref, b_ref,
                          y_ref, sum_ref, ssq_ref,
                          pad_buf, halo_buf, dma_sem, *,
                          apply_affine, apply_relu):
  """One (image, row-tile) grid step.

  x_blk_ref : (1, th, W, Cin)   auto-pipelined core rows of this tile (bf16)
  x_hbm_ref : (N, H, W, Cin)    same array in HBM; only the 2 halo rows
  w_ref     : (3, 3, Cin, Cout) per-(kh,kw) weight slabs (bf16)
  s_ref/b_ref: (1, Cin)         per-channel affine applied to the input
  y_ref     : (1, th, W, Cout)  raw conv output tile (bf16)
  sum_ref   : (1, 1, 1, Cout)   per-tile partial sum   (BN batch stats, f32)
  ssq_ref   : (1, 1, 1, Cout)   per-tile partial sumsq (f32)
  pad_buf   : VMEM (th+2, W+2, Cin) bf16 zero-padded, affine-transformed input
  halo_buf  : VMEM (2, W, Cin)      bf16 landing buffer for the halo rows
  dma_sem   : DMA semaphores (2,)
  """
  _, th, W, cin = x_blk_ref.shape
  cout = w_ref.shape[-1]
  n = pl.program_id(0)
  j = pl.program_id(1)
  gh = pl.num_programs(1)

  if apply_affine:
    s = s_ref[0].astype(jnp.float32)      # (cin,)
    b = b_ref[0].astype(jnp.float32)

  def _affine(v):
    if not apply_affine and not apply_relu:
      return v.astype(pad_buf.dtype)
    v = v.astype(jnp.float32)
    if apply_affine:
      v = v * s + b
    if apply_relu:
      v = jnp.maximum(v, 0.0)
    return v.astype(pad_buf.dtype)

  def _halo_copy(slot, row):
    return pltpu.make_async_copy(x_hbm_ref.at[n, row], halo_buf.at[slot],
                                 dma_sem.at[slot])

  have_top = j > 0
  have_bot = j < gh - 1

  # ---- issue both halo DMAs up-front so they overlap with compute ----------
  @pl.when(have_top)
  def _():
    _halo_copy(0, j * th - 1).start()

  @pl.when(have_bot)
  def _():
    _halo_copy(1, (j + 1) * th).start()

  # ---- core rows (auto-pipelined block) -> interior of the padded tile -----
  # (runs while the halo DMAs are in flight)
  pad_buf[1:th + 1, 1:W + 1, :] = _affine(x_blk_ref[0])

  # ---- zero the 1-pixel W border columns ------------------------------------
  pad_buf[:, 0, :] = jnp.zeros((th + 2, cin), pad_buf.dtype)
  pad_buf[:, W + 1, :] = jnp.zeros((th + 2, cin), pad_buf.dtype)

  # ---- top halo row or zero padding -----------------------------------------
  @pl.when(have_top)
  def _():
    _halo_copy(0, j * th - 1).wait()
    pad_buf[0, 1:W + 1, :] = _affine(halo_buf[0])

  @pl.when(j == 0)
  def _():
    pad_buf[0, :, :] = jnp.zeros((W + 2, cin), pad_buf.dtype)

  # ---- bottom halo row or zero padding --------------------------------------
  @pl.when(have_bot)
  def _():
    _halo_copy(1, (j + 1) * th).wait()
    pad_buf[th + 1, 1:W + 1, :] = _affine(halo_buf[1])

  @pl.when(j == gh - 1)
  def _():
    pad_buf[th + 1, :, :] = jnp.zeros((W + 2, cin), pad_buf.dtype)

  # ---- 3x3 conv: 9 MXU matmuls on contiguous slices (no lane-axis concat) ---
  acc = None
  for kh in range(3):
    for kw in range(3):
      patch = pad_buf[kh:kh + th, kw:kw + W, :].reshape(th * W, cin)
      part = jnp.dot(patch, w_ref[kh, kw],
                     preferred_element_type=jnp.float32)
      acc = part if acc is None else acc + part          # (th*W, cout) f32

  # ---- outputs: bf16 conv tile + one-pass BN partial stats from f32 acc -----
  y_ref[...] = acc.reshape(1, th, W, cout).astype(y_ref.dtype)
  sum_ref[...] = jnp.sum(acc, axis=0).reshape(1, 1, 1, cout)
  ssq_ref[...] = jnp.sum(acc * acc, axis=0).reshape(1, 1, 1, cout)


def _conv3x3_bn_stats(x, w_packed, scale, bias, *, apply_affine, apply_relu,
                      th):
  """x: (N,H,W,Cin) bf16, lane-padded NHWC.  Returns bf16 conv + f32 partials."""
  N, H, W, cin = x.shape
  cout = w_packed.shape[-1]
  gh = H // th
  kernel = functools.partial(_conv3x3_stats_kernel,
                             apply_affine=apply_affine, apply_relu=apply_relu)
  grid_spec = pltpu.PrefetchScalarGridSpec(
      num_scalar_prefetch=0,
      grid=(N, gh),
      in_specs=[
          pl.BlockSpec((1, th, W, cin), lambda n, j: (n, j, 0, 0)),
          pl.BlockSpec(memory_space=pl.ANY),                    # halo rows
          pl.BlockSpec((3, 3, cin, cout), lambda n, j: (0, 0, 0, 0)),
          pl.BlockSpec((1, cin), lambda n, j: (0, 0)),
          pl.BlockSpec((1, cin), lambda n, j: (0, 0)),
      ],
      out_specs=(
          pl.BlockSpec((1, th, W, cout), lambda n, j: (n, j, 0, 0)),
          pl.BlockSpec((1, 1, 1, cout), lambda n, j: (n, j, 0, 0)),
          pl.BlockSpec((1, 1, 1, cout), lambda n, j: (n, j, 0, 0)),
      ),
      scratch_shapes=[
          pltpu.VMEM((th + 2, W + 2, cin), _COMPUTE_DTYPE),
          pltpu.VMEM((2, W, cin), x.dtype),
          pltpu.SemaphoreType.DMA((2,)),
      ],
  )
  return pl.pallas_call(
      kernel,
      grid_spec=grid_spec,
      out_shape=(
          jax.ShapeDtypeStruct((N, H, W, cout), _COMPUTE_DTYPE),
          jax.ShapeDtypeStruct((N, gh, 1, cout), jnp.float32),
          jax.ShapeDtypeStruct((N, gh, 1, cout), jnp.float32),
      ),
      compiler_params=pltpu.CompilerParams(
          dimension_semantics=("parallel", "parallel"),
          vmem_limit_bytes=_vmem_limit()),
  )(x, x, w_packed, scale, bias)


# ---------------------------------------------------------------------------
# final pass: bn2 (folded scale/bias) + identity shortcut + relu, tiled with
# large lane-dense (1, H*W, C) blocks.
# ---------------------------------------------------------------------------
def _bn_add_relu_kernel(y_ref, x_ref, s_ref, b_ref, o_ref):
  s = s_ref[0].astype(jnp.float32)
  b = b_ref[0].astype(jnp.float32)
  v = y_ref[...].astype(jnp.float32) * s + b + x_ref[...].astype(jnp.float32)
  o_ref[...] = jnp.maximum(v, 0.0).astype(o_ref.dtype)


def _bn_add_relu(y, x_id, scale, bias):
  N, H, W, c = y.shape
  hw = H * W
  y2 = y.reshape(N, hw, c)          # free: contiguous reshape outside kernel
  x2 = x_id.reshape(N, hw, c)
  grid_spec = pltpu.PrefetchScalarGridSpec(
      num_scalar_prefetch=0,
      grid=(N,),
      in_specs=[
          pl.BlockSpec((1, hw, c), lambda n: (n, 0, 0)),
          pl.BlockSpec((1, hw, c), lambda n: (n, 0, 0)),
          pl.BlockSpec((1, c), lambda n: (0, 0)),
          pl.BlockSpec((1, c), lambda n: (0, 0)),
      ],
      out_specs=pl.BlockSpec((1, hw, c), lambda n: (n, 0, 0)),
  )
  out = pl.pallas_call(
      _bn_add_relu_kernel,
      grid_spec=grid_spec,
      out_shape=jax.ShapeDtypeStruct((N, hw, c), jnp.float32),
      compiler_params=pltpu.CompilerParams(
          dimension_semantics=("parallel",),
          vmem_limit_bytes=_vmem_limit()),
  )(y2, x2, scale, bias)
  return out.reshape(N, H, W, c)


def _stats_to_affine(psum, pssq, gamma, beta, count):
  """Fold BN batch stats into a single per-channel (scale, bias)."""
  # TODO(synk): E[x^2]-E[x]^2 in f32 can cancel at very large N*H*W; a shifted
  #             two-pass reduction would tighten this if needed.
  total = jnp.sum(psum, axis=(0, 1, 2))
  total_sq = jnp.sum(pssq, axis=(0, 1, 2))
  mean = total / count
  var = jnp.maximum(total_sq / count - mean * mean, 0.0)   # biased batch var
  scale = gamma.reshape(-1) * lax.rsqrt(var + _EPS)
  bias = beta.reshape(-1) - mean * scale
  return scale.reshape(1, -1), bias.reshape(1, -1)


# ---------------------------------------------------------------------------
# public wrapper (PyTorch-compatible NCHW interface)
# ---------------------------------------------------------------------------
@functools.partial(jax.jit, static_argnames=("stride", "row_tile"))
def basic_block(x_nchw, params, stride=1, row_tile=None):
  """BasicBlock forward.  x_nchw: (N, C, H, W) float32."""
  if stride != 1:
    # TODO(synk): strided conv1 + 1x1-conv/BN downsample shortcut.
    raise NotImplementedError("only the stride=1 BasicBlock is implemented")

  w1, w2 = params["w1"], params["w2"]        # HWIO
  cin, planes = w1.shape[2], w1.shape[3]
  if cin != planes:
    raise NotImplementedError("identity shortcut requires in_planes == planes")

  N, C, H, W = x_nchw.shape
  assert C == cin
  cpad = _round_up(C, _LANE)
  # Whole-image row tiles by default: ResNet-scale images always fit VMEM and
  # this removes halo DMAs entirely while filling the 256-wide MXU (M=H*W).
  th = H if row_tile is None else min(int(row_tile), H)
  assert H % th == 0  # TODO(synk): handle H not divisible by the row tile.

  # NCHW -> NHWC, lane-pad channels, bf16 storage (halves activation traffic;
  # MXU operands are bf16 anyway; zero channels are inert through the net).
  x = jnp.transpose(x_nchw, (0, 2, 3, 1))
  x = jnp.pad(x, ((0, 0), (0, 0), (0, 0),
                  (0, cpad - C))).astype(_COMPUTE_DTYPE)

  def pack_w(w):  # HWIO (3,3,ci,co) -> (3,3,cpad,cpad), bf16
    w = jnp.pad(w, ((0, 0), (0, 0),
                    (0, cpad - w.shape[2]), (0, cpad - w.shape[3])))
    return w.astype(_COMPUTE_DTYPE)

  def pad_c(v):
    return jnp.pad(v.reshape(1, -1), ((0, 0), (0, cpad - v.size)))

  w1p, w2p = pack_w(w1), pack_w(w2)
  g1p, b1p = pad_c(params["g1"]), pad_c(params["b1"])
  g2p, b2p = pad_c(params["g2"]), pad_c(params["b2"])
  zeros = jnp.zeros((1, cpad), jnp.float32)
  count = jnp.float32(N * H * W)

  # pass 1: conv1 (input affine statically skipped) + BN1 partial stats
  y1, ps1, pq1 = _conv3x3_bn_stats(x, w1p, zeros, zeros,
                                   apply_affine=False, apply_relu=False, th=th)
  s1, t1 = _stats_to_affine(ps1, pq1, g1p, b1p, count)

  # pass 2: conv2 over relu(bn1(.)) -- BN1+ReLU fused into the input load
  y2, ps2, pq2 = _conv3x3_bn_stats(y1, w2p, s1, t1,
                                   apply_affine=True, apply_relu=True, th=th)
  s2, t2 = _stats_to_affine(ps2, pq2, g2p, b2p, count)

  # pass 3: bn2 + identity shortcut + relu
  out = _bn_add_relu(y2, x, s2, t2)

  out = out[..., :C]                        # drop lane padding
  return jnp.transpose(out, (0, 3, 1, 2))   # NHWC -> NCHW


# ---------------------------------------------------------------------------
# pure-JAX f32 reference (PyTorch training-mode BN semantics) + test
# ---------------------------------------------------------------------------
def _reference(x_nchw, params):
  def conv(x, w_hwio):
    w_oihw = jnp.transpose(w_hwio, (3, 2, 0, 1))
    return lax.conv_general_dilated(
        x, w_oihw, window_strides=(1, 1), padding=((1, 1), (1, 1)),
        dimension_numbers=("NCHW", "OIHW", "NCHW"))

  def bn(o, g, b):
    mean = jnp.mean(o, axis=(0, 2, 3), keepdims=True)
    var = jnp.mean((o - mean) ** 2, axis=(0, 2, 3), keepdims=True)
    return ((o - mean) * lax.rsqrt(var + _EPS)
            * g.reshape(1, -1, 1, 1) + b.reshape(1, -1, 1, 1))

  out = jax.nn.relu(bn(conv(x_nchw, params["w1"]),
                       params["g1"].ravel(), params["b1"].ravel()))
  out = bn(conv(out, params["w2"]), params["g2"].ravel(), params["b2"].ravel())
  return jax.nn.relu(out + x_nchw)


def _init_params(key, in_planes, planes):
  k1, k2, k3, k4, k5, k6 = jax.random.split(key, 6)
  fan1, fan2 = in_planes * 9, planes * 9
  return {
      "w1": jax.random.normal(k1, (3, 3, in_planes, planes), jnp.float32)
            / np.sqrt(fan1),
      "w2": jax.random.normal(k2, (3, 3, planes, planes), jnp.float32)
            / np.sqrt(fan2),
      "g1": 1.0 + 0.1 * jax.random.normal(k3, (1, planes), jnp.float32),
      "b1": 0.1 * jax.random.normal(k4, (1, planes), jnp.float32),
      "g2": 1.0 + 0.1 * jax.random.normal(k5, (1, planes), jnp.float32),
      "b2": 0.1 * jax.random.normal(k6, (1, planes), jnp.float32),
  }


if __name__ == "__main__":
  key = jax.random.PRNGKey(0)
  k_x, k_p = jax.random.split(key)

  N, C, H, W = 2, 8, 16, 16          # in_planes = planes = 8, stride = 1
  x = jax.random.normal(k_x, (N, C, H, W), jnp.float32)
  params = _init_params(k_p, in_planes=C, planes=C)

  out = jax.block_until_ready(basic_block(x, params, stride=1))
  ref = jax.block_until_ready(_reference(x, params))

  # Tolerance accounts for bf16 MXU operands / bf16 intermediates (f32
  # accumulation and f32 BN statistics) vs the f32 reference.
  np.testing.assert_allclose(np.asarray(out), np.asarray(ref),
                             rtol=5e-2, atol=5e-2)
  print("KERNEL_OK")
</pallas_src>

<mosaic_0001>
module attributes {stable_mosaic.version = 11 : i64} {
  func.func @_bn_add_relu_kernel(%arg0: i32, %arg1: memref<1x256x128xbf16, #tpu.memory_space<vmem>>, %arg2: memref<1x256x128xbf16, #tpu.memory_space<vmem>>, %arg3: memref<1x128xf32, #tpu.memory_space<vmem>>, %arg4: memref<1x128xf32, #tpu.memory_space<vmem>>, %arg5: memref<1x256x128xf32, #tpu.memory_space<vmem>>) attributes {dimension_semantics = [#tpu.dimension_semantics<parallel>], iteration_bounds = array<i64: 2>, scalar_prefetch = 0 : i64, scratch_operands = 0 : i64, tpu.core_type = #tpu.core_type<tc>, window_params = [{transform_indices = @transform_0, window_bounds = array<i64: 1, 256, 128>}, {transform_indices = @transform_1, window_bounds = array<i64: 1, 256, 128>}, {pipeline_mode = #tpu.pipeline_mode<synchronous>, transform_indices = @transform_2, window_bounds = array<i64: 1, 128>}, {pipeline_mode = #tpu.pipeline_mode<synchronous>, transform_indices = @transform_3, window_bounds = array<i64: 1, 128>}, {transform_indices = @transform_4, window_bounds = array<i64: 1, 256, 128>}]} {
    %c0 = arith.constant 0 : index
    %c0_0 = arith.constant 0 : index
    %0 = vector.load %arg3[%c0, %c0_0] : memref<1x128xf32, #tpu.memory_space<vmem>>, vector<1x128xf32>
    %1 = vector.shape_cast %0 : vector<1x128xf32> to vector<128xf32>
    %c0_1 = arith.constant 0 : index
    %c0_2 = arith.constant 0 : index
    %2 = vector.load %arg4[%c0_1, %c0_2] : memref<1x128xf32, #tpu.memory_space<vmem>>, vector<1x128xf32>
    %3 = vector.shape_cast %2 : vector<1x128xf32> to vector<128xf32>
    %c0_3 = arith.constant 0 : index
    %c0_4 = arith.constant 0 : index
    %c0_5 = arith.constant 0 : index
    %4 = vector.load %arg1[%c0_3, %c0_4, %c0_5] : memref<1x256x128xbf16, #tpu.memory_space<vmem>>, vector<1x256x128xbf16>
    %5 = arith.extf %4 : vector<1x256x128xbf16> to vector<1x256x128xf32>
    %6 = vector.shape_cast %1 : vector<128xf32> to vector<1x1x128xf32>
    %7 = vector.broadcast %6 : vector<1x1x128xf32> to vector<1x256x128xf32>
    %8 = arith.mulf %5, %7 : vector<1x256x128xf32>
    %9 = vector.shape_cast %3 : vector<128xf32> to vector<1x1x128xf32>
    %10 = vector.broadcast %9 : vector<1x1x128xf32> to vector<1x256x128xf32>
    %11 = arith.addf %8, %10 : vector<1x256x128xf32>
    %c0_6 = arith.constant 0 : index
    %c0_7 = arith.constant 0 : index
    %c0_8 = arith.constant 0 : index
    %12 = vector.load %arg2[%c0_6, %c0_7, %c0_8] : memref<1x256x128xbf16, #tpu.memory_space<vmem>>, vector<1x256x128xbf16>
    %13 = arith.extf %12 : vector<1x256x128xbf16> to vector<1x256x128xf32>
    %14 = arith.addf %11, %13 : vector<1x256x128xf32>
    %cst = arith.constant 0.000000e+00 : f32
    %15 = vector.broadcast %cst : f32 to vector<1x256x128xf32>
    %16 = arith.maximumf %14, %15 : vector<1x256x128xf32>
    %c0_9 = arith.constant 0 : index
    %c0_10 = arith.constant 0 : index
    %c0_11 = arith.constant 0 : index
    %17 = vector.load %arg5[%c0_9, %c0_10, %c0_11] : memref<1x256x128xf32, #tpu.memory_space<vmem>>, vector<1x256x128xf32>
    tpu.vector_store %arg5[%c0_9, %c0_10, %c0_11], %16 {strides = array<i32>} : memref<1x256x128xf32, #tpu.memory_space<vmem>>, vector<1x256x128xf32>,
    return
  }
  func.func @transform_0(%arg0: i32) -> (i32, i32, i32) {
    %c0_i32 = arith.constant 0 : i32
    %c0_i32_0 = arith.constant 0 : i32
    %c0_i32_1 = arith.constant 0 : i32
    return %arg0, %c0_i32, %c0_i32_0 : i32, i32, i32
  }
  func.func @transform_1(%arg0: i32) -> (i32, i32, i32) {
    %c0_i32 = arith.constant 0 : i32
    %c0_i32_0 = arith.constant 0 : i32
    %c0_i32_1 = arith.constant 0 : i32
    return %arg0, %c0_i32, %c0_i32_0 : i32, i32, i32
  }
  func.func @transform_2(%arg0: i32) -> (i32, i32) {
    %c0_i32 = arith.constant 0 : i32
    %c0_i32_0 = arith.constant 0 : i32
    %c0_i32_1 = arith.constant 0 : i32
    return %c0_i32, %c0_i32_0 : i32, i32
  }
  func.func @transform_3(%arg0: i32) -> (i32, i32) {
    %c0_i32 = arith.constant 0 : i32
    %c0_i32_0 = arith.constant 0 : i32
    %c0_i32_1 = arith.constant 0 : i32
    return %c0_i32, %c0_i32_0 : i32, i32
  }
  func.func @transform_4(%arg0: i32) -> (i32, i32, i32) {
    %c0_i32 = arith.constant 0 : i32
    %c0_i32_0 = arith.constant 0 : i32
    %c0_i32_1 = arith.constant 0 : i32
    return %arg0, %c0_i32, %c0_i32_0 : i32, i32, i32
  }
}

module attributes {stable_mosaic.version = 11 : i64} {
  func.func @_conv3x3_stats_kernel(%arg0: i32, %arg1: i32, %arg2: memref<1x16x16x128xbf16, #tpu.memory_space<vmem>>, %arg3: memref<2x16x16x128xbf16, #tpu.memory_space<any>>, %arg4: memref<3x3x128x128xbf16, #tpu.memory_space<vmem>>, %arg5: memref<1x128xf32, #tpu.memory_space<vmem>>, %arg6: memref<1x128xf32, #tpu.memory_space<vmem>>, %arg7: memref<1x16x16x128xbf16, #tpu.memory_space<vmem>>, %arg8: memref<1x1x1x128xf32, #tpu.memory_space<vmem>>, %arg9: memref<1x1x1x128xf32, #tpu.memory_space<vmem>>, %arg10: memref<18x18x128xbf16, #tpu.memory_space<vmem>>, %arg11: memref<2x16x128xbf16, #tpu.memory_space<vmem>>, %arg12: memref<2x!tpu.dma_semaphore, #tpu.memory_space<semaphore_mem>>) attributes {dimension_semantics = [#tpu.dimension_semantics<parallel>, #tpu.dimension_semantics<parallel>], iteration_bounds = array<i64: 2, 1>, scalar_prefetch = 0 : i64, scratch_operands = 3 : i64, tpu.core_type = #tpu.core_type<tc>, window_params = [{transform_indices = @transform_0, window_bounds = array<i64: 1, 16, 16, 128>}, {}, {pipeline_mode = #tpu.pipeline_mode<synchronous>, transform_indices = @transform_2, window_bounds = array<i64: 3, 3, 128, 128>}, {pipeline_mode = #tpu.pipeline_mode<synchronous>, transform_indices = @transform_3, window_bounds = array<i64: 1, 128>}, {pipeline_mode = #tpu.pipeline_mode<synchronous>, transform_indices = @transform_4, window_bounds = array<i64: 1, 128>}, {transform_indices = @transform_5, window_bounds = array<i64: 1, 16, 16, 128>}, {transform_indices = @transform_6, window_bounds = array<i64: 1, 1, 1, 128>}, {transform_indices = @transform_7, window_bounds = array<i64: 1, 1, 1, 128>}]} {
    %c0_i32 = arith.constant 0 : i32
    %0 = arith.cmpi sgt, %arg1, %c0_i32 : i32
    %c0_i32_0 = arith.constant 0 : i32
    %1 = arith.cmpi slt, %arg1, %c0_i32_0 : i32
    %2 = arith.extui %0 : i1 to i32
    %c0_i32_1 = arith.constant 0 : i32
    %3 = arith.cmpi ne, %2, %c0_i32_1 : i32
    scf.if %3 {
      %c16_i32 = arith.constant 16 : i32
      %90 = arith.muli %arg1, %c16_i32 : i32
      %c1_i32 = arith.constant 1 : i32
      %91 = arith.subi %90, %c1_i32 : i32
      %c0_i32_105 = arith.constant 0 : i32
      %c0_i32_106 = arith.constant 0 : i32
      %c0_i32_107 = arith.constant 0 : i32
      %c0_i32_108 = arith.constant 0 : i32
      %92 = tpu.memref_slice %arg3[%arg0, %91, %c0_i32_107, %c0_i32_108] : memref<2x16x16x128xbf16, #tpu.memory_space<any>> -> memref<1x1x16x128xbf16, #tpu.memory_space<any>>
      %93 = tpu.memref_squeeze %92 : memref<1x1x16x128xbf16, #tpu.memory_space<any>> -> memref<16x128xbf16, #tpu.memory_space<any>>
      %c0_i32_109 = arith.constant 0 : i32
      %c0_i32_110 = arith.constant 0 : i32
      %94 = tpu.memref_slice %arg11[%c0_i32_105, %c0_i32_109, %c0_i32_110] : memref<2x16x128xbf16, #tpu.memory_space<vmem>> -> memref<1x16x128xbf16, #tpu.memory_space<vmem>>
      %95 = tpu.memref_squeeze %94 : memref<1x16x128xbf16, #tpu.memory_space<vmem>> -> memref<16x128xbf16, #tpu.memory_space<vmem>>
      %96 = tpu.memref_slice %arg12[%c0_i32_106] : memref<2x!tpu.dma_semaphore, #tpu.memory_space<semaphore_mem>> -> memref<1x!tpu.dma_semaphore, #tpu.memory_space<semaphore_mem>>
      %97 = tpu.memref_squeeze %96 : memref<1x!tpu.dma_semaphore, #tpu.memory_space<semaphore_mem>> -> memref<!tpu.dma_semaphore, #tpu.memory_space<semaphore_mem>>
      tpu.enqueue_dma source(%93 : memref<16x128xbf16, #tpu.memory_space<any>>) target(%95 : memref<16x128xbf16, #tpu.memory_space<vmem>>) target_semaphore(%97 : memref<!tpu.dma_semaphore, #tpu.memory_space<semaphore_mem>>)
    } else {
    }
    %4 = arith.extui %1 : i1 to i32
    %c0_i32_2 = arith.constant 0 : i32
    %5 = arith.cmpi ne, %4, %c0_i32_2 : i32
    scf.if %5 {
      %c1_i32 = arith.constant 1 : i32
      %90 = arith.addi %arg1, %c1_i32 : i32
      %c16_i32 = arith.constant 16 : i32
      %91 = arith.muli %90, %c16_i32 : i32
      %c1_i32_105 = arith.constant 1 : i32
      %c1_i32_106 = arith.constant 1 : i32
      %c0_i32_107 = arith.constant 0 : i32
      %c0_i32_108 = arith.constant 0 : i32
      %92 = tpu.memref_slice %arg3[%arg0, %91, %c0_i32_107, %c0_i32_108] : memref<2x16x16x128xbf16, #tpu.memory_space<any>> -> memref<1x1x16x128xbf16, #tpu.memory_space<any>>
      %93 = tpu.memref_squeeze %92 : memref<1x1x16x128xbf16, #tpu.memory_space<any>> -> memref<16x128xbf16, #tpu.memory_space<any>>
      %c0_i32_109 = arith.constant 0 : i32
      %c0_i32_110 = arith.constant 0 : i32
      %94 = tpu.memref_slice %arg11[%c1_i32_105, %c0_i32_109, %c0_i32_110] : memref<2x16x128xbf16, #tpu.memory_space<vmem>> -> memref<1x16x128xbf16, #tpu.memory_space<vmem>>
      %95 = tpu.memref_squeeze %94 : memref<1x16x128xbf16, #tpu.memory_space<vmem>> -> memref<16x128xbf16, #tpu.memory_space<vmem>>
      %96 = tpu.memref_slice %arg12[%c1_i32_106] : memref<2x!tpu.dma_semaphore, #tpu.memory_space<semaphore_mem>> -> memref<1x!tpu.dma_semaphore, #tpu.memory_space<semaphore_mem>>
      %97 = tpu.memref_squeeze %96 : memref<1x!tpu.dma_semaphore, #tpu.memory_space<semaphore_mem>> -> memref<!tpu.dma_semaphore, #tpu.memory_space<semaphore_mem>>
      tpu.enqueue_dma source(%93 : memref<16x128xbf16, #tpu.memory_space<any>>) target(%95 : memref<16x128xbf16, #tpu.memory_space<vmem>>) target_semaphore(%97 : memref<!tpu.dma_semaphore, #tpu.memory_space<semaphore_mem>>)
    } else {
    }
    %c0 = arith.constant 0 : index
    %c0_3 = arith.constant 0 : index
    %c0_4 = arith.constant 0 : index
    %c0_5 = arith.constant 0 : index
    %6 = vector.load %arg2[%c0, %c0_3, %c0_4, %c0_5] : memref<1x16x16x128xbf16, #tpu.memory_space<vmem>>, vector<1x16x16x128xbf16>
    %7 = vector.shape_cast %6 : vector<1x16x16x128xbf16> to vector<16x16x128xbf16>
    %c1 = arith.constant 1 : index
    %c1_6 = arith.constant 1 : index
    %c0_7 = arith.constant 0 : index
    %8 = vector.load %arg10[%c1, %c1_6, %c0_7] : memref<18x18x128xbf16, #tpu.memory_space<vmem>>, vector<16x16x128xbf16>
    tpu.vector_store %arg10[%c1, %c1_6, %c0_7], %7 {strides = array<i32>} : memref<18x18x128xbf16, #tpu.memory_space<vmem>>, vector<16x16x128xbf16>,
    %cst = arith.constant 0.000000e+00 : bf16
    %9 = vector.broadcast %cst : bf16 to vector<18x128xbf16>
    %c0_8 = arith.constant 0 : index
    %c0_9 = arith.constant 0 : index
    %c0_10 = arith.constant 0 : index
    %10 = vector.load %arg10[%c0_8, %c0_9, %c0_10] : memref<18x18x128xbf16, #tpu.memory_space<vmem>>, vector<18x1x128xbf16>
    %11 = vector.shape_cast %10 : vector<18x1x128xbf16> to vector<18x128xbf16>
    %12 = vector.shape_cast %9 : vector<18x128xbf16> to vector<18x1x128xbf16>
    tpu.vector_store %arg10[%c0_8, %c0_9, %c0_10], %12 {strides = array<i32>} : memref<18x18x128xbf16, #tpu.memory_space<vmem>>, vector<18x1x128xbf16>,
    %cst_11 = arith.constant 0.000000e+00 : bf16
    %13 = vector.broadcast %cst_11 : bf16 to vector<18x128xbf16>
    %c0_12 = arith.constant 0 : index
    %c17 = arith.constant 17 : index
    %c0_13 = arith.constant 0 : index
    %14 = vector.load %arg10[%c0_12, %c17, %c0_13] : memref<18x18x128xbf16, #tpu.memory_space<vmem>>, vector<18x1x128xbf16>
    %15 = vector.shape_cast %14 : vector<18x1x128xbf16> to vector<18x128xbf16>
    %16 = vector.shape_cast %13 : vector<18x128xbf16> to vector<18x1x128xbf16>
    tpu.vector_store %arg10[%c0_12, %c17, %c0_13], %16 {strides = array<i32>} : memref<18x18x128xbf16, #tpu.memory_space<vmem>>, vector<18x1x128xbf16>,
    %17 = arith.extui %0 : i1 to i32
    %c0_i32_14 = arith.constant 0 : i32
    %18 = arith.cmpi ne, %17, %c0_i32_14 : i32
    scf.if %18 {
      %c16_i32 = arith.constant 16 : i32
      %90 = arith.muli %arg1, %c16_i32 : i32
      %c1_i32 = arith.constant 1 : i32
      %91 = arith.subi %90, %c1_i32 : i32
      %c0_i32_105 = arith.constant 0 : i32
      %c0_i32_106 = arith.constant 0 : i32
      %c0_i32_107 = arith.constant 0 : i32
      %c0_i32_108 = arith.constant 0 : i32
      %92 = tpu.memref_slice %arg3[%arg0, %91, %c0_i32_107, %c0_i32_108] : memref<2x16x16x128xbf16, #tpu.memory_space<any>> -> memref<1x1x16x128xbf16, #tpu.memory_space<any>>
      %93 = tpu.memref_squeeze %92 : memref<1x1x16x128xbf16, #tpu.memory_space<any>> -> memref<16x128xbf16, #tpu.memory_space<any>>
      %c0_i32_109 = arith.constant 0 : i32
      %c0_i32_110 = arith.constant 0 : i32
      %94 = tpu.memref_slice %arg11[%c0_i32_105, %c0_i32_109, %c0_i32_110] : memref<2x16x128xbf16, #tpu.memory_space<vmem>> -> memref<1x16x128xbf16, #tpu.memory_space<vmem>>
      %95 = tpu.memref_squeeze %94 : memref<1x16x128xbf16, #tpu.memory_space<vmem>> -> memref<16x128xbf16, #tpu.memory_space<vmem>>
      %96 = tpu.memref_slice %arg12[%c0_i32_106] : memref<2x!tpu.dma_semaphore, #tpu.memory_space<semaphore_mem>> -> memref<1x!tpu.dma_semaphore, #tpu.memory_space<semaphore_mem>>
      %97 = tpu.memref_squeeze %96 : memref<1x!tpu.dma_semaphore, #tpu.memory_space<semaphore_mem>> -> memref<!tpu.dma_semaphore, #tpu.memory_space<semaphore_mem>>
      tpu.wait_dma2 semaphore(%97 : memref<!tpu.dma_semaphore, #tpu.memory_space<semaphore_mem>>) src(%93 : memref<16x128xbf16, #tpu.memory_space<any>>) dst(%95 : memref<16x128xbf16, #tpu.memory_space<vmem>>)
      %c0_111 = arith.constant 0 : index
      %c0_112 = arith.constant 0 : index
      %c0_113 = arith.constant 0 : index
      %98 = vector.load %arg11[%c0_111, %c0_112, %c0_113] : memref<2x16x128xbf16, #tpu.memory_space<vmem>>, vector<1x16x128xbf16>
      %99 = vector.shape_cast %98 : vector<1x16x128xbf16> to vector<16x128xbf16>
      %c0_114 = arith.constant 0 : index
      %c1_115 = arith.constant 1 : index
      %c0_116 = arith.constant 0 : index
      %100 = vector.load %arg10[%c0_114, %c1_115, %c0_116] : memref<18x18x128xbf16, #tpu.memory_space<vmem>>, vector<1x16x128xbf16>
      %101 = vector.shape_cast %100 : vector<1x16x128xbf16> to vector<16x128xbf16>
      %102 = vector.shape_cast %99 : vector<16x128xbf16> to vector<1x16x128xbf16>
      tpu.vector_store %arg10[%c0_114, %c1_115, %c0_116], %102 {strides = array<i32>} : memref<18x18x128xbf16, #tpu.memory_space<vmem>>, vector<1x16x128xbf16>,
    } else {
    }
    %c0_i32_15 = arith.constant 0 : i32
    %19 = arith.cmpi eq, %arg1, %c0_i32_15 : i32
    %20 = arith.extui %19 : i1 to i32
    %c0_i32_16 = arith.constant 0 : i32
    %21 = arith.cmpi ne, %20, %c0_i32_16 : i32
    scf.if %21 {
      %cst_105 = arith.constant 0.000000e+00 : bf16
      %90 = vector.broadcast %cst_105 : bf16 to vector<18x128xbf16>
      %c0_106 = arith.constant 0 : index
      %c0_107 = arith.constant 0 : index
      %c0_108 = arith.constant 0 : index
      %91 = vector.load %arg10[%c0_106, %c0_107, %c0_108] : memref<18x18x128xbf16, #tpu.memory_space<vmem>>, vector<1x18x128xbf16>
      %92 = vector.shape_cast %91 : vector<1x18x128xbf16> to vector<18x128xbf16>
      %93 = vector.shape_cast %90 : vector<18x128xbf16> to vector<1x18x128xbf16>
      tpu.vector_store %arg10[%c0_106, %c0_107, %c0_108], %93 {strides = array<i32>} : memref<18x18x128xbf16, #tpu.memory_space<vmem>>, vector<1x18x128xbf16>,
    } else {
    }
    %22 = arith.extui %1 : i1 to i32
    %c0_i32_17 = arith.constant 0 : i32
    %23 = arith.cmpi ne, %22, %c0_i32_17 : i32
    scf.if %23 {
      %c1_i32 = arith.constant 1 : i32
      %90 = arith.addi %arg1, %c1_i32 : i32
      %c16_i32 = arith.constant 16 : i32
      %91 = arith.muli %90, %c16_i32 : i32
      %c1_i32_105 = arith.constant 1 : i32
      %c1_i32_106 = arith.constant 1 : i32
      %c0_i32_107 = arith.constant 0 : i32
      %c0_i32_108 = arith.constant 0 : i32
      %92 = tpu.memref_slice %arg3[%arg0, %91, %c0_i32_107, %c0_i32_108] : memref<2x16x16x128xbf16, #tpu.memory_space<any>> -> memref<1x1x16x128xbf16, #tpu.memory_space<any>>
      %93 = tpu.memref_squeeze %92 : memref<1x1x16x128xbf16, #tpu.memory_space<any>> -> memref<16x128xbf16, #tpu.memory_space<any>>
      %c0_i32_109 = arith.constant 0 : i32
      %c0_i32_110 = arith.constant 0 : i32
      %94 = tpu.memref_slice %arg11[%c1_i32_105, %c0_i32_109, %c0_i32_110] : memref<2x16x128xbf16, #tpu.memory_space<vmem>> -> memref<1x16x128xbf16, #tpu.memory_space<vmem>>
      %95 = tpu.memref_squeeze %94 : memref<1x16x128xbf16, #tpu.memory_space<vmem>> -> memref<16x128xbf16, #tpu.memory_space<vmem>>
      %96 = tpu.memref_slice %arg12[%c1_i32_106] : memref<2x!tpu.dma_semaphore, #tpu.memory_space<semaphore_mem>> -> memref<1x!tpu.dma_semaphore, #tpu.memory_space<semaphore_mem>>
      %97 = tpu.memref_squeeze %96 : memref<1x!tpu.dma_semaphore, #tpu.memory_space<semaphore_mem>> -> memref<!tpu.dma_semaphore, #tpu.memory_space<semaphore_mem>>
      tpu.wait_dma2 semaphore(%97 : memref<!tpu.dma_semaphore, #tpu.memory_space<semaphore_mem>>) src(%93 : memref<16x128xbf16, #tpu.memory_space<any>>) dst(%95 : memref<16x128xbf16, #tpu.memory_space<vmem>>)
      %c1_111 = arith.constant 1 : index
      %c0_112 = arith.constant 0 : index
      %c0_113 = arith.constant 0 : index
      %98 = vector.load %arg11[%c1_111, %c0_112, %c0_113] : memref<2x16x128xbf16, #tpu.memory_space<vmem>>, vector<1x16x128xbf16>
      %99 = vector.shape_cast %98 : vector<1x16x128xbf16> to vector<16x128xbf16>
      %c17_114 = arith.constant 17 : index
      %c1_115 = arith.constant 1 : index
      %c0_116 = arith.constant 0 : index
      %100 = vector.load %arg10[%c17_114, %c1_115, %c0_116] : memref<18x18x128xbf16, #tpu.memory_space<vmem>>, vector<1x16x128xbf16>
      %101 = vector.shape_cast %100 : vector<1x16x128xbf16> to vector<16x128xbf16>
      %102 = vector.shape_cast %99 : vector<16x128xbf16> to vector<1x16x128xbf16>
      tpu.vector_store %arg10[%c17_114, %c1_115, %c0_116], %102 {strides = array<i32>} : memref<18x18x128xbf16, #tpu.memory_space<vmem>>, vector<1x16x128xbf16>,
    } else {
    }
    %c0_i32_18 = arith.constant 0 : i32
    %24 = arith.cmpi eq, %arg1, %c0_i32_18 : i32
    %25 = arith.extui %24 : i1 to i32
    %c0_i32_19 = arith.constant 0 : i32
    %26 = arith.cmpi ne, %25, %c0_i32_19 : i32
    scf.if %26 {
      %cst_105 = arith.constant 0.000000e+00 : bf16
      %90 = vector.broadcast %cst_105 : bf16 to vector<18x128xbf16>
      %c17_106 = arith.constant 17 : index
      %c0_107 = arith.constant 0 : index
      %c0_108 = arith.constant 0 : index
      %91 = vector.load %arg10[%c17_106, %c0_107, %c0_108] : memref<18x18x128xbf16, #tpu.memory_space<vmem>>, vector<1x18x128xbf16>
      %92 = vector.shape_cast %91 : vector<1x18x128xbf16> to vector<18x128xbf16>
      %93 = vector.shape_cast %90 : vector<18x128xbf16> to vector<1x18x128xbf16>
      tpu.vector_store %arg10[%c17_106, %c0_107, %c0_108], %93 {strides = array<i32>} : memref<18x18x128xbf16, #tpu.memory_space<vmem>>, vector<1x18x128xbf16>,
    } else {
    }
    %c0_20 = arith.constant 0 : index
    %c0_21 = arith.constant 0 : index
    %c0_22 = arith.constant 0 : index
    %27 = vector.load %arg10[%c0_20, %c0_21, %c0_22] : memref<18x18x128xbf16, #tpu.memory_space<vmem>>, vector<16x16x128xbf16>
    %28 = vector.shape_cast %27 : vector<16x16x128xbf16> to vector<256x128xbf16>
    %c0_23 = arith.constant 0 : index
    %c0_24 = arith.constant 0 : index
    %c0_25 = arith.constant 0 : index
    %c0_26 = arith.constant 0 : index
    %29 = vector.load %arg4[%c0_23, %c0_24, %c0_25, %c0_26] : memref<3x3x128x128xbf16, #tpu.memory_space<vmem>>, vector<1x1x128x128xbf16>
    %30 = vector.shape_cast %29 : vector<1x1x128x128xbf16> to vector<128x128xbf16>
    %cst_27 = arith.constant dense<0.000000e+00> : vector<256x128xf32>
    %31 = tpu.matmul %28, %30, %cst_27 {dimension_numbers = #tpu.dot_dimension_numbers<[1], [0], [0], [1], [0, 0, 1, 1], [], []>} : vector<256x128xbf16>, vector<128x128xbf16>, vector<256x128xf32> -> vector<256x128xf32>
    %c0_28 = arith.constant 0 : index
    %c1_29 = arith.constant 1 : index
    %c0_30 = arith.constant 0 : index
    %32 = vector.load %arg10[%c0_28, %c1_29, %c0_30] : memref<18x18x128xbf16, #tpu.memory_space<vmem>>, vector<16x16x128xbf16>
    %33 = vector.shape_cast %32 : vector<16x16x128xbf16> to vector<256x128xbf16>
    %c0_31 = arith.constant 0 : index
    %c1_32 = arith.constant 1 : index
    %c0_33 = arith.constant 0 : index
    %c0_34 = arith.constant 0 : index
    %34 = vector.load %arg4[%c0_31, %c1_32, %c0_33, %c0_34] : memref<3x3x128x128xbf16, #tpu.memory_space<vmem>>, vector<1x1x128x128xbf16>
    %35 = vector.shape_cast %34 : vector<1x1x128x128xbf16> to vector<128x128xbf16>
    %cst_35 = arith.constant dense<0.000000e+00> : vector<256x128xf32>
    %36 = tpu.matmul %33, %35, %cst_35 {dimension_numbers = #tpu.dot_dimension_numbers<[1], [0], [0], [1], [0, 0, 1, 1], [], []>} : vector<256x128xbf16>, vector<128x128xbf16>, vector<256x128xf32> -> vector<256x128xf32>
    %37 = arith.addf %31, %36 : vector<256x128xf32>
    %c0_36 = arith.constant 0 : index
    %c2 = arith.constant 2 : index
    %c0_37 = arith.constant 0 : index
    %38 = vector.load %arg10[%c0_36, %c2, %c0_37] : memref<18x18x128xbf16, #tpu.memory_space<vmem>>, vector<16x16x128xbf16>
    %39 = vector.shape_cast %38 : vector<16x16x128xbf16> to vector<256x128xbf16>
    %c0_38 = arith.constant 0 : index
    %c2_39 = arith.constant 2 : index
    %c0_40 = arith.constant 0 : index
    %c0_41 = arith.constant 0 : index
    %40 = vector.load %arg4[%c0_38, %c2_39, %c0_40, %c0_41] : memref<3x3x128x128xbf16, #tpu.memory_space<vmem>>, vector<1x1x128x128xbf16>
    %41 = vector.shape_cast %40 : vector<1x1x128x128xbf16> to vector<128x128xbf16>
    %cst_42 = arith.constant dense<0.000000e+00> : vector<256x128xf32>
    %42 = tpu.matmul %39, %41, %cst_42 {dimension_numbers = #tpu.dot_dimension_numbers<[1], [0], [0], [1], [0, 0, 1, 1], [], []>} : vector<256x128xbf16>, vector<128x128xbf16>, vector<256x128xf32> -> vector<256x128xf32>
    %43 = arith.addf %37, %42 : vector<256x128xf32>
    %c1_43 = arith.constant 1 : index
    %c0_44 = arith.constant 0 : index
    %c0_45 = arith.constant 0 : index
    %44 = vector.load %arg10[%c1_43, %c0_44, %c0_45] : memref<18x18x128xbf16, #tpu.memory_space<vmem>>, vector<16x16x128xbf16>
    %45 = vector.shape_cast %44 : vector<16x16x128xbf16> to vector<256x128xbf16>
    %c1_46 = arith.constant 1 : index
    %c0_47 = arith.constant 0 : index
    %c0_48 = arith.constant 0 : index
    %c0_49 = arith.constant 0 : index
    %46 = vector.load %arg4[%c1_46, %c0_47, %c0_48, %c0_49] : memref<3x3x128x128xbf16, #tpu.memory_space<vmem>>, vector<1x1x128x128xbf16>
    %47 = vector.shape_cast %46 : vector<1x1x128x128xbf16> to vector<128x128xbf16>
    %cst_50 = arith.constant dense<0.000000e+00> : vector<256x128xf32>
    %48 = tpu.matmul %45, %47, %cst_50 {dimension_numbers = #tpu.dot_dimension_numbers<[1], [0], [0], [1], [0, 0, 1, 1], [], []>} : vector<256x128xbf16>, vector<128x128xbf16>, vector<256x128xf32> -> vector<256x128xf32>
    %49 = arith.addf %43, %48 : vector<256x128xf32>
    %c1_51 = arith.constant 1 : index
    %c1_52 = arith.constant 1 : index
    %c0_53 = arith.constant 0 : index
    %50 = vector.load %arg10[%c1_51, %c1_52, %c0_53] : memref<18x18x128xbf16, #tpu.memory_space<vmem>>, vector<16x16x128xbf16>
    %51 = vector.shape_cast %50 : vector<16x16x128xbf16> to vector<256x128xbf16>
    %c1_54 = arith.constant 1 : index
    %c1_55 = arith.constant 1 : index
    %c0_56 = arith.constant 0 : index
    %c0_57 = arith.constant 0 : index
    %52 = vector.load %arg4[%c1_54, %c1_55, %c0_56, %c0_57] : memref<3x3x128x128xbf16, #tpu.memory_space<vmem>>, vector<1x1x128x128xbf16>
    %53 = vector.shape_cast %52 : vector<1x1x128x128xbf16> to vector<128x128xbf16>
    %cst_58 = arith.constant dense<0.000000e+00> : vector<256x128xf32>
    %54 = tpu.matmul %51, %53, %cst_58 {dimension_numbers = #tpu.dot_dimension_numbers<[1], [0], [0], [1], [0, 0, 1, 1], [], []>} : vector<256x128xbf16>, vector<128x128xbf16>, vector<256x128xf32> -> vector<256x128xf32>
    %55 = arith.addf %49, %54 : vector<256x128xf32>
    %c1_59 = arith.constant 1 : index
    %c2_60 = arith.constant 2 : index
    %c0_61 = arith.constant 0 : index
    %56 = vector.load %arg10[%c1_59, %c2_60, %c0_61] : memref<18x18x128xbf16, #tpu.memory_space<vmem>>, vector<16x16x128xbf16>
    %57 = vector.shape_cast %56 : vector<16x16x128xbf16> to vector<256x128xbf16>
    %c1_62 = arith.constant 1 : index
    %c2_63 = arith.constant 2 : index
    %c0_64 = arith.constant 0 : index
    %c0_65 = arith.constant 0 : index
    %58 = vector.load %arg4[%c1_62, %c2_63, %c0_64, %c0_65] : memref<3x3x128x128xbf16, #tpu.memory_space<vmem>>, vector<1x1x128x128xbf16>
    %59 = vector.shape_cast %58 : vector<1x1x128x128xbf16> to vector<128x128xbf16>
    %cst_66 = arith.constant dense<0.000000e+00> : vector<256x128xf32>
    %60 = tpu.matmul %57, %59, %cst_66 {dimension_numbers = #tpu.dot_dimension_numbers<[1], [0], [0], [1], [0, 0, 1, 1], [], []>} : vector<256x128xbf16>, vector<128x128xbf16>, vector<256x128xf32> -> vector<256x128xf32>
    %61 = arith.addf %55, %60 : vector<256x128xf32>
    %c2_67 = arith.constant 2 : index
    %c0_68 = arith.constant 0 : index
    %c0_69 = arith.constant 0 : index
    %62 = vector.load %arg10[%c2_67, %c0_68, %c0_69] : memref<18x18x128xbf16, #tpu.memory_space<vmem>>, vector<16x16x128xbf16>
    %63 = vector.shape_cast %62 : vector<16x16x128xbf16> to vector<256x128xbf16>
    %c2_70 = arith.constant 2 : index
    %c0_71 = arith.constant 0 : index
    %c0_72 = arith.constant 0 : index
    %c0_73 = arith.constant 0 : index
    %64 = vector.load %arg4[%c2_70, %c0_71, %c0_72, %c0_73] : memref<3x3x128x128xbf16, #tpu.memory_space<vmem>>, vector<1x1x128x128xbf16>
    %65 = vector.shape_cast %64 : vector<1x1x128x128xbf16> to vector<128x128xbf16>
    %cst_74 = arith.constant dense<0.000000e+00> : vector<256x128xf32>
    %66 = tpu.matmul %63, %65, %cst_74 {dimension_numbers = #tpu.dot_dimension_numbers<[1], [0], [0], [1], [0, 0, 1, 1], [], []>} : vector<256x128xbf16>, vector<128x128xbf16>, vector<256x128xf32> -> vector<256x128xf32>
    %67 = arith.addf %61, %66 : vector<256x128xf32>
    %c2_75 = arith.constant 2 : index
    %c1_76 = arith.constant 1 : index
    %c0_77 = arith.constant 0 : index
    %68 = vector.load %arg10[%c2_75, %c1_76, %c0_77] : memref<18x18x128xbf16, #tpu.memory_space<vmem>>, vector<16x16x128xbf16>
    %69 = vector.shape_cast %68 : vector<16x16x128xbf16> to vector<256x128xbf16>
    %c2_78 = arith.constant 2 : index
    %c1_79 = arith.constant 1 : index
    %c0_80 = arith.constant 0 : index
    %c0_81 = arith.constant 0 : index
    %70 = vector.load %arg4[%c2_78, %c1_79, %c0_80, %c0_81] : memref<3x3x128x128xbf16, #tpu.memory_space<vmem>>, vector<1x1x128x128xbf16>
    %71 = vector.shape_cast %70 : vector<1x1x128x128xbf16> to vector<128x128xbf16>
    %cst_82 = arith.constant dense<0.000000e+00> : vector<256x128xf32>
    %72 = tpu.matmul %69, %71, %cst_82 {dimension_numbers = #tpu.dot_dimension_numbers<[1], [0], [0], [1], [0, 0, 1, 1], [], []>} : vector<256x128xbf16>, vector<128x128xbf16>, vector<256x128xf32> -> vector<256x128xf32>
    %73 = arith.addf %67, %72 : vector<256x128xf32>
    %c2_83 = arith.constant 2 : index
    %c2_84 = arith.constant 2 : index
    %c0_85 = arith.constant 0 : index
    %74 = vector.load %arg10[%c2_83, %c2_84, %c0_85] : memref<18x18x128xbf16, #tpu.memory_space<vmem>>, vector<16x16x128xbf16>
    %75 = vector.shape_cast %74 : vector<16x16x128xbf16> to vector<256x128xbf16>
    %c2_86 = arith.constant 2 : index
    %c2_87 = arith.constant 2 : index
    %c0_88 = arith.constant 0 : index
    %c0_89 = arith.constant 0 : index
    %76 = vector.load %arg4[%c2_86, %c2_87, %c0_88, %c0_89] : memref<3x3x128x128xbf16, #tpu.memory_space<vmem>>, vector<1x1x128x128xbf16>
    %77 = vector.shape_cast %76 : vector<1x1x128x128xbf16> to vector<128x128xbf16>
    %cst_90 = arith.constant dense<0.000000e+00> : vector<256x128xf32>
    %78 = tpu.matmul %75, %77, %cst_90 {dimension_numbers = #tpu.dot_dimension_numbers<[1], [0], [0], [1], [0, 0, 1, 1], [], []>} : vector<256x128xbf16>, vector<128x128xbf16>, vector<256x128xf32> -> vector<256x128xf32>
    %79 = arith.addf %73, %78 : vector<256x128xf32>
    %80 = vector.shape_cast %79 : vector<256x128xf32> to vector<1x16x16x128xf32>
    %81 = arith.truncf %80 : vector<1x16x16x128xf32> to vector<1x16x16x128xbf16>
    %c0_91 = arith.constant 0 : index
    %c0_92 = arith.constant 0 : index
    %c0_93 = arith.constant 0 : index
    %c0_94 = arith.constant 0 : index
    %82 = vector.load %arg7[%c0_91, %c0_92, %c0_93, %c0_94] : memref<1x16x16x128xbf16, #tpu.memory_space<vmem>>, vector<1x16x16x128xbf16>
    tpu.vector_store %arg7[%c0_91, %c0_92, %c0_93, %c0_94], %81 {strides = array<i32>} : memref<1x16x16x128xbf16, #tpu.memory_space<vmem>>, vector<1x16x16x128xbf16>,
    %cst_95 = arith.constant dense<0.000000e+00> : vector<128xf32>
    %83 = vector.multi_reduction <add>, %79, %cst_95 [0] : vector<256x128xf32> to vector<128xf32>
    %84 = vector.shape_cast %83 : vector<128xf32> to vector<1x1x1x128xf32>
    %c0_96 = arith.constant 0 : index
    %c0_97 = arith.constant 0 : index
    %c0_98 = arith.constant 0 : index
    %c0_99 = arith.constant 0 : index
    %85 = vector.load %arg8[%c0_96, %c0_97, %c0_98, %c0_99] : memref<1x1x1x128xf32, #tpu.memory_space<vmem>>, vector<1x1x1x128xf32>
    tpu.vector_store %arg8[%c0_96, %c0_97, %c0_98, %c0_99], %84 {strides = array<i32>} : memref<1x1x1x128xf32, #tpu.memory_space<vmem>>, vector<1x1x1x128xf32>,
    %86 = arith.mulf %79, %79 : vector<256x128xf32>
    %cst_100 = arith.constant dense<0.000000e+00> : vector<128xf32>
    %87 = vector.multi_reduction <add>, %86, %cst_100 [0] : vector<256x128xf32> to vector<128xf32>
    %88 = vector.shape_cast %87 : vector<128xf32> to vector<1x1x1x128xf32>
    %c0_101 = arith.constant 0 : index
    %c0_102 = arith.constant 0 : index
    %c0_103 = arith.constant 0 : index
    %c0_104 = arith.constant 0 : index
    %89 = vector.load %arg9[%c0_101, %c0_102, %c0_103, %c0_104] : memref<1x1x1x128xf32, #tpu.memory_space<vmem>>, vector<1x1x1x128xf32>
    tpu.vector_store %arg9[%c0_101, %c0_102, %c0_103, %c0_104], %88 {strides = array<i32>} : memref<1x1x1x128xf32, #tpu.memory_space<vmem>>, vector<1x1x1x128xf32>,
    return
  }
  func.func @transform_0(%arg0: i32, %arg1: i32) -> (i32, i32, i32, i32) {
    %c0_i32 = arith.constant 0 : i32
    %c0_i32_0 = arith.constant 0 : i32
    %c0_i32_1 = arith.constant 0 : i32
    return %arg0, %arg1, %c0_i32, %c0_i32_0 : i32, i32, i32, i32
  }
  func.func @transform_2(%arg0: i32, %arg1: i32) -> (i32, i32, i32, i32) {
    %c0_i32 = arith.constant 0 : i32
    %c0_i32_0 = arith.constant 0 : i32
    %c0_i32_1 = arith.constant 0 : i32
    %c0_i32_2 = arith.constant 0 : i32
    %c0_i32_3 = arith.constant 0 : i32
    return %c0_i32, %c0_i32_0, %c0_i32_1, %c0_i32_2 : i32, i32, i32, i32
  }
  func.func @transform_3(%arg0: i32, %arg1: i32) -> (i32, i32) {
    %c0_i32 = arith.constant 0 : i32
    %c0_i32_0 = arith.constant 0 : i32
    %c0_i32_1 = arith.constant 0 : i32
    return %c0_i32, %c0_i32_0 : i32, i32
  }
  func.func @transform_4(%arg0: i32, %arg1: i32) -> (i32, i32) {
    %c0_i32 = arith.constant 0 : i32
    %c0_i32_0 = arith.constant 0 : i32
    %c0_i32_1 = arith.constant 0 : i32
    return %c0_i32, %c0_i32_0 : i32, i32
  }
  func.func @transform_5(%arg0: i32, %arg1: i32) -> (i32, i32, i32, i32) {
    %c0_i32 = arith.constant 0 : i32
    %c0_i32_0 = arith.constant 0 : i32
    %c0_i32_1 = arith.constant 0 : i32
    return %arg0, %arg1, %c0_i32, %c0_i32_0 : i32, i32, i32, i32
  }
  func.func @transform_6(%arg0: i32, %arg1: i32) -> (i32, i32, i32, i32) {
    %c0_i32 = arith.constant 0 : i32
    %c0_i32_0 = arith.constant 0 : i32
    %c0_i32_1 = arith.constant 0 : i32
    return %arg0, %arg1, %c0_i32, %c0_i32_0 : i32, i32, i32, i32
  }
  func.func @transform_7(%arg0: i32, %arg1: i32) -> (i32, i32, i32, i32) {
    %c0_i32 = arith.constant 0 : i32
    %c0_i32_0 = arith.constant 0 : i32
    %c0_i32_1 = arith.constant 0 : i32
    return %arg0, %arg1, %c0_i32, %c0_i32_0 : i32, i32, i32, i32
  }
}

module attributes {stable_mosaic.version = 11 : i64} {
  func.func @_conv3x3_stats_kernel(%arg0: i32, %arg1: i32, %arg2: memref<1x16x16x128xbf16, #tpu.memory_space<vmem>>, %arg3: memref<2x16x16x128xbf16, #tpu.memory_space<any>>, %arg4: memref<3x3x128x128xbf16, #tpu.memory_space<vmem>>, %arg5: memref<1x128xf32, #tpu.memory_space<vmem>>, %arg6: memref<1x128xf32, #tpu.memory_space<vmem>>, %arg7: memref<1x16x16x128xbf16, #tpu.memory_space<vmem>>, %arg8: memref<1x1x1x128xf32, #tpu.memory_space<vmem>>, %arg9: memref<1x1x1x128xf32, #tpu.memory_space<vmem>>, %arg10: memref<18x18x128xbf16, #tpu.memory_space<vmem>>, %arg11: memref<2x16x128xbf16, #tpu.memory_space<vmem>>, %arg12: memref<2x!tpu.dma_semaphore, #tpu.memory_space<semaphore_mem>>) attributes {dimension_semantics = [#tpu.dimension_semantics<parallel>, #tpu.dimension_semantics<parallel>], iteration_bounds = array<i64: 2, 1>, scalar_prefetch = 0 : i64, scratch_operands = 3 : i64, tpu.core_type = #tpu.core_type<tc>, window_params = [{transform_indices = @transform_0, window_bounds = array<i64: 1, 16, 16, 128>}, {}, {pipeline_mode = #tpu.pipeline_mode<synchronous>, transform_indices = @transform_2, window_bounds = array<i64: 3, 3, 128, 128>}, {pipeline_mode = #tpu.pipeline_mode<synchronous>, transform_indices = @transform_3, window_bounds = array<i64: 1, 128>}, {pipeline_mode = #tpu.pipeline_mode<synchronous>, transform_indices = @transform_4, window_bounds = array<i64: 1, 128>}, {transform_indices = @transform_5, window_bounds = array<i64: 1, 16, 16, 128>}, {transform_indices = @transform_6, window_bounds = array<i64: 1, 1, 1, 128>}, {transform_indices = @transform_7, window_bounds = array<i64: 1, 1, 1, 128>}]} {
    %c0 = arith.constant 0 : index
    %c0_0 = arith.constant 0 : index
    %0 = vector.load %arg5[%c0, %c0_0] : memref<1x128xf32, #tpu.memory_space<vmem>>, vector<1x128xf32>
    %1 = vector.shape_cast %0 : vector<1x128xf32> to vector<128xf32>
    %c0_1 = arith.constant 0 : index
    %c0_2 = arith.constant 0 : index
    %2 = vector.load %arg6[%c0_1, %c0_2] : memref<1x128xf32, #tpu.memory_space<vmem>>, vector<1x128xf32>
    %3 = vector.shape_cast %2 : vector<1x128xf32> to vector<128xf32>
    %c0_i32 = arith.constant 0 : i32
    %4 = arith.cmpi sgt, %arg1, %c0_i32 : i32
    %c0_i32_3 = arith.constant 0 : i32
    %5 = arith.cmpi slt, %arg1, %c0_i32_3 : i32
    %6 = arith.extui %4 : i1 to i32
    %c0_i32_4 = arith.constant 0 : i32
    %7 = arith.cmpi ne, %6, %c0_i32_4 : i32
    scf.if %7 {
      %c16_i32 = arith.constant 16 : i32
      %104 = arith.muli %arg1, %c16_i32 : i32
      %c1_i32 = arith.constant 1 : i32
      %105 = arith.subi %104, %c1_i32 : i32
      %c0_i32_110 = arith.constant 0 : i32
      %c0_i32_111 = arith.constant 0 : i32
      %c0_i32_112 = arith.constant 0 : i32
      %c0_i32_113 = arith.constant 0 : i32
      %106 = tpu.memref_slice %arg3[%arg0, %105, %c0_i32_112, %c0_i32_113] : memref<2x16x16x128xbf16, #tpu.memory_space<any>> -> memref<1x1x16x128xbf16, #tpu.memory_space<any>>
      %107 = tpu.memref_squeeze %106 : memref<1x1x16x128xbf16, #tpu.memory_space<any>> -> memref<16x128xbf16, #tpu.memory_space<any>>
      %c0_i32_114 = arith.constant 0 : i32
      %c0_i32_115 = arith.constant 0 : i32
      %108 = tpu.memref_slice %arg11[%c0_i32_110, %c0_i32_114, %c0_i32_115] : memref<2x16x128xbf16, #tpu.memory_space<vmem>> -> memref<1x16x128xbf16, #tpu.memory_space<vmem>>
      %109 = tpu.memref_squeeze %108 : memref<1x16x128xbf16, #tpu.memory_space<vmem>> -> memref<16x128xbf16, #tpu.memory_space<vmem>>
      %110 = tpu.memref_slice %arg12[%c0_i32_111] : memref<2x!tpu.dma_semaphore, #tpu.memory_space<semaphore_mem>> -> memref<1x!tpu.dma_semaphore, #tpu.memory_space<semaphore_mem>>
      %111 = tpu.memref_squeeze %110 : memref<1x!tpu.dma_semaphore, #tpu.memory_space<semaphore_mem>> -> memref<!tpu.dma_semaphore, #tpu.memory_space<semaphore_mem>>
      tpu.enqueue_dma source(%107 : memref<16x128xbf16, #tpu.memory_space<any>>) target(%109 : memref<16x128xbf16, #tpu.memory_space<vmem>>) target_semaphore(%111 : memref<!tpu.dma_semaphore, #tpu.memory_space<semaphore_mem>>)
    } else {
    }
    %8 = arith.extui %5 : i1 to i32
    %c0_i32_5 = arith.constant 0 : i32
    %9 = arith.cmpi ne, %8, %c0_i32_5 : i32
    scf.if %9 {
      %c1_i32 = arith.constant 1 : i32
      %104 = arith.addi %arg1, %c1_i32 : i32
      %c16_i32 = arith.constant 16 : i32
      %105 = arith.muli %104, %c16_i32 : i32
      %c1_i32_110 = arith.constant 1 : i32
      %c1_i32_111 = arith.constant 1 : i32
      %c0_i32_112 = arith.constant 0 : i32
      %c0_i32_113 = arith.constant 0 : i32
      %106 = tpu.memref_slice %arg3[%arg0, %105, %c0_i32_112, %c0_i32_113] : memref<2x16x16x128xbf16, #tpu.memory_space<any>> -> memref<1x1x16x128xbf16, #tpu.memory_space<any>>
      %107 = tpu.memref_squeeze %106 : memref<1x1x16x128xbf16, #tpu.memory_space<any>> -> memref<16x128xbf16, #tpu.memory_space<any>>
      %c0_i32_114 = arith.constant 0 : i32
      %c0_i32_115 = arith.constant 0 : i32
      %108 = tpu.memref_slice %arg11[%c1_i32_110, %c0_i32_114, %c0_i32_115] : memref<2x16x128xbf16, #tpu.memory_space<vmem>> -> memref<1x16x128xbf16, #tpu.memory_space<vmem>>
      %109 = tpu.memref_squeeze %108 : memref<1x16x128xbf16, #tpu.memory_space<vmem>> -> memref<16x128xbf16, #tpu.memory_space<vmem>>
      %110 = tpu.memref_slice %arg12[%c1_i32_111] : memref<2x!tpu.dma_semaphore, #tpu.memory_space<semaphore_mem>> -> memref<1x!tpu.dma_semaphore, #tpu.memory_space<semaphore_mem>>
      %111 = tpu.memref_squeeze %110 : memref<1x!tpu.dma_semaphore, #tpu.memory_space<semaphore_mem>> -> memref<!tpu.dma_semaphore, #tpu.memory_space<semaphore_mem>>
      tpu.enqueue_dma source(%107 : memref<16x128xbf16, #tpu.memory_space<any>>) target(%109 : memref<16x128xbf16, #tpu.memory_space<vmem>>) target_semaphore(%111 : memref<!tpu.dma_semaphore, #tpu.memory_space<semaphore_mem>>)
    } else {
    }
    %c0_6 = arith.constant 0 : index
    %c0_7 = arith.constant 0 : index
    %c0_8 = arith.constant 0 : index
    %c0_9 = arith.constant 0 : index
    %10 = vector.load %arg2[%c0_6, %c0_7, %c0_8, %c0_9] : memref<1x16x16x128xbf16, #tpu.memory_space<vmem>>, vector<1x16x16x128xbf16>
    %11 = vector.shape_cast %10 : vector<1x16x16x128xbf16> to vector<16x16x128xbf16>
    %12 = arith.extf %11 : vector<16x16x128xbf16> to vector<16x16x128xf32>
    %13 = vector.shape_cast %1 : vector<128xf32> to vector<1x1x128xf32>
    %14 = vector.broadcast %13 : vector<1x1x128xf32> to vector<16x16x128xf32>
    %15 = arith.mulf %12, %14 : vector<16x16x128xf32>
    %16 = vector.shape_cast %3 : vector<128xf32> to vector<1x1x128xf32>
    %17 = vector.broadcast %16 : vector<1x1x128xf32> to vector<16x16x128xf32>
    %18 = arith.addf %15, %17 : vector<16x16x128xf32>
    %cst = arith.constant 0.000000e+00 : f32
    %19 = vector.broadcast %cst : f32 to vector<16x16x128xf32>
    %20 = arith.maximumf %18, %19 : vector<16x16x128xf32>
    %21 = arith.truncf %20 : vector<16x16x128xf32> to vector<16x16x128xbf16>
    %c1 = arith.constant 1 : index
    %c1_10 = arith.constant 1 : index
    %c0_11 = arith.constant 0 : index
    %22 = vector.load %arg10[%c1, %c1_10, %c0_11] : memref<18x18x128xbf16, #tpu.memory_space<vmem>>, vector<16x16x128xbf16>
    tpu.vector_store %arg10[%c1, %c1_10, %c0_11], %21 {strides = array<i32>} : memref<18x18x128xbf16, #tpu.memory_space<vmem>>, vector<16x16x128xbf16>,
    %cst_12 = arith.constant 0.000000e+00 : bf16
    %23 = vector.broadcast %cst_12 : bf16 to vector<18x128xbf16>
    %c0_13 = arith.constant 0 : index
    %c0_14 = arith.constant 0 : index
    %c0_15 = arith.constant 0 : index
    %24 = vector.load %arg10[%c0_13, %c0_14, %c0_15] : memref<18x18x128xbf16, #tpu.memory_space<vmem>>, vector<18x1x128xbf16>
    %25 = vector.shape_cast %24 : vector<18x1x128xbf16> to vector<18x128xbf16>
    %26 = vector.shape_cast %23 : vector<18x128xbf16> to vector<18x1x128xbf16>
    tpu.vector_store %arg10[%c0_13, %c0_14, %c0_15], %26 {strides = array<i32>} : memref<18x18x128xbf16, #tpu.memory_space<vmem>>, vector<18x1x128xbf16>,
    %cst_16 = arith.constant 0.000000e+00 : bf16
    %27 = vector.broadcast %cst_16 : bf16 to vector<18x128xbf16>
    %c0_17 = arith.constant 0 : index
    %c17 = arith.constant 17 : index
    %c0_18 = arith.constant 0 : index
    %28 = vector.load %arg10[%c0_17, %c17, %c0_18] : memref<18x18x128xbf16, #tpu.memory_space<vmem>>, vector<18x1x128xbf16>
    %29 = vector.shape_cast %28 : vector<18x1x128xbf16> to vector<18x128xbf16>
    %30 = vector.shape_cast %27 : vector<18x128xbf16> to vector<18x1x128xbf16>
    tpu.vector_store %arg10[%c0_17, %c17, %c0_18], %30 {strides = array<i32>} : memref<18x18x128xbf16, #tpu.memory_space<vmem>>, vector<18x1x128xbf16>,
    %31 = arith.extui %4 : i1 to i32
    %c0_i32_19 = arith.constant 0 : i32
    %32 = arith.cmpi ne, %31, %c0_i32_19 : i32
    scf.if %32 {
      %c16_i32 = arith.constant 16 : i32
      %104 = arith.muli %arg1, %c16_i32 : i32
      %c1_i32 = arith.constant 1 : i32
      %105 = arith.subi %104, %c1_i32 : i32
      %c0_i32_110 = arith.constant 0 : i32
      %c0_i32_111 = arith.constant 0 : i32
      %c0_i32_112 = arith.constant 0 : i32
      %c0_i32_113 = arith.constant 0 : i32
      %106 = tpu.memref_slice %arg3[%arg0, %105, %c0_i32_112, %c0_i32_113] : memref<2x16x16x128xbf16, #tpu.memory_space<any>> -> memref<1x1x16x128xbf16, #tpu.memory_space<any>>
      %107 = tpu.memref_squeeze %106 : memref<1x1x16x128xbf16, #tpu.memory_space<any>> -> memref<16x128xbf16, #tpu.memory_space<any>>
      %c0_i32_114 = arith.constant 0 : i32
      %c0_i32_115 = arith.constant 0 : i32
      %108 = tpu.memref_slice %arg11[%c0_i32_110, %c0_i32_114, %c0_i32_115] : memref<2x16x128xbf16, #tpu.memory_space<vmem>> -> memref<1x16x128xbf16, #tpu.memory_space<vmem>>
      %109 = tpu.memref_squeeze %108 : memref<1x16x128xbf16, #tpu.memory_space<vmem>> -> memref<16x128xbf16, #tpu.memory_space<vmem>>
      %110 = tpu.memref_slice %arg12[%c0_i32_111] : memref<2x!tpu.dma_semaphore, #tpu.memory_space<semaphore_mem>> -> memref<1x!tpu.dma_semaphore, #tpu.memory_space<semaphore_mem>>
      %111 = tpu.memref_squeeze %110 : memref<1x!tpu.dma_semaphore, #tpu.memory_space<semaphore_mem>> -> memref<!tpu.dma_semaphore, #tpu.memory_space<semaphore_mem>>
      tpu.wait_dma2 semaphore(%111 : memref<!tpu.dma_semaphore, #tpu.memory_space<semaphore_mem>>) src(%107 : memref<16x128xbf16, #tpu.memory_space<any>>) dst(%109 : memref<16x128xbf16, #tpu.memory_space<vmem>>)
      %c0_116 = arith.constant 0 : index
      %c0_117 = arith.constant 0 : index
      %c0_118 = arith.constant 0 : index
      %112 = vector.load %arg11[%c0_116, %c0_117, %c0_118] : memref<2x16x128xbf16, #tpu.memory_space<vmem>>, vector<1x16x128xbf16>
      %113 = vector.shape_cast %112 : vector<1x16x128xbf16> to vector<16x128xbf16>
      %114 = arith.extf %113 : vector<16x128xbf16> to vector<16x128xf32>
      %115 = vector.shape_cast %1 : vector<128xf32> to vector<1x128xf32>
      %116 = vector.broadcast %115 : vector<1x128xf32> to vector<16x128xf32>
      %117 = arith.mulf %114, %116 : vector<16x128xf32>
      %118 = vector.shape_cast %3 : vector<128xf32> to vector<1x128xf32>
      %119 = vector.broadcast %118 : vector<1x128xf32> to vector<16x128xf32>
      %120 = arith.addf %117, %119 : vector<16x128xf32>
      %cst_119 = arith.constant 0.000000e+00 : f32
      %121 = vector.broadcast %cst_119 : f32 to vector<16x128xf32>
      %122 = arith.maximumf %120, %121 : vector<16x128xf32>
      %123 = arith.truncf %122 : vector<16x128xf32> to vector<16x128xbf16>
      %c0_120 = arith.constant 0 : index
      %c1_121 = arith.constant 1 : index
      %c0_122 = arith.constant 0 : index
      %124 = vector.load %arg10[%c0_120, %c1_121, %c0_122] : memref<18x18x128xbf16, #tpu.memory_space<vmem>>, vector<1x16x128xbf16>
      %125 = vector.shape_cast %124 : vector<1x16x128xbf16> to vector<16x128xbf16>
      %126 = vector.shape_cast %123 : vector<16x128xbf16> to vector<1x16x128xbf16>
      tpu.vector_store %arg10[%c0_120, %c1_121, %c0_122], %126 {strides = array<i32>} : memref<18x18x128xbf16, #tpu.memory_space<vmem>>, vector<1x16x128xbf16>,
    } else {
    }
    %c0_i32_20 = arith.constant 0 : i32
    %33 = arith.cmpi eq, %arg1, %c0_i32_20 : i32
    %34 = arith.extui %33 : i1 to i32
    %c0_i32_21 = arith.constant 0 : i32
    %35 = arith.cmpi ne, %34, %c0_i32_21 : i32
    scf.if %35 {
      %cst_110 = arith.constant 0.000000e+00 : bf16
      %104 = vector.broadcast %cst_110 : bf16 to vector<18x128xbf16>
      %c0_111 = arith.constant 0 : index
      %c0_112 = arith.constant 0 : index
      %c0_113 = arith.constant 0 : index
      %105 = vector.load %arg10[%c0_111, %c0_112, %c0_113] : memref<18x18x128xbf16, #tpu.memory_space<vmem>>, vector<1x18x128xbf16>
      %106 = vector.shape_cast %105 : vector<1x18x128xbf16> to vector<18x128xbf16>
      %107 = vector.shape_cast %104 : vector<18x128xbf16> to vector<1x18x128xbf16>
      tpu.vector_store %arg10[%c0_111, %c0_112, %c0_113], %107 {strides = array<i32>} : memref<18x18x128xbf16, #tpu.memory_space<vmem>>, vector<1x18x128xbf16>,
    } else {
    }
    %36 = arith.extui %5 : i1 to i32
    %c0_i32_22 = arith.constant 0 : i32
    %37 = arith.cmpi ne, %36, %c0_i32_22 : i32
    scf.if %37 {
      %c1_i32 = arith.constant 1 : i32
      %104 = arith.addi %arg1, %c1_i32 : i32
      %c16_i32 = arith.constant 16 : i32
      %105 = arith.muli %104, %c16_i32 : i32
      %c1_i32_110 = arith.constant 1 : i32
      %c1_i32_111 = arith.constant 1 : i32
      %c0_i32_112 = arith.constant 0 : i32
      %c0_i32_113 = arith.constant 0 : i32
      %106 = tpu.memref_slice %arg3[%arg0, %105, %c0_i32_112, %c0_i32_113] : memref<2x16x16x128xbf16, #tpu.memory_space<any>> -> memref<1x1x16x128xbf16, #tpu.memory_space<any>>
      %107 = tpu.memref_squeeze %106 : memref<1x1x16x128xbf16, #tpu.memory_space<any>> -> memref<16x128xbf16, #tpu.memory_space<any>>
      %c0_i32_114 = arith.constant 0 : i32
      %c0_i32_115 = arith.constant 0 : i32
      %108 = tpu.memref_slice %arg11[%c1_i32_110, %c0_i32_114, %c0_i32_115] : memref<2x16x128xbf16, #tpu.memory_space<vmem>> -> memref<1x16x128xbf16, #tpu.memory_space<vmem>>
      %109 = tpu.memref_squeeze %108 : memref<1x16x128xbf16, #tpu.memory_space<vmem>> -> memref<16x128xbf16, #tpu.memory_space<vmem>>
      %110 = tpu.memref_slice %arg12[%c1_i32_111] : memref<2x!tpu.dma_semaphore, #tpu.memory_space<semaphore_mem>> -> memref<1x!tpu.dma_semaphore, #tpu.memory_space<semaphore_mem>>
      %111 = tpu.memref_squeeze %110 : memref<1x!tpu.dma_semaphore, #tpu.memory_space<semaphore_mem>> -> memref<!tpu.dma_semaphore, #tpu.memory_space<semaphore_mem>>
      tpu.wait_dma2 semaphore(%111 : memref<!tpu.dma_semaphore, #tpu.memory_space<semaphore_mem>>) src(%107 : memref<16x128xbf16, #tpu.memory_space<any>>) dst(%109 : memref<16x128xbf16, #tpu.memory_space<vmem>>)
      %c1_116 = arith.constant 1 : index
      %c0_117 = arith.constant 0 : index
      %c0_118 = arith.constant 0 : index
      %112 = vector.load %arg11[%c1_116, %c0_117, %c0_118] : memref<2x16x128xbf16, #tpu.memory_space<vmem>>, vector<1x16x128xbf16>
      %113 = vector.shape_cast %112 : vector<1x16x128xbf16> to vector<16x128xbf16>
      %114 = arith.extf %113 : vector<16x128xbf16> to vector<16x128xf32>
      %115 = vector.shape_cast %1 : vector<128xf32> to vector<1x128xf32>
      %116 = vector.broadcast %115 : vector<1x128xf32> to vector<16x128xf32>
      %117 = arith.mulf %114, %116 : vector<16x128xf32>
      %118 = vector.shape_cast %3 : vector<128xf32> to vector<1x128xf32>
      %119 = vector.broadcast %118 : vector<1x128xf32> to vector<16x128xf32>
      %120 = arith.addf %117, %119 : vector<16x128xf32>
      %cst_119 = arith.constant 0.000000e+00 : f32
      %121 = vector.broadcast %cst_119 : f32 to vector<16x128xf32>
      %122 = arith.maximumf %120, %121 : vector<16x128xf32>
      %123 = arith.truncf %122 : vector<16x128xf32> to vector<16x128xbf16>
      %c17_120 = arith.constant 17 : index
      %c1_121 = arith.constant 1 : index
      %c0_122 = arith.constant 0 : index
      %124 = vector.load %arg10[%c17_120, %c1_121, %c0_122] : memref<18x18x128xbf16, #tpu.memory_space<vmem>>, vector<1x16x128xbf16>
      %125 = vector.shape_cast %124 : vector<1x16x128xbf16> to vector<16x128xbf16>
      %126 = vector.shape_cast %123 : vector<16x128xbf16> to vector<1x16x128xbf16>
      tpu.vector_store %arg10[%c17_120, %c1_121, %c0_122], %126 {strides = array<i32>} : memref<18x18x128xbf16, #tpu.memory_space<vmem>>, vector<1x16x128xbf16>,
    } else {
    }
    %c0_i32_23 = arith.constant 0 : i32
    %38 = arith.cmpi eq, %arg1, %c0_i32_23 : i32
    %39 = arith.extui %38 : i1 to i32
    %c0_i32_24 = arith.constant 0 : i32
    %40 = arith.cmpi ne, %39, %c0_i32_24 : i32
    scf.if %40 {
      %cst_110 = arith.constant 0.000000e+00 : bf16
      %104 = vector.broadcast %cst_110 : bf16 to vector<18x128xbf16>
      %c17_111 = arith.constant 17 : index
      %c0_112 = arith.constant 0 : index
      %c0_113 = arith.constant 0 : index
      %105 = vector.load %arg10[%c17_111, %c0_112, %c0_113] : memref<18x18x128xbf16, #tpu.memory_space<vmem>>, vector<1x18x128xbf16>
      %106 = vector.shape_cast %105 : vector<1x18x128xbf16> to vector<18x128xbf16>
      %107 = vector.shape_cast %104 : vector<18x128xbf16> to vector<1x18x128xbf16>
      tpu.vector_store %arg10[%c17_111, %c0_112, %c0_113], %107 {strides = array<i32>} : memref<18x18x128xbf16, #tpu.memory_space<vmem>>, vector<1x18x128xbf16>,
    } else {
    }
    %c0_25 = arith.constant 0 : index
    %c0_26 = arith.constant 0 : index
    %c0_27 = arith.constant 0 : index
    %41 = vector.load %arg10[%c0_25, %c0_26, %c0_27] : memref<18x18x128xbf16, #tpu.memory_space<vmem>>, vector<16x16x128xbf16>
    %42 = vector.shape_cast %41 : vector<16x16x128xbf16> to vector<256x128xbf16>
    %c0_28 = arith.constant 0 : index
    %c0_29 = arith.constant 0 : index
    %c0_30 = arith.constant 0 : index
    %c0_31 = arith.constant 0 : index
    %43 = vector.load %arg4[%c0_28, %c0_29, %c0_30, %c0_31] : memref<3x3x128x128xbf16, #tpu.memory_space<vmem>>, vector<1x1x128x128xbf16>
    %44 = vector.shape_cast %43 : vector<1x1x128x128xbf16> to vector<128x128xbf16>
    %cst_32 = arith.constant dense<0.000000e+00> : vector<256x128xf32>
    %45 = tpu.matmul %42, %44, %cst_32 {dimension_numbers = #tpu.dot_dimension_numbers<[1], [0], [0], [1], [0, 0, 1, 1], [], []>} : vector<256x128xbf16>, vector<128x128xbf16>, vector<256x128xf32> -> vector<256x128xf32>
    %c0_33 = arith.constant 0 : index
    %c1_34 = arith.constant 1 : index
    %c0_35 = arith.constant 0 : index
    %46 = vector.load %arg10[%c0_33, %c1_34, %c0_35] : memref<18x18x128xbf16, #tpu.memory_space<vmem>>, vector<16x16x128xbf16>
    %47 = vector.shape_cast %46 : vector<16x16x128xbf16> to vector<256x128xbf16>
    %c0_36 = arith.constant 0 : index
    %c1_37 = arith.constant 1 : index
    %c0_38 = arith.constant 0 : index
    %c0_39 = arith.constant 0 : index
    %48 = vector.load %arg4[%c0_36, %c1_37, %c0_38, %c0_39] : memref<3x3x128x128xbf16, #tpu.memory_space<vmem>>, vector<1x1x128x128xbf16>
    %49 = vector.shape_cast %48 : vector<1x1x128x128xbf16> to vector<128x128xbf16>
    %cst_40 = arith.constant dense<0.000000e+00> : vector<256x128xf32>
    %50 = tpu.matmul %47, %49, %cst_40 {dimension_numbers = #tpu.dot_dimension_numbers<[1], [0], [0], [1], [0, 0, 1, 1], [], []>} : vector<256x128xbf16>, vector<128x128xbf16>, vector<256x128xf32> -> vector<256x128xf32>
    %51 = arith.addf %45, %50 : vector<256x128xf32>
    %c0_41 = arith.constant 0 : index
    %c2 = arith.constant 2 : index
    %c0_42 = arith.constant 0 : index
    %52 = vector.load %arg10[%c0_41, %c2, %c0_42] : memref<18x18x128xbf16, #tpu.memory_space<vmem>>, vector<16x16x128xbf16>
    %53 = vector.shape_cast %52 : vector<16x16x128xbf16> to vector<256x128xbf16>
    %c0_43 = arith.constant 0 : index
    %c2_44 = arith.constant 2 : index
    %c0_45 = arith.constant 0 : index
    %c0_46 = arith.constant 0 : index
    %54 = vector.load %arg4[%c0_43, %c2_44, %c0_45, %c0_46] : memref<3x3x128x128xbf16, #tpu.memory_space<vmem>>, vector<1x1x128x128xbf16>
    %55 = vector.shape_cast %54 : vector<1x1x128x128xbf16> to vector<128x128xbf16>
    %cst_47 = arith.constant dense<0.000000e+00> : vector<256x128xf32>
    %56 = tpu.matmul %53, %55, %cst_47 {dimension_numbers = #tpu.dot_dimension_numbers<[1], [0], [0], [1], [0, 0, 1, 1], [], []>} : vector<256x128xbf16>, vector<128x128xbf16>, vector<256x128xf32> -> vector<256x128xf32>
    %57 = arith.addf %51, %56 : vector<256x128xf32>
    %c1_48 = arith.constant 1 : index
    %c0_49 = arith.constant 0 : index
    %c0_50 = arith.constant 0 : index
    %58 = vector.load %arg10[%c1_48, %c0_49, %c0_50] : memref<18x18x128xbf16, #tpu.memory_space<vmem>>, vector<16x16x128xbf16>
    %59 = vector.shape_cast %58 : vector<16x16x128xbf16> to vector<256x128xbf16>
    %c1_51 = arith.constant 1 : index
    %c0_52 = arith.constant 0 : index
    %c0_53 = arith.constant 0 : index
    %c0_54 = arith.constant 0 : index
    %60 = vector.load %arg4[%c1_51, %c0_52, %c0_53, %c0_54] : memref<3x3x128x128xbf16, #tpu.memory_space<vmem>>, vector<1x1x128x128xbf16>
    %61 = vector.shape_cast %60 : vector<1x1x128x128xbf16> to vector<128x128xbf16>
    %cst_55 = arith.constant dense<0.000000e+00> : vector<256x128xf32>
    %62 = tpu.matmul %59, %61, %cst_55 {dimension_numbers = #tpu.dot_dimension_numbers<[1], [0], [0], [1], [0, 0, 1, 1], [], []>} : vector<256x128xbf16>, vector<128x128xbf16>, vector<256x128xf32> -> vector<256x128xf32>
    %63 = arith.addf %57, %62 : vector<256x128xf32>
    %c1_56 = arith.constant 1 : index
    %c1_57 = arith.constant 1 : index
    %c0_58 = arith.constant 0 : index
    %64 = vector.load %arg10[%c1_56, %c1_57, %c0_58] : memref<18x18x128xbf16, #tpu.memory_space<vmem>>, vector<16x16x128xbf16>
    %65 = vector.shape_cast %64 : vector<16x16x128xbf16> to vector<256x128xbf16>
    %c1_59 = arith.constant 1 : index
    %c1_60 = arith.constant 1 : index
    %c0_61 = arith.constant 0 : index
    %c0_62 = arith.constant 0 : index
    %66 = vector.load %arg4[%c1_59, %c1_60, %c0_61, %c0_62] : memref<3x3x128x128xbf16, #tpu.memory_space<vmem>>, vector<1x1x128x128xbf16>
    %67 = vector.shape_cast %66 : vector<1x1x128x128xbf16> to vector<128x128xbf16>
    %cst_63 = arith.constant dense<0.000000e+00> : vector<256x128xf32>
    %68 = tpu.matmul %65, %67, %cst_63 {dimension_numbers = #tpu.dot_dimension_numbers<[1], [0], [0], [1], [0, 0, 1, 1], [], []>} : vector<256x128xbf16>, vector<128x128xbf16>, vector<256x128xf32> -> vector<256x128xf32>
    %69 = arith.addf %63, %68 : vector<256x128xf32>
    %c1_64 = arith.constant 1 : index
    %c2_65 = arith.constant 2 : index
    %c0_66 = arith.constant 0 : index
    %70 = vector.load %arg10[%c1_64, %c2_65, %c0_66] : memref<18x18x128xbf16, #tpu.memory_space<vmem>>, vector<16x16x128xbf16>
    %71 = vector.shape_cast %70 : vector<16x16x128xbf16> to vector<256x128xbf16>
    %c1_67 = arith.constant 1 : index
    %c2_68 = arith.constant 2 : index
    %c0_69 = arith.constant 0 : index
    %c0_70 = arith.constant 0 : index
    %72 = vector.load %arg4[%c1_67, %c2_68, %c0_69, %c0_70] : memref<3x3x128x128xbf16, #tpu.memory_space<vmem>>, vector<1x1x128x128xbf16>
    %73 = vector.shape_cast %72 : vector<1x1x128x128xbf16> to vector<128x128xbf16>
    %cst_71 = arith.constant dense<0.000000e+00> : vector<256x128xf32>
    %74 = tpu.matmul %71, %73, %cst_71 {dimension_numbers = #tpu.dot_dimension_numbers<[1], [0], [0], [1], [0, 0, 1, 1], [], []>} : vector<256x128xbf16>, vector<128x128xbf16>, vector<256x128xf32> -> vector<256x128xf32>
    %75 = arith.addf %69, %74 : vector<256x128xf32>
    %c2_72 = arith.constant 2 : index
    %c0_73 = arith.constant 0 : index
    %c0_74 = arith.constant 0 : index
    %76 = vector.load %arg10[%c2_72, %c0_73, %c0_74] : memref<18x18x128xbf16, #tpu.memory_space<vmem>>, vector<16x16x128xbf16>
    %77 = vector.shape_cast %76 : vector<16x16x128xbf16> to vector<256x128xbf16>
    %c2_75 = arith.constant 2 : index
    %c0_76 = arith.constant 0 : index
    %c0_77 = arith.constant 0 : index
    %c0_78 = arith.constant 0 : index
    %78 = vector.load %arg4[%c2_75, %c0_76, %c0_77, %c0_78] : memref<3x3x128x128xbf16, #tpu.memory_space<vmem>>, vector<1x1x128x128xbf16>
    %79 = vector.shape_cast %78 : vector<1x1x128x128xbf16> to vector<128x128xbf16>
    %cst_79 = arith.constant dense<0.000000e+00> : vector<256x128xf32>
    %80 = tpu.matmul %77, %79, %cst_79 {dimension_numbers = #tpu.dot_dimension_numbers<[1], [0], [0], [1], [0, 0, 1, 1], [], []>} : vector<256x128xbf16>, vector<128x128xbf16>, vector<256x128xf32> -> vector<256x128xf32>
    %81 = arith.addf %75, %80 : vector<256x128xf32>
    %c2_80 = arith.constant 2 : index
    %c1_81 = arith.constant 1 : index
    %c0_82 = arith.constant 0 : index
    %82 = vector.load %arg10[%c2_80, %c1_81, %c0_82] : memref<18x18x128xbf16, #tpu.memory_space<vmem>>, vector<16x16x128xbf16>
    %83 = vector.shape_cast %82 : vector<16x16x128xbf16> to vector<256x128xbf16>
    %c2_83 = arith.constant 2 : index
    %c1_84 = arith.constant 1 : index
    %c0_85 = arith.constant 0 : index
    %c0_86 = arith.constant 0 : index
    %84 = vector.load %arg4[%c2_83, %c1_84, %c0_85, %c0_86] : memref<3x3x128x128xbf16, #tpu.memory_space<vmem>>, vector<1x1x128x128xbf16>
    %85 = vector.shape_cast %84 : vector<1x1x128x128xbf16> to vector<128x128xbf16>
    %cst_87 = arith.constant dense<0.000000e+00> : vector<256x128xf32>
    %86 = tpu.matmul %83, %85, %cst_87 {dimension_numbers = #tpu.dot_dimension_numbers<[1], [0], [0], [1], [0, 0, 1, 1], [], []>} : vector<256x128xbf16>, vector<128x128xbf16>, vector<256x128xf32> -> vector<256x128xf32>
    %87 = arith.addf %81, %86 : vector<256x128xf32>
    %c2_88 = arith.constant 2 : index
    %c2_89 = arith.constant 2 : index
    %c0_90 = arith.constant 0 : index
    %88 = vector.load %arg10[%c2_88, %c2_89, %c0_90] : memref<18x18x128xbf16, #tpu.memory_space<vmem>>, vector<16x16x128xbf16>
    %89 = vector.shape_cast %88 : vector<16x16x128xbf16> to vector<256x128xbf16>
    %c2_91 = arith.constant 2 : index
    %c2_92 = arith.constant 2 : index
    %c0_93 = arith.constant 0 : index
    %c0_94 = arith.constant 0 : index
    %90 = vector.load %arg4[%c2_91, %c2_92, %c0_93, %c0_94] : memref<3x3x128x128xbf16, #tpu.memory_space<vmem>>, vector<1x1x128x128xbf16>
    %91 = vector.shape_cast %90 : vector<1x1x128x128xbf16> to vector<128x128xbf16>
    %cst_95 = arith.constant dense<0.000000e+00> : vector<256x128xf32>
    %92 = tpu.matmul %89, %91, %cst_95 {dimension_numbers = #tpu.dot_dimension_numbers<[1], [0], [0], [1], [0, 0, 1, 1], [], []>} : vector<256x128xbf16>, vector<128x128xbf16>, vector<256x128xf32> -> vector<256x128xf32>
    %93 = arith.addf %87, %92 : vector<256x128xf32>
    %94 = vector.shape_cast %93 : vector<256x128xf32> to vector<1x16x16x128xf32>
    %95 = arith.truncf %94 : vector<1x16x16x128xf32> to vector<1x16x16x128xbf16>
    %c0_96 = arith.constant 0 : index
    %c0_97 = arith.constant 0 : index
    %c0_98 = arith.constant 0 : index
    %c0_99 = arith.constant 0 : index
    %96 = vector.load %arg7[%c0_96, %c0_97, %c0_98, %c0_99] : memref<1x16x16x128xbf16, #tpu.memory_space<vmem>>, vector<1x16x16x128xbf16>
    tpu.vector_store %arg7[%c0_96, %c0_97, %c0_98, %c0_99], %95 {strides = array<i32>} : memref<1x16x16x128xbf16, #tpu.memory_space<vmem>>, vector<1x16x16x128xbf16>,
    %cst_100 = arith.constant dense<0.000000e+00> : vector<128xf32>
    %97 = vector.multi_reduction <add>, %93, %cst_100 [0] : vector<256x128xf32> to vector<128xf32>
    %98 = vector.shape_cast %97 : vector<128xf32> to vector<1x1x1x128xf32>
    %c0_101 = arith.constant 0 : index
    %c0_102 = arith.constant 0 : index
    %c0_103 = arith.constant 0 : index
    %c0_104 = arith.constant 0 : index
    %99 = vector.load %arg8[%c0_101, %c0_102, %c0_103, %c0_104] : memref<1x1x1x128xf32, #tpu.memory_space<vmem>>, vector<1x1x1x128xf32>
    tpu.vector_store %arg8[%c0_101, %c0_102, %c0_103, %c0_104], %98 {strides = array<i32>} : memref<1x1x1x128xf32, #tpu.memory_space<vmem>>, vector<1x1x1x128xf32>,
    %100 = arith.mulf %93, %93 : vector<256x128xf32>
    %cst_105 = arith.constant dense<0.000000e+00> : vector<128xf32>
    %101 = vector.multi_reduction <add>, %100, %cst_105 [0] : vector<256x128xf32> to vector<128xf32>
    %102 = vector.shape_cast %101 : vector<128xf32> to vector<1x1x1x128xf32>
    %c0_106 = arith.constant 0 : index
    %c0_107 = arith.constant 0 : index
    %c0_108 = arith.constant 0 : index
    %c0_109 = arith.constant 0 : index
    %103 = vector.load %arg9[%c0_106, %c0_107, %c0_108, %c0_109] : memref<1x1x1x128xf32, #tpu.memory_space<vmem>>, vector<1x1x1x128xf32>
    tpu.vector_store %arg9[%c0_106, %c0_107, %c0_108, %c0_109], %102 {strides = array<i32>} : memref<1x1x1x128xf32, #tpu.memory_space<vmem>>, vector<1x1x1x128xf32>,
    return
  }
  func.func @transform_0(%arg0: i32, %arg1: i32) -> (i32, i32, i32, i32) {
    %c0_i32 = arith.constant 0 : i32
    %c0_i32_0 = arith.constant 0 : i32
    %c0_i32_1 = arith.constant 0 : i32
    return %arg0, %arg1, %c0_i32, %c0_i32_0 : i32, i32, i32, i32
  }
  func.func @transform_2(%arg0: i32, %arg1: i32) -> (i32, i32, i32, i32) {
    %c0_i32 = arith.constant 0 : i32
    %c0_i32_0 = arith.constant 0 : i32
    %c0_i32_1 = arith.constant 0 : i32
    %c0_i32_2 = arith.constant 0 : i32
    %c0_i32_3 = arith.constant 0 : i32
    return %c0_i32, %c0_i32_0, %c0_i32_1, %c0_i32_2 : i32, i32, i32, i32
  }
  func.func @transform_3(%arg0: i32, %arg1: i32) -> (i32, i32) {
    %c0_i32 = arith.constant 0 : i32
    %c0_i32_0 = arith.constant 0 : i32
    %c0_i32_1 = arith.constant 0 : i32
    return %c0_i32, %c0_i32_0 : i32, i32
  }
  func.func @transform_4(%arg0: i32, %arg1: i32) -> (i32, i32) {
    %c0_i32 = arith.constant 0 : i32
    %c0_i32_0 = arith.constant 0 : i32
    %c0_i32_1 = arith.constant 0 : i32
    return %c0_i32, %c0_i32_0 : i32, i32
  }
  func.func @transform_5(%arg0: i32, %arg1: i32) -> (i32, i32, i32, i32) {
    %c0_i32 = arith.constant 0 : i32
    %c0_i32_0 = arith.constant 0 : i32
    %c0_i32_1 = arith.constant 0 : i32
    return %arg0, %arg1, %c0_i32, %c0_i32_0 : i32, i32, i32, i32
  }
  func.func @transform_6(%arg0: i32, %arg1: i32) -> (i32, i32, i32, i32) {
    %c0_i32 = arith.constant 0 : i32
    %c0_i32_0 = arith.constant 0 : i32
    %c0_i32_1 = arith.constant 0 : i32
    return %arg0, %arg1, %c0_i32, %c0_i32_0 : i32, i32, i32, i32
  }
  func.func @transform_7(%arg0: i32, %arg1: i32) -> (i32, i32, i32, i32) {
    %c0_i32 = arith.constant 0 : i32
    %c0_i32_0 = arith.constant 0 : i32
    %c0_i32_1 = arith.constant 0 : i32
    return %arg0, %arg1, %c0_i32, %c0_i32_0 : i32, i32, i32, i32
  }
}

</mosaic_0001>

<bundles_post_ra>
// kernel: basic_block.5
= control target key start
LH: loop header
LB: loop body
LE: loop exit
PB: predicated region body
PF: predicated region fallthrough
CT: control target
= control target key end

     0   :  { %s804_s15 = smov 0   ;;  %s972_s0 = inlined_call_operand.vmem [shape: bf16[2,256,128], index: 0, kind: input, shape index: {}]   ;;  %s973_s1 = inlined_call_operand.vmem [shape: bf16[2,256,128], index: 1, kind: input, shape index: {}]   ;;  %s974_s2 = inlined_call_operand.vmem [shape: f32[1,128], index: 2, kind: input, shape index: {}]   ;;  %s975_s3 = inlined_call_operand.vmem [shape: f32[1,128], index: 3, kind: input, shape index: {}]   ;;  %s976_s4 = inlined_call_operand.vmem [shape: f32[2,256,128], index: 4, kind: output, shape index: {}]  }
   0x1 LB: > { %s587_s16 = sadd.s32 4294967295, %s777_s15   ;;  %p591_p0 = scmp.ge.s32.totalorder %s777_s15, 1  ;;  %s777_s15 = sphi %s804_s15, %s14_s15  }
   0x2   : > { %p172_p1 = scmp.lt.s32.totalorder %s777_s15, 3 }
   0x4   : > { %p173_p2 = pnand %p591_p0, %p172_p1 }
   0x5   : > { %p203_p3 = scmp.lt.s32.totalorder (!%p173_p2), %s587_s16, 1  ;;  %v828_v0 = vld [vmem:[%s974_s2] ss:$0 sm:$0xff] (!%p173_p2) }
   0x6   : > { %176 = sbr.rel (%p173_p2) target bundleno = 71 (0x47), region = 36  ;;  %v839_v11 = vld [vmem:[%s975_s3] ss:$0 sm:$0xff] (!%p173_p2) }
   0xd   : > { %s978_s16 = smov (!%p203_p3, %s587_s16), 1 }
   0xe   : > { %s602_s17 = sshll.u32 %s978_s16, 7  ;;  %s604_s28 = sshll.u32 %s978_s16, 8 }
   0xf   : > { %s818_s20 = scalar_lea.vmem %s972_s0, %s602_s17  ;;  %s823_s23 = scalar_lea.vmem %s973_s1, %s602_s17 }
  0x10   : > { %v606_v1 = vld [vmem:[%s818_s20] sm:$0xff]   ;;  %v733_v3 = vld [vmem:[%s818_s20 + $0x8] sm:$0xff]   ;;  %v734_v9 = vld [vmem:[%s818_s20 + $0x10] sm:$0xff]   ;;  %s859_s5 = scalar_lea.vmem %s976_s4, %s604_s28 }
  0x11   : > { %v670_v2 = vld [vmem:[%s823_s23] sm:$0xff]   ;;  %v607_v4 = vunpack.c.l.bf16 %v606_v1  ;;  %v608_v6 = vunpack.c.h.bf16 %v606_v1  ;;  %v748_v8 = vld [vmem:[%s823_s23 + $0x8] sm:$0xff]   ;;  %v749_v10 = vld [vmem:[%s823_s23 + $0x10] sm:$0xff]   ;;  %v611_v12 = vunpack.c.l.bf16 %v733_v3  ;;  %v612_v14 = vunpack.c.h.bf16 %v733_v3 }
  0x12   : > { %v671_v5 = vunpack.c.l.bf16 %v670_v2  ;;  %v672_v7 = vunpack.c.h.bf16 %v670_v2  ;;  %v675_v13 = vunpack.c.l.bf16 %v748_v8  ;;  %v676_v15 = vunpack.c.h.bf16 %v748_v8  ;;  %v735_v16 = vld [vmem:[%s818_s20 + $0x18] sm:$0xff]   ;;  %v736_v42 = vld [vmem:[%s818_s20 + $0x20] sm:$0xff]   ;;  %v737_v52 = vld [vmem:[%s818_s20 + $0x28] sm:$0xff]  }
  0x13   : > { %v290_v17 = vmul.f32 %v607_v4, %v828_v0  ;;  %v291_v18 = vmul.f32 %v608_v6, %v828_v0  ;;  %v615_v19 = vunpack.c.l.bf16 %v734_v9  ;;  %v679_v20 = vunpack.c.l.bf16 %v749_v10  ;;  %v750_v21 = vld [vmem:[%s823_s23 + $0x18] sm:$0xff]   ;;  %v751_v47 = vld [vmem:[%s823_s23 + $0x20] sm:$0xff]   ;;  %v752_v57 = vld [vmem:[%s823_s23 + $0x28] sm:$0xff]  }
  0x14   : > { %v292_v22 = vmul.f32 %v611_v12, %v828_v0  ;;  %v293_v23 = vmul.f32 %v612_v14, %v828_v0  ;;  %v616_v24 = vunpack.c.h.bf16 %v734_v9  ;;  %v680_v25 = vunpack.c.h.bf16 %v749_v10  ;;  %v738_v62 = vld [vmem:[%s818_s20 + $0x30] sm:$0xff]   ;;  %v739_v14 = vld [vmem:[%s818_s20 + $0x38] sm:$0xff]  }
  0x15   : > { %v328_v26 = vadd.f32 %v839_v11, %v290_v17  ;;  %v329_v27 = vadd.f32 %v839_v11, %v291_v18  ;;  %v294_v28 = vmul.f32 %v615_v19, %v828_v0  ;;  %v619_v29 = vunpack.c.l.bf16 %v735_v16  ;;  %v753_v4 = vld [vmem:[%s823_s23 + $0x30] sm:$0xff]  }
  0x16   : > { %v330_v30 = vadd.f32 %v839_v11, %v292_v22  ;;  %v331_v31 = vadd.f32 %v839_v11, %v293_v23  ;;  %v295_v32 = vmul.f32 %v616_v24, %v828_v0  ;;  %v683_v33 = vunpack.c.l.bf16 %v750_v21  ;;  %v754_v23 = vld [vmem:[%s823_s23 + $0x38] sm:$0xff]  }
  0x17   : > { %v424_v34 = vadd.f32 %v671_v5, %v328_v26  ;;  %v425_v35 = vadd.f32 %v672_v7, %v329_v27  ;;  %v332_v36 = vadd.f32 %v839_v11, %v294_v28  ;;  %v296_v37 = vmul.f32 %v619_v29, %v828_v0 }
  0x18   : > { %v426_v38 = vadd.f32 %v675_v13, %v330_v30  ;;  %v427_v39 = vadd.f32 %v676_v15, %v331_v31  ;;  %v333_v40 = vadd.f32 %v839_v11, %v295_v32  ;;  %v620_v41 = vunpack.c.h.bf16 %v735_v16  ;;  %v740_v32 = vld [vmem:[%s818_s20 + $0x40] sm:$0xff]  }
  0x19   : > { %v456_v43 = vmax.f32 %v424_v34, 0.0  ;;  %v457_v44 = vmax.f32 %v425_v35, 0.0  ;;  %v428_v45 = vadd.f32 %v679_v20, %v332_v36  ;;  %v334_v46 = vadd.f32 %v839_v11, %v296_v37  ;;  %v755_v37 = vld [vmem:[%s823_s23 + $0x40] sm:$0xff]  }
  0x1a   : > { %v458_v48 = vmax.f32 %v426_v38, 0.0  ;;  %v459_v49 = vmax.f32 %v427_v39, 0.0  ;;  %v429_v50 = vadd.f32 %v680_v25, %v333_v40  ;;  %v297_v51 = vmul.f32 %v620_v41, %v828_v0 }
  0x1b   : > { %488 = vst [vmem:[%s859_s5] sm:$0xff] %v456_v43  ;;  %489 = vst [vmem:[%s859_s5 + $0x8] sm:$0xff] %v457_v44  ;;  %v460_v53 = vmax.f32 %v428_v45, 0.0  ;;  %v430_v54 = vadd.f32 %v683_v33, %v334_v46  ;;  %v684_v55 = vunpack.c.h.bf16 %v750_v21  ;;  %v623_v56 = vunpack.c.l.bf16 %v736_v42  ;;  %v741_v46 = vld [vmem:[%s818_s20 + $0x48] sm:$0xff]  }
  0x1c   : > { %490 = vst [vmem:[%s859_s5 + $0x10] sm:$0xff] %v458_v48  ;;  %491 = vst [vmem:[%s859_s5 + $0x18] sm:$0xff] %v459_v49  ;;  %v461_v58 = vmax.f32 %v429_v50, 0.0  ;;  %v335_v59 = vadd.f32 %v839_v11, %v297_v51  ;;  %v687_v60 = vunpack.c.l.bf16 %v751_v47  ;;  %v624_v61 = vunpack.c.h.bf16 %v736_v42 }
  0x1d   : > { %492 = vst [vmem:[%s859_s5 + $0x20] sm:$0xff] %v460_v53  ;;  %v462_v63 = vmax.f32 %v430_v54, 0.0  ;;  %v298_v1 = vmul.f32 %v623_v56, %v828_v0  ;;  %v688_v2 = vunpack.c.h.bf16 %v751_v47  ;;  %v627_v3 = vunpack.c.l.bf16 %v737_v52  ;;  %v756_v47 = vld [vmem:[%s823_s23 + $0x48] sm:$0xff]   ;;  %v742_v56 = vld [vmem:[%s818_s20 + $0x50] sm:$0xff]  }
  0x1e   : > { %493 = vst [vmem:[%s859_s5 + $0x28] sm:$0xff] %v461_v58  ;;  %v431_v5 = vadd.f32 %v684_v55, %v335_v59  ;;  %v299_v6 = vmul.f32 %v624_v61, %v828_v0  ;;  %v691_v7 = vunpack.c.l.bf16 %v752_v57  ;;  %v628_v8 = vunpack.c.h.bf16 %v737_v52  ;;  %v757_v61 = vld [vmem:[%s823_s23 + $0x50] sm:$0xff]  }
  0x1f   : > { %494 = vst [vmem:[%s859_s5 + $0x30] sm:$0xff] %v462_v63  ;;  %v336_v9 = vadd.f32 %v839_v11, %v298_v1  ;;  %v300_v10 = vmul.f32 %v627_v3, %v828_v0  ;;  %v692_v12 = vunpack.c.h.bf16 %v752_v57  ;;  %v631_v13 = vunpack.c.l.bf16 %v738_v62 }
  0x20   : > { %v463_v15 = vmax.f32 %v431_v5, 0.0  ;;  %v337_v16 = vadd.f32 %v839_v11, %v299_v6  ;;  %v301_v17 = vmul.f32 %v628_v8, %v828_v0  ;;  %v695_v18 = vunpack.c.l.bf16 %v753_v4 }
  0x21   : > { %v432_v19 = vadd.f32 %v687_v60, %v336_v9  ;;  %v338_v20 = vadd.f32 %v839_v11, %v300_v10  ;;  %v302_v21 = vmul.f32 %v631_v13, %v828_v0  ;;  %v632_v22 = vunpack.c.h.bf16 %v738_v62 }
  0x22   : > { %495 = vst [vmem:[%s859_s5 + $0x38] sm:$0xff] %v463_v15  ;;  %v433_v24 = vadd.f32 %v688_v2, %v337_v16  ;;  %v339_v25 = vadd.f32 %v839_v11, %v301_v17  ;;  %v696_v26 = vunpack.c.h.bf16 %v753_v4  ;;  %v635_v27 = vunpack.c.l.bf16 %v739_v14  ;;  %v758_v17 = vld [vmem:[%s823_s23 + $0x58] sm:$0xff]  }
  0x23   : > { %v464_v28 = vmax.f32 %v432_v19, 0.0  ;;  %v434_v29 = vadd.f32 %v691_v7, %v338_v20  ;;  %v340_v30 = vadd.f32 %v839_v11, %v302_v21  ;;  %v303_v31 = vmul.f32 %v632_v22, %v828_v0 }
  0x24   : > { %v465_v33 = vmax.f32 %v433_v24, 0.0  ;;  %v435_v34 = vadd.f32 %v692_v12, %v339_v25  ;;  %v304_v35 = vmul.f32 %v635_v27, %v828_v0  ;;  %v699_v36 = vunpack.c.l.bf16 %v754_v23  ;;  %v743_v12 = vld [vmem:[%s818_s20 + $0x58] sm:$0xff]  }
  0x25   : > { %496 = vst [vmem:[%s859_s5 + $0x40] sm:$0xff] %v464_v28  ;;  %v466_v38 = vmax.f32 %v434_v29, 0.0  ;;  %v436_v39 = vadd.f32 %v695_v18, %v340_v30  ;;  %v341_v40 = vadd.f32 %v839_v11, %v303_v31  ;;  %v636_v41 = vunpack.c.h.bf16 %v739_v14  ;;  %v759_v31 = vld [vmem:[%s823_s23 + $0x60] sm:$0xff]  }
  0x26   : > { %497 = vst [vmem:[%s859_s5 + $0x48] sm:$0xff] %v465_v33  ;;  %v467_v42 = vmax.f32 %v435_v34, 0.0  ;;  %v342_v43 = vadd.f32 %v839_v11, %v304_v35  ;;  %v700_v44 = vunpack.c.h.bf16 %v754_v23  ;;  %v639_v45 = vunpack.c.l.bf16 %v740_v32 }
  0x27   : > { %498 = vst [vmem:[%s859_s5 + $0x50] sm:$0xff] %v466_v38  ;;  %v468_v48 = vmax.f32 %v436_v39, 0.0  ;;  %v437_v49 = vadd.f32 %v696_v26, %v341_v40  ;;  %v305_v50 = vmul.f32 %v636_v41, %v828_v0  ;;  %v703_v51 = vunpack.c.l.bf16 %v755_v37  ;;  %v744_v26 = vld [vmem:[%s818_s20 + $0x60] sm:$0xff]   ;;  %v745_v40 = vld [vmem:[%s818_s20 + $0x68] sm:$0xff]  }
  0x28   : > { %499 = vst [vmem:[%s859_s5 + $0x58] sm:$0xff] %v467_v42  ;;  %v438_v52 = vadd.f32 %v699_v36, %v342_v43  ;;  %v306_v53 = vmul.f32 %v639_v45, %v828_v0  ;;  %v640_v54 = vunpack.c.h.bf16 %v740_v32  ;;  %v704_v55 = vunpack.c.h.bf16 %v755_v37  ;;  %v760_v41 = vld [vmem:[%s823_s23 + $0x68] sm:$0xff]  }
  0x29   : > { %500 = vst [vmem:[%s859_s5 + $0x60] sm:$0xff] %v468_v48  ;;  %v469_v57 = vmax.f32 %v437_v49, 0.0  ;;  %v343_v58 = vadd.f32 %v839_v11, %v305_v50  ;;  %v643_v59 = vunpack.c.l.bf16 %v741_v46  ;;  %v707_v60 = vunpack.c.l.bf16 %v756_v47  ;;  %v746_v50 = vld [vmem:[%s818_s20 + $0x70] sm:$0xff]  }
  0x2a   : > { %v470_v62 = vmax.f32 %v438_v52, 0.0  ;;  %v344_v63 = vadd.f32 %v839_v11, %v306_v53  ;;  %v307_v1 = vmul.f32 %v640_v54, %v828_v0  ;;  %v644_v2 = vunpack.c.h.bf16 %v741_v46 }
  0x2b   : > { %501 = vst [vmem:[%s859_s5 + $0x68] sm:$0xff] %v469_v57  ;;  %v439_v3 = vadd.f32 %v700_v44, %v343_v58  ;;  %v308_v4 = vmul.f32 %v643_v59, %v828_v0  ;;  %v708_v5 = vunpack.c.h.bf16 %v756_v47  ;;  %v647_v6 = vunpack.c.l.bf16 %v742_v56  ;;  %v761_v59 = vld [vmem:[%s823_s23 + $0x70] sm:$0xff]  }
  0x2c   : > { %502 = vst [vmem:[%s859_s5 + $0x70] sm:$0xff] %v470_v62  ;;  %v440_v7 = vadd.f32 %v703_v51, %v344_v63  ;;  %v345_v8 = vadd.f32 %v839_v11, %v307_v1  ;;  %v309_v9 = vmul.f32 %v644_v2, %v828_v0  ;;  %v711_v10 = vunpack.c.l.bf16 %v757_v61 }
  0x2d   : > { %v471_v13 = vmax.f32 %v439_v3, 0.0  ;;  %v346_v14 = vadd.f32 %v839_v11, %v308_v4  ;;  %v310_v15 = vmul.f32 %v647_v6, %v828_v0  ;;  %v648_v16 = vunpack.c.h.bf16 %v742_v56 }
  0x2e   : > { %v472_v18 = vmax.f32 %v440_v7, 0.0  ;;  %v441_v19 = vadd.f32 %v704_v55, %v345_v8  ;;  %v347_v20 = vadd.f32 %v839_v11, %v309_v9  ;;  %v712_v21 = vunpack.c.h.bf16 %v757_v61 }
  0x2f   : > { %503 = vst [vmem:[%s859_s5 + $0x78] sm:$0xff] %v471_v13  ;;  %v442_v22 = vadd.f32 %v707_v60, %v346_v14  ;;  %v348_v23 = vadd.f32 %v839_v11, %v310_v15  ;;  %v311_v24 = vmul.f32 %v648_v16, %v828_v0  ;;  %v651_v25 = vunpack.c.l.bf16 %v743_v12 }
  0x30   : > { %504 = vst [vmem:[%s859_s5 + $0x80] sm:$0xff] %v472_v18  ;;  %v473_v27 = vmax.f32 %v441_v19, 0.0  ;;  %v443_v28 = vadd.f32 %v708_v5, %v347_v20  ;;  %v715_v29 = vunpack.c.l.bf16 %v758_v17  ;;  %v652_v30 = vunpack.c.h.bf16 %v743_v12  ;;  %v747_v5 = vld [vmem:[%s818_s20 + $0x78] sm:$0xff]  }
  0x31   : > { %v474_v32 = vmax.f32 %v442_v22, 0.0  ;;  %v444_v33 = vadd.f32 %v711_v10, %v348_v23  ;;  %v349_v34 = vadd.f32 %v839_v11, %v311_v24  ;;  %v312_v35 = vmul.f32 %v651_v25, %v828_v0  ;;  %v762_v10 = vld [vmem:[%s823_s23 + $0x78] sm:$0xff]  }
  0x32   : > { %505 = vst [vmem:[%s859_s5 + $0x88] sm:$0xff] %v473_v27  ;;  %v475_v36 = vmax.f32 %v443_v28, 0.0  ;;  %v313_v37 = vmul.f32 %v652_v30, %v828_v0  ;;  %v716_v38 = vunpack.c.h.bf16 %v758_v17  ;;  %v655_v39 = vunpack.c.l.bf16 %v744_v26 }
  0x33   : > { %506 = vst [vmem:[%s859_s5 + $0x90] sm:$0xff] %v474_v32  ;;  %v476_v42 = vmax.f32 %v444_v33, 0.0  ;;  %v445_v43 = vadd.f32 %v712_v21, %v349_v34  ;;  %v350_v44 = vadd.f32 %v839_v11, %v312_v35  ;;  %v719_v45 = vunpack.c.l.bf16 %v759_v31 }
  0x34   : > { %507 = vst [vmem:[%s859_s5 + $0x98] sm:$0xff] %v475_v36  ;;  %v351_v46 = vadd.f32 %v839_v11, %v313_v37  ;;  %v314_v47 = vmul.f32 %v655_v39, %v828_v0  ;;  %v656_v48 = vunpack.c.h.bf16 %v744_v26  ;;  %v720_v49 = vunpack.c.h.bf16 %v759_v31 }
  0x35   : > { %508 = vst [vmem:[%s859_s5 + $0xa0] sm:$0xff] %v476_v42  ;;  %v477_v51 = vmax.f32 %v445_v43, 0.0  ;;  %v446_v52 = vadd.f32 %v715_v29, %v350_v44  ;;  %v659_v53 = vunpack.c.l.bf16 %v745_v40  ;;  %v723_v54 = vunpack.c.l.bf16 %v760_v41 }
  0x36   : > { %v447_v55 = vadd.f32 %v716_v38, %v351_v46  ;;  %v352_v56 = vadd.f32 %v839_v11, %v314_v47  ;;  %v315_v57 = vmul.f32 %v656_v48, %v828_v0  ;;  %v660_v58 = vunpack.c.h.bf16 %v745_v40 }
  0x37   : > { %509 = vst [vmem:[%s859_s5 + $0xa8] sm:$0xff] %v477_v51  ;;  %v478_v60 = vmax.f32 %v446_v52, 0.0  ;;  %v316_v61 = vmul.f32 %v659_v53, %v828_v0  ;;  %v724_v62 = vunpack.c.h.bf16 %v760_v41  ;;  %v663_v63 = vunpack.c.l.bf16 %v746_v50 }
  0x38   : > { %v479_v1 = vmax.f32 %v447_v55, 0.0  ;;  %v448_v2 = vadd.f32 %v719_v45, %v352_v56  ;;  %v353_v3 = vadd.f32 %v839_v11, %v315_v57  ;;  %v317_v4 = vmul.f32 %v660_v58, %v828_v0 }
  0x39   : > { %510 = vst [vmem:[%s859_s5 + $0xb0] sm:$0xff] %v478_v60  ;;  %v354_v6 = vadd.f32 %v839_v11, %v316_v61  ;;  %v318_v7 = vmul.f32 %v663_v63, %v828_v0  ;;  %v727_v8 = vunpack.c.l.bf16 %v761_v59  ;;  %v664_v9 = vunpack.c.h.bf16 %v746_v50 }
  0x3a   : > { %511 = vst [vmem:[%s859_s5 + $0xb8] sm:$0xff] %v479_v1  ;;  %v480_v12 = vmax.f32 %v448_v2, 0.0  ;;  %v449_v13 = vadd.f32 %v720_v49, %v353_v3  ;;  %v355_v14 = vadd.f32 %v839_v11, %v317_v4  ;;  %v728_v15 = vunpack.c.h.bf16 %v761_v59 }
  0x3b   : > { %v450_v16 = vadd.f32 %v723_v54, %v354_v6  ;;  %v356_v17 = vadd.f32 %v839_v11, %v318_v7  ;;  %v319_v18 = vmul.f32 %v664_v9, %v828_v0  ;;  %v667_v19 = vunpack.c.l.bf16 %v747_v5 }
  0x3c   : > { %512 = vst [vmem:[%s859_s5 + $0xc0] sm:$0xff] %v480_v12  ;;  %v481_v20 = vmax.f32 %v449_v13, 0.0  ;;  %v451_v21 = vadd.f32 %v724_v62, %v355_v14  ;;  %v731_v22 = vunpack.c.l.bf16 %v762_v10  ;;  %v668_v23 = vunpack.c.h.bf16 %v747_v5 }
  0x3d   : > { %v482_v24 = vmax.f32 %v450_v16, 0.0  ;;  %v452_v25 = vadd.f32 %v727_v8, %v356_v17  ;;  %v357_v26 = vadd.f32 %v839_v11, %v319_v18  ;;  %v320_v27 = vmul.f32 %v667_v19, %v828_v0 }
  0x3e   : > { %513 = vst [vmem:[%s859_s5 + $0xc8] sm:$0xff] %v481_v20  ;;  %v483_v28 = vmax.f32 %v451_v21, 0.0  ;;  %v321_v29 = vmul.f32 %v668_v23, %v828_v0  ;;  %v732_v30 = vunpack.c.h.bf16 %v762_v10 }
  0x3f   : > { %514 = vst [vmem:[%s859_s5 + $0xd0] sm:$0xff] %v482_v24  ;;  %v484_v31 = vmax.f32 %v452_v25, 0.0  ;;  %v453_v32 = vadd.f32 %v728_v15, %v357_v26  ;;  %v358_v33 = vadd.f32 %v839_v11, %v320_v27 }
  0x40   : > { %515 = vst [vmem:[%s859_s5 + $0xd8] sm:$0xff] %v483_v28  ;;  %v359_v34 = vadd.f32 %v839_v11, %v321_v29 }
  0x41   : > { %516 = vst [vmem:[%s859_s5 + $0xe0] sm:$0xff] %v484_v31  ;;  %v485_v35 = vmax.f32 %v453_v32, 0.0  ;;  %v454_v36 = vadd.f32 %v731_v22, %v358_v33 }
  0x42   : > { %v455_v37 = vadd.f32 %v732_v30, %v359_v34 }
  0x43   : > { %517 = vst [vmem:[%s859_s5 + $0xe8] sm:$0xff] %v485_v35  ;;  %v486_v38 = vmax.f32 %v454_v36, 0.0 }
  0x44   : > { %v487_v39 = vmax.f32 %v455_v37, 0.0 }
  0x45   : > { %518 = vst [vmem:[%s859_s5 + $0xf0] sm:$0xff] %v486_v38 }
  0x46   : > { %519 = vst [vmem:[%s859_s5 + $0xf8] sm:$0xff] %v487_v39 }
  0x47 PF: > { %s14_s15 = sadd.s32 1, %s777_s15  }
  0x48   : > { %p11_p4 = scmp.ge.s32.totalorder %s14_s15, 4  }
  0x4a   :  { %13 = sbr.rel (!%p11_p4) target bundleno = 1 (0x1), region = 69 }

// kernel: basic_block.3
= control target key start
LH: loop header
LB: loop body
LE: loop exit
PB: predicated region body
PF: predicated region fallthrough
CT: control target
= control target key end

     0   :  { %s8182_s24 = smov 0   ;;  %s8184_s1 = smov 0   ;;  %s10168_s0 = inlined_call_operand.vmem [shape: bf16[2,16,16,128], index: 0, kind: input, shape index: {}, may-alias: {0,1}]   ;;  %s10169_s1 = inlined_call_operand.vmem [shape: bf16[2,16,16,128], index: 1, kind: input, shape index: {}, may-alias: {0,1}]   ;;  %s10170_s2 = inlined_call_operand.vmem [shape: bf16[3,3,128,128], index: 2, kind: input, shape index: {}]   ;;  %s10171_s3 = inlined_call_operand.vmem [shape: f32[1,128], index: 3, kind: input, shape index: {}, may-alias: {3,4}]   ;;  %s10172_s4 = inlined_call_operand.vmem [shape: f32[1,128], index: 4, kind: input, shape index: {}, may-alias: {3,4}]   ;;  %s10173_s5 = inlined_call_operand.vmem [shape: bf16[2,16,16,128], index: 5, kind: output, shape index: {0}]   ;;  %s10174_s6 = inlined_call_operand.vmem [shape: f32[2,1,1,128], index: 6, kind: output, shape index: {1}]   ;;  %s10175_s7 = inlined_call_operand.vmem [shape: f32[2,1,1,128], index: 7, kind: output, shape index: {2}]  }
   0x1   :  { %s8186_s25 = smov 0  }
   0x2 LB: > { %s30_s3 = sadd.s32 1, %s8135_s1  ;;  %p6404_p0 = scmp.ge.s32.totalorder %s8139_s25, 1  ;;  %s8139_s25 = sphi %s8186_s25, %s18_s25   ;;  %s8135_s1 = sphi %s8184_s1, %s10272_s1   ;;  %s8131_s24 = sphi %s8182_s24, %s10271_s24  }
   0x3   : > { %p32_p1 = scmp.ge.s32.totalorder %s30_s3, 2  ;;  %p244_p2 = scmp.lt.s32.totalorder %s8139_s25, 3 }
   0x5   : > { %s10274_s3 = smov (%p32_p1, %s30_s3), 0  ;;  %p245_p3 = pnand %p6404_p0, %p244_p2 }
   0x7   : > { %248 = sbr.rel (%p245_p3) target bundleno = 686 (0x2ae), region = 36 }
   0xe   : > { %v7922_v0 = vld [vmem:[%s10170_s2 + $0x40] sm:$0xff]   ;;  %v7924_v2 = vld [vmem:[%s10170_s2 + $0x48] sm:$0xff]   ;;  %v10176_v3 = vmov 0   ;;  %v7926_v5 = vld [vmem:[%s10170_s2 + $0x50] sm:$0xff]   ;;  %p297_p4 = scmp.lt.s32.totalorder %s8131_s24, 1  ;;  %vm802_vm0 = vcmask 1040384  }
   0xf   : > { %v7923_v1 = vld [vmem:[%s10170_s2 + $0x100] sm:$0xff]   ;;  %7193 = vmatprep.subr.bf16.mxu1 %v7922_v0  ;;  %1066 = vst [vmem:[#allocation2 + $0x4] sm:$0xf] %v10176_v3  ;;  %1116 = vst [vmem:[#allocation2 + $0xd0] sm:$0xf] %v10176_v3  ;;  %v7925_v4 = vld [vmem:[%s10170_s2 + $0x108] sm:$0xff]  }
  0x10   : > { %7385 = vmatprep.subr.bf16.mxu0 %v7923_v1  ;;  %7194 = vmatpush3.bf16.msra.mxu1 %v7922_v0  ;;  %v7927_v6 = vld [vmem:[%s10170_s2 + $0x110] sm:$0xff]   ;;  %v7928_v7 = vld [vmem:[%s10170_s2 + $0x58] sm:$0xff]   ;;  %s10276_s24 = smov (!%p297_p4, %s8131_s24), 1  ;;  %v7930_v9 = vld [vmem:[%s10170_s2 + $0x60] sm:$0xff]   ;;  %vm471_vm1 = vsmask.f32 256 }
  0x11   : > { %7386 = vmatpush3.bf16.msra.mxu0 %v7923_v1  ;;  %7195 = vmatprep.subr.bf16.mxu1 %v7924_v2  ;;  %v7929_v8 = vld [vmem:[%s10170_s2 + $0x118] sm:$0xff]   ;;  %v7931_v10 = vld [vmem:[%s10170_s2 + $0x120] sm:$0xff]   ;;  %s6847_s22 = sshll.u32 %s10276_s24, 7  ;;  %v7932_v11 = vld [vmem:[%s10170_s2 + $0x68] sm:$0xff]   ;;  %vm796_vm2 = vsmask.f32 7938  ;;  %s323_s28 = scalar_lea.vmem %s10174_s6, %s10276_s24 }
  0x12   : > { %7387 = vmatprep.subr.bf16.mxu0 %v7925_v4  ;;  %v7933_v12 = vld [vmem:[%s10170_s2 + $0x128] sm:$0xff]   ;;  %v912_v13 = vld [vmem:[#allocation2] sm:$0x1]  ;;  %s8250_s30 = scalar_lea.vmem %s10168_s0, %s6847_s22  ;;  %vm8254_vm3 = vmand %vm802_vm0, %vm471_vm1  ;;  %v10195_v18 = vmov 0  ;;  %vm795_vm5 = vcmask 1043456   ;;  %vm2212_vm12 = vcmask 1042432   ;;  %s10129_s26 = scalar_lea.vmem %s10173_s5, %s6847_s22 }
  0x13   : > { %v967_v15 = vld [vmem:[#allocation2 + $0x8] sm:$0x1]  ;;  %v913_v17 = vsel %vm8254_vm3, 0, %v912_v13  ;;  %vm8262_vm4 = vmand %vm802_vm0, %vm796_vm2  ;;  %v439_v22 = vld [vmem:[%s8250_s30] sm:$0xf]  ;;  %vm2213_vm13 = vcmask 1046532   ;;  %s329_s8 = scalar_lea.vmem %s10175_s7, %s10276_s24 }
  0x14   : > { %7196 = vmatpush3.bf16.msra.mxu1 %v7924_v2  ;;  %v10196_v18 = vsel %vm8262_vm4, 4294967295, %v10195_v18  ;;  %914 = vst [vmem:[#allocation2] sm:$0x1] %v913_v17  ;;  %v968_v21 = vsel %vm8262_vm4, 0, %v967_v15  ;;  %v440_v23 = vld [vmem:[%s8250_s30 + $0x4] sm:$0xf]  ;;  %vm8285_vm9 = vmand %vm795_vm5, %vm796_vm2 }
  0x15   : > { %7388 = vmatpush3.bf16.msra.mxu0 %v7925_v4  ;;  %7197 = vmatprep.subr.bf16.mxu1 %v7926_v5  ;;  %10197 = vst [vmem:[#allocation7_spill] sm:$0xff] %v10196_v18  ;;  %v7934_v24 = vld [vmem:[%s10170_s2 + $0x70] sm:$0xff]   ;;  %969 = vst [vmem:[#allocation2 + $0x8] sm:$0x1] %v968_v21  ;;  %vm1182_vm6 = vsmask.f32 3328 }
  0x16   : > { %7389 = vmatprep.subr.bf16.mxu0 %v7927_v6  ;;  %v1119_v16 = vld [vmem:[#allocation2 + $0x4] sm:$0xf]  ;;  %1065 = vst [vmem:[#allocation2] sm:$0xf] %v10176_v3  ;;  %vm1183_vm7 = vsmask.f32 7440  ;;  %vm8645_vm14 = vmor %vm2212_vm12, %vm2213_vm13 }
  0x17   : > { %v1195_v19 = vshll.u32 %v1119_v16, 16  ;;  %v1199_v20 = vshrl.u32 %v1119_v16, 16  ;;  %vm472_vm8 = vsmask.f32 4368  ;;  %v475_v27 = vshrl.u32 %v439_v22, 16  ;;  %v7935_v28 = vld [vmem:[%s10170_s2 + $0x130] sm:$0xff]   ;;  %vm8320_vm11 = vmor %vm1182_vm6, %vm1183_vm7 }
  0x18   : > { %7198 = vmatpush3.bf16.msra.mxu1 %v7926_v5  ;;  %1067 = vst [vmem:[#allocation2 + $0x8] sm:$0x1] %v10176_v3  ;;  %v478_v29 = vshll.u32 %v439_v22, 16  ;;  %v483_v30 = vshrl.u32 %v440_v23, 16  ;;  %v486_v31 = vshll.u32 %v440_v23, 16  ;;  %v7936_v33 = vld [vmem:[%s10170_s2 + $0x78] sm:$0xff]   ;;  %vm8292_vm10 = vmor %vm471_vm1, %vm472_vm8 }
  0x19   : > { %7390 = vmatpush3.bf16.msra.mxu0 %v7927_v6  ;;  %7199 = vmatprep.subr.bf16.mxu1 %v7928_v7  ;;  %v8274_v25 = vrot.slane %v1195_v19, 5  ;;  %v1201_v26 = vrot.slane %v1199_v20, 4  ;;  %v798_v32 = vld [vmem:[#allocation2 + $0xc] sm:$0xf]  ;;  %v477_v34 = vrot.slane %v475_v27, 7  ;;  %v7937_v43 = vld [vmem:[%s10170_s2 + $0x138] sm:$0xff]  }
  0x1a   : > { %7391 = vmatprep.subr.bf16.mxu0 %v7929_v8  ;;  %v804_v35 = vld [vmem:[#allocation2 + $0x14] sm:$0x1]  ;;  %v485_v36 = vrot.slane %v483_v30, 7  ;;  %v441_v42 = vld [vmem:[%s8250_s30 + $0x8] sm:$0xf]  ;;  %v8306_v50 = vld [vmem:[%s10170_s2] sm:$0xff]  }
  0x1b   : > { %v1202_v38 = vor.u32 %v1201_v26, %v8274_v25  ;;  %v480_v40 = vor.u32 %v478_v29, %v477_v34  ;;  %v481_v41 = vrot.slane %v477_v34, 4  ;;  %v442_v46 = vld [vmem:[%s8250_s30 + $0xc] sm:$0xf]  ;;  %v492_v47 = vshrl.u32 %v441_v42, 16  ;;  %v807_v53 = vld [vmem:[#allocation2 + $0x18] sm:$0xf] }
  0x1c   : > { %7200 = vmatpush3.bf16.msra.mxu1 %v7928_v7  ;;  %v488_v44 = vor.u32 %v486_v31, %v485_v36  ;;  %v490_v45 = vrot.slane %v485_v36, 4  ;;  %v495_v48 = vshll.u32 %v441_v42, 16  ;;  %v500_v51 = vshrl.u32 %v442_v46, 16  ;;  %v8315_v57 = vld [vmem:[%s10170_s2 + $0x140] sm:$0xff]   ;;  %v444_v13 = vld [vmem:[%s8250_s30 + $0x14] sm:$0xf] }
  0x1d   : > { %7392 = vmatpush3.bf16.msra.mxu0 %v7929_v8  ;;  %7201 = vmatprep.subr.bf16.mxu1 %v7930_v9  ;;  %v799_v49 = vsel %vm8285_vm9, %v480_v40, %v798_v32  ;;  %v503_v52 = vshll.u32 %v442_v46, 16  ;;  %v1118_v54 = vld [vmem:[#allocation2] sm:$0xf]  ;;  %v494_v58 = vrot.slane %v492_v47, 7  ;;  %v1203_v62 = vrot.slane %v1202_v38, 4 }
  0x1e   : > { %7393 = vmatprep.subr.bf16.mxu0 %v7931_v10  ;;  %v489_v55 = vsel %vm8292_vm10, %v481_v41, %v488_v44  ;;  %800 = vst [vmem:[#allocation2 + $0xc] sm:$0xf] %v799_v49  ;;  %v805_v56 = vsel %vm8254_vm3, %v490_v45, %v804_v35  ;;  %v1186_v60 = vshrl.u32 %v1118_v54, 16  ;;  %v1189_v61 = vshll.u32 %v1118_v54, 16  ;;  %v811_v4 = vld [vmem:[#allocation2 + $0x20] sm:$0x1] }
  0x1f   : > { %v1166_v59 = vld [vmem:[#allocation2 + $0x8] sm:$0x1]  ;;  %801 = vst [vmem:[#allocation2 + $0x10] sm:$0xf] %v489_v55  ;;  %806 = vst [vmem:[#allocation2 + $0x14] sm:$0x1] %v805_v56  ;;  %v497_v1 = vor.u32 %v495_v48, %v494_v58 }
  0x20   : > { %7202 = vmatpush3.bf16.msra.mxu1 %v7930_v9  ;;  %v502_v63 = vrot.slane %v500_v51, 7  ;;  %v1205_v0 = vshll.u32 %v1166_v59, 16  ;;  %v498_v2 = vrot.slane %v494_v58, 4  ;;  %v1188_v5 = vrot.slane %v1186_v60, 4  ;;  %v443_v9 = vld [vmem:[%s8250_s30 + $0x10] sm:$0xf] }
  0x21   : > { %7394 = vmatpush3.bf16.msra.mxu0 %v7931_v10  ;;  %7203 = vmatprep.subr.bf16.mxu1 %v7932_v11  ;;  %v1191_v6 = vrot.slane %v1189_v61, 5  ;;  %v509_v15 = vshrl.u32 %v443_v9, 16  ;;  %v512_v16 = vshll.u32 %v443_v9, 16  ;;  %v517_v21 = vshrl.u32 %v444_v13, 16  ;;  %v818_v46 = vld [vmem:[#allocation2 + $0x2c] sm:$0x1] }
  0x22   : > { %7395 = vmatprep.subr.bf16.mxu0 %v7933_v12  ;;  %v505_v7 = vor.u32 %v503_v52, %v502_v63  ;;  %v507_v8 = vrot.slane %v502_v63, 4  ;;  %v520_v23 = vshll.u32 %v444_v13, 16  ;;  %v8351_v51 = vld [vmem:[%s8250_s30 + $0x18] sm:$0xf]  ;;  %v8050_v37 = vld [vmem:[%s10170_s2 + $0x80] sm:$0xff]  }
  0x23   : > { %v1192_v17 = vor.u32 %v1191_v6, %v1188_v5  ;;  %v511_v22 = vrot.slane %v509_v15, 7  ;;  %v519_v29 = vrot.slane %v517_v21, 7 }
  0x24   : > { %7204 = vmatpush3.bf16.msra.mxu1 %v7932_v11  ;;  %v1207_v11 = vrot.slane %v1205_v0, 5  ;;  %v506_v19 = vsel %vm8292_vm10, %v498_v2, %v505_v7  ;;  %v812_v20 = vsel %vm8254_vm3, %v507_v8, %v811_v4  ;;  %v529_v2 = vshll.u32 %v8351_v51, 16 }
  0x25   : > { %7396 = vmatpush3.bf16.msra.mxu0 %v7933_v12  ;;  %7205 = vmatprep.subr.bf16.mxu1 %v7934_v24  ;;  %v808_v12 = vsel %vm8285_vm9, %v497_v1, %v807_v53  ;;  %810 = vst [vmem:[#allocation2 + $0x1c] sm:$0xf] %v506_v19  ;;  %813 = vst [vmem:[#allocation2 + $0x20] sm:$0x1] %v812_v20  ;;  %v1193_v26 = vrot.slane %v1192_v17, 4  ;;  %v515_v34 = vrot.slane %v511_v22, 4 }
  0x26   : > { %7397 = vmatprep.subr.bf16.mxu0 %v7935_v28  ;;  %809 = vst [vmem:[#allocation2 + $0x18] sm:$0xf] %v808_v12  ;;  %v1208_v27 = vsel %vm8320_vm11, %v1203_v62, %v1207_v11  ;;  %v970_v31 = vld [vmem:[#allocation2 + $0x14] sm:$0x1]  ;;  %v1121_v32 = vld [vmem:[#allocation2 + $0x10] sm:$0xf]  ;;  %v522_v45 = vor.u32 %v520_v23, %v519_v29 }
  0x27   : > { %v1198_v35 = vsel %vm8320_vm11, %v1193_v26, %v8274_v25  ;;  %v971_v36 = vsel %vm8262_vm4, 0, %v970_v31  ;;  %v1219_v38 = vshll.u32 %v1121_v32, 16  ;;  %v1223_v40 = vshrl.u32 %v1121_v32, 16  ;;  %v8342_v41 = vld [vmem:[#allocation2 + $0x10] sm:$0xf] }
  0x28   : > { %7206 = vmatpush3.bf16.msra.mxu1 %v7934_v24  ;;  %v814_v24 = vld [vmem:[#allocation2 + $0x24] sm:$0xf]  ;;  %v6435_v42 = vcombine.low %v1198_v35, %v1208_v27  ;;  %972 = vst [vmem:[#allocation2 + $0x14] sm:$0x1] %v971_v36  ;;  %v3097_v44 = vshrl.u32 %v8342_v41, 16  ;;  %v524_v48 = vrot.slane %v519_v29, 4  ;;  %v523_v55 = vsel %vm8292_vm10, %v515_v34, %v522_v45 }
  0x29   : > { %7398 = vmatpush3.bf16.msra.mxu0 %v7935_v28  ;;  %7207 = vmatprep.subr.bf16.mxu1 %v7936_v33  ;;  %v915_v28 = vld [vmem:[#allocation2 + $0xc] sm:$0x1]  ;;  %v8346_v47 = vrot.slane %v1219_v38, 5  ;;  %v1225_v25 = vrot.slane %v1223_v40, 4  ;;  %817 = vst [vmem:[#allocation2 + $0x28] sm:$0xf] %v523_v55 }
  0x2a   : > { %7399 = vmatprep.subr.bf16.mxu0 %v7937_v43  ;;  %v916_v30 = vsel %vm8254_vm3, 0, %v915_v28  ;;  %7209 = vmatprep.mubr.bf16.mxu1 %v6435_v42  ;;  %v3099_v53 = vrot.slane %v3097_v44, 4  ;;  %v819_v61 = vsel %vm8254_vm3, %v524_v48, %v818_v46  ;;  %v526_v1 = vshrl.u32 %v8351_v51, 16 }
  0x2b   : > { %917 = vst [vmem:[#allocation2 + $0xc] sm:$0x1] %v916_v30  ;;  %v1226_v56 = vor.u32 %v1225_v25, %v8346_v47  ;;  %820 = vst [vmem:[#allocation2 + $0x2c] sm:$0x1] %v819_v61 }
  0x2c   : > { %7208 = vmatpush3.bf16.msra.mxu1 %v7936_v33  ;;  %v514_v33 = vor.u32 %v512_v16, %v511_v22  ;;  %v973_v59 = vld [vmem:[#allocation2 + $0x20] sm:$0x1]  ;;  %v8360_v60 = vld [vmem:[#allocation2 + $0x1c] sm:$0xf] }
  0x2d   : > { %7400 = vmatpush3.bf16.msra.mxu0 %v7937_v43  ;;  %7241 = vmatprep.subr.bf16.mxu1 %v8306_v50  ;;  %v3093_v43 = vshll.u32 %v8342_v41, 16  ;;  %v918_v54 = vld [vmem:[#allocation2 + $0x18] sm:$0x1]  ;;  %v974_v63 = vsel %vm8262_vm4, 0, %v973_v59  ;;  %v8367_v0 = vld [vmem:[#allocation2 + $0x1c] sm:$0xf] }
  0x2e   : > { %7433 = vmatprep.subr.bf16.mxu0 %v8315_v57  ;;  %v815_v49 = vsel %vm8285_vm9, %v514_v33, %v814_v24  ;;  %v919_v58 = vsel %vm8254_vm3, 0, %v918_v54  ;;  %v1227_v4 = vrot.slane %v1226_v56, 4  ;;  %975 = vst [vmem:[#allocation2 + $0x20] sm:$0x1] %v974_v63  ;;  %v3117_v5 = vshll.u32 %v8360_v60, 16 }
  0x2f   : > { %v8353_v52 = vrot.slane %v3093_v43, 5  ;;  %816 = vst [vmem:[#allocation2 + $0x24] sm:$0xf] %v815_v49  ;;  %920 = vst [vmem:[#allocation2 + $0x18] sm:$0x1] %v919_v58  ;;  %v3121_v6 = vshrl.u32 %v8360_v60, 16 }
  0x30   : > { %v3862_v7 = vrot.slane %v8360_v60, 5  ;;  %v1243_v11 = vshll.u32 %v8367_v0, 16  ;;  %v1247_v12 = vshrl.u32 %v8367_v0, 16  ;;  %v1167_v13 = vld [vmem:[#allocation2 + $0x14] sm:$0x1]  ;;  %v8379_v27 = vrot.slane %v3117_v5, 5 }
  0x31   : > { %v3100_v62 = vor.u32 %v3099_v53, %v8353_v52  ;;  %v8376_v17 = vld [vmem:[#allocation2 + $0x14] sm:$0x1]  ;;  %v1229_v19 = vshll.u32 %v1167_v13, 16  ;;  %v3123_v31 = vrot.slane %v3121_v6, 4  ;;  %v1125_v13 = vld [vmem:[#allocation2 + $0x28] sm:$0xf] }
  0x32   : > { %v1120_v8 = vld [vmem:[#allocation2 + $0xc] sm:$0xf]  ;;  %v3103_v26 = vshll.u32 %v8376_v17, 16  ;;  %v3858_v34 = vrot.slane %v8376_v17, 5  ;;  %v8384_v36 = vrot.slane %v3862_v7, 4 }
  0x33   : > { %v3035_v9 = vld [vmem:[#allocation2 + $0xc] sm:$0xf]  ;;  %v1210_v15 = vshrl.u32 %v1120_v8, 16  ;;  %v1213_v16 = vshll.u32 %v1120_v8, 16  ;;  %v3101_v22 = vrot.slane %v3100_v62, 4  ;;  %v1231_v28 = vrot.slane %v1229_v19, 5 }
  0x34   : > { %v3084_v20 = vshrl.u32 %v3035_v9, 16  ;;  %v3087_v21 = vshll.u32 %v3035_v9, 16  ;;  %v3105_v33 = vrot.slane %v3103_v26, 5  ;;  %v3124_v48 = vor.u32 %v3123_v31, %v8379_v27  ;;  %v976_v9 = vld [vmem:[#allocation2 + $0x2c] sm:$0x1] }
  0x35   : > { %v1212_v23 = vrot.slane %v1210_v15, 4  ;;  %v1215_v24 = vrot.slane %v1213_v16, 5  ;;  %v1232_v38 = vsel %vm8320_vm11, %v1227_v4, %v1231_v28  ;;  %v8388_v42 = vld [vmem:[#allocation2 + $0x20] sm:$0x1]  ;;  %v7941_v15 = vld [vmem:[%s10170_s2 + $0x8] sm:$0xff]   ;;  %v1271_v31 = vshrl.u32 %v1125_v13, 16 }
  0x36   : > { %v3086_v29 = vrot.slane %v3084_v20, 4  ;;  %v3089_v30 = vrot.slane %v3087_v21, 5  ;;  %v3038_v35 = vld [vmem:[#allocation2 + $0x18] sm:$0xf]  ;;  %v3106_v25 = vsel %vm8320_vm11, %v3101_v22, %v3105_v33  ;;  %v3127_v49 = vshll.u32 %v8388_v42, 16 }
  0x37   : > { %v1216_v32 = vor.u32 %v1215_v24, %v1212_v23  ;;  %v3108_v43 = vshrl.u32 %v3038_v35, 16  ;;  %v3111_v44 = vshll.u32 %v3038_v35, 16  ;;  %v1122_v45 = vld [vmem:[#allocation2 + $0x18] sm:$0xf]  ;;  %v1168_v53 = vld [vmem:[#allocation2 + $0x20] sm:$0x1] }
  0x38   : > { %v3090_v40 = vor.u32 %v3089_v30, %v3086_v29  ;;  %v3865_v58 = vrot.slane %v8388_v42, 5  ;;  %v921_v59 = vld [vmem:[#allocation2 + $0x24] sm:$0x1]  ;;  %v3125_v62 = vrot.slane %v3124_v48, 4  ;;  %v3129_v63 = vrot.slane %v3127_v49, 5 }
  0x39   : > { %v1217_v46 = vrot.slane %v1216_v32, 4  ;;  %v3110_v55 = vrot.slane %v3108_v43, 4  ;;  %v3113_v56 = vrot.slane %v3111_v44, 5  ;;  %v1234_v0 = vshrl.u32 %v1122_v45, 16  ;;  %v3042_v21 = vld [vmem:[#allocation2 + $0x28] sm:$0xf] }
  0x3a   : > { %v3091_v54 = vrot.slane %v3090_v40, 4  ;;  %v1237_v8 = vshll.u32 %v1122_v45, 16  ;;  %v1245_v20 = vrot.slane %v1243_v11, 5  ;;  %v1253_v24 = vshll.u32 %v1168_v53, 16  ;;  %v446_v26 = vld [vmem:[%s8250_s30 + $0x1c] sm:$0xf] }
  0x3b   : > { %v1222_v61 = vsel %vm8320_vm11, %v1217_v46, %v8346_v47  ;;  %v3114_v6 = vor.u32 %v3113_v56, %v3110_v55  ;;  %v3130_v47 = vsel %vm8320_vm11, %v3125_v62, %v3129_v63  ;;  %v1236_v19 = vrot.slane %v1234_v0, 4  ;;  %v821_v48 = vld [vmem:[#allocation2 + $0x30] sm:$0xf]  ;;  %v8429_v56 = vld [vmem:[%s8250_s30 + $0x20] sm:$0xf]  ;;  %v7947_v63 = vld [vmem:[%s10170_s2 + $0x18] sm:$0xff]  }
  0x3c   : > { %v6436_v4 = vcombine.low %v1222_v61, %v1232_v38  ;;  %v3096_v5 = vsel %vm8320_vm11, %v3091_v54, %v8353_v52  ;;  %v1239_v23 = vrot.slane %v1237_v8, 5  ;;  %v1249_v52 = vrot.slane %v1247_v12, 4  ;;  %v7940_v38 = vld [vmem:[%s10170_s2 + $0x148] sm:$0xff]  }
  0x3d   : > { %v6595_v16 = vcombine.low %v3096_v5, %v3106_v25  ;;  %v3115_v22 = vrot.slane %v3114_v6, 4  ;;  %v922_v28 = vsel %vm8254_vm3, 0, %v921_v59  ;;  %v977_v29 = vsel %vm8262_vm4, 0, %v976_v9 }
  0x3e   : > { %7210 = vmatmul.mubr.bf16.vlgmr.msra.gmra.mrb[0].mxu1 %v6436_v4  ;;  %v1267_v30 = vshll.u32 %v1125_v13, 16  ;;  %v1240_v32 = vor.u32 %v1239_v23, %v1236_v19  ;;  %v1250_v33 = vor.u32 %v1249_v52, %v1245_v20  ;;  %v1255_v12 = vrot.slane %v1253_v24, 5  ;;  %923 = vst [vmem:[#allocation2 + $0x24] sm:$0x1] %v922_v28  ;;  %978 = vst [vmem:[#allocation2 + $0x2c] sm:$0x1] %v977_v29 }
  0x3f   : > { %7401 = vmatprep.mubr.bf16.mxu0 %v6595_v16  ;;  %7242 = vmatpush3.bf16.msra.mxu1 %v8306_v50  ;;  %v3120_v11 = vsel %vm8320_vm11, %v3115_v22, %v8379_v27  ;;  %v7944_v50 = vld [vmem:[%s10170_s2 + $0x10] sm:$0xff]   ;;  %v1273_v43 = vrot.slane %v1271_v31, 4  ;;  %v3141_v27 = vshll.u32 %v3042_v21, 16  ;;  %v3145_v46 = vshrl.u32 %v3042_v21, 16  ;;  %v7950_v13 = vld [vmem:[%s10170_s2 + $0x20] sm:$0xff]   ;;  %v7943_v31 = vld [vmem:[%s10170_s2 + $0x158] sm:$0xff]  }
  0x40   : > { %7243 = vmatprep.subr.bf16.mxu1 %v7941_v15  ;;  %v6596_v35 = vcombine.low %v3120_v11, %v3130_v47  ;;  %v8421_v40 = vrot.slane %v1267_v30, 5  ;;  %v1241_v44 = vrot.slane %v1240_v32, 4  ;;  %v1251_v45 = vrot.slane %v1250_v33, 4  ;;  %v825_v24 = vld [vmem:[#allocation2 + $0x38] sm:$0x1] }
  0x41   : > { %v528_v25 = vrot.slane %v526_v1, 7  ;;  %v8426_v53 = vrot.slane %v3141_v27, 5  ;;  %v534_v54 = vshrl.u32 %v446_v26, 16  ;;  %v537_v55 = vshll.u32 %v446_v26, 16  ;;  %v448_v11 = vld [vmem:[%s8250_s30 + $0x24] sm:$0xf] }
  0x42   : > { %7402 = vmatmul.mubr.bf16.vlgmr.msra.gmra.mrb[0].mxu0 %v6596_v35  ;;  %v1274_v49 = vor.u32 %v1273_v43, %v8421_v40  ;;  %v1246_v59 = vsel %vm8320_vm11, %v1241_v44, %v1245_v20  ;;  %v1256_v61 = vsel %vm8320_vm11, %v1251_v45, %v1255_v12  ;;  %v3147_v1 = vrot.slane %v3145_v46, 4  ;;  %v828_v35 = vld [vmem:[#allocation2 + $0x3c] sm:$0xf]  ;;  %v8466_v43 = vld [vmem:[%s10170_s2 + $0x28] sm:$0xff]  }
  0x43   : > { %7244 = vmatpush3.bf16.msra.mxu1 %v7941_v15  ;;  %7434 = vmatpush3.bf16.msra.mxu0 %v8315_v57  ;;  %v531_v62 = vor.u32 %v529_v2, %v528_v25  ;;  %v6437_v0 = vcombine.low %v1246_v59, %v1256_v61  ;;  %v7942_v57 = vld [vmem:[%s10170_s2 + $0x150] sm:$0xff]   ;;  %v532_v5 = vrot.slane %v528_v25, 4  ;;  %v536_v6 = vrot.slane %v534_v54, 7 }
  0x44   : > { %7245 = vmatprep.subr.bf16.mxu1 %v7944_v50  ;;  %7435 = vmatprep.subr.bf16.mxu0 %v7940_v38  ;;  %v8441_v4 = vrot.slane %v1274_v49, 4  ;;  %v3148_v8 = vor.u32 %v3147_v1, %v8426_v53  ;;  %v543_v2 = vshrl.u32 %v8429_v56, 16  ;;  %v546_v9 = vshll.u32 %v8429_v56, 16  ;;  %v7945_v1 = vld [vmem:[%s10170_s2 + $0x160] sm:$0xff]  }
  0x45   : > { %v822_v51 = vsel %vm8285_vm9, %v531_v62, %v821_v48  ;;  %7213 = vmatprep.mubr.bf16.mxu1 %v6437_v0  ;;  %v1124_v15 = vld [vmem:[#allocation2 + $0x24] sm:$0xf]  ;;  %v1169_v16 = vld [vmem:[#allocation2 + $0x2c] sm:$0x1]  ;;  %v539_v19 = vor.u32 %v537_v55, %v536_v6  ;;  %v541_v45 = vrot.slane %v536_v6, 4  ;;  %v551_v49 = vshrl.u32 %v448_v11, 16 }
  0x46   : > { %v3041_v47 = vld [vmem:[#allocation2 + $0x24] sm:$0xf]  ;;  %823 = vst [vmem:[#allocation2 + $0x30] sm:$0xf] %v822_v51  ;;  %v1258_v20 = vshrl.u32 %v1124_v15, 16  ;;  %v1261_v21 = vshll.u32 %v1124_v15, 16  ;;  %v8670_v60 = vsel %vm8645_vm14, %v8384_v36, %v3865_v58 }
  0x47   : > { %7246 = vmatpush3.bf16.msra.mxu1 %v7944_v50  ;;  %7436 = vmatpush3.bf16.msra.mxu0 %v7940_v38  ;;  %v1277_v22 = vshll.u32 %v1169_v16, 16  ;;  %v3043_v23 = vld [vmem:[#allocation2 + $0x2c] sm:$0x1]  ;;  %v3132_v52 = vshrl.u32 %v3041_v47, 16  ;;  %v3135_v26 = vshll.u32 %v3041_v47, 16  ;;  %v8454_v28 = vrot.slane %v3148_v8, 4 }
  0x48   : > { %7247 = vmatprep.subr.bf16.mxu1 %v7947_v63  ;;  %v3151_v29 = vshll.u32 %v3043_v23, 16  ;;  %7437 = vmatprep.subr.bf16.mxu0 %v7942_v57  ;;  %v540_v30 = vsel %vm8292_vm10, %v532_v5, %v539_v19  ;;  %v1260_v32 = vrot.slane %v1258_v20, 4  ;;  %v1263_v33 = vrot.slane %v1261_v21, 5  ;;  %v449_v38 = vld [vmem:[%s8250_s30 + $0x28] sm:$0xf] }
  0x49   : > { %v1279_v12 = vrot.slane %v1277_v22, 5  ;;  %v3134_v50 = vrot.slane %v3132_v52, 4  ;;  %824 = vst [vmem:[#allocation2 + $0x34] sm:$0xf] %v540_v30  ;;  %v3137_v27 = vrot.slane %v3135_v26, 5  ;;  %v545_v46 = vrot.slane %v543_v2, 7 }
  0x4a   : > { %v3153_v44 = vrot.slane %v3151_v29, 5  ;;  %v1264_v25 = vor.u32 %v1263_v33, %v1260_v32  ;;  %v554_v54 = vshll.u32 %v448_v11, 16  ;;  %v826_v59 = vsel %vm8254_vm3, %v541_v45, %v825_v24  ;;  %v8480_v62 = vld [vmem:[%s8250_s30 + $0x2c] sm:$0xf]  ;;  %v832_v2 = vld [vmem:[#allocation2 + $0x44] sm:$0x1] }
  0x4b   : > { %7248 = vmatpush3.bf16.msra.mxu1 %v7947_v63  ;;  %v1280_v48 = vsel %vm8320_vm11, %v8441_v4, %v1279_v12  ;;  %7438 = vmatpush3.bf16.msra.mxu0 %v7942_v57  ;;  %v3138_v55 = vor.u32 %v3137_v27, %v3134_v50  ;;  %v548_v61 = vor.u32 %v546_v9, %v545_v46  ;;  %v549_v4 = vrot.slane %v545_v46, 4  ;;  %v7946_v15 = vld [vmem:[%s10170_s2 + $0x168] sm:$0xff]   ;;  %v8493_v22 = vld [vmem:[%s8250_s30 + $0x30] sm:$0xf]  ;;  %v8513_v50 = vld [vmem:[%s8250_s30 + $0x34] sm:$0xf] }
  0x4c   : > { %7249 = vmatprep.subr.bf16.mxu1 %v7950_v13  ;;  %v3154_v56 = vsel %vm8320_vm11, %v8454_v28, %v3153_v44  ;;  %7439 = vmatprep.subr.bf16.mxu0 %v7943_v31  ;;  %v1265_v63 = vrot.slane %v1264_v25, 4  ;;  %827 = vst [vmem:[#allocation2 + $0x38] sm:$0x1] %v826_v59  ;;  %v553_v57 = vrot.slane %v551_v49, 7  ;;  %v560_v5 = vshrl.u32 %v449_v38, 16  ;;  %v7954_v11 = vld [vmem:[%s10170_s2 + $0x30] sm:$0xff]  }
  0x4d   : > { %v924_v0 = vld [vmem:[#allocation2 + $0x30] sm:$0x1]  ;;  %v3139_v6 = vrot.slane %v3138_v55, 4  ;;  %v829_v51 = vsel %vm8285_vm9, %v548_v61, %v828_v35  ;;  %v563_v9 = vshll.u32 %v449_v38, 16  ;;  %v835_v21 = vld [vmem:[#allocation2 + $0x48] sm:$0xf] }
  0x4e   : > { %v925_v8 = vsel %vm8254_vm3, 0, %v924_v0  ;;  %v1270_v16 = vsel %vm8320_vm11, %v1265_v63, %v8421_v40  ;;  %v556_v47 = vor.u32 %v554_v54, %v553_v57  ;;  %v558_v19 = vrot.slane %v553_v57, 4  ;;  %830 = vst [vmem:[#allocation2 + $0x3c] sm:$0xf] %v829_v51  ;;  %v7948_v54 = vld [vmem:[%s10170_s2 + $0x170] sm:$0xff]  }
  0x4f   : > { %7250 = vmatpush3.bf16.msra.mxu1 %v7950_v13  ;;  %926 = vst [vmem:[#allocation2 + $0x30] sm:$0x1] %v925_v8  ;;  %7440 = vmatpush3.bf16.msra.mxu0 %v7943_v31  ;;  %v562_v20 = vrot.slane %v560_v5, 7  ;;  %v6438_v23 = vcombine.low %v1270_v16, %v1280_v48  ;;  %v3144_v13 = vsel %vm8320_vm11, %v3139_v6, %v8426_v53  ;;  %v568_v24 = vshrl.u32 %v8480_v62, 16  ;;  %v7949_v16 = vld [vmem:[%s10170_s2 + $0x178] sm:$0xff]  }
  0x50   : > { %7251 = vmatprep.subr.bf16.mxu1 %v8466_v43  ;;  %v8499_v52 = vld [vmem:[#allocation2 + $0x34] sm:$0xf]  ;;  %7441 = vmatprep.subr.bf16.mxu0 %v7945_v1  ;;  %v571_v26 = vshll.u32 %v8480_v62, 16  ;;  %v6597_v28 = vcombine.low %v3144_v13, %v3154_v56  ;;  %v557_v32 = vsel %vm8292_vm10, %v549_v4, %v556_v47  ;;  %v833_v33 = vsel %vm8254_vm3, %v558_v19, %v832_v2  ;;  %v8052_v39 = vld [vmem:[#allocation2 + $0x24] sm:$0xf] }
  0x51   : > { %v1127_v40 = vld [vmem:[#allocation2 + $0x34] sm:$0xf]  ;;  %v3165_v29 = vshll.u32 %v8499_v52, 16  ;;  %v3169_v30 = vshrl.u32 %v8499_v52, 16  ;;  %7214 = vmatmul.mubr.bf16.gmra.mrb[4].mxu1 %v6438_v23  ;;  %v565_v12 = vor.u32 %v563_v9, %v562_v20  ;;  %831 = vst [vmem:[#allocation2 + $0x40] sm:$0xf] %v557_v32 }
  0x52   : > { %v1291_v31 = vshll.u32 %v1127_v40, 16  ;;  %v1295_v53 = vshrl.u32 %v1127_v40, 16  ;;  %7405 = vmatprep.mubr.bf16.mxu0 %v6597_v28  ;;  %834 = vst [vmem:[#allocation2 + $0x44] sm:$0x1] %v833_v33  ;;  %v566_v44 = vrot.slane %v562_v20, 4  ;;  %v570_v25 = vrot.slane %v568_v24, 7 }
  0x53   : > { %v8515_v35 = vrot.slane %v3165_v29, 5  ;;  %v3171_v38 = vrot.slane %v3169_v30, 4  ;;  %7442 = vmatpush3.bf16.msra.mxu0 %v7945_v1  ;;  %v979_v45 = vld [vmem:[#allocation2 + $0x38] sm:$0x1]  ;;  %v836_v48 = vsel %vm8285_vm9, %v565_v12, %v835_v21  ;;  %v577_v49 = vshrl.u32 %v8493_v22, 16  ;;  %7252 = vmatpush3.bf16.msra.mxu1 %v8466_v43 }
  0x54   : > { %v8517_v27 = vrot.slane %v1291_v31, 5  ;;  %v1297_v46 = vrot.slane %v1295_v53, 4  ;;  %7443 = vmatprep.subr.bf16.mxu0 %v7946_v15  ;;  %v980_v55 = vsel %vm8262_vm4, 0, %v979_v45  ;;  %837 = vst [vmem:[#allocation2 + $0x48] sm:$0xf] %v836_v48  ;;  %v580_v59 = vshll.u32 %v8493_v22, 16  ;;  %7253 = vmatprep.subr.bf16.mxu1 %v7954_v11 }
  0x55   : > { %v3172_v56 = vor.u32 %v3171_v38, %v8515_v35  ;;  %v585_v61 = vshrl.u32 %v8513_v50, 16  ;;  %981 = vst [vmem:[#allocation2 + $0x38] sm:$0x1] %v980_v55  ;;  %v927_v0 = vld [vmem:[#allocation2 + $0x3c] sm:$0x1]  ;;  %v573_v4 = vor.u32 %v571_v26, %v570_v25  ;;  %v8543_v40 = vrot.slane %v577_v49, 7 }
  0x56   : > { %v3044_v1 = vld [vmem:[#allocation2 + $0x30] sm:$0xf]  ;;  %v1298_v63 = vor.u32 %v1297_v46, %v8517_v27  ;;  %v928_v2 = vsel %vm8254_vm3, 0, %v927_v0  ;;  %v8552_v31 = vld [vmem:[%s10170_s2 + $0x180] sm:$0xff]  }
  0x57   : > { %v1126_v62 = vld [vmem:[#allocation2 + $0x30] sm:$0xf]  ;;  %v3156_v57 = vshrl.u32 %v3044_v1, 16  ;;  %v3159_v43 = vshll.u32 %v3044_v1, 16  ;;  %v8532_v5 = vrot.slane %v3172_v56, 4  ;;  %7444 = vmatpush3.bf16.msra.mxu0 %v7946_v15  ;;  %v574_v9 = vsel %vm8292_vm10, %v566_v44, %v573_v4  ;;  %7254 = vmatpush3.bf16.msra.mxu1 %v7954_v11 }
  0x58   : > { %v1282_v6 = vshrl.u32 %v1126_v62, 16  ;;  %v1285_v8 = vshll.u32 %v1126_v62, 16  ;;  %v8534_v51 = vrot.slane %v1298_v63, 4  ;;  %7445 = vmatprep.subr.bf16.mxu0 %v7948_v54  ;;  %929 = vst [vmem:[#allocation2 + $0x3c] sm:$0x1] %v928_v2  ;;  %v575_v15 = vrot.slane %v570_v25, 4 }
  0x59   : > { %v3158_v47 = vrot.slane %v3156_v57, 4  ;;  %v3161_v19 = vrot.slane %v3159_v43, 5  ;;  %838 = vst [vmem:[#allocation2 + $0x4c] sm:$0xf] %v574_v9  ;;  %v839_v21 = vld [vmem:[#allocation2 + $0x50] sm:$0x1]  ;;  %v8563_v25 = vor.u32 %v580_v59, %v8543_v40 }
  0x5a   : > { %v1284_v20 = vrot.slane %v1282_v6, 4  ;;  %v1287_v22 = vrot.slane %v1285_v8, 5  ;;  %v982_v23 = vld [vmem:[#allocation2 + $0x44] sm:$0x1]  ;;  %v1129_v13 = vld [vmem:[#allocation2 + $0x40] sm:$0xf]  ;;  %v840_v33 = vsel %vm8254_vm3, %v575_v15, %v839_v21 }
  0x5b   : > { %v3162_v24 = vor.u32 %v3161_v19, %v3158_v47  ;;  %v983_v26 = vsel %vm8262_vm4, 0, %v982_v23  ;;  %v1315_v28 = vshll.u32 %v1129_v13, 16  ;;  %v1319_v29 = vshrl.u32 %v1129_v13, 16  ;;  %v8547_v30 = vld [vmem:[#allocation2 + $0x40] sm:$0xf]  ;;  %7446 = vmatpush3.bf16.msra.mxu0 %v7948_v54  ;;  %v7956_v59 = vld [vmem:[%s10170_s2 + $0x38] sm:$0xff]  }
  0x5c   : > { %v1288_v11 = vor.u32 %v1287_v22, %v1284_v20  ;;  %984 = vst [vmem:[#allocation2 + $0x44] sm:$0x1] %v983_v26  ;;  %v3189_v53 = vshll.u32 %v8547_v30, 16  ;;  %v3193_v32 = vshrl.u32 %v8547_v30, 16  ;;  %v930_v12 = vld [vmem:[#allocation2 + $0x48] sm:$0x1]  ;;  %7447 = vmatprep.subr.bf16.mxu0 %v7949_v16  ;;  %7255 = vmatprep.subr.bf16.mxu1 %v7956_v59 }
  0x5d   : > { %v8558_v38 = vld [vmem:[#allocation2 + $0x38] sm:$0x1]  ;;  %v3163_v44 = vrot.slane %v3162_v24, 4  ;;  %v8560_v46 = vrot.slane %v1315_v28, 5  ;;  %841 = vst [vmem:[#allocation2 + $0x50] sm:$0x1] %v840_v33  ;;  %7256 = vmatpush3.bf16.msra.mxu1 %v7956_v59 }
  0x5e   : > { %v1170_v45 = vld [vmem:[#allocation2 + $0x38] sm:$0x1]  ;;  %v3175_v48 = vshll.u32 %v8558_v38, 16  ;;  %v1289_v49 = vrot.slane %v1288_v11, 4  ;;  %v1321_v55 = vrot.slane %v1319_v29, 4  ;;  %v8569_v1 = vrot.slane %v3189_v53, 5 }
  0x5f   : > { %v1301_v54 = vshll.u32 %v1170_v45, 16  ;;  %v3168_v56 = vsel %vm8320_vm11, %v3163_v44, %v8515_v35  ;;  %v3195_v62 = vrot.slane %v3193_v32, 4  ;;  %v931_v63 = vsel %vm8254_vm3, 0, %v930_v12  ;;  %7448 = vmatpush3.bf16.msra.mxu0 %v7949_v16  ;;  %v1128_v43 = vld [vmem:[#allocation2 + $0x3c] sm:$0xf] }
  0x60   : > { %v3177_v0 = vrot.slane %v3175_v48, 5  ;;  %v1294_v4 = vsel %vm8320_vm11, %v1289_v49, %v8517_v27  ;;  %v1322_v35 = vor.u32 %v1321_v55, %v8560_v46  ;;  %v3047_v6 = vld [vmem:[#allocation2 + $0x3c] sm:$0xf]  ;;  %932 = vst [vmem:[#allocation2 + $0x48] sm:$0x1] %v931_v63  ;;  %7481 = vmatprep.subr.bf16.mxu0 %v8552_v31  ;;  %v1306_v8 = vshrl.u32 %v1128_v43, 16 }
  0x61   : > { %v1303_v57 = vrot.slane %v1301_v54, 5  ;;  %v1309_v2 = vshll.u32 %v1128_v43, 16  ;;  %v3180_v9 = vshrl.u32 %v3047_v6, 16  ;;  %v3183_v16 = vshll.u32 %v3047_v6, 16  ;;  %v8588_v15 = vld [vmem:[#allocation2 + $0x4c] sm:$0xf] }
  0x62   : > { %v3178_v47 = vsel %vm8320_vm11, %v8532_v5, %v3177_v0  ;;  %v1323_v19 = vrot.slane %v1322_v35, 4  ;;  %v3196_v20 = vor.u32 %v3195_v62, %v8569_v1  ;;  %v1131_v21 = vld [vmem:[#allocation2 + $0x4c] sm:$0xf]  ;;  %v1308_v24 = vrot.slane %v1306_v8, 4  ;;  %v7960_v55 = vld [vmem:[%s10170_s2 + $0x80] sm:$0xff]  }
  0x63   : > { %v1304_v27 = vsel %vm8320_vm11, %v8534_v51, %v1303_v57  ;;  %v6598_v22 = vcombine.low %v3168_v56, %v3178_v47  ;;  %v1171_v13 = vld [vmem:[#allocation2 + $0x44] sm:$0x1]  ;;  %v1311_v26 = vrot.slane %v1309_v2, 5  ;;  %v3182_v5 = vrot.slane %v3180_v9, 4  ;;  %7289 = vmatprep.subr.bf16.mxu1 %v7960_v55 }
  0x64   : > { %v6439_v23 = vcombine.low %v1294_v4, %v1304_v27  ;;  %v8590_v28 = vld [vmem:[#allocation2 + $0x44] sm:$0x1]  ;;  %v1325_v29 = vshll.u32 %v1171_v13, 16  ;;  %v3185_v11 = vrot.slane %v3183_v16, 5  ;;  %v3197_v53 = vrot.slane %v3196_v20, 4 }
  0x65   : > { %v985_v32 = vld [vmem:[#allocation2 + $0x50] sm:$0x1]  ;;  %7406 = vmatmul.mubr.bf16.gmra.mrb[4].mxu0 %v6598_v22  ;;  %v1312_v51 = vor.u32 %v1311_v26, %v1308_v24  ;;  %v3199_v33 = vshll.u32 %v8590_v28, 16  ;;  %v3213_v44 = vshll.u32 %v8588_v15, 16  ;;  %v3217_v49 = vshrl.u32 %v8588_v15, 16 }
  0x66   : > { %7217 = vmatprep.mubr.bf16.mxu1 %v6439_v23  ;;  %v986_v12 = vsel %vm8262_vm4, 0, %v985_v32  ;;  %v1327_v45 = vrot.slane %v1325_v29, 5  ;;  %v3186_v48 = vor.u32 %v3185_v11, %v3182_v5  ;;  %v1339_v54 = vshll.u32 %v1131_v21, 16  ;;  %v453_v26 = vld [vmem:[%s8250_s30 + $0x38] sm:$0xf] }
  0x67   : > { %987 = vst [vmem:[#allocation2 + $0x50] sm:$0x1] %v986_v12  ;;  %v1313_v56 = vrot.slane %v1312_v51, 4  ;;  %v3201_v62 = vrot.slane %v3199_v33, 5  ;;  %v3050_v63 = vld [vmem:[#allocation2 + $0x48] sm:$0xf] }
  0x68   : > { %v3215_v59 = vrot.slane %v3213_v44, 5  ;;  %v1343_v0 = vshrl.u32 %v1131_v21, 16  ;;  %v1328_v4 = vsel %vm8320_vm11, %v1323_v19, %v1327_v45  ;;  %v3187_v57 = vrot.slane %v3186_v48, 4  ;;  %v1130_v6 = vld [vmem:[#allocation2 + $0x48] sm:$0xf] }
  0x69   : > { %v3204_v43 = vshrl.u32 %v3050_v63, 16  ;;  %v3207_v35 = vshll.u32 %v3050_v63, 16  ;;  %v1318_v8 = vsel %vm8320_vm11, %v1313_v56, %v8560_v46  ;;  %v3202_v2 = vsel %vm8320_vm11, %v3197_v53, %v3201_v62  ;;  %v842_v21 = vld [vmem:[#allocation2 + $0x54] sm:$0xf] }
  0x6a   : > { %v3219_v9 = vrot.slane %v3217_v49, 4  ;;  %v1330_v16 = vshrl.u32 %v1130_v6, 16  ;;  %v6440_v47 = vcombine.low %v1318_v8, %v1328_v4  ;;  %v3192_v27 = vsel %vm8320_vm11, %v3187_v57, %v8569_v1  ;;  %v846_v49 = vld [vmem:[#allocation2 + $0x5c] sm:$0x1] }
  0x6b   : > { %v3206_v19 = vrot.slane %v3204_v43, 4  ;;  %v3209_v20 = vrot.slane %v3207_v35, 5  ;;  %v6599_v22 = vcombine.low %v3192_v27, %v3202_v2  ;;  %v1333_v24 = vshll.u32 %v1130_v6, 16 }
  0x6c   : > { %v3220_v23 = vor.u32 %v3219_v9, %v3215_v59  ;;  %v1332_v13 = vrot.slane %v1330_v16, 4  ;;  %7218 = vmatmul.mubr.bf16.gmra.mrb[8].mxu1 %v6440_v47  ;;  %v1341_v29 = vrot.slane %v1339_v54, 5  ;;  %v1345_v5 = vrot.slane %v1343_v0, 4  ;;  %v454_v54 = vld [vmem:[%s8250_s30 + $0x3c] sm:$0xf] }
  0x6d   : > { %v3210_v46 = vor.u32 %v3209_v20, %v3206_v19  ;;  %v583_v11 = vrot.slane %v8543_v40, 4  ;;  %7409 = vmatprep.mubr.bf16.mxu0 %v6599_v22  ;;  %v1335_v51 = vrot.slane %v1333_v24, 5  ;;  %v843_v33 = vsel %vm8285_vm9, %v8563_v25, %v842_v21  ;;  %v456_v16 = vld [vmem:[%s8250_s30 + $0x44] sm:$0xf]  ;;  %v849_v20 = vld [vmem:[#allocation2 + $0x60] sm:$0xf] }
  0x6e   : > { %v8612_v53 = vld [vmem:[#allocation2 + $0x50] sm:$0x1]  ;;  %v3221_v32 = vrot.slane %v3220_v23, 4  ;;  %v1346_v45 = vor.u32 %v1345_v5, %v1341_v29  ;;  %844 = vst [vmem:[#allocation2 + $0x54] sm:$0xf] %v843_v33  ;;  %v587_v55 = vrot.slane %v585_v61, 7 }
  0x6f   : > { %v1172_v1 = vld [vmem:[#allocation2 + $0x50] sm:$0x1]  ;;  %v3211_v12 = vrot.slane %v3210_v46, 4  ;;  %v3223_v44 = vshll.u32 %v8612_v53, 16  ;;  %v1336_v40 = vor.u32 %v1335_v51, %v1332_v13  ;;  %v588_v56 = vshll.u32 %v8513_v50, 16 }
  0x70   : > { %v1349_v48 = vshll.u32 %v1172_v1, 16  ;;  %v594_v62 = vshrl.u32 %v453_v26, 16  ;;  %v1347_v0 = vrot.slane %v1346_v45, 4  ;;  %v592_v35 = vrot.slane %v587_v55, 4  ;;  %v455_v50 = vld [vmem:[%s8250_s30 + $0x40] sm:$0xf] }
  0x71   : > { %v3216_v25 = vsel %vm8320_vm11, %v3211_v12, %v3215_v59  ;;  %v3225_v63 = vrot.slane %v3223_v44, 5  ;;  %v1337_v57 = vrot.slane %v1336_v40, 4  ;;  %v590_v43 = vor.u32 %v588_v56, %v587_v55  ;;  %v853_v24 = vld [vmem:[#allocation2 + $0x68] sm:$0x1]  ;;  %v8640_v44 = vld [vmem:[#allocation2 + $0xc] sm:$0xe] }
  0x72   : > { %v1351_v4 = vrot.slane %v1349_v48, 5  ;;  %v596_v6 = vrot.slane %v594_v62, 7  ;;  %v597_v2 = vshll.u32 %v453_v26, 16  ;;  %v602_v9 = vshrl.u32 %v454_v54, 16  ;;  %v3790_v26 = vld [vmem:[#allocation2 + $0x18] sm:$0xe] }
  0x73   : > { %v3226_v8 = vsel %vm8320_vm11, %v3221_v32, %v3225_v63  ;;  %v1342_v59 = vsel %vm8320_vm11, %v1337_v57, %v1341_v29  ;;  %v591_v27 = vsel %vm8292_vm10, %v583_v11, %v590_v43  ;;  %v847_v19 = vsel %vm8254_vm3, %v592_v35, %v846_v49  ;;  %v856_v40 = vld [vmem:[#allocation2 + $0x6c] sm:$0xf]  ;;  %v860_v43 = vld [vmem:[#allocation2 + $0x74] sm:$0x1] }
  0x74   : > { %v1352_v61 = vsel %vm8320_vm11, %v1347_v0, %v1351_v4  ;;  %v6600_v47 = vcombine.low %v3216_v25, %v3226_v8  ;;  %845 = vst [vmem:[#allocation2 + $0x58] sm:$0xf] %v591_v27  ;;  %848 = vst [vmem:[#allocation2 + $0x5c] sm:$0x1] %v847_v19  ;;  %v599_v22 = vor.u32 %v597_v2, %v596_v6  ;;  %v600_v23 = vrot.slane %v596_v6, 4 }
  0x75   : > { %v6441_v21 = vcombine.low %v1342_v59, %v1352_v61  ;;  %v604_v13 = vrot.slane %v602_v9, 7  ;;  %v933_v46 = vld [vmem:[#allocation2 + $0x54] sm:$0x1]  ;;  %v605_v5 = vshll.u32 %v454_v54, 16  ;;  %v611_v32 = vshrl.u32 %v455_v50, 16 }
  0x76   : > { %7410 = vmatmul.mubr.bf16.gmra.mrb[8].mxu0 %v6600_v47  ;;  %v614_v29 = vshll.u32 %v455_v50, 16  ;;  %v619_v1 = vshrl.u32 %v456_v16, 16  ;;  %v934_v11 = vsel %vm8254_vm3, 0, %v933_v46  ;;  %v850_v33 = vsel %vm8285_vm9, %v599_v22, %v849_v20 }
  0x77   : > { %7221 = vmatprep.mubr.bf16.mxu1 %v6441_v21  ;;  %v609_v51 = vrot.slane %v604_v13, 4  ;;  %v622_v12 = vshll.u32 %v456_v16, 16  ;;  %935 = vst [vmem:[#allocation2 + $0x54] sm:$0x1] %v934_v11  ;;  %v607_v45 = vor.u32 %v605_v5, %v604_v13  ;;  %851 = vst [vmem:[#allocation2 + $0x60] sm:$0xf] %v850_v33 }
  0x78   : > { %v613_v48 = vrot.slane %v611_v32, 7  ;;  %v621_v49 = vrot.slane %v619_v1, 7  ;;  %v3855_v56 = vrot.slane %v8342_v41, 5  ;;  %v6620_v62 = vrot.slane %v3790_v26, 9 }
  0x79   : > { %v854_v54 = vsel %vm8254_vm3, %v609_v51, %v853_v24  ;;  %v608_v25 = vsel %vm8292_vm10, %v600_v23, %v607_v45  ;;  %v6619_v35 = vrot.slane %v8640_v44, 9 }
  0x7a   : > { %855 = vst [vmem:[#allocation2 + $0x68] sm:$0x1] %v854_v54  ;;  %v616_v63 = vor.u32 %v614_v29, %v613_v48  ;;  %v617_v0 = vrot.slane %v613_v48, 4  ;;  %v624_v4 = vor.u32 %v622_v12, %v621_v49  ;;  %852 = vst [vmem:[#allocation2 + $0x64] sm:$0xf] %v608_v25  ;;  %v626_v57 = vrot.slane %v621_v49, 4 }
  0x7b   : > { %v8657_v6 = vsel %vm8645_vm14, %v6620_v62, %v3862_v7  ;;  %v988_v8 = vld [vmem:[#allocation2 + $0x5c] sm:$0x1]  ;;  %v1133_v61 = vld [vmem:[#allocation2 + $0x58] sm:$0xf]  ;;  %v3857_v19 = vrot.slane %v3855_v56, 4 }
  0x7c   : > { %v8659_v2 = vld [vmem:[#allocation2 + $0x58] sm:$0xf]  ;;  %v625_v9 = vsel %vm8292_vm10, %v617_v0, %v624_v4  ;;  %v857_v50 = vsel %vm8285_vm9, %v616_v63, %v856_v40  ;;  %v989_v7 = vsel %vm8262_vm4, 0, %v988_v8  ;;  %v1363_v16 = vshll.u32 %v1133_v61, 16 }
  0x7d   : > { %v1367_v47 = vshrl.u32 %v1133_v61, 16  ;;  %v3237_v59 = vshll.u32 %v8659_v2, 16  ;;  %858 = vst [vmem:[#allocation2 + $0x6c] sm:$0xf] %v857_v50  ;;  %859 = vst [vmem:[#allocation2 + $0x70] sm:$0xf] %v625_v9  ;;  %v861_v42 = vsel %vm8254_vm3, %v626_v57, %v860_v43  ;;  %v6652_v36 = vcombine.low %v8657_v6, %v8670_v60 }
  0x7e   : > { %990 = vst [vmem:[#allocation2 + $0x5c] sm:$0x1] %v989_v7  ;;  %v3241_v27 = vshrl.u32 %v8659_v2, 16  ;;  %v1132_v58 = vld [vmem:[#allocation2 + $0x54] sm:$0xf]  ;;  %v8682_v20 = vrot.slane %v1363_v16, 5  ;;  %v8701_v50 = vsel %vm8645_vm14, %v6619_v35, %v3855_v56  ;;  %v8707_v7 = vsel %vm8645_vm14, %v3857_v19, %v3858_v34 }
  0x7f   : > { %v1369_v21 = vrot.slane %v1367_v47, 4  ;;  %v3053_v22 = vld [vmem:[#allocation2 + $0x54] sm:$0xf]  ;;  %862 = vst [vmem:[#allocation2 + $0x74] sm:$0x1] %v861_v42  ;;  %v1354_v23 = vshrl.u32 %v1132_v58, 16 }
  0x80   : > { %v1357_v13 = vshll.u32 %v1132_v58, 16  ;;  %v3228_v24 = vshrl.u32 %v3053_v22, 16  ;;  %v3231_v26 = vshll.u32 %v3053_v22, 16  ;;  %v936_v46 = vld [vmem:[#allocation2 + $0x60] sm:$0x1]  ;;  %v3239_v32 = vrot.slane %v3237_v59, 5 }
  0x81   : > { %v1370_v5 = vor.u32 %v1369_v21, %v8682_v20  ;;  %v3243_v29 = vrot.slane %v3241_v27, 4  ;;  %v937_v1 = vsel %vm8254_vm3, 0, %v936_v46  ;;  %v991_v11 = vld [vmem:[#allocation2 + $0x68] sm:$0x1]  ;;  %v1356_v51 = vrot.slane %v1354_v23, 4 }
  0x82   : > { %v1359_v33 = vrot.slane %v1357_v13, 5  ;;  %v3230_v12 = vrot.slane %v3228_v24, 4  ;;  %v3233_v44 = vrot.slane %v3231_v26, 5  ;;  %938 = vst [vmem:[#allocation2 + $0x60] sm:$0x1] %v937_v1  ;;  %v992_v54 = vsel %vm8262_vm4, 0, %v991_v11 }
  0x83   : > { %v8687_v45 = vld [vmem:[#allocation2 + $0x64] sm:$0xf]  ;;  %v1371_v48 = vrot.slane %v1370_v5, 4  ;;  %v3244_v49 = vor.u32 %v3243_v29, %v3239_v32  ;;  %993 = vst [vmem:[#allocation2 + $0x68] sm:$0x1] %v992_v54  ;;  %v6651_v46 = vcombine.low %v8701_v50, %v8707_v7 }
  0x84   : > { %v3261_v40 = vshll.u32 %v8687_v45, 16  ;;  %v1135_v62 = vld [vmem:[#allocation2 + $0x64] sm:$0xf]  ;;  %v1360_v25 = vor.u32 %v1359_v33, %v1356_v51  ;;  %v3234_v63 = vor.u32 %v3233_v44, %v3230_v12  ;;  %v3265_v0 = vshrl.u32 %v8687_v45, 16  ;;  %v939_v57 = vld [vmem:[#allocation2 + $0x6c] sm:$0x1] }
  0x85   : > { %v1387_v4 = vshll.u32 %v1135_v62, 16  ;;  %v1173_v43 = vld [vmem:[#allocation2 + $0x5c] sm:$0x1]  ;;  %v3245_v61 = vrot.slane %v3244_v49, 4  ;;  %v1391_v41 = vshrl.u32 %v1135_v62, 16  ;;  %v940_v56 = vsel %vm8254_vm3, 0, %v939_v57 }
  0x86   : > { %v8693_v8 = vld [vmem:[#allocation2 + $0x5c] sm:$0x1]  ;;  %v8695_v9 = vrot.slane %v3261_v40, 5  ;;  %v1361_v16 = vrot.slane %v1360_v25, 4  ;;  %v1373_v47 = vshll.u32 %v1173_v43, 16  ;;  %v3235_v59 = vrot.slane %v3234_v63, 4 }
  0x87   : > { %v3247_v27 = vshll.u32 %v8693_v8, 16  ;;  %v994_v42 = vld [vmem:[#allocation2 + $0x74] sm:$0x1]  ;;  %v3267_v58 = vrot.slane %v3265_v0, 4  ;;  %v8710_v21 = vrot.slane %v1387_v4, 5  ;;  %v1393_v24 = vrot.slane %v1391_v41, 4 }
  0x88   : > { %v1366_v17 = vsel %vm8320_vm11, %v1361_v16, %v8682_v20  ;;  %v1375_v35 = vrot.slane %v1373_v47, 5  ;;  %v3240_v34 = vsel %vm8320_vm11, %v3235_v59, %v3239_v32  ;;  %941 = vst [vmem:[#allocation2 + $0x6c] sm:$0x1] %v940_v56  ;;  %v995_v26 = vsel %vm8262_vm4, 0, %v994_v42  ;;  %v1137_v1 = vld [vmem:[#allocation2 + $0x70] sm:$0xf] }
  0x89   : > { %v3249_v19 = vrot.slane %v3247_v27, 5  ;;  %v3056_v22 = vld [vmem:[#allocation2 + $0x60] sm:$0xf]  ;;  %v3268_v23 = vor.u32 %v3267_v58, %v8695_v9  ;;  %996 = vst [vmem:[#allocation2 + $0x74] sm:$0x1] %v995_v26  ;;  %v1394_v0 = vor.u32 %v1393_v24, %v8710_v21  ;;  %v1411_v57 = vshll.u32 %v1137_v1, 16 }
  0x8a   : > { %v1134_v13 = vld [vmem:[#allocation2 + $0x60] sm:$0xf]  ;;  %v1376_v20 = vsel %vm8320_vm11, %v1371_v48, %v1375_v35  ;;  %v3252_v32 = vshrl.u32 %v3056_v22, 16  ;;  %v3255_v29 = vshll.u32 %v3056_v22, 16  ;;  %v457_v11 = vld [vmem:[%s8250_s30 + $0x48] sm:$0xf] }
  0x8b   : > { %v3250_v5 = vsel %vm8320_vm11, %v3245_v61, %v3249_v19  ;;  %v6442_v51 = vcombine.low %v1366_v17, %v1376_v20  ;;  %v8729_v12 = vld [vmem:[#allocation2 + $0x68] sm:$0x1]  ;;  %v3269_v44 = vrot.slane %v3268_v23, 4  ;;  %v1378_v54 = vshrl.u32 %v1134_v13, 16  ;;  %v458_v41 = vld [vmem:[%s8250_s30 + $0x4c] sm:$0xf] }
  0x8c   : > { %v6601_v33 = vcombine.low %v3240_v34, %v3250_v5  ;;  %v1174_v49 = vld [vmem:[#allocation2 + $0x68] sm:$0x1]  ;;  %v3254_v40 = vrot.slane %v3252_v32, 4  ;;  %v3257_v62 = vrot.slane %v3255_v29, 5  ;;  %v3271_v25 = vshll.u32 %v8729_v12, 16 }
  0x8d   : > { %v1381_v48 = vshll.u32 %v1134_v13, 16  ;;  %7222 = vmatmul.mubr.bf16.gmra.mrb[12].mxu1 %v6442_v51  ;;  %v1380_v63 = vrot.slane %v1378_v54, 4  ;;  %v1397_v4 = vshll.u32 %v1174_v49, 16  ;;  %v1415_v47 = vshrl.u32 %v1137_v1, 16  ;;  %v863_v1 = vld [vmem:[#allocation2 + $0x78] sm:$0xf] }
  0x8e   : > { %7413 = vmatprep.mubr.bf16.mxu0 %v6601_v33  ;;  %v3258_v43 = vor.u32 %v3257_v62, %v3254_v40  ;;  %v3273_v61 = vrot.slane %v3271_v25, 5  ;;  %v1395_v59 = vrot.slane %v1394_v0, 4  ;;  %v1413_v58 = vrot.slane %v1411_v57, 5  ;;  %v459_v51 = vld [vmem:[%s8250_s30 + $0x50] sm:$0xf] }
  0x8f   : > { %v1383_v16 = vrot.slane %v1381_v48, 5  ;;  %v1399_v27 = vrot.slane %v1397_v4, 5  ;;  %v1136_v42 = vld [vmem:[#allocation2 + $0x6c] sm:$0xf]  ;;  %v628_v56 = vshrl.u32 %v457_v11, 16  ;;  %v1417_v24 = vrot.slane %v1415_v47, 4 }
  0x90   : > { %v3259_v17 = vrot.slane %v3258_v43, 4  ;;  %v3274_v35 = vsel %vm8320_vm11, %v3269_v44, %v3273_v61  ;;  %v1402_v19 = vshrl.u32 %v1136_v42, 16  ;;  %v1175_v23 = vld [vmem:[#allocation2 + $0x74] sm:$0x1]  ;;  %v1405_v13 = vshll.u32 %v1136_v42, 16 }
  0x91   : > { %v1384_v34 = vor.u32 %v1383_v16, %v1380_v63  ;;  %v1400_v22 = vsel %vm8320_vm11, %v1395_v59, %v1399_v27  ;;  %v630_v26 = vrot.slane %v628_v56, 7  ;;  %v1421_v29 = vshll.u32 %v1175_v23, 16  ;;  %v460_v63 = vld [vmem:[%s8250_s30 + $0x54] sm:$0xf]  ;;  %v867_v43 = vld [vmem:[#allocation2 + $0x80] sm:$0x1] }
  0x92   : > { %v3264_v20 = vsel %vm8320_vm11, %v3259_v17, %v8695_v9  ;;  %v1404_v32 = vrot.slane %v1402_v19, 4  ;;  %v1407_v44 = vrot.slane %v1405_v13, 5  ;;  %v1418_v49 = vor.u32 %v1417_v24, %v1413_v58  ;;  %v3791_v61 = vld [vmem:[#allocation2 + $0x24] sm:$0xe]  ;;  %v8042_v13 = vld [vmem:[#allocation2 + $0x28] sm:$0xf] }
  0x93   : > { %v1385_v5 = vrot.slane %v1384_v34, 4  ;;  %v6602_v33 = vcombine.low %v3264_v20, %v3274_v35  ;;  %v631_v54 = vshll.u32 %v457_v11, 16  ;;  %v1423_v62 = vrot.slane %v1421_v29, 5  ;;  %v870_v17 = vld [vmem:[#allocation2 + $0x84] sm:$0xf] }
  0x94   : > { %v634_v25 = vrot.slane %v630_v26, 4  ;;  %v636_v48 = vshrl.u32 %v458_v41, 16  ;;  %v1408_v9 = vor.u32 %v1407_v44, %v1404_v32  ;;  %v1419_v4 = vrot.slane %v1418_v49, 4  ;;  %v3792_v35 = vld [vmem:[#allocation2 + $0x30] sm:$0xe] }
  0x95   : > { %v1390_v40 = vsel %vm8320_vm11, %v1385_v5, %v8710_v21  ;;  %7414 = vmatmul.mubr.bf16.gmra.mrb[12].mxu0 %v6602_v33  ;;  %v633_v57 = vor.u32 %v631_v54, %v630_v26  ;;  %v639_v16 = vshll.u32 %v458_v41, 16  ;;  %v645_v47 = vshrl.u32 %v459_v51, 16  ;;  %v874_v41 = vld [vmem:[#allocation2 + $0x8c] sm:$0x1]  ;;  %v461_v20 = vld [vmem:[%s8250_s30 + $0x58] sm:$0xf] }
  0x96   : > { %v6443_v0 = vcombine.low %v1390_v40, %v1400_v22  ;;  %7449 = vmatprep.mubr.bf16.mxu0 %v6651_v46  ;;  %v638_v11 = vrot.slane %v636_v48, 7  ;;  %v648_v59 = vshll.u32 %v459_v51, 16  ;;  %v1409_v21 = vrot.slane %v1408_v9, 4  ;;  %v7953_v26 = vld [vmem:[%s10170_s2 + $0x188] sm:$0xff]   ;;  %v462_v5 = vld [vmem:[%s8250_s30 + $0x5c] sm:$0xf] }
  0x97   : > { %v1424_v27 = vsel %vm8320_vm11, %v1419_v4, %v1423_v62  ;;  %v864_v42 = vsel %vm8285_vm9, %v633_v57, %v863_v1  ;;  %v653_v56 = vshrl.u32 %v460_v63, 16  ;;  %v647_v7 = vrot.slane %v645_v47, 7  ;;  %v8767_v54 = vld [vmem:[%s8250_s30 + $0x60] sm:$0xf] }
  0x98   : > { %7225 = vmatprep.mubr.bf16.mxu1 %v6443_v0  ;;  %v641_v34 = vor.u32 %v639_v16, %v638_v11  ;;  %v643_v50 = vrot.slane %v638_v11, 4  ;;  %865 = vst [vmem:[#allocation2 + $0x78] sm:$0xf] %v864_v42  ;;  %v656_v46 = vshll.u32 %v460_v63, 16  ;;  %v1414_v19 = vsel %vm8320_vm11, %v1409_v21, %v1413_v58  ;;  %v8772_v0 = vld [vmem:[%s8250_s30 + $0x64] sm:$0xf] }
  0x99   : > { %v655_v22 = vrot.slane %v653_v56, 7  ;;  %v6621_v23 = vrot.slane %v3791_v61, 9  ;;  %v3869_v24 = vrot.slane %v8042_v13, 5  ;;  %v6444_v32 = vcombine.low %v1414_v19, %v1424_v27  ;;  %v877_v42 = vld [vmem:[#allocation2 + $0x90] sm:$0xf] }
  0x9a   : > { %v642_v29 = vsel %vm8292_vm10, %v634_v25, %v641_v34  ;;  %v868_v1 = vsel %vm8254_vm3, %v643_v50, %v867_v43  ;;  %v650_v58 = vor.u32 %v648_v59, %v647_v7  ;;  %v651_v51 = vrot.slane %v647_v7, 4  ;;  %v8043_v25 = vld [vmem:[#allocation2 + $0x2c] sm:$0x1] }
  0x9b   : > { %866 = vst [vmem:[#allocation2 + $0x7c] sm:$0xf] %v642_v29  ;;  %869 = vst [vmem:[#allocation2 + $0x80] sm:$0x1] %v868_v1  ;;  %v658_v33 = vor.u32 %v656_v46, %v655_v22  ;;  %v660_v44 = vrot.slane %v655_v22, 4  ;;  %v3870_v49 = vsel %vm8645_vm14, %v6621_v23, %v3869_v24  ;;  %7226 = vmatmul.mubr.bf16.gmra.mrb[16].mxu1 %v6444_v32  ;;  %v3871_v62 = vrot.slane %v3869_v24, 4 }
  0x9c   : > { %v871_v40 = vsel %vm8285_vm9, %v650_v58, %v870_v17  ;;  %v3872_v48 = vrot.slane %v8043_v25, 5  ;;  %v6622_v63 = vrot.slane %v3792_v35, 9  ;;  %v3876_v57 = vrot.slane %v8499_v52, 5  ;;  %v881_v35 = vld [vmem:[#allocation2 + $0x98] sm:$0x1] }
  0x9d   : > { %7450 = vmatmul.mubr.bf16.vlgmr.msra.gmra.mrb[0].mxu0 %v6652_v36  ;;  %v659_v9 = vsel %vm8292_vm10, %v651_v51, %v658_v33  ;;  %872 = vst [vmem:[#allocation2 + $0x84] sm:$0xf] %v871_v40  ;;  %v875_v4 = vsel %vm8254_vm3, %v660_v44, %v874_v41  ;;  %v3879_v43 = vrot.slane %v8558_v38, 5  ;;  %v662_v6 = vshrl.u32 %v461_v20, 16  ;;  %v7957_v24 = vld [vmem:[%s10170_s2 + $0x198] sm:$0xff]  }
  0x9e   : > { %7482 = vmatpush3.bf16.msra.mxu0 %v8552_v31  ;;  %873 = vst [vmem:[#allocation2 + $0x88] sm:$0xf] %v659_v9  ;;  %876 = vst [vmem:[#allocation2 + $0x8c] sm:$0x1] %v875_v4  ;;  %v3873_v61 = vsel %vm8645_vm14, %v3871_v62, %v3872_v48  ;;  %v665_v60 = vshll.u32 %v461_v20, 16  ;;  %v670_v36 = vshrl.u32 %v462_v5, 16  ;;  %v3877_v47 = vsel %vm8645_vm14, %v6622_v63, %v3876_v57 }
  0x9f   : > { %v942_v11 = vld [vmem:[#allocation2 + $0x78] sm:$0x1]  ;;  %v6653_v16 = vcombine.low %v3870_v49, %v3873_v61  ;;  %7483 = vmatprep.subr.bf16.mxu0 %v7953_v26  ;;  %v3878_v59 = vrot.slane %v3876_v57, 4  ;;  %v673_v52 = vshll.u32 %v462_v5, 16  ;;  %v7955_v31 = vld [vmem:[%s10170_s2 + $0x190] sm:$0xff]   ;;  %v664_v21 = vrot.slane %v662_v6, 7 }
  0xa0   : > { %v943_v38 = vsel %vm8254_vm3, 0, %v942_v11  ;;  %v672_v27 = vrot.slane %v670_v36, 7  ;;  %v679_v56 = vshrl.u32 %v8767_v54, 16  ;;  %v682_v34 = vshll.u32 %v8767_v54, 16  ;;  %v884_v1 = vld [vmem:[#allocation2 + $0x9c] sm:$0xf] }
  0xa1   : > { %944 = vst [vmem:[#allocation2 + $0x78] sm:$0x1] %v943_v38  ;;  %7453 = vmatprep.mubr.bf16.mxu0 %v6653_v16  ;;  %v3880_v17 = vsel %vm8645_vm14, %v3878_v59, %v3879_v43  ;;  %v687_v50 = vshrl.u32 %v8772_v0, 16  ;;  %v690_v7 = vshll.u32 %v8772_v0, 16  ;;  %v667_v22 = vor.u32 %v665_v60, %v664_v21  ;;  %v3793_v49 = vld [vmem:[#allocation2 + $0x3c] sm:$0xe] }
  0xa2   : > { %v997_v46 = vld [vmem:[#allocation2 + $0x80] sm:$0x1]  ;;  %v1139_v41 = vld [vmem:[#allocation2 + $0x7c] sm:$0xf]  ;;  %v6654_v19 = vcombine.low %v3877_v47, %v3880_v17  ;;  %7484 = vmatpush3.bf16.msra.mxu0 %v7953_v26  ;;  %v668_v23 = vrot.slane %v664_v21, 4  ;;  %v675_v13 = vor.u32 %v673_v52, %v672_v27  ;;  %v677_v29 = vrot.slane %v672_v27, 4 }
  0xa3   : > { %v998_v20 = vsel %vm8262_vm4, 0, %v997_v46  ;;  %v1435_v5 = vshll.u32 %v1139_v41, 16  ;;  %v1439_v32 = vshrl.u32 %v1139_v41, 16  ;;  %7485 = vmatprep.subr.bf16.mxu0 %v7955_v31  ;;  %v878_v51 = vsel %vm8285_vm9, %v667_v22, %v877_v42  ;;  %v888_v36 = vld [vmem:[#allocation2 + $0xa4] sm:$0x1]  ;;  %v7965_v17 = vld [vmem:[%s10170_s2 + $0x1a8] sm:$0xff]  }
  0xa4   : > { %999 = vst [vmem:[#allocation2 + $0x80] sm:$0x1] %v998_v20  ;;  %v945_v58 = vld [vmem:[#allocation2 + $0x84] sm:$0x1]  ;;  %v676_v26 = vsel %vm8292_vm10, %v668_v23, %v675_v13  ;;  %v681_v33 = vrot.slane %v679_v56, 7  ;;  %v689_v44 = vrot.slane %v687_v50, 7  ;;  %v882_v48 = vsel %vm8254_vm3, %v677_v29, %v881_v35 }
  0xa5   : > { %v8808_v54 = vrot.slane %v1435_v5, 5  ;;  %v1441_v40 = vrot.slane %v1439_v32, 4  ;;  %v946_v62 = vsel %vm8254_vm3, 0, %v945_v58  ;;  %v1000_v25 = vld [vmem:[#allocation2 + $0x8c] sm:$0x1]  ;;  %7454 = vmatmul.mubr.bf16.gmra.mrb[4].mxu0 %v6654_v19  ;;  %v7961_v11 = vld [vmem:[%s10170_s2 + $0x1a0] sm:$0xff]  }
  0xa6   : > { %879 = vst [vmem:[#allocation2 + $0x90] sm:$0xf] %v878_v51  ;;  %880 = vst [vmem:[#allocation2 + $0x94] sm:$0xf] %v676_v26  ;;  %v1001_v63 = vsel %vm8262_vm4, 0, %v1000_v25  ;;  %v684_v9 = vor.u32 %v682_v34, %v681_v33  ;;  %v685_v4 = vrot.slane %v681_v33, 4  ;;  %v692_v57 = vor.u32 %v690_v7, %v689_v44  ;;  %7486 = vmatpush3.bf16.msra.mxu0 %v7955_v31 }
  0xa7   : > { %947 = vst [vmem:[#allocation2 + $0x84] sm:$0x1] %v946_v62  ;;  %v8816_v0 = vld [vmem:[#allocation2 + $0x88] sm:$0xf]  ;;  %883 = vst [vmem:[#allocation2 + $0x98] sm:$0x1] %v882_v48  ;;  %v1442_v43 = vor.u32 %v1441_v40, %v8808_v54  ;;  %7487 = vmatprep.subr.bf16.mxu0 %v7957_v24 }
  0xa8   : > { %1002 = vst [vmem:[#allocation2 + $0x8c] sm:$0x1] %v1001_v63  ;;  %v1459_v61 = vshll.u32 %v8816_v0, 16  ;;  %v1463_v6 = vshrl.u32 %v8816_v0, 16  ;;  %v694_v60 = vrot.slane %v689_v44, 4  ;;  %v693_v47 = vsel %vm8292_vm10, %v685_v4, %v692_v57  ;;  %v7969_v63 = vld [vmem:[%s10170_s2 + $0x1b0] sm:$0xff]  }
  0xa9   : > { %v8824_v16 = vld [vmem:[#allocation2 + $0x78] sm:$0xf]  ;;  %v885_v59 = vsel %vm8285_vm9, %v684_v9, %v884_v1  ;;  %v6623_v52 = vrot.slane %v3793_v49, 9  ;;  %v3883_v31 = vrot.slane %v8547_v30, 5  ;;  %v8831_v38 = vld [vmem:[#allocation2 + $0x48] sm:$0xe] }
  0xaa   : > { %v1426_v21 = vshrl.u32 %v8824_v16, 16  ;;  %v1429_v27 = vshll.u32 %v8824_v16, 16  ;;  %v1443_v42 = vrot.slane %v1442_v43, 4  ;;  %v8835_v56 = vrot.slane %v1459_v61, 5  ;;  %886 = vst [vmem:[#allocation2 + $0x9c] sm:$0xf] %v885_v59  ;;  %7488 = vmatpush3.bf16.msra.mxu0 %v7957_v24 }
  0xab   : > { %887 = vst [vmem:[#allocation2 + $0xa0] sm:$0xf] %v693_v47  ;;  %v1465_v35 = vrot.slane %v1463_v6, 4  ;;  %v889_v34 = vsel %vm8254_vm3, %v694_v60, %v888_v36  ;;  %v3885_v30 = vrot.slane %v3883_v31, 4  ;;  %v1176_v50 = vld [vmem:[#allocation2 + $0x80] sm:$0x1]  ;;  %7489 = vmatprep.subr.bf16.mxu0 %v7961_v11  ;;  %v3884_v5 = vsel %vm8645_vm14, %v6623_v52, %v3883_v31 }
  0xac   : > { %v1428_v7 = vrot.slane %v1426_v21, 4  ;;  %v1431_v46 = vrot.slane %v1429_v27, 5  ;;  %890 = vst [vmem:[#allocation2 + $0xa4] sm:$0x1] %v889_v34  ;;  %v3886_v41 = vrot.slane %v8590_v28, 5  ;;  %v6624_v19 = vrot.slane %v8831_v38, 9 }
  0xad   : > { %v1445_v22 = vshll.u32 %v1176_v50, 16  ;;  %v1466_v23 = vor.u32 %v1465_v35, %v8835_v56  ;;  %v948_v13 = vld [vmem:[#allocation2 + $0x90] sm:$0x1]  ;;  %v8845_v20 = vld [vmem:[#allocation2 + $0x94] sm:$0xf]  ;;  %v3890_v24 = vrot.slane %v8588_v15, 5 }
  0xae   : > { %v1432_v32 = vor.u32 %v1431_v46, %v1428_v7  ;;  %v8850_v29 = vld [vmem:[#allocation2 + $0x84] sm:$0xf]  ;;  %v949_v28 = vsel %vm8254_vm3, 0, %v948_v13  ;;  %v1003_v1 = vld [vmem:[#allocation2 + $0x98] sm:$0x1]  ;;  %v1483_v58 = vshll.u32 %v8845_v20, 16  ;;  %v3887_v26 = vsel %vm8645_vm14, %v3885_v30, %v3886_v41  ;;  %7490 = vmatpush3.bf16.msra.mxu0 %v7961_v11 }
  0xaf   : > { %v1447_v51 = vrot.slane %v1445_v22, 5  ;;  %v1177_v33 = vld [vmem:[#allocation2 + $0x8c] sm:$0x1]  ;;  %v1450_v44 = vshrl.u32 %v8850_v29, 16  ;;  %v1453_v49 = vshll.u32 %v8850_v29, 16  ;;  %v1467_v40 = vrot.slane %v1466_v23, 4  ;;  %7491 = vmatprep.subr.bf16.mxu0 %v7965_v17 }
  0xb0   : > { %950 = vst [vmem:[#allocation2 + $0x90] sm:$0x1] %v949_v28  ;;  %v1433_v15 = vrot.slane %v1432_v32, 4  ;;  %v1469_v62 = vshll.u32 %v1177_v33, 16  ;;  %v1004_v25 = vsel %vm8262_vm4, 0, %v1003_v1  ;;  %v8861_v48 = vrot.slane %v1483_v58, 5 }
  0xb1   : > { %v1448_v9 = vsel %vm8320_vm11, %v1443_v42, %v1447_v51  ;;  %v1452_v4 = vrot.slane %v1450_v44, 4  ;;  %v1455_v57 = vrot.slane %v1453_v49, 5  ;;  %1005 = vst [vmem:[#allocation2 + $0x98] sm:$0x1] %v1004_v25  ;;  %v1487_v43 = vshrl.u32 %v8845_v20, 16  ;;  %v7973_v30 = vld [vmem:[%s10170_s2 + $0x1b8] sm:$0xff]  }
  0xb2   : > { %v951_v61 = vld [vmem:[#allocation2 + $0x9c] sm:$0x1]  ;;  %v1438_v6 = vsel %vm8320_vm11, %v1433_v15, %v8808_v54  ;;  %v1471_v60 = vrot.slane %v1469_v62, 5  ;;  %v8874_v11 = vld [vmem:[#allocation2 + $0xa0] sm:$0xf]  ;;  %v6655_v47 = vcombine.low %v3884_v5, %v3887_v26  ;;  %7492 = vmatpush3.bf16.msra.mxu0 %v7965_v17  ;;  %v3891_v34 = vsel %vm8645_vm14, %v6624_v19, %v3890_v24 }
  0xb3   : > { %v952_v36 = vsel %vm8254_vm3, 0, %v951_v61  ;;  %v6445_v59 = vcombine.low %v1438_v6, %v1448_v9  ;;  %v1456_v52 = vor.u32 %v1455_v57, %v1452_v4  ;;  %v1489_v31 = vrot.slane %v1487_v43, 4  ;;  %v1006_v38 = vld [vmem:[#allocation2 + $0xa4] sm:$0x1]  ;;  %v465_v27 = vld [vmem:[%s8250_s30 + $0x68] sm:$0xf]  ;;  %7493 = vmatprep.subr.bf16.mxu0 %v7969_v63 }
  0xb4   : > { %953 = vst [vmem:[#allocation2 + $0x9c] sm:$0x1] %v952_v36  ;;  %v1507_v21 = vshll.u32 %v8874_v11, 16  ;;  %v1472_v54 = vsel %vm8320_vm11, %v1467_v40, %v1471_v60  ;;  %v1007_v42 = vsel %vm8262_vm4, 0, %v1006_v38  ;;  %v1511_v35 = vshrl.u32 %v8874_v11, 16  ;;  %7457 = vmatprep.mubr.bf16.mxu0 %v6655_v47  ;;  %v8907_v25 = vld [vmem:[%s10170_s2 + $0x1c0] sm:$0xff]  }
  0xb5   : > { %7229 = vmatprep.mubr.bf16.mxu1 %v6445_v59  ;;  %v1457_v50 = vrot.slane %v1456_v52, 4  ;;  %v1490_v17 = vor.u32 %v1489_v31, %v8861_v48  ;;  %1008 = vst [vmem:[#allocation2 + $0xa4] sm:$0x1] %v1007_v42  ;;  %v3892_v46 = vrot.slane %v3890_v24, 4  ;;  %v466_v41 = vld [vmem:[%s8250_s30 + $0x6c] sm:$0xf] }
  0xb6   : > { %v8889_v7 = vrot.slane %v1507_v21, 5  ;;  %v1513_v23 = vrot.slane %v1511_v35, 4  ;;  %v3893_v19 = vrot.slane %v8612_v53, 5  ;;  %v696_v13 = vshrl.u32 %v465_v27, 16  ;;  %v891_v26 = vld [vmem:[#allocation2 + $0xa8] sm:$0xf]  ;;  %7494 = vmatpush3.bf16.msra.mxu0 %v7969_v63 }
  0xb7   : > { %v8892_v22 = vld [vmem:[#allocation2 + $0x90] sm:$0xf]  ;;  %v699_v5 = vshll.u32 %v465_v27, 16  ;;  %v1462_v32 = vsel %vm8320_vm11, %v1457_v50, %v8835_v56  ;;  %v1491_v58 = vrot.slane %v1490_v17, 4  ;;  %7495 = vmatprep.subr.bf16.mxu0 %v7973_v30  ;;  %v704_v43 = vshrl.u32 %v466_v41, 16 }
  0xb8   : > { %v1474_v28 = vshrl.u32 %v8892_v22, 16  ;;  %v1477_v1 = vshll.u32 %v8892_v22, 16  ;;  %v6446_v24 = vcombine.low %v1462_v32, %v1472_v54  ;;  %v1178_v51 = vld [vmem:[#allocation2 + $0x98] sm:$0x1]  ;;  %v1514_v33 = vor.u32 %v1513_v23, %v8889_v7  ;;  %v467_v49 = vld [vmem:[%s8250_s30 + $0x70] sm:$0xf] }
  0xb9   : > { %v3894_v53 = vsel %vm8645_vm14, %v3892_v46, %v3893_v19  ;;  %v698_v44 = vrot.slane %v696_v13, 7  ;;  %v1493_v15 = vshll.u32 %v1178_v51, 16  ;;  %v468_v61 = vld [vmem:[%s8250_s30 + $0x74] sm:$0xf]  ;;  %v895_v59 = vld [vmem:[#allocation2 + $0xb0] sm:$0x1] }
  0xba   : > { %v1476_v40 = vrot.slane %v1474_v28, 4  ;;  %v1479_v56 = vrot.slane %v1477_v1, 5  ;;  %v6656_v62 = vcombine.low %v3891_v34, %v3894_v53  ;;  %7230 = vmatmul.mubr.bf16.gmra.mrb[20].mxu1 %v6446_v24  ;;  %v1515_v9 = vrot.slane %v1514_v33, 4  ;;  %7496 = vmatpush3.bf16.msra.mxu0 %v7973_v30  ;;  %v3795_v50 = vld [vmem:[#allocation2 + $0x54] sm:$0xe] }
  0xbb   : > { %v8909_v63 = vld [vmem:[#allocation2 + $0x9c] sm:$0xf]  ;;  %v701_v4 = vor.u32 %v699_v5, %v698_v44  ;;  %v702_v57 = vrot.slane %v698_v44, 4  ;;  %v1495_v60 = vrot.slane %v1493_v15, 5  ;;  %v706_v31 = vrot.slane %v704_v43, 7  ;;  %7529 = vmatprep.subr.bf16.mxu0 %v8907_v25 }
  0xbc   : > { %v1480_v6 = vor.u32 %v1479_v56, %v1476_v40  ;;  %v1498_v36 = vshrl.u32 %v8909_v63, 16  ;;  %v1501_v47 = vshll.u32 %v8909_v63, 16  ;;  %7458 = vmatmul.mubr.bf16.gmra.mrb[8].mxu0 %v6656_v62  ;;  %v1179_v52 = vld [vmem:[#allocation2 + $0xa4] sm:$0x1]  ;;  %v707_v38 = vshll.u32 %v466_v41, 16 }
  0xbd   : > { %v892_v21 = vsel %vm8285_vm9, %v701_v4, %v891_v26  ;;  %v713_v27 = vshrl.u32 %v467_v49, 16  ;;  %v1496_v42 = vsel %vm8320_vm11, %v1491_v58, %v1495_v60  ;;  %v1517_v17 = vshll.u32 %v1179_v52, 16  ;;  %v898_v41 = vld [vmem:[#allocation2 + $0xb4] sm:$0xf]  ;;  %v902_v24 = vld [vmem:[#allocation2 + $0xbc] sm:$0x1] }
  0xbe   : > { %v1481_v54 = vrot.slane %v1480_v6, 4  ;;  %v1500_v35 = vrot.slane %v1498_v36, 4  ;;  %v1503_v34 = vrot.slane %v1501_v47, 5  ;;  %893 = vst [vmem:[#allocation2 + $0xa8] sm:$0xf] %v892_v21  ;;  %v709_v46 = vor.u32 %v707_v38, %v706_v31 }
  0xbf   : > { %v711_v23 = vrot.slane %v706_v31, 4  ;;  %v715_v19 = vrot.slane %v713_v27, 7  ;;  %v716_v5 = vshll.u32 %v467_v49, 16  ;;  %v721_v32 = vshrl.u32 %v468_v61, 16  ;;  %v3796_v51 = vld [vmem:[#allocation2 + $0x60] sm:$0xe] }
  0xc0   : > { %v1486_v13 = vsel %vm8320_vm11, %v1481_v54, %v8861_v48  ;;  %v1504_v30 = vor.u32 %v1503_v34, %v1500_v35  ;;  %v1519_v1 = vrot.slane %v1517_v17, 5  ;;  %v710_v58 = vsel %vm8292_vm10, %v702_v57, %v709_v46  ;;  %v3797_v48 = vld [vmem:[#allocation2 + $0x6c] sm:$0xe]  ;;  %v3060_v4 = vld [vmem:[#allocation2 + $0x70] sm:$0xf] }
  0xc1   : > { %v6447_v28 = vcombine.low %v1486_v13, %v1496_v42  ;;  %v896_v26 = vsel %vm8254_vm3, %v711_v23, %v895_v59  ;;  %894 = vst [vmem:[#allocation2 + $0xac] sm:$0xf] %v710_v58  ;;  %v718_v53 = vor.u32 %v716_v5, %v715_v19  ;;  %v719_v44 = vrot.slane %v715_v19, 4  ;;  %v3065_v55 = vld [vmem:[#allocation2 + $0x84] sm:$0xf] }
  0xc2   : > { %v1505_v33 = vrot.slane %v1504_v30, 4  ;;  %897 = vst [vmem:[#allocation2 + $0xb0] sm:$0x1] %v896_v26  ;;  %v723_v40 = vrot.slane %v721_v32, 7  ;;  %v1520_v49 = vsel %vm8320_vm11, %v1515_v9, %v1519_v1  ;;  %v724_v56 = vshll.u32 %v468_v61, 16 }
  0xc3   : > { %7233 = vmatprep.mubr.bf16.mxu1 %v6447_v28  ;;  %v6625_v15 = vrot.slane %v3795_v50, 9  ;;  %v3897_v62 = vrot.slane %v8659_v2, 5  ;;  %v899_v6 = vsel %vm8285_vm9, %v718_v53, %v898_v41  ;;  %v3900_v60 = vrot.slane %v8693_v8, 5  ;;  %v3061_v2 = vld [vmem:[#allocation2 + $0x74] sm:$0x1] }
  0xc4   : > { %v1510_v57 = vsel %vm8320_vm11, %v1505_v33, %v8889_v7  ;;  %v728_v43 = vrot.slane %v723_v40, 4  ;;  %v726_v59 = vor.u32 %v724_v56, %v723_v40  ;;  %900 = vst [vmem:[#allocation2 + $0xb4] sm:$0xf] %v899_v6  ;;  %v6626_v31 = vrot.slane %v3796_v51, 9  ;;  %v8957_v30 = vld [vmem:[#allocation2 + $0x7c] sm:$0xf] }
  0xc5   : > { %v6448_v36 = vcombine.low %v1510_v57, %v1520_v49  ;;  %v954_v47 = vld [vmem:[#allocation2 + $0xa8] sm:$0x1]  ;;  %v3898_v9 = vsel %vm8645_vm14, %v6625_v15, %v3897_v62  ;;  %v3899_v61 = vrot.slane %v3897_v62, 4  ;;  %v3904_v38 = vrot.slane %v8687_v45, 5  ;;  %v3798_v45 = vld [vmem:[#allocation2 + $0x78] sm:$0xe] }
  0xc6   : > { %v955_v52 = vsel %vm8254_vm3, 0, %v954_v47  ;;  %v903_v7 = vsel %vm8254_vm3, %v728_v43, %v902_v24  ;;  %v727_v8 = vsel %vm8292_vm10, %v719_v44, %v726_v59  ;;  %v3907_v27 = vrot.slane %v8729_v12, 5  ;;  %v3799_v44 = vld [vmem:[#allocation2 + $0x84] sm:$0xe]  ;;  %v8971_v15 = vld [vmem:[#allocation2 + $0x80] sm:$0x1] }
  0xc7   : > { %7234 = vmatmul.mubr.bf16.gmra.mrb[24].mxu1 %v6448_v36  ;;  %956 = vst [vmem:[#allocation2 + $0xa8] sm:$0x1] %v955_v52  ;;  %904 = vst [vmem:[#allocation2 + $0xbc] sm:$0x1] %v903_v7  ;;  %v3901_v21 = vsel %vm8645_vm14, %v3899_v61, %v3900_v60  ;;  %v6627_v54 = vrot.slane %v3797_v48, 9  ;;  %v3905_v35 = vsel %vm8645_vm14, %v6626_v31, %v3904_v38  ;;  %v3906_v34 = vrot.slane %v3904_v38, 4 }
  0xc8   : > { %901 = vst [vmem:[#allocation2 + $0xb8] sm:$0xf] %v727_v8  ;;  %v6657_v42 = vcombine.low %v3898_v9, %v3901_v21  ;;  %v3911_v50 = vrot.slane %v3060_v4, 5  ;;  %v8949_v46 = vld [vmem:[#allocation2 + $0xac] sm:$0xf]  ;;  %v3914_v23 = vrot.slane %v3061_v2, 5 }
  0xc9   : > { %v1009_v17 = vld [vmem:[#allocation2 + $0xb0] sm:$0x1]  ;;  %v1531_v41 = vshll.u32 %v8949_v46, 16  ;;  %v1535_v12 = vshrl.u32 %v8949_v46, 16  ;;  %v3908_v13 = vsel %vm8645_vm14, %v3906_v34, %v3907_v27  ;;  %v6628_v33 = vrot.slane %v3798_v45, 9 }
  0xca   : > { %v1010_v19 = vsel %vm8262_vm4, 0, %v1009_v17  ;;  %7461 = vmatprep.mubr.bf16.mxu0 %v6657_v42  ;;  %v6658_v5 = vcombine.low %v3905_v35, %v3908_v13  ;;  %v3912_v32 = vsel %vm8645_vm14, %v6627_v54, %v3911_v50  ;;  %v3913_v28 = vrot.slane %v3911_v50, 4  ;;  %v3066_v62 = vld [vmem:[#allocation2 + $0x88] sm:$0xf]  ;;  %v8981_v47 = vld [vmem:[#allocation2 + $0x4] sm:$0xf] }
  0xcb   : > { %1011 = vst [vmem:[#allocation2 + $0xb0] sm:$0x1] %v1010_v19  ;;  %v8961_v1 = vrot.slane %v1531_v41, 5  ;;  %v1537_v58 = vrot.slane %v1535_v12, 4  ;;  %v957_v26 = vld [vmem:[#allocation2 + $0xb4] sm:$0x1] }
  0xcc   : > { %v958_v24 = vsel %vm8254_vm3, 0, %v957_v26  ;;  %7462 = vmatmul.mubr.bf16.gmra.mrb[12].mxu0 %v6658_v5  ;;  %v3915_v51 = vsel %vm8645_vm14, %v3913_v28, %v3914_v23  ;;  %v3918_v53 = vrot.slane %v8957_v30, 5  ;;  %v8983_v59 = vld [vmem:[#allocation2] sm:$0xf]  ;;  %v3067_v2 = vld [vmem:[#allocation2 + $0x8c] sm:$0x1] }
  0xcd   : > { %v1538_v48 = vor.u32 %v1537_v58, %v8961_v1  ;;  %959 = vst [vmem:[#allocation2 + $0xb4] sm:$0x1] %v958_v24  ;;  %v6659_v56 = vcombine.low %v3912_v32, %v3915_v51  ;;  %v6459_v9 = vcombine.low %v8983_v59, %v8981_v47  ;;  %v3800_v52 = vld [vmem:[#allocation2 + $0x90] sm:$0xe]  ;;  %v3921_v8 = vrot.slane %v8971_v15, 5 }
  0xce   : > { %v8968_v40 = vld [vmem:[#allocation2 + $0xa8] sm:$0xf]  ;;  %v1012_v49 = vld [vmem:[#allocation2 + $0xbc] sm:$0x1]  ;;  %v3919_v61 = vsel %vm8645_vm14, %v6628_v33, %v3918_v53  ;;  %v3920_v38 = vrot.slane %v3918_v53, 4  ;;  %v6629_v34 = vrot.slane %v3799_v44, 9 }
  0xcf   : > { %v1522_v4 = vshrl.u32 %v8968_v40, 16  ;;  %v1525_v57 = vshll.u32 %v8968_v40, 16  ;;  %v1013_v43 = vsel %vm8262_vm4, 0, %v1012_v49  ;;  %v8977_v6 = vld [vmem:[#allocation2 + $0xb8] sm:$0xf]  ;;  %7465 = vmatprep.mubr.bf16.mxu0 %v6659_v56  ;;  %v1539_v54 = vrot.slane %v1538_v48, 4 }
  0xd0   : > { %1014 = vst [vmem:[#allocation2 + $0xbc] sm:$0x1] %v1013_v43  ;;  %v1555_v60 = vshll.u32 %v8977_v6, 16  ;;  %v1559_v36 = vshrl.u32 %v8977_v6, 16  ;;  %v3069_v21 = vld [vmem:[#allocation2 + $0x94] sm:$0xf]  ;;  %v3922_v17 = vsel %vm8645_vm14, %v3920_v38, %v3921_v8 }
  0xd1   : > { %v1524_v7 = vrot.slane %v1522_v4, 4  ;;  %v1527_v31 = vrot.slane %v1525_v57, 5  ;;  %v3925_v23 = vrot.slane %v3066_v62, 5  ;;  %v3070_v19 = vld [vmem:[#allocation2 + $0x98] sm:$0x1]  ;;  %v6660_v12 = vcombine.low %v3919_v61, %v3922_v17 }
  0xd2   : > { %v1180_v27 = vld [vmem:[#allocation2 + $0xb0] sm:$0x1]  ;;  %v8990_v42 = vrot.slane %v1555_v60, 5  ;;  %v1561_v35 = vrot.slane %v1559_v36, 4  ;;  %v3928_v13 = vrot.slane %v3067_v2, 5  ;;  %v6630_v5 = vrot.slane %v3800_v52, 9 }
  0xd3   : > { %v1528_v50 = vor.u32 %v1527_v31, %v1524_v7  ;;  %v1541_v45 = vshll.u32 %v1180_v27, 16  ;;  %v3801_v32 = vld [vmem:[#allocation2 + $0x9c] sm:$0xe]  ;;  %v3926_v24 = vsel %vm8645_vm14, %v6629_v34, %v3925_v23  ;;  %v3927_v51 = vrot.slane %v3925_v23, 4  ;;  %v3072_v33 = vld [vmem:[#allocation2 + $0xa0] sm:$0xf] }
  0xd4   : > { %v1562_v41 = vor.u32 %v1561_v35, %v8990_v42  ;;  %v8995_v26 = vld [vmem:[#allocation2 + $0xb4] sm:$0xf]  ;;  %v3073_v53 = vld [vmem:[#allocation2 + $0xa4] sm:$0x1]  ;;  %7466 = vmatmul.mubr.bf16.gmra.mrb[16].mxu0 %v6660_v12  ;;  %v3932_v56 = vrot.slane %v3069_v21, 5  ;;  %v3935_v61 = vrot.slane %v3070_v19, 5 }
  0xd5   : > { %v1529_v28 = vrot.slane %v1528_v50, 4  ;;  %v1543_v58 = vrot.slane %v1541_v45, 5  ;;  %v1546_v44 = vshrl.u32 %v8995_v26, 16  ;;  %v1549_v48 = vshll.u32 %v8995_v26, 16  ;;  %v3075_v62 = vld [vmem:[#allocation2 + $0xac] sm:$0xf] }
  0xd6   : > { %v1563_v49 = vrot.slane %v1562_v41, 4  ;;  %v3802_v4 = vld [vmem:[#allocation2 + $0xa8] sm:$0xe]  ;;  %v3929_v36 = vsel %vm8645_vm14, %v3927_v51, %v3928_v13  ;;  %v3076_v2 = vld [vmem:[#allocation2 + $0xb0] sm:$0x1]  ;;  %v3933_v27 = vsel %vm8645_vm14, %v6630_v5, %v3932_v56  ;;  %v6631_v35 = vrot.slane %v3801_v32, 9 }
  0xd7   : > { %v1534_v57 = vsel %vm8320_vm11, %v1529_v28, %v8961_v1  ;;  %v1544_v43 = vsel %vm8320_vm11, %v1539_v54, %v1543_v58  ;;  %v1181_v60 = vld [vmem:[#allocation2 + $0xbc] sm:$0x1]  ;;  %v1548_v7 = vrot.slane %v1546_v44, 4  ;;  %v1551_v31 = vrot.slane %v1549_v48, 5  ;;  %v3803_v8 = vld [vmem:[#allocation2 + $0xb4] sm:$0xe] }
  0xd8   : > { %v6449_v52 = vcombine.low %v1534_v57, %v1544_v43  ;;  %v1565_v38 = vshll.u32 %v1181_v60, 16  ;;  %v6661_v21 = vcombine.low %v3926_v24, %v3929_v36  ;;  %v3934_v1 = vrot.slane %v3932_v56, 4  ;;  %v3078_v34 = vld [vmem:[#allocation2 + $0xb8] sm:$0xf]  ;;  %v3079_v54 = vld [vmem:[#allocation2 + $0xbc] sm:$0x1] }
  0xd9   : > { %v469_v50 = vld [vmem:[%s8250_s30 + $0x78] sm:$0xf]  ;;  %v1552_v45 = vor.u32 %v1551_v31, %v1548_v7  ;;  %v3939_v23 = vrot.slane %v3072_v33, 5  ;;  %v3942_v19 = vrot.slane %v3073_v53, 5  ;;  %v6632_v12 = vrot.slane %v3802_v4, 9 }
  0xda   : > { %7237 = vmatprep.mubr.bf16.mxu1 %v6449_v52  ;;  %v1567_v17 = vrot.slane %v1565_v38, 5  ;;  %7469 = vmatprep.mubr.bf16.mxu0 %v6661_v21  ;;  %v3936_v41 = vsel %vm8645_vm14, %v3934_v1, %v3935_v61  ;;  %v3946_v13 = vrot.slane %v3075_v62, 5  ;;  %v3949_v28 = vrot.slane %v3076_v2, 5  ;;  %v470_v51 = vld [vmem:[%s8250_s30 + $0x7c] sm:$0xf] }
  0xdb   : > { %v1553_v58 = vrot.slane %v1552_v45, 4  ;;  %v6662_v32 = vcombine.low %v3933_v27, %v3936_v41  ;;  %v3940_v24 = vsel %vm8645_vm14, %v6631_v35, %v3939_v23  ;;  %v3941_v44 = vrot.slane %v3939_v23, 4  ;;  %v905_v21 = vld [vmem:[#allocation2 + $0xc0] sm:$0xf]  ;;  %v8047_v45 = vld [vmem:[#allocation2 + $0xc] sm:$0xf] }
  0xdc   : > { %v1568_v5 = vsel %vm8320_vm11, %v1563_v49, %v1567_v17  ;;  %v3947_v33 = vsel %vm8645_vm14, %v6632_v12, %v3946_v13  ;;  %v3948_v53 = vrot.slane %v3946_v13, 4  ;;  %v6633_v48 = vrot.slane %v3803_v8, 9  ;;  %v8049_v41 = vld [vmem:[#allocation2 + $0x18] sm:$0xf]  ;;  %v7964_v13 = vld [vmem:[%s10170_s2 + $0x88] sm:$0xff]  }
  0xdd   : > { %v1558_v56 = vsel %vm8320_vm11, %v1553_v58, %v8990_v42  ;;  %7470 = vmatmul.mubr.bf16.gmra.mrb[20].mxu0 %v6662_v32  ;;  %v3953_v62 = vrot.slane %v3078_v34, 5  ;;  %v3956_v4 = vrot.slane %v3079_v54, 5  ;;  %v730_v57 = vshrl.u32 %v469_v50, 16  ;;  %v909_v54 = vld [vmem:[#allocation2 + $0xc8] sm:$0x1] }
  0xde   : > { %v6450_v49 = vcombine.low %v1558_v56, %v1568_v5  ;;  %v3943_v43 = vsel %vm8645_vm14, %v3941_v44, %v3942_v19  ;;  %v3950_v60 = vsel %vm8645_vm14, %v3948_v53, %v3949_v28  ;;  %v733_v36 = vshll.u32 %v469_v50, 16  ;;  %v9034_v50 = vld [vmem:[#allocation2 + $0x10] sm:$0xf]  ;;  %v9055_v32 = vld [vmem:[#allocation2 + $0x28] sm:$0xf]  ;;  %v7972_v53 = vld [vmem:[%s10170_s2 + $0x98] sm:$0xff]  }
  0xdf   : > { %v6663_v61 = vcombine.low %v3940_v24, %v3943_v43  ;;  %v3954_v2 = vsel %vm8645_vm14, %v6633_v48, %v3953_v62  ;;  %v3955_v52 = vrot.slane %v3953_v62, 4  ;;  %v732_v7 = vrot.slane %v730_v57, 7  ;;  %v7968_v5 = vld [vmem:[%s10170_s2 + $0x90] sm:$0xff]   ;;  %v7976_v43 = vld [vmem:[%s10170_s2 + $0xa0] sm:$0xff]  }
  0xe0   : > { %7238 = vmatmul.mubr.bf16.gmra.mrb[28].mxu1 %v6450_v49  ;;  %v738_v42 = vshrl.u32 %v470_v51, 16  ;;  %v741_v31 = vshll.u32 %v470_v51, 16  ;;  %v6664_v38 = vcombine.low %v3947_v33, %v3950_v60  ;;  %v6460_v17 = vcombine.low %v8047_v45, %v9034_v50  ;;  %v9058_v51 = vld [vmem:[#allocation2 + $0x34] sm:$0xf]  ;;  %v8054_v44 = vld [vmem:[#allocation2 + $0x30] sm:$0xf] }
  0xe1   : > { %7257 = vmatprep.mubr.bf16.mxu1 %v6459_v9  ;;  %7473 = vmatprep.mubr.bf16.mxu0 %v6663_v61  ;;  %v3957_v8 = vsel %vm8645_vm14, %v3955_v52, %v3956_v4  ;;  %v735_v1 = vor.u32 %v733_v36, %v732_v7  ;;  %v736_v35 = vrot.slane %v732_v7, 4  ;;  %v9039_v9 = vld [vmem:[#allocation2 + $0x1c] sm:$0xf]  ;;  %v6462_v24 = vcombine.low %v8052_v39, %v9055_v32  ;;  %v963_v36 = vld [vmem:[#allocation2 + $0xcc] sm:$0x1] }
  0xe2   : > { %v6665_v27 = vcombine.low %v3954_v2, %v3957_v8  ;;  %v740_v34 = vrot.slane %v738_v42, 7  ;;  %v6461_v12 = vcombine.low %v8049_v41, %v9039_v9  ;;  %v6463_v33 = vcombine.low %v8054_v44, %v9058_v51  ;;  %v9071_v61 = vld [vmem:[#allocation2 + $0x40] sm:$0xf]  ;;  %v8056_v2 = vld [vmem:[#allocation2 + $0x3c] sm:$0xf] }
  0xe3   : > { %v906_v59 = vsel %vm8285_vm9, %v735_v1, %v905_v21  ;;  %v6464_v52 = vcombine.low %v8056_v2, %v9071_v61  ;;  %v964_v42 = vsel %vm8254_vm3, 0, %v963_v36  ;;  %v3309_v21 = vshll.u32 %v8957_v30, 16  ;;  %v9103_v39 = vld [vmem:[#allocation2 + $0x58] sm:$0xf]  ;;  %v9115_v36 = vld [vmem:[#allocation2 + $0x6c] sm:$0xf] }
  0xe4   : > { %v743_v23 = vor.u32 %v741_v31, %v740_v34  ;;  %v745_v19 = vrot.slane %v740_v34, 4  ;;  %907 = vst [vmem:[#allocation2 + $0xc0] sm:$0xf] %v906_v59  ;;  %v9076_v31 = vld [vmem:[#allocation2 + $0x4c] sm:$0xf]  ;;  %v3319_v34 = vshll.u32 %v8971_v15, 16 }
  0xe5   : > { %7474 = vmatmul.mubr.bf16.gmra.mrb[24].mxu0 %v6664_v38  ;;  %v8058_v38 = vld [vmem:[#allocation2 + $0x48] sm:$0xf]  ;;  %965 = vst [vmem:[#allocation2 + $0xcc] sm:$0x1] %v964_v42  ;;  %v9092_v59 = vrot.slane %v3309_v21, 5  ;;  %v2238_v42 = vrot.slane %v9055_v32, 5  ;;  %v6471_v21 = vcombine.low %v8892_v22, %v8845_v20 }
  0xe6   : > { %7477 = vmatprep.mubr.bf16.mxu0 %v6665_v27  ;;  %v744_v28 = vsel %vm8292_vm10, %v736_v35, %v743_v23  ;;  %v910_v58 = vsel %vm8254_vm3, %v745_v19, %v909_v54  ;;  %v6465_v8 = vcombine.low %v8058_v38, %v9076_v31  ;;  %v3313_v27 = vshrl.u32 %v8957_v30, 16  ;;  %v7982_v35 = vld [vmem:[%s10170_s2 + $0xa8] sm:$0xff]   ;;  %1115 = vst [vmem:[#allocation2 + $0xcc] sm:$0xf] %v10176_v3  ;;  %v7988_v30 = vld [vmem:[%s10170_s2 + $0xb0] sm:$0xff]  }
  0xe7   : > { %908 = vst [vmem:[#allocation2 + $0xc4] sm:$0xf] %v744_v28  ;;  %911 = vst [vmem:[#allocation2 + $0xc8] sm:$0x1] %v910_v58  ;;  %v2164_v23 = vld [vmem:[#allocation2] sm:$0xe] }
  0xe8   : > { %7258 = vmatmul.mubr.bf16.vlgmr.msra.gmra.mrb[0].mxu1 %v6460_v17  ;;  %v7977_v17 = vld [vmem:[#allocation2 + $0x18] sm:$0xff]   ;;  %v2217_v19 = vrot.slane %v8981_v47, 5  ;;  %10206 = vst [vmem:[#allocation8_spill] sm:$0xff] %v9092_v59  ;;  %v9094_v41 = vrot.slane %v3313_v27, 4  ;;  %v9098_v28 = vld [vmem:[#allocation2 + $0x14] sm:$0x1] }
  0xe9   : > { %7290 = vmatpush3.bf16.msra.mxu1 %v8050_v37  ;;  %7261 = vmatprep.mubr.bf16.mxu1 %v6461_v12  ;;  %v8059_v12 = vld [vmem:[#allocation2 + $0x8] sm:$0x1]  ;;  %v2227_v58 = vrot.slane %v9098_v28, 5  ;;  %v8062_v47 = vld [vmem:[#allocation2 + $0x54] sm:$0xf]  ;;  %v6483_v44 = vrot.slane %v2164_v23, 9 }
  0xea   : > { %7291 = vmatprep.subr.bf16.mxu1 %v7964_v13  ;;  %v9119_v2 = vld [vmem:[#allocation2 + $0x7c] sm:$0xf]  ;;  %v7979_v38 = vld [vmem:[#allocation2 + $0x24] sm:$0xff]   ;;  %v4681_v20 = vld [vmem:[#allocation2 + $0x34] sm:$0xf] }
  0xeb   : > { %v960_v4 = vld [vmem:[#allocation2 + $0xc0] sm:$0x1]  ;;  %v3804_v57 = vld [vmem:[#allocation2 + $0xc0] sm:$0xe]  ;;  %v8004_v22 = vld [vmem:[%s10170_s2 + $0x1e8] sm:$0xff]  }
  0xec   : > { %v961_v60 = vsel %vm8254_vm3, 0, %v960_v4  ;;  %v6634_v7 = vrot.slane %v3804_v57, 9  ;;  %v2219_v4 = vrot.slane %v2217_v19, 4  ;;  %v2166_v57 = vld [vmem:[#allocation2 + $0x18] sm:$0xe]  ;;  %v9148_v23 = vld [vmem:[%s10170_s2 + $0xc0] sm:$0xff]  }
  0xed   : > { %7292 = vmatpush3.bf16.msra.mxu1 %v7964_v13  ;;  %962 = vst [vmem:[#allocation2 + $0xc0] sm:$0x1] %v961_v60  ;;  %v2220_v13 = vrot.slane %v8059_v12, 5  ;;  %v9113_v60 = vld [vmem:[#allocation2 + $0x70] sm:$0xf] }
  0xee   : > { %7293 = vmatprep.subr.bf16.mxu1 %v7968_v5  ;;  %v1015_v48 = vld [vmem:[#allocation2 + $0xc8] sm:$0x1]  ;;  %v3081_v62 = vld [vmem:[#allocation2 + $0xc4] sm:$0xf] }
  0xef   : > { %v1016_v56 = vsel %vm8262_vm4, 0, %v1015_v48  ;;  %v3960_v49 = vrot.slane %v3081_v62, 5  ;;  %v9107_v48 = vld [vmem:[#allocation2 + $0x64] sm:$0xf] }
  0xf0   : > { %7262 = vmatmul.mubr.bf16.gmra.mrb[4].mxu1 %v6462_v24  ;;  %1017 = vst [vmem:[#allocation2 + $0xc8] sm:$0x1] %v1016_v56  ;;  %v6466_v24 = vcombine.low %v8062_v47, %v9103_v39  ;;  %v8064_v56 = vld [vmem:[#allocation2 + $0x60] sm:$0xf]  ;;  %v2170_v47 = vld [vmem:[#allocation2 + $0x48] sm:$0xe] }
  0xf1   : > { %7265 = vmatprep.mubr.bf16.mxu1 %v6463_v33  ;;  %7294 = vmatpush3.bf16.msra.mxu1 %v7968_v5  ;;  %v3962_v1 = vrot.slane %v3960_v49, 4  ;;  %v3961_v54 = vsel %vm8645_vm14, %v6634_v7, %v3960_v49  ;;  %v9101_v5 = vrot.slane %v3319_v34, 5  ;;  %v2165_v33 = vld [vmem:[#allocation2 + $0xc] sm:$0xe]  ;;  %v6467_v62 = vcombine.low %v8064_v56, %v9107_v48  ;;  %v2167_v7 = vld [vmem:[#allocation2 + $0x24] sm:$0xe] }
  0xf2   : > { %7295 = vmatprep.subr.bf16.mxu1 %v7972_v53  ;;  %v2231_v49 = vrot.slane %v9039_v9, 5  ;;  %v7994_v9 = vld [vmem:[%s10170_s2 + $0xb8] sm:$0xff]   ;;  %v6484_v27 = vrot.slane %v2165_v33, 9  ;;  %v9136_v34 = vsel %vm8645_vm14, %v6483_v44, %v2217_v19  ;;  %v6486_v12 = vrot.slane %v2167_v7, 9  ;;  %v4678_v7 = vld [vmem:[#allocation2 + $0x28] sm:$0xf] }
  0xf3   : > { %10207 = vst [vmem:[#allocation9_spill] sm:$0xff] %v9101_v5  ;;  %v2169_v44 = vld [vmem:[#allocation2 + $0x3c] sm:$0xe]  ;;  %v8079_v5 = vld [vmem:[#allocation2 + $0x94] sm:$0xf] }
  0xf4   : > { %v2233_v19 = vrot.slane %v2231_v49, 4  ;;  %v2301_v18 = vrot.slane %v8079_v5, 5 }
  0xf5   : > { %7296 = vmatpush3.bf16.msra.mxu1 %v7972_v53  ;;  %v2224_v53 = vrot.slane %v9034_v50, 5  ;;  %v6468_v50 = vcombine.low %v9115_v36, %v9113_v60  ;;  %v7989_v36 = vld [vmem:[#allocation2 + $0x48] sm:$0xff]  }
  0xf6   : > { %7297 = vmatprep.subr.bf16.mxu1 %v7976_v43 }
  0xf7   : > { %v3082_v14 = vld [vmem:[#allocation2 + $0xc8] sm:$0x1]  ;;  %v2226_v32 = vrot.slane %v2224_v53, 4 }
  0xf8   : > { %7266 = vmatmul.mubr.bf16.gmra.mrb[8].mxu1 %v6464_v52  ;;  %v3963_v45 = vrot.slane %v3082_v14, 5  ;;  %v6469_v52 = vcombine.low %v8824_v16, %v9119_v2  ;;  %v6472_v14 = vcombine.low %v8909_v63, %v8874_v11  ;;  %v2172_v16 = vld [vmem:[#allocation2 + $0x60] sm:$0xe] }
  0xf9   : > { %7269 = vmatprep.mubr.bf16.mxu1 %v6465_v8  ;;  %7298 = vmatpush3.bf16.msra.mxu1 %v7976_v43  ;;  %v3316_v43 = vor.u32 %v9094_v41, %v9092_v59  ;;  %v6470_v8 = vcombine.low %v8850_v29, %v8816_v0  ;;  %v8068_v41 = vld [vmem:[#allocation2 + $0x20] sm:$0x1] }
  0xfa   : > { %v3964_v15 = vsel %vm8645_vm14, %v3962_v1, %v3963_v45  ;;  %7299 = vmatprep.subr.bf16.mxu1 %v7982_v35  ;;  %v2168_v1 = vld [vmem:[#allocation2 + $0x30] sm:$0xe] }
  0xfb   : > { %v6666_v37 = vcombine.low %v3961_v54, %v3964_v15  ;;  %v6485_v54 = vrot.slane %v2166_v57, 9  ;;  %v7983_v45 = vld [vmem:[#allocation2 + $0x30] sm:$0xff]   ;;  %v2234_v15 = vrot.slane %v8068_v41, 5  ;;  %v6487_v33 = vrot.slane %v2168_v1, 9 }
  0xfc   : > { %v2252_v57 = vrot.slane %v9071_v61, 5  ;;  %v9159_v41 = vsel %vm8645_vm14, %v6484_v27, %v2224_v53  ;;  %v9166_v1 = vrot.slane %v3316_v43, 4  ;;  %v9172_v61 = vsel %vm8645_vm14, %v2226_v32, %v2227_v58  ;;  %v4674_v27 = vld [vmem:[#allocation2 + $0x18] sm:$0xf]  ;;  %v8071_v43 = vld [vmem:[#allocation2 + $0x44] sm:$0x1] }
  0xfd   : > { %7478 = vmatmul.mubr.bf16.gmra.mrb[28].mxu0 %v6666_v37  ;;  %7300 = vmatpush3.bf16.msra.mxu1 %v7982_v35  ;;  %v2245_v35 = vrot.slane %v9058_v51, 5  ;;  %v9143_v51 = vsel %vm8645_vm14, %v2219_v4, %v2220_v13  ;;  %v9163_v3 = vsel %vm8645_vm14, %v6485_v54, %v2231_v49  ;;  %v9176_v53 = vsel %vm8645_vm14, %v2233_v19, %v2234_v15  ;;  %v4675_v32 = vld [vmem:[#allocation2 + $0x1c] sm:$0xf]  ;;  %v2171_v19 = vld [vmem:[#allocation2 + $0x54] sm:$0xe] }
  0xfe   : > { %7497 = vmatprep.mubr.bf16.mxu0 %v7977_v17  ;;  %7301 = vmatprep.subr.bf16.mxu1 %v7988_v30  ;;  %v7984_v17 = vld [vmem:[%s10170_s2 + $0x1c8] sm:$0xff]   ;;  %10208 = vst [vmem:[#allocation10_spill] sm:$0xff] %v9166_v1  ;;  %v9180_v49 = vsel %vm8645_vm14, %v6486_v12, %v2238_v42  ;;  %v6488_v58 = vrot.slane %v2169_v44, 9  ;;  %v2254_v54 = vrot.slane %v2252_v57, 4  ;;  %v8072_v15 = vld [vmem:[#allocation2 + $0x50] sm:$0x1] }
  0xff   : > { %v2247_v56 = vrot.slane %v2245_v35, 4  ;;  %v2262_v12 = vrot.slane %v8072_v15, 5 }
 0x100   : > { %7270 = vmatmul.mubr.bf16.gmra.mrb[12].mxu1 %v6466_v24  ;;  %v8069_v24 = vld [vmem:[#allocation2 + $0x2c] sm:$0x1] }
 0x101   : > { %7273 = vmatprep.mubr.bf16.mxu1 %v6467_v62  ;;  %7302 = vmatpush3.bf16.msra.mxu1 %v7988_v30  ;;  %v2240_v30 = vrot.slane %v2238_v42, 4  ;;  %v2241_v13 = vrot.slane %v8069_v24, 5  ;;  %v8070_v62 = vld [vmem:[#allocation2 + $0x38] sm:$0x1]  ;;  %v2259_v24 = vrot.slane %v9076_v31, 5  ;;  %v7990_v31 = vld [vmem:[%s10170_s2 + $0x1d0] sm:$0xff]  }
 0x102   : > { %7303 = vmatprep.subr.bf16.mxu1 %v7994_v9  ;;  %v2248_v4 = vrot.slane %v8070_v62, 5  ;;  %v6490_v62 = vrot.slane %v2171_v19, 9  ;;  %v2273_v19 = vrot.slane %v9107_v48, 5 }
 0x103   : > { %v9188_v28 = vsel %vm8645_vm14, %v2240_v30, %v2241_v13  ;;  %v4723_v30 = vshrl.u32 %v4674_v27, 16  ;;  %v4726_v13 = vshll.u32 %v4674_v27, 16  ;;  %v8073_v27 = vld [vmem:[#allocation2 + $0x5c] sm:$0x1] }
 0x104   : > { %v9198_v42 = vsel %vm8645_vm14, %v2247_v56, %v2248_v4  ;;  %v4736_v56 = vshrl.u32 %v4675_v32, 16 }
 0x105   : > { %7498 = vmatmul.mubr.bf16.vlgmr.msra.gmra.mrb[0].mxu0 %v7979_v38  ;;  %7304 = vmatpush3.bf16.msra.mxu1 %v7994_v9  ;;  %v2255_v9 = vrot.slane %v8071_v43, 5  ;;  %v2266_v38 = vrot.slane %v9103_v39, 5  ;;  %v2261_v39 = vrot.slane %v2259_v24, 4  ;;  %v2269_v43 = vrot.slane %v8073_v27, 5  ;;  %v4677_v27 = vld [vmem:[#allocation2 + $0x24] sm:$0xf] }
 0x106   : > { %7530 = vmatpush3.bf16.msra.mxu0 %v8907_v25  ;;  %7501 = vmatprep.mubr.bf16.mxu0 %v7983_v45  ;;  %v9194_v25 = vsel %vm8645_vm14, %v6487_v33, %v2245_v35  ;;  %v6489_v45 = vrot.slane %v2170_v47, 9  ;;  %v7985_v35 = vld [vmem:[#allocation2 + $0x3c] sm:$0xff]   ;;  %v4732_v33 = vshll.u32 %v4675_v32, 16  ;;  %v4725_v15 = vrot.slane %v4723_v30, 4  ;;  %v4679_v30 = vld [vmem:[#allocation2 + $0x2c] sm:$0x1] }
 0x107   : > { %7531 = vmatprep.subr.bf16.mxu0 %v7984_v17  ;;  %7337 = vmatprep.subr.bf16.mxu1 %v9148_v23  ;;  %v2268_v4 = vrot.slane %v2266_v38, 4  ;;  %v9223_v32 = vsel %vm8645_vm14, %v2254_v54, %v2255_v9  ;;  %v9232_v47 = vsel %vm8645_vm14, %v2261_v39, %v2262_v12  ;;  %v4728_v44 = vrot.slane %v4726_v13, 5  ;;  %v8074_v9 = vld [vmem:[#allocation2 + $0x68] sm:$0x1]  ;;  %v2173_v54 = vld [vmem:[#allocation2 + $0x6c] sm:$0xe] }
 0x108   : > { %7274 = vmatmul.mubr.bf16.gmra.mrb[16].mxu1 %v6468_v50  ;;  %v9228_v50 = vsel %vm8645_vm14, %v6489_v45, %v2259_v24  ;;  %v2276_v48 = vrot.slane %v8074_v9, 5  ;;  %v9237_v37 = vrot.slane %v4732_v33, 5  ;;  %v4738_v24 = vrot.slane %v4736_v56, 4  ;;  %v4676_v12 = vld [vmem:[#allocation2 + $0x20] sm:$0x1] }
 0x109   : > { %7277 = vmatprep.mubr.bf16.mxu1 %v6469_v52  ;;  %v7996_v52 = vld [vmem:[%s10170_s2 + $0x1d8] sm:$0xff]   ;;  %v9241_v45 = vsel %vm8645_vm14, %v6490_v62, %v2266_v38  ;;  %v9245_v39 = vsel %vm8645_vm14, %v2268_v4, %v2269_v43  ;;  %v4747_v13 = vshrl.u32 %v4677_v27, 16  ;;  %v2280_v33 = vrot.slane %v9113_v60, 5  ;;  %v7995_v60 = vld [vmem:[#allocation2 + $0x60] sm:$0xff]   ;;  %v8075_v43 = vld [vmem:[#allocation2 + $0x74] sm:$0x1] }
 0x10a   : > { %7532 = vmatpush3.bf16.msra.mxu0 %v7984_v17  ;;  %v9219_v17 = vsel %vm8645_vm14, %v6488_v58, %v2252_v57  ;;  %v8000_v57 = vld [vmem:[%s10170_s2 + $0x1e0] sm:$0xff]   ;;  %v6491_v58 = vrot.slane %v2172_v16, 9  ;;  %v2275_v16 = vrot.slane %v2273_v19, 4  ;;  %v4756_v9 = vshll.u32 %v4678_v7, 16 }
 0x10b   : > { %7533 = vmatprep.subr.bf16.mxu0 %v7990_v31  ;;  %v4760_v56 = vshrl.u32 %v4678_v7, 16  ;;  %v6492_v62 = vrot.slane %v2173_v54, 9  ;;  %v4729_v4 = vor.u32 %v4728_v44, %v4725_v15  ;;  %v2283_v7 = vrot.slane %v8075_v43, 5 }
 0x10c   : > { %v4742_v0 = vshll.u32 %v4676_v12, 16  ;;  %v4766_v29 = vshll.u32 %v4679_v30, 16  ;;  %v9263_v54 = vsel %vm8645_vm14, %v6491_v58, %v2273_v19  ;;  %v4749_v44 = vrot.slane %v4747_v13, 4  ;;  %v9280_v30 = vld [vmem:[#allocation2 + $0x78] sm:$0xe] }
 0x10d   : > { %7502 = vmatmul.mubr.bf16.gmra.mrb[4].mxu0 %v7985_v35  ;;  %v4750_v35 = vshll.u32 %v4677_v27, 16  ;;  %v4739_v27 = vor.u32 %v4738_v24, %v9237_v37  ;;  %v9272_v24 = vrot.slane %v4756_v9, 5  ;;  %v4762_v12 = vrot.slane %v4760_v56, 4  ;;  %v8008_v9 = vld [vmem:[%s10170_s2 + $0x1f0] sm:$0xff]  }
 0x10e   : > { %7505 = vmatprep.mubr.bf16.mxu0 %v7989_v36  ;;  %7534 = vmatpush3.bf16.msra.mxu0 %v7990_v31  ;;  %v7991_v31 = vld [vmem:[#allocation2 + $0x54] sm:$0xff]   ;;  %v9276_v19 = vsel %vm8645_vm14, %v6492_v62, %v2280_v33  ;;  %v9278_v58 = vrot.slane %v4729_v4, 4  ;;  %v4744_v38 = vrot.slane %v4742_v0, 5  ;;  %v4780_v36 = vshll.u32 %v4681_v20, 16 }
 0x10f   : > { %7535 = vmatprep.subr.bf16.mxu0 %v7996_v52  ;;  %v4752_v15 = vrot.slane %v4750_v35, 5  ;;  %v4740_v43 = vrot.slane %v4739_v27, 4  ;;  %v9287_v62 = vrot.slane %v4766_v29, 5  ;;  %v2287_v4 = vrot.slane %v9119_v2, 5  ;;  %v7997_v27 = vld [vmem:[#allocation2 + $0x6c] sm:$0xff]   ;;  %v7999_v2 = vld [vmem:[#allocation2 + $0x78] sm:$0xff]  }
 0x110   : > { %7278 = vmatmul.mubr.bf16.gmra.mrb[20].mxu1 %v6470_v8  ;;  %v4680_v8 = vld [vmem:[#allocation2 + $0x30] sm:$0xf]  ;;  %v6493_v0 = vrot.slane %v9280_v30, 9  ;;  %v4684_v29 = vld [vmem:[#allocation2 + $0x40] sm:$0xf]  ;;  %v9316_v63 = vrot.slane %v4780_v36, 5 }
 0x111   : > { %7281 = vmatprep.mubr.bf16.mxu1 %v6471_v21  ;;  %v9270_v21 = vsel %vm8645_vm14, %v2275_v16, %v2276_v48  ;;  %v4771_v13 = vshrl.u32 %v4680_v8, 16  ;;  %v4774_v35 = vshll.u32 %v4680_v8, 16  ;;  %v4784_v48 = vshrl.u32 %v4681_v20, 16  ;;  %v4683_v16 = vld [vmem:[#allocation2 + $0x3c] sm:$0xf] }
 0x112   : > { %7536 = vmatpush3.bf16.msra.mxu0 %v7996_v52  ;;  %v2282_v52 = vrot.slane %v2280_v33, 4  ;;  %v4753_v56 = vor.u32 %v4752_v15, %v4749_v44  ;;  %v9298_v8 = vld [vmem:[#allocation2 + $0x88] sm:$0xf]  ;;  %v4795_v33 = vshrl.u32 %v4683_v16, 16  ;;  %v4798_v59 = vshll.u32 %v4683_v16, 16 }
 0x113   : > { %7537 = vmatprep.subr.bf16.mxu0 %v8000_v57  ;;  %v4773_v15 = vrot.slane %v4771_v13, 4  ;;  %v4776_v20 = vrot.slane %v4774_v35, 5  ;;  %v4745_v11 = vsel %vm8320_vm11, %v4740_v43, %v4744_v38  ;;  %v4682_v16 = vld [vmem:[#allocation2 + $0x38] sm:$0x1]  ;;  %v8078_v44 = vld [vmem:[#allocation2 + $0x8c] sm:$0x1] }
 0x114   : > { %v9318_v30 = vrot.slane %v4753_v56, 4  ;;  %v4808_v1 = vshrl.u32 %v4684_v29, 16  ;;  %v10210_v38 = vrot.slane %v9298_v8, 5 }
 0x115   : > { %7506 = vmatmul.mubr.bf16.gmra.mrb[8].mxu0 %v7991_v31  ;;  %v9290_v31 = vld [vmem:[#allocation2 + $0x84] sm:$0xe]  ;;  %v4777_v43 = vor.u32 %v4776_v20, %v4773_v15  ;;  %v4686_v15 = vld [vmem:[#allocation2 + $0x48] sm:$0xf]  ;;  %v9343_v20 = vld [vmem:[#allocation2 + $0x4c] sm:$0xf] }
 0x116   : > { %7509 = vmatprep.mubr.bf16.mxu0 %v7995_v60  ;;  %7538 = vmatpush3.bf16.msra.mxu0 %v8000_v57  ;;  %v9294_v60 = vsel %vm8645_vm14, %v2282_v52, %v2283_v7  ;;  %v4763_v57 = vor.u32 %v4762_v12, %v9272_v24  ;;  %v10209_v7 = vcombine.low %v8968_v40, %v8949_v46  ;;  %v8012_v52 = vld [vmem:[%s10170_s2 + $0x1f8] sm:$0xff]   ;;  %v2289_v46 = vrot.slane %v2287_v4, 4  ;;  %v8077_v40 = vld [vmem:[#allocation2 + $0x80] sm:$0x1] }
 0x117   : > { %7539 = vmatprep.subr.bf16.mxu0 %v8004_v22  ;;  %v4735_v12 = vsel %vm8320_vm11, %v9278_v58, %v9237_v37  ;;  %v2290_v13 = vrot.slane %v8077_v40, 5  ;;  %v6494_v35 = vrot.slane %v9290_v31, 9  ;;  %v2297_v37 = vrot.slane %v8078_v44, 5  ;;  %v9330_v31 = vld [vmem:[%s10170_s2 + $0x200] sm:$0xff]  }
 0x118   : > { %7282 = vmatmul.mubr.bf16.gmra.mrb[24].mxu1 %v6472_v14  ;;  %v4786_v14 = vrot.slane %v4784_v48, 4  ;;  %v4804_v58 = vshll.u32 %v4684_v29, 16  ;;  %v2296_v36 = vrot.slane %v10210_v38, 4  ;;  %v4800_v48 = vrot.slane %v4798_v59, 5  ;;  %v4685_v40 = vld [vmem:[#allocation2 + $0x44] sm:$0x1] }
 0x119   : > { %7285 = vmatprep.mubr.bf16.mxu1 %v10209_v7  ;;  %v9321_v7 = vrot.slane %v4763_v57, 4  ;;  %v4790_v44 = vshll.u32 %v4682_v16, 16  ;;  %v2176_v29 = vld [vmem:[#allocation2 + $0x90] sm:$0xe]  ;;  %v4759_v59 = vsel %vm8320_vm11, %v9318_v30, %v9272_v24  ;;  %v4810_v24 = vrot.slane %v4808_v1, 4 }
 0x11a   : > { %7540 = vmatpush3.bf16.msra.mxu0 %v8004_v22  ;;  %v4797_v22 = vrot.slane %v4795_v33, 4  ;;  %v4787_v57 = vor.u32 %v4786_v14, %v9316_v63  ;;  %v9333_v33 = vcombine.low %v4735_v12, %v4745_v11  ;;  %v4814_v11 = vshll.u32 %v4685_v40, 16  ;;  %v8003_v38 = vld [vmem:[#allocation2 + $0x90] sm:$0xff]  }
 0x11b   : > { %7541 = vmatprep.subr.bf16.mxu0 %v8008_v9  ;;  %v4769_v5 = vsel %vm8320_vm11, %v9321_v7, %v9287_v62  ;;  %v6495_v14 = vrot.slane %v2176_v29, 9  ;;  %v10212_v30 = vcombine.low %v9136_v34, %v9143_v51  ;;  %v8001_v62 = vld [vmem:[#allocation2 + $0x84] sm:$0xff]   ;;  %v4792_v7 = vrot.slane %v4790_v44, 5 }
 0x11c   : > { %v4801_v12 = vor.u32 %v4800_v48, %v4797_v22  ;;  %v4788_v16 = vrot.slane %v4787_v57, 4  ;;  %v4819_v34 = vshrl.u32 %v4686_v15, 16  ;;  %v4822_v51 = vshll.u32 %v4686_v15, 16 }
 0x11d   : > { %7510 = vmatmul.mubr.bf16.gmra.mrb[12].mxu0 %v7997_v27  ;;  %v9341_v27 = vsel %vm8645_vm14, %v6493_v0, %v2287_v4  ;;  %v10211_v4 = vcombine.low %v8995_v26, %v8977_v6  ;;  %v4778_v0 = vrot.slane %v4777_v43, 4  ;;  %v10213_v26 = vrot.slane %v9298_v8, 5  ;;  %v2177_v43 = vld [vmem:[#allocation2 + $0x9c] sm:$0xe]  ;;  %v4689_v8 = vld [vmem:[#allocation2 + $0x54] sm:$0xf] }
 0x11e   : > { %7513 = vmatprep.mubr.bf16.mxu0 %v7999_v2  ;;  %7542 = vmatpush3.bf16.msra.mxu0 %v8008_v9  ;;  %v9351_v9 = vsel %vm8645_vm14, %v2289_v46, %v2290_v13  ;;  %v9353_v2 = vrot.slane %v4804_v58, 5  ;;  %v2303_v46 = vrot.slane %v2301_v18, 4  ;;  %v8080_v13 = vld [vmem:[#allocation2 + $0x98] sm:$0x1]  ;;  %v9372_v22 = vsel %vm8645_vm14, %v2296_v36, %v2297_v37 }
 0x11f   : > { %7543 = vmatprep.subr.bf16.mxu0 %v8012_v52  ;;  %v2304_v58 = vrot.slane %v8080_v13, 5  ;;  %v9367_v1 = vsel %vm8645_vm14, %v6494_v35, %v10213_v26  ;;  %v4828_v48 = vshll.u32 %v9343_v20, 16  ;;  %v4832_v57 = vshrl.u32 %v9343_v20, 16  ;;  %v8002_v35 = vld [vmem:[%s10170_s2 + $0xc8] sm:$0xff]   ;;  %v8005_v13 = vld [vmem:[#allocation2 + $0x9c] sm:$0xff]  }
 0x120   : > { %7286 = vmatmul.mubr.bf16.gmra.mrb[28].mxu1 %v10211_v4  ;;  %v4783_v44 = vsel %vm8320_vm11, %v4778_v0, %v9316_v63  ;;  %v9383_v40 = vrot.slane %v4801_v12, 4  ;;  %v9385_v29 = vrot.slane %v4814_v11, 5  ;;  %v9389_v37 = vsel %vm8645_vm14, %v6495_v14, %v2301_v18  ;;  %v8081_v4 = vld [vmem:[#allocation2 + $0xa0] sm:$0xf]  ;;  %v9397_v63 = vld [vmem:[#allocation2 + $0x50] sm:$0x1] }
 0x121   : > { %7305 = vmatprep.mubr.bf16.mxu1 %v10212_v30  ;;  %10214 = vst [vmem:[#allocation11_spill] sm:$0xff] %v9389_v37  ;;  %v4793_v36 = vsel %vm8320_vm11, %v4788_v16, %v4792_v7  ;;  %v9395_v15 = vsel %vm8645_vm14, %v2303_v46, %v2304_v58  ;;  %v2308_v30 = vrot.slane %v8081_v4, 5  ;;  %10216 = vst [vmem:[#allocation13_spill] sm:$0xff] %v9397_v63  ;;  %v9399_v0 = vld [vmem:[#allocation2 + $0x58] sm:$0xf]  ;;  %v4821_v12 = vrot.slane %v4819_v34, 4 }
 0x122   : > { %7544 = vmatpush3.bf16.msra.mxu0 %v8012_v52  ;;  %v4811_v52 = vor.u32 %v4810_v24, %v9353_v2  ;;  %10215 = vst [vmem:[#allocation12_spill] sm:$0xff] %v9395_v15  ;;  %v6496_v24 = vrot.slane %v2177_v43, 9  ;;  %10217 = vst [vmem:[#allocation14_spill] sm:$0xff] %v9399_v0  ;;  %v4824_v11 = vrot.slane %v4822_v51, 5  ;;  %v9401_v18 = vld [vmem:[#allocation2 + $0x5c] sm:$0x1]  ;;  %v10219_v43 = vcombine.low %v9159_v41, %v9172_v61 }
 0x123   : > { %7577 = vmatprep.subr.bf16.mxu0 %v9330_v31  ;;  %10218 = vst [vmem:[#allocation15_spill] sm:$0xff] %v9401_v18  ;;  %v4843_v14 = vshrl.u32 %v4689_v8, 16  ;;  %v8082_v7 = vld [vmem:[#allocation2 + $0xa4] sm:$0x1]  ;;  %v9405_v58 = vrot.slane %v4828_v48, 5  ;;  %v4834_v26 = vrot.slane %v4832_v57, 4  ;;  %v9410_v4 = vcombine.low %v4759_v59, %v4769_v5 }
 0x124   : > { %v9403_v16 = vrot.slane %v4811_v52, 4  ;;  %v2311_v46 = vrot.slane %v8082_v7, 5  ;;  %v4852_v34 = vshll.u32 %v9399_v0, 16  ;;  %v4856_v51 = vshrl.u32 %v9399_v0, 16  ;;  %v4692_v52 = vld [vmem:[#allocation2 + $0x60] sm:$0xf] }
 0x125   : > { %7514 = vmatmul.mubr.bf16.gmra.mrb[16].mxu0 %v8001_v62  ;;  %v4846_v62 = vshll.u32 %v4689_v8, 16  ;;  %v10220_v48 = vcombine.low %v9163_v3, %v9176_v53  ;;  %v8006_v41 = vld [vmem:[%s10170_s2 + $0xd0] sm:$0xff]   ;;  %v9423_v61 = vcombine.low %v4783_v44, %v4793_v36  ;;  %v4807_v59 = vsel %vm8320_vm11, %v9383_v40, %v9353_v2 }
 0x126   : > { %7517 = vmatprep.mubr.bf16.mxu0 %v8003_v38  ;;  %v2310_v57 = vrot.slane %v2308_v30, 4  ;;  %v4825_v8 = vor.u32 %v4824_v11, %v4821_v12  ;;  %v4838_v3 = vshll.u32 %v9397_v63, 16  ;;  %v4845_v53 = vrot.slane %v4843_v14, 4  ;;  %v8083_v11 = vld [vmem:[#allocation2 + $0xac] sm:$0xf] }
 0x127   : > { %v4848_v7 = vrot.slane %v4846_v62, 5  ;;  %v4835_v44 = vor.u32 %v4834_v26, %v9405_v58  ;;  %v4862_v36 = vshll.u32 %v9401_v18, 16  ;;  %v4867_v38 = vshrl.u32 %v4692_v52, 16  ;;  %v9450_v26 = vld [vmem:[#allocation2 + $0x68] sm:$0x1]  ;;  %v8011_v18 = vld [vmem:[#allocation2 + $0xc0] sm:$0xff]  }
 0x128   : > { %7306 = vmatmul.mubr.bf16.vlgmr.msra.gmra.mrb[0].mxu1 %v10219_v43  ;;  %v9432_v43 = vld [vmem:[#allocation2 + $0x64] sm:$0xf]  ;;  %v4870_v2 = vshll.u32 %v4692_v52, 16  ;;  %v9438_v40 = vsel %vm8645_vm14, %v6496_v24, %v2308_v30  ;;  %v9440_v5 = vrot.slane %v4852_v34, 5  ;;  %v4858_v12 = vrot.slane %v4856_v51, 4  ;;  %10224 = vst [vmem:[#allocation19_spill] sm:$0xff] %v9450_v26 }
 0x129   : > { %7338 = vmatpush3.bf16.msra.mxu1 %v9148_v23  ;;  %7309 = vmatprep.mubr.bf16.mxu1 %v10220_v48  ;;  %v8007_v23 = vld [vmem:[#allocation2 + $0xa8] sm:$0xff]   ;;  %10221 = vst [vmem:[#allocation16_spill] sm:$0xff] %v9432_v43  ;;  %10222 = vst [vmem:[#allocation17_spill] sm:$0xff] %v9438_v40  ;;  %v2315_v6 = vrot.slane %v8083_v11, 5  ;;  %v4817_v14 = vsel %vm8320_vm11, %v9403_v16, %v9385_v29  ;;  %v9448_v62 = vsel %vm8645_vm14, %v2310_v57, %v2311_v46  ;;  %v9461_v46 = vld [vmem:[#allocation2 + $0xb4] sm:$0xe] }
 0x12a   : > { %7339 = vmatprep.subr.bf16.mxu1 %v8002_v35  ;;  %v2178_v48 = vld [vmem:[#allocation2 + $0xa8] sm:$0xe]  ;;  %10223 = vst [vmem:[#allocation18_spill] sm:$0xff] %v9448_v62  ;;  %v4876_v24 = vshll.u32 %v9432_v43, 16  ;;  %v4880_v30 = vshrl.u32 %v9432_v43, 16  ;;  %v9459_v34 = vrot.slane %v4838_v3, 5  ;;  %v4849_v29 = vor.u32 %v4848_v7, %v4845_v53 }
 0x12b   : > { %v6497_v16 = vrot.slane %v2178_v48, 9  ;;  %v4695_v51 = vld [vmem:[#allocation2 + $0x6c] sm:$0xf]  ;;  %v9463_v52 = vrot.slane %v4835_v44, 4  ;;  %v9465_v57 = vrot.slane %v4862_v36, 5  ;;  %v4869_v11 = vrot.slane %v4867_v38, 4 }
 0x12c   : > { %v4872_v56 = vrot.slane %v4870_v2, 5  ;;  %v10226_v43 = vcombine.low %v9180_v49, %v9188_v28  ;;  %v8014_v3 = vld [vmem:[%s10170_s2 + $0xe0] sm:$0xff]   ;;  %v4859_v53 = vor.u32 %v4858_v12, %v9440_v5  ;;  %v2317_v7 = vrot.slane %v2315_v6, 4  ;;  %v8084_v44 = vld [vmem:[#allocation2 + $0xb0] sm:$0x1]  ;;  %v8016_v28 = vld [vmem:[%s10170_s2 + $0xe8] sm:$0xff]  }
 0x12d   : > { %7340 = vmatpush3.bf16.msra.mxu1 %v8002_v35  ;;  %7518 = vmatmul.mubr.bf16.gmra.mrb[20].mxu0 %v8005_v13  ;;  %v8010_v35 = vld [vmem:[%s10170_s2 + $0xd8] sm:$0xff]   ;;  %v9457_v13 = vrot.slane %v4825_v8, 4  ;;  %v2318_v48 = vrot.slane %v8084_v44, 5  ;;  %v10227_v2 = vcombine.low %v9194_v25, %v9198_v42  ;;  %v9482_v49 = vcombine.low %v4807_v59, %v4817_v14  ;;  %v9495_v42 = vld [vmem:[#allocation2 + $0x74] sm:$0x1] }
 0x12e   : > { %7341 = vmatprep.subr.bf16.mxu1 %v8006_v41  ;;  %7521 = vmatprep.mubr.bf16.mxu0 %v8007_v23  ;;  %v9467_v23 = vld [vmem:[#allocation2 + $0x70] sm:$0xf]  ;;  %v8009_v8 = vld [vmem:[#allocation2 + $0xb4] sm:$0xff]   ;;  %v4882_v12 = vrot.slane %v4880_v30, 4  ;;  %v9492_v38 = vrot.slane %v4849_v29, 4  ;;  %v4886_v25 = vshll.u32 %v9450_v26, 16  ;;  %v4873_v14 = vor.u32 %v4872_v56, %v4869_v11 }
 0x12f   : > { %10225 = vst [vmem:[#allocation20_spill] sm:$0xff] %v9467_v23  ;;  %v9476_v36 = vld [vmem:[#allocation2 + $0xb8] sm:$0xf]  ;;  %v4831_v44 = vsel %vm8320_vm11, %v9457_v13, %v9405_v58  ;;  %10228 = vst [vmem:[#allocation21_spill] sm:$0xff] %v9495_v42  ;;  %v4900_v30 = vshll.u32 %v9467_v23, 16  ;;  %v4841_v58 = vsel %vm8320_vm11, %v9463_v52, %v9459_v34  ;;  %v9506_v13 = vrot.slane %v4859_v53, 4 }
 0x130   : > { %7310 = vmatmul.mubr.bf16.gmra.mrb[4].mxu1 %v10226_v43  ;;  %v9486_v43 = vrot.slane %v4876_v24, 5  ;;  %v4894_v24 = vshll.u32 %v4695_v51, 16  ;;  %v9510_v29 = vsel %vm8645_vm14, %v6497_v16, %v2315_v6  ;;  %v9512_v56 = vld [vmem:[#allocation2 + $0xbc] sm:$0x1]  ;;  %v4701_v59 = vld [vmem:[#allocation2 + $0x84] sm:$0xf]  ;;  %v9519_v62 = vsel %vm8645_vm14, %v2317_v7, %v2318_v48 }
 0x131   : > { %7313 = vmatprep.mubr.bf16.mxu1 %v10227_v2  ;;  %7342 = vmatpush3.bf16.msra.mxu1 %v8006_v41  ;;  %v4891_v41 = vshrl.u32 %v4695_v51, 16  ;;  %v4698_v2 = vld [vmem:[#allocation2 + $0x78] sm:$0xf]  ;;  %v9515_v11 = vld [vmem:[#allocation2 + $0x7c] sm:$0xf]  ;;  %v10230_v34 = vrot.slane %v9476_v36, 5  ;;  %v9553_v15 = vcombine.low %v4831_v44, %v4841_v58 }
 0x132   : > { %7343 = vmatprep.subr.bf16.mxu1 %v8010_v35  ;;  %10229 = vst [vmem:[#allocation22_spill] sm:$0xff] %v9515_v11  ;;  %v4883_v6 = vor.u32 %v4882_v12, %v9486_v43  ;;  %v4904_v16 = vshrl.u32 %v9467_v23, 16  ;;  %v9527_v53 = vld [vmem:[#allocation2 + $0x88] sm:$0xf]  ;;  %v9529_v51 = vrot.slane %v4886_v25, 5  ;;  %v4918_v40 = vshll.u32 %v4698_v2, 16 }
 0x133   : > { %v9523_v52 = vrot.slane %v10230_v34, 4  ;;  %10231 = vst [vmem:[#allocation23_spill] sm:$0xff] %v9527_v53  ;;  %v8013_v26 = vld [vmem:[#allocation2 + $0xcc] sm:$0xff]   ;;  %v9531_v7 = vrot.slane %v4873_v14, 4  ;;  %v4896_v48 = vrot.slane %v4894_v24, 5  ;;  %v9533_v0 = vrot.slane %v4900_v30, 5 }
 0x134   : > { %v4910_v34 = vshll.u32 %v9495_v42, 16  ;;  %v10232_v12 = vcombine.low %v9219_v17, %v9223_v32  ;;  %v4924_v25 = vshll.u32 %v9515_v11, 16  ;;  %v4942_v14 = vshll.u32 %v4701_v59, 16  ;;  %v4704_v23 = vld [vmem:[#allocation2 + $0x90] sm:$0xf]  ;;  %v8020_v44 = vld [vmem:[%s10170_s2 + $0xf8] sm:$0xff]  }
 0x135   : > { %7522 = vmatmul.mubr.bf16.gmra.mrb[24].mxu0 %v8009_v8  ;;  %7344 = vmatpush3.bf16.msra.mxu1 %v8010_v35  ;;  %v4893_v8 = vrot.slane %v4891_v41, 4  ;;  %v4915_v35 = vshrl.u32 %v4698_v2, 16  ;;  %v4928_v41 = vshrl.u32 %v9515_v11, 16  ;;  %v4939_v2 = vshrl.u32 %v4701_v59, 16  ;;  %v9551_v42 = vld [vmem:[#allocation2 + $0x94] sm:$0xf] }
 0x136   : > { %7525 = vmatprep.mubr.bf16.mxu0 %v8011_v18  ;;  %7345 = vmatprep.subr.bf16.mxu1 %v8014_v3  ;;  %v8018_v18 = vld [vmem:[%s10170_s2 + $0xf0] sm:$0xff]   ;;  %v10233_v24 = vcombine.low %v9228_v50, %v9232_v47  ;;  %v9547_v30 = vrot.slane %v4883_v6, 4  ;;  %v4906_v17 = vrot.slane %v4904_v16, 4  ;;  %v4948_v32 = vshll.u32 %v9527_v53, 16  ;;  %10234 = vst [vmem:[#allocation24_spill] sm:$0xff] %v9551_v42 }
 0x137   : > { %v4855_v59 = vsel %vm8320_vm11, %v9492_v38, %v9440_v5  ;;  %v4917_v47 = vrot.slane %v4915_v35, 4  ;;  %v4920_v50 = vrot.slane %v4918_v40, 5  ;;  %v4897_v16 = vor.u32 %v4896_v48, %v4893_v8  ;;  %v9568_v40 = vld [vmem:[#allocation2 + $0x8c] sm:$0x1] }
 0x138   : > { %7314 = vmatmul.mubr.bf16.gmra.mrb[8].mxu1 %v10232_v12  ;;  %v4952_v12 = vshrl.u32 %v9527_v53, 16  ;;  %v4963_v53 = vshrl.u32 %v4704_v23, 16  ;;  %v4966_v11 = vshll.u32 %v4704_v23, 16  ;;  %v9566_v58 = vrot.slane %v4924_v25, 5 }
 0x139   : > { %7317 = vmatprep.mubr.bf16.mxu1 %v10233_v24  ;;  %7346 = vmatpush3.bf16.msra.mxu1 %v8014_v3  ;;  %v4707_v3 = vld [vmem:[#allocation2 + $0x9c] sm:$0xf]  ;;  %v9561_v24 = vld [vmem:[#allocation2 + $0x80] sm:$0x1]  ;;  %v4930_v37 = vrot.slane %v4928_v41, 4  ;;  %v4941_v63 = vrot.slane %v4939_v2, 4  ;;  %v4865_v48 = vsel %vm8320_vm11, %v9506_v13, %v9465_v57 }
 0x13a   : > { %7347 = vmatprep.subr.bf16.mxu1 %v8016_v28  ;;  %v4944_v5 = vrot.slane %v4942_v14, 5  ;;  %v9570_v38 = vrot.slane %v4948_v32, 5  ;;  %v4954_v8 = vrot.slane %v4952_v12, 4  ;;  %v4972_v35 = vshll.u32 %v9551_v42, 16  ;;  %v1018_v14 = vld [vmem:[#allocation2 + $0xd4] sm:$0x1] }
 0x13b   : > { %v4976_v23 = vshrl.u32 %v9551_v42, 16  ;;  %v4987_v41 = vshrl.u32 %v4707_v3, 16  ;;  %v4990_v2 = vshll.u32 %v4707_v3, 16  ;;  %v4907_v32 = vor.u32 %v4906_v17, %v9533_v0  ;;  %v9609_v17 = vld [vmem:[#allocation2 + $0x98] sm:$0x1] }
 0x13c   : > { %v4965_v12 = vrot.slane %v4963_v53, 4  ;;  %v4968_v6 = vrot.slane %v4966_v11, 5  ;;  %v10237_v42 = vcombine.low %v9241_v45, %v9245_v39  ;;  %v9591_v57 = vrot.slane %v4897_v16, 4  ;;  %v8017_v11 = vld [vmem:[%s10170_s2 + $0x208] sm:$0xff]  }
 0x13d   : > { %7526 = vmatmul.mubr.bf16.gmra.mrb[28].mxu0 %v8013_v26  ;;  %7348 = vmatpush3.bf16.msra.mxu1 %v8016_v28  ;;  %v10235_v26 = vrot.slane %v9476_v36, 5  ;;  %v10236_v28 = vrot.slane %v9461_v46, 9  ;;  %v9593_v36 = vrot.slane %v4910_v34, 5  ;;  %v4931_v46 = vor.u32 %v4930_v37, %v9566_v58 }
 0x13e   : > { %7545 = vmatprep.mubr.bf16.mxu0 %v9333_v33  ;;  %7349 = vmatprep.subr.bf16.mxu1 %v8018_v18  ;;  %v4921_v33 = vor.u32 %v4920_v50, %v4917_v47  ;;  %v4934_v13 = vshll.u32 %v9561_v24, 16  ;;  %v10238_v3 = vcombine.low %v9263_v54, %v9270_v21  ;;  %v4945_v53 = vor.u32 %v4944_v5, %v4941_v63 }
 0x13f   : > { %v9585_v25 = vsel %vm8645_vm14, %v10236_v28, %v10235_v26  ;;  %v4955_v45 = vor.u32 %v4954_v8, %v9570_v38  ;;  %v4958_v39 = vshll.u32 %v9568_v40, 16  ;;  %v1019_v37 = vsel %vm8262_vm4, 0, %v1018_v14 }
 0x140   : > { %7318 = vmatmul.mubr.bf16.gmra.mrb[12].mxu1 %v10237_v42  ;;  %v9605_v42 = vld [vmem:[#allocation2 + $0xa0] sm:$0xf]  ;;  %v9611_v54 = vrot.slane %v4972_v35, 5  ;;  %v4978_v21 = vrot.slane %v4976_v23, 4  ;;  %v4989_v47 = vrot.slane %v4987_v41, 4  ;;  %v4992_v50 = vrot.slane %v4990_v2, 5 }
 0x141   : > { %7321 = vmatprep.mubr.bf16.mxu1 %v10238_v3  ;;  %7350 = vmatpush3.bf16.msra.mxu1 %v8018_v18  ;;  %1020 = vst [vmem:[#allocation2 + $0xd4] sm:$0x1] %v1019_v37  ;;  %v10240_v63 = vrot.slane %v9512_v56, 5  ;;  %v4908_v16 = vrot.slane %v4907_v32, 4  ;;  %v4922_v5 = vrot.slane %v4921_v33, 4  ;;  %v4969_v8 = vor.u32 %v4968_v6, %v4965_v12  ;;  %v9655_v33 = vld [vmem:[%s10170_s2 + $0x100] sm:$0xff]  }
 0x142   : > { %7351 = vmatprep.subr.bf16.mxu1 %v8020_v44  ;;  %v10241_v26 = vmov 0   ;;  %v4932_v28 = vrot.slane %v4931_v46, 4  ;;  %v4936_v14 = vrot.slane %v4934_v13, 5  ;;  %v4996_v35 = vshll.u32 %v9605_v42, 16  ;;  %v9626_v3 = vld [vmem:[#allocation2 + $0xa4] sm:$0x1] }
 0x143   : > { %v9618_v18 = vsel %vm8645_vm14, %v9523_v52, %v10240_v63  ;;  %1117 = vst [vmem:[#allocation2 + $0xd4] sm:$0x1] %v10241_v26  ;;  %v5000_v23 = vshrl.u32 %v9605_v42, 16  ;;  %v9624_v41 = vcombine.low %v4855_v59, %v4865_v48  ;;  %v4946_v56 = vrot.slane %v4945_v53, 4  ;;  %v9636_v48 = vld [vmem:[#allocation2 + $0xac] sm:$0xf] }
 0x144   : > { %v4956_v2 = vrot.slane %v4955_v45, 4  ;;  %v4960_v52 = vrot.slane %v4958_v39, 5  ;;  %v4879_v6 = vsel %vm8320_vm11, %v9531_v7, %v9486_v43  ;;  %v4979_v32 = vor.u32 %v4978_v21, %v9611_v54  ;;  %v8021_v37 = vld [vmem:[%s10170_s2 + $0x218] sm:$0xff]  }
 0x145   : > { %7546 = vmatmul.mubr.bf16.vlgmr.msra.gmra.mrb[0].mxu0 %v9410_v4  ;;  %7352 = vmatpush3.bf16.msra.mxu1 %v8020_v44  ;;  %v4982_v4 = vshll.u32 %v9609_v17, 16  ;;  %v4993_v59 = vor.u32 %v4992_v50, %v4989_v47  ;;  %v4710_v44 = vld [vmem:[#allocation2 + $0xa8] sm:$0xf]  ;;  %v4903_v43 = vsel %vm8320_vm11, %v9591_v57, %v9533_v0  ;;  %v4913_v7 = vsel %vm8320_vm11, %v4908_v16, %v9593_v36 }
 0x146   : > { %7578 = vmatpush3.bf16.msra.mxu0 %v9330_v31  ;;  %7549 = vmatprep.mubr.bf16.mxu0 %v9423_v61  ;;  %v8019_v31 = vld [vmem:[%s10170_s2 + $0x210] sm:$0xff]   ;;  %v4889_v61 = vsel %vm8320_vm11, %v9547_v30, %v9529_v51  ;;  %v9658_v12 = vrot.slane %v4969_v8, 4  ;;  %v10242_v51 = vcombine.low %v9276_v19, %v9294_v60  ;;  %v4927_v0 = vsel %vm8320_vm11, %v4922_v5, %v9566_v58 }
 0x147   : > { %7579 = vmatprep.subr.bf16.mxu0 %v8017_v11  ;;  %7625 = vmatprep.subr.bf16.mxu1 %v9655_v33  ;;  %v4937_v30 = vsel %vm8320_vm11, %v4932_v28, %v4936_v14  ;;  %v9668_v57 = vrot.slane %v4996_v35, 5  ;;  %v5002_v36 = vrot.slane %v5000_v23, 4  ;;  %v10243_v46 = vcombine.low %v9341_v27, %v9351_v9  ;;  %v5432_v27 = vld [vmem:[#allocation2 + $0x48] sm:$0xe]  ;;  %v9702_v5 = vld [vmem:[#allocation2 + $0xb0] sm:$0x1] }
 0x148   : > { %7322 = vmatmul.mubr.bf16.gmra.mrb[16].mxu1 %v10242_v51  ;;  %v4951_v13 = vsel %vm8320_vm11, %v4946_v56, %v9570_v38  ;;  %v4961_v19 = vsel %vm8320_vm11, %v4956_v2, %v4960_v52  ;;  %v5011_v60 = vshrl.u32 %v4710_v44, 16  ;;  %v5014_v53 = vshll.u32 %v4710_v44, 16  ;;  %v9704_v8 = vld [vmem:[#allocation2 + $0xb4] sm:$0xf]  ;;  %v8024_v56 = vld [vmem:[%s10170_s2 + $0x220] sm:$0xff]  }
 0x149   : > { %7325 = vmatprep.mubr.bf16.mxu1 %v10243_v46  ;;  %v9678_v58 = vrot.slane %v4979_v32, 4  ;;  %v9680_v45 = vrot.slane %v4982_v4, 5  ;;  %v9682_v39 = vrot.slane %v4993_v59, 4  ;;  %v5006_v34 = vshll.u32 %v9626_v3, 16  ;;  %v5433_v23 = vld [vmem:[#allocation2 + $0x54] sm:$0xe] }
 0x14a   : > { %7580 = vmatpush3.bf16.msra.mxu0 %v8017_v11  ;;  %v6530_v9 = vcombine.low %v9585_v25, %v9618_v18  ;;  %v6737_v38 = vcombine.low %v4879_v6, %v4889_v61  ;;  %v9690_v21 = vcombine.low %v4903_v43, %v4913_v7  ;;  %v5020_v11 = vshll.u32 %v9636_v48, 16  ;;  %v5435_v44 = vld [vmem:[#allocation2 + $0x6c] sm:$0xe] }
 0x14b   : > { %7581 = vmatprep.subr.bf16.mxu0 %v8019_v31  ;;  %v9693_v47 = vcombine.low %v4927_v0, %v4937_v30  ;;  %v9695_v50 = vcombine.low %v4951_v13, %v4961_v19  ;;  %v5003_v16 = vor.u32 %v5002_v36, %v9668_v57  ;;  %v9707_v26 = vrot.slane %v5011_v60, 4  ;;  %v10245_v7 = vld [vmem:[#allocation13_spill] sm:$0xff]  ;;  %v10246_v30 = vld [vmem:[#allocation11_spill] sm:$0xff]  ;;  %v10247_v36 = vld [vmem:[#allocation12_spill] sm:$0xff] }
 0x14c   : > { %v9709_v28 = vrot.slane %v5014_v53, 5  ;;  %v6759_v14 = vrot.slane %v5432_v27, 9  ;;  %v5522_v35 = vrot.slane %v9343_v20, 5  ;;  %v9724_v52 = vrot.slane %v5006_v34, 5  ;;  %v10249_v19 = vld [vmem:[#allocation14_spill] sm:$0xff]  ;;  %v10251_v27 = vld [vmem:[#allocation16_spill] sm:$0xff] }
 0x14d   : > { %7550 = vmatmul.mubr.bf16.gmra.mrb[4].mxu0 %v9482_v49  ;;  %v4985_v49 = vsel %vm8320_vm11, %v9678_v58, %v9680_v45  ;;  %v5024_v20 = vshrl.u32 %v9636_v48, 16  ;;  %v9727_v6 = vrot.slane %v5020_v11, 5  ;;  %v5030_v32 = vshll.u32 %v9702_v5, 16  ;;  %v9895_v45 = vld [vmem:[#allocation2 + $0xd0] sm:$0xf] }
 0x14e   : > { %7553 = vmatprep.mubr.bf16.mxu0 %v9553_v15  ;;  %7582 = vmatpush3.bf16.msra.mxu0 %v8019_v31  ;;  %v5434_v15 = vld [vmem:[#allocation2 + $0x60] sm:$0xe]  ;;  %v5035_v4 = vshrl.u32 %v9704_v8, 16  ;;  %v5524_v59 = vrot.slane %v5522_v35, 4  ;;  %v10244_v31 = vcombine.low %v9367_v1, %v9372_v22  ;;  %v9734_v61 = vrot.slane %v5003_v16, 4  ;;  %v10250_v1 = vld [vmem:[#allocation15_spill] sm:$0xff] }
 0x14f   : > { %7583 = vmatprep.subr.bf16.mxu0 %v8021_v37  ;;  %v9738_v43 = vsel %vm8645_vm14, %v6759_v14, %v5522_v35  ;;  %v5525_v51 = vrot.slane %v10245_v7, 5  ;;  %v6760_v0 = vrot.slane %v5433_v23, 9  ;;  %v10248_v46 = vcombine.low %v10246_v30, %v10247_v36  ;;  %v10252_v16 = vld [vmem:[#allocation19_spill] sm:$0xff]  ;;  %v10254_v30 = vld [vmem:[#allocation21_spill] sm:$0xff] }
 0x150   : > { %7326 = vmatmul.mubr.bf16.gmra.mrb[20].mxu1 %v10244_v31  ;;  %v5017_v13 = vor.u32 %v9709_v28, %v9707_v26  ;;  %v5529_v60 = vrot.slane %v10249_v19, 5  ;;  %v5532_v22 = vrot.slane %v10250_v1, 5  ;;  %v6761_v53 = vrot.slane %v5434_v15, 9  ;;  %v8027_v26 = vld [vmem:[%s10170_s2 + $0x228] sm:$0xff]   ;;  %v9757_v28 = vld [vmem:[#allocation2 + $0xb8] sm:$0xf] }
 0x151   : > { %7329 = vmatprep.mubr.bf16.mxu1 %v10248_v46  ;;  %v9750_v34 = vsel %vm8645_vm14, %v5524_v59, %v5525_v51  ;;  %v5536_v11 = vrot.slane %v10251_v27, 5  ;;  %v5539_v14 = vrot.slane %v10252_v16, 5  ;;  %v6762_v35 = vrot.slane %v5435_v44, 9  ;;  %v10253_v59 = vld [vmem:[#allocation20_spill] sm:$0xff]  ;;  %v10255_v16 = vld [vmem:[#allocation17_spill] sm:$0xff] }
 0x152   : > { %7584 = vmatpush3.bf16.msra.mxu0 %v8021_v37  ;;  %v9763_v37 = vsel %vm8645_vm14, %v6760_v0, %v5529_v60  ;;  %v5531_v15 = vrot.slane %v5529_v60, 4  ;;  %v5543_v31 = vrot.slane %v10253_v59, 5  ;;  %v9766_v7 = vrot.slane %v5024_v20, 4  ;;  %v3062_v60 = vld [vmem:[#allocation2 + $0x78] sm:$0xf] }
 0x153   : > { %7585 = vmatprep.subr.bf16.mxu0 %v8024_v56  ;;  %v9770_v44 = vsel %vm8645_vm14, %v6761_v53, %v5536_v11  ;;  %v5538_v51 = vrot.slane %v5536_v11, 4  ;;  %v5546_v36 = vrot.slane %v10254_v30, 5  ;;  %v5038_v46 = vshll.u32 %v9704_v8, 16  ;;  %v5436_v11 = vld [vmem:[#allocation2 + $0x78] sm:$0xe] }
 0x154   : > { %v9777_v0 = vsel %vm8645_vm14, %v5531_v15, %v5532_v22  ;;  %v9781_v19 = vsel %vm8645_vm14, %v6762_v35, %v5543_v31  ;;  %v5545_v20 = vrot.slane %v5543_v31, 4  ;;  %v9783_v1 = vrot.slane %v5030_v32, 5  ;;  %v8030_v22 = vld [vmem:[%s10170_s2 + $0x230] sm:$0xff]   ;;  %v4716_v59 = vld [vmem:[#allocation2 + $0xc0] sm:$0xf] }
 0x155   : > { %7554 = vmatmul.mubr.bf16.gmra.mrb[8].mxu0 %v9624_v41  ;;  %v5044_v53 = vshll.u32 %v9757_v28, 16  ;;  %v9790_v8 = vsel %vm8645_vm14, %v5538_v51, %v5539_v14  ;;  %v9795_v27 = vrot.slane %v5035_v4, 4  ;;  %v10256_v14 = vld [vmem:[#allocation18_spill] sm:$0xff]  ;;  %v5009_v4 = vsel %vm8320_vm11, %v9734_v61, %v9724_v52  ;;  %v5437_v61 = vld [vmem:[#allocation2 + $0x84] sm:$0xe] }
 0x156   : > { %7557 = vmatprep.mubr.bf16.mxu0 %v6737_v38  ;;  %7586 = vmatpush3.bf16.msra.mxu0 %v8024_v56  ;;  %v5048_v38 = vshrl.u32 %v9757_v28, 16  ;;  %v9802_v32 = vsel %vm8645_vm14, %v5545_v20, %v5546_v36  ;;  %v10257_v35 = vcombine.low %v10255_v16, %v10256_v14  ;;  %v9811_v15 = vrot.slane %v5017_v13, 4  ;;  %v10259_v14 = vld [vmem:[#allocation9_spill] sm:$0xff]  ;;  %v9828_v31 = vld [vmem:[#allocation2 + $0xc4] sm:$0xf] }
 0x157   : > { %7587 = vmatprep.subr.bf16.mxu0 %v8027_v26  ;;  %v3300_v51 = vshrl.u32 %v3062_v60, 16  ;;  %v10258_v30 = vcombine.low %v9510_v29, %v9519_v62  ;;  %v5027_v36 = vor.u32 %v9766_v7, %v9727_v6  ;;  %v9820_v20 = vrot.slane %v5038_v46, 5  ;;  %v10261_v29 = vld [vmem:[#allocation22_spill] sm:$0xff] }
 0x158   : > { %7330 = vmatmul.mubr.bf16.gmra.mrb[24].mxu1 %v10257_v35  ;;  %v3303_v16 = vshll.u32 %v3062_v60, 16  ;;  %v10260_v35 = vld [vmem:[#allocation10_spill] sm:$0xff]  ;;  %v9826_v13 = vrot.slane %v5044_v53, 5  ;;  %v6763_v62 = vrot.slane %v5436_v11, 9  ;;  %v5059_v7 = vshrl.u32 %v4716_v59, 16  ;;  %v8033_v60 = vld [vmem:[%s10170_s2 + $0x238] sm:$0xff]  }
 0x159   : > { %7333 = vmatprep.mubr.bf16.mxu1 %v10258_v30  ;;  %v3322_v52 = vsel %vm8320_vm11, %v10260_v35, %v10259_v14  ;;  %v3302_v56 = vrot.slane %v3300_v51, 4  ;;  %v5550_v30 = vrot.slane %v10261_v29, 5  ;;  %v5062_v46 = vshll.u32 %v4716_v59, 16  ;;  %v9835_v35 = vld [vmem:[#allocation2 + $0xbc] sm:$0x1]  ;;  %v8022_v59 = vld [vmem:[#allocation2 + $0xc] sm:$0xff]  }
 0x15a   : > { %7588 = vmatpush3.bf16.msra.mxu0 %v8027_v26  ;;  %v3305_v41 = vrot.slane %v3303_v16, 5  ;;  %v5553_v14 = vrot.slane %v9561_v24, 5  ;;  %v6764_v11 = vrot.slane %v5437_v61, 9  ;;  %v10262_v51 = vld [vmem:[#allocation23_spill] sm:$0xff]  ;;  %v5068_v23 = vshll.u32 %v9828_v31, 16 }
 0x15b   : > { %7589 = vmatprep.subr.bf16.mxu0 %v8030_v22  ;;  %v9839_v26 = vsel %vm8645_vm14, %v6763_v62, %v5550_v30  ;;  %v5552_v53 = vrot.slane %v5550_v30, 4  ;;  %v5557_v29 = vrot.slane %v10262_v51, 5  ;;  %v5072_v2 = vshrl.u32 %v9828_v31, 16 }
 0x15c   : > { %v3306_v16 = vor.u32 %v3305_v41, %v3302_v56  ;;  %v5560_v24 = vrot.slane %v9568_v40, 5  ;;  %v5050_v63 = vrot.slane %v5048_v38, 4  ;;  %v5028_v30 = vrot.slane %v5027_v36, 4 }
 0x15d   : > { %7558 = vmatmul.mubr.bf16.gmra.mrb[12].mxu0 %v9690_v21  ;;  %v9849_v62 = vsel %vm8645_vm14, %v5552_v53, %v5553_v14  ;;  %v9853_v61 = vsel %vm8645_vm14, %v6764_v11, %v5557_v29  ;;  %v5559_v21 = vrot.slane %v5557_v29, 4  ;;  %v5054_v51 = vshll.u32 %v9835_v35, 16  ;;  %v10263_v11 = vld [vmem:[#allocation8_spill] sm:$0xff]  ;;  %v5438_v29 = vld [vmem:[#allocation2 + $0x90] sm:$0xe] }
 0x15e   : > { %7561 = vmatprep.mubr.bf16.mxu0 %v9693_v47  ;;  %7590 = vmatpush3.bf16.msra.mxu0 %v8030_v22  ;;  %v3307_v41 = vrot.slane %v3306_v16, 4  ;;  %v6795_v40 = vcombine.low %v9839_v26, %v9849_v62  ;;  %v5041_v47 = vor.u32 %v9820_v20, %v9795_v27  ;;  %v9863_v22 = vld [vmem:[#allocation2 + $0xc8] sm:$0x1]  ;;  %v5061_v38 = vrot.slane %v5059_v7, 4  ;;  %v4719_v27 = vld [vmem:[#allocation2 + $0xcc] sm:$0xf] }
 0x15f   : > { %7591 = vmatprep.subr.bf16.mxu0 %v8033_v60  ;;  %v5064_v56 = vrot.slane %v5062_v46, 5  ;;  %v9867_v36 = vsel %vm8645_vm14, %v5559_v21, %v5560_v24  ;;  %v9869_v14 = vrot.slane %v5068_v23, 5  ;;  %v5074_v53 = vrot.slane %v5072_v2, 4  ;;  %v5439_v16 = vld [vmem:[#allocation2 + $0x9c] sm:$0xe]  ;;  %v10266_v21 = vld [vmem:[#allocation24_spill] sm:$0xff] }
 0x160   : > { %7334 = vmatmul.mubr.bf16.gmra.mrb[28].mxu1 %v6530_v9  ;;  %v3312_v25 = vsel %vm8320_vm11, %v3307_v41, %v10263_v11  ;;  %v6796_v18 = vcombine.low %v9853_v61, %v9867_v36  ;;  %v10264_v9 = vsel %vm8320_vm11, %v9658_v12, %v9611_v54  ;;  %v10265_v20 = vsel %vm8320_vm11, %v9682_v39, %v9668_v57  ;;  %v8025_v39 = vld [vmem:[#allocation2 + $0x24] sm:$0xff]  }
 0x161   : > { %7353 = vmatprep.mubr.bf16.mxu1 %v8022_v59  ;;  %v6741_v23 = vcombine.low %v10264_v9, %v4985_v49  ;;  %v9886_v2 = vcombine.low %v3312_v25, %v3322_v52  ;;  %v6742_v7 = vcombine.low %v10265_v20, %v5009_v4  ;;  %v5051_v46 = vor.u32 %v5050_v63, %v9826_v13  ;;  %v8023_v59 = vld [vmem:[#allocation2 + $0x18] sm:$0xff]  }
 0x162   : > { %7592 = vmatpush3.bf16.msra.mxu0 %v8033_v60  ;;  %v5078_v58 = vshll.u32 %v9863_v22, 16  ;;  %v5023_v54 = vsel %vm8320_vm11, %v9811_v15, %v9727_v6  ;;  %v5033_v12 = vsel %vm8320_vm11, %v5028_v30, %v9783_v1  ;;  %v5056_v49 = vrot.slane %v5054_v51, 5 }
 0x163   : > { %v5065_v57 = vor.u32 %v5064_v56, %v5061_v38  ;;  %v5042_v63 = vrot.slane %v5041_v47, 4  ;;  %v5075_v4 = vor.u32 %v5074_v53, %v9869_v14  ;;  %v5083_v52 = vshrl.u32 %v4719_v27, 16 }
 0x164   : > { %v5086_v60 = vshll.u32 %v4719_v27, 16  ;;  %v5092_v24 = vshll.u32 %v9895_v45, 16  ;;  %v5096_v6 = vshrl.u32 %v9895_v45, 16  ;;  %v6765_v15 = vrot.slane %v5438_v29, 9 }
 0x165   : > { %7562 = vmatmul.mubr.bf16.gmra.mrb[16].mxu0 %v9695_v50  ;;  %v5564_v41 = vrot.slane %v10266_v21, 5  ;;  %v6743_v1 = vcombine.low %v5023_v54, %v5033_v12  ;;  %v5052_v30 = vrot.slane %v5051_v46, 4  ;;  %v5080_v51 = vrot.slane %v5078_v58, 5 }
 0x166   : > { %7565 = vmatprep.mubr.bf16.mxu0 %v6741_v23  ;;  %v5567_v50 = vrot.slane %v9609_v17, 5  ;;  %v5066_v47 = vrot.slane %v5065_v57, 4  ;;  %v6766_v53 = vrot.slane %v5439_v16, 9  ;;  %v5085_v11 = vrot.slane %v5083_v52, 4  ;;  %v8088_v17 = vld [vmem:[%s10170_s2 + $0x108] sm:$0xff]   ;;  %v8028_v57 = vld [vmem:[#allocation2 + $0x3c] sm:$0xff]  }
 0x167   : > { %v9912_v38 = vsel %vm8645_vm14, %v6765_v15, %v5564_v41  ;;  %v5566_v56 = vrot.slane %v5564_v41, 4  ;;  %v5088_v25 = vrot.slane %v5086_v60, 5  ;;  %v5571_v9 = vrot.slane %v9605_v42, 5  ;;  %v5428_v52 = vld [vmem:[#allocation2 + $0x18] sm:$0xe] }
 0x168   : > { %7354 = vmatmul.mubr.bf16.vlgmr.msra.gmra.mrb[0].mxu1 %v8023_v59  ;;  %v5574_v23 = vrot.slane %v9626_v3, 5  ;;  %v5076_v27 = vrot.slane %v5075_v4, 4  ;;  %v9920_v20 = vrot.slane %v5092_v24, 5  ;;  %v5098_v46 = vrot.slane %v5096_v6, 4  ;;  %v8026_v59 = vld [vmem:[#allocation2 + $0x30] sm:$0xff]  }
 0x169   : > { %7633 = vmatpush3.bf16.msra.mxu1 %v9655_v33  ;;  %7357 = vmatprep.mubr.bf16.mxu1 %v8025_v39  ;;  %v9924_v58 = vsel %vm8645_vm14, %v5566_v56, %v5567_v50  ;;  %v9926_v33 = vld [vmem:[#allocation2 + $0xd4] sm:$0x1]  ;;  %v9932_v3 = vsel %vm8645_vm14, %v6766_v53, %v5571_v9  ;;  %v5573_v29 = vrot.slane %v5571_v9, 4  ;;  %v5047_v54 = vsel %vm8320_vm11, %v5042_v63, %v9826_v13  ;;  %v8089_v60 = vld [vmem:[#allocation2 + $0x1c] sm:$0xf] }
 0x16a   : > { %7626 = vmatprep.subr.bf16.mxu1 %v8088_v17  ;;  %v6797_v42 = vcombine.low %v9912_v38, %v9924_v58  ;;  %v5057_v12 = vsel %vm8320_vm11, %v5052_v30, %v5056_v49  ;;  %v5071_v39 = vsel %vm8320_vm11, %v5066_v47, %v9869_v14  ;;  %v5089_v4 = vor.u32 %v5088_v25, %v5085_v11  ;;  %v8090_v13 = vld [vmem:[%s10170_s2 + $0x110] sm:$0xff]   ;;  %v5440_v6 = vld [vmem:[#allocation2 + $0xa8] sm:$0xe] }
 0x16b   : > { %v5494_v16 = vrot.slane %v8089_v60, 5  ;;  %v9944_v24 = vsel %vm8645_vm14, %v5573_v29, %v5574_v23  ;;  %v5099_v49 = vor.u32 %v5098_v46, %v9920_v20  ;;  %v5102_v14 = vshll.u32 %v9926_v33, 16  ;;  %v5441_v41 = vld [vmem:[#allocation2 + $0xb4] sm:$0xe]  ;;  %v8094_v60 = vld [vmem:[#allocation2 + $0x28] sm:$0xf] }
 0x16c   : > { %v6798_v63 = vcombine.low %v9932_v3, %v9944_v24  ;;  %v6744_v15 = vcombine.low %v5047_v54, %v5057_v12  ;;  %v6755_v21 = vrot.slane %v5428_v52, 9  ;;  %v6767_v56 = vrot.slane %v5440_v6, 9  ;;  %v5429_v52 = vld [vmem:[#allocation2 + $0x24] sm:$0xe] }
 0x16d   : > { %7634 = vmatpush3.bf16.msra.mxu1 %v8088_v17  ;;  %7566 = vmatmul.mubr.bf16.gmra.mrb[20].mxu0 %v6742_v7  ;;  %v5081_v7 = vsel %vm8320_vm11, %v5076_v27, %v5080_v51  ;;  %v5496_v50 = vrot.slane %v5494_v16, 4  ;;  %v8092_v51 = vld [vmem:[%s10170_s2 + $0x118] sm:$0xff]   ;;  %v5090_v53 = vrot.slane %v5089_v4, 4  ;;  %v5100_v11 = vrot.slane %v5099_v49, 4  ;;  %v8029_v27 = vld [vmem:[#allocation2 + $0x48] sm:$0xff]   ;;  %v8093_v4 = vld [vmem:[%s10170_s2 + $0x120] sm:$0xff]  }
 0x16e   : > { %7627 = vmatprep.subr.bf16.mxu1 %v8090_v13  ;;  %7569 = vmatprep.mubr.bf16.mxu0 %v6743_v1  ;;  %v6745_v30 = vcombine.low %v5071_v39, %v5081_v7  ;;  %v8091_v1 = vld [vmem:[#allocation2 + $0x20] sm:$0x1]  ;;  %v5104_v25 = vrot.slane %v5102_v14, 5  ;;  %v5578_v9 = vrot.slane %v9636_v48, 5  ;;  %v5581_v23 = vrot.slane %v9702_v5, 5 }
 0x16f   : > { %v5497_v47 = vrot.slane %v8091_v1, 5  ;;  %v6768_v17 = vrot.slane %v5441_v41, 9  ;;  %v5495_v54 = vsel %vm8645_vm14, %v6755_v21, %v5494_v16  ;;  %v5585_v48 = vrot.slane %v9757_v28, 5  ;;  %v5430_v14 = vld [vmem:[#allocation2 + $0x30] sm:$0xe] }
 0x170   : > { %7358 = vmatmul.mubr.bf16.gmra.mrb[4].mxu1 %v8026_v59  ;;  %v9962_v46 = vsel %vm8645_vm14, %v6767_v56, %v5578_v9  ;;  %v5580_v29 = vrot.slane %v5578_v9, 4  ;;  %v8031_v59 = vld [vmem:[#allocation2 + $0x54] sm:$0xff]   ;;  %v5588_v5 = vrot.slane %v9835_v35, 5  ;;  %v5105_v39 = vsel %vm8320_vm11, %v5100_v11, %v5104_v25 }
 0x171   : > { %7361 = vmatprep.mubr.bf16.mxu1 %v8028_v57  ;;  %7635 = vmatpush3.bf16.msra.mxu1 %v8090_v13  ;;  %v5498_v12 = vsel %vm8645_vm14, %v5496_v50, %v5497_v47  ;;  %v5095_v57 = vsel %vm8320_vm11, %v5090_v53, %v9920_v20  ;;  %v5501_v16 = vrot.slane %v8094_v60, 5  ;;  %v8095_v35 = vld [vmem:[#allocation2 + $0x34] sm:$0xf]  ;;  %v9986_v7 = vsel %vm8645_vm14, %v6768_v17, %v5585_v48  ;;  %v8096_v50 = vld [vmem:[#allocation2 + $0x2c] sm:$0x1] }
 0x172   : > { %7628 = vmatprep.subr.bf16.mxu1 %v8092_v51  ;;  %v9980_v28 = vsel %vm8645_vm14, %v5580_v29, %v5581_v23  ;;  %v5508_v13 = vrot.slane %v8095_v35, 5  ;;  %v5587_v49 = vrot.slane %v5585_v48, 4  ;;  %v6746_v6 = vcombine.low %v5095_v57, %v5105_v39  ;;  %v8097_v47 = vld [vmem:[%s10170_s2 + $0x128] sm:$0xff]   ;;  %v8098_v25 = vld [vmem:[#allocation2 + $0x38] sm:$0x1]  ;;  %v8032_v23 = vld [vmem:[#allocation2 + $0x60] sm:$0xff]  }
 0x173   : > { %v6799_v20 = vcombine.low %v9962_v46, %v9980_v28  ;;  %v6787_v41 = vcombine.low %v5495_v54, %v5498_v12  ;;  %v5504_v1 = vrot.slane %v8096_v50, 5  ;;  %v6757_v53 = vrot.slane %v5430_v14, 9  ;;  %v5443_v17 = vld [vmem:[#allocation2 + $0xcc] sm:$0xe]  ;;  %v5431_v12 = vld [vmem:[#allocation2 + $0x3c] sm:$0xe] }
 0x174   : > { %v9990_v21 = vsel %vm8645_vm14, %v5587_v49, %v5588_v5  ;;  %v5510_v11 = vrot.slane %v5508_v13, 4  ;;  %v5511_v9 = vrot.slane %v8098_v25, 5  ;;  %v8099_v48 = vld [vmem:[#allocation2 + $0x40] sm:$0xf]  ;;  %v8100_v57 = vld [vmem:[%s10170_s2 + $0x130] sm:$0xff]   ;;  %v5592_v39 = vrot.slane %v9828_v31, 5 }
 0x175   : > { %7570 = vmatmul.mubr.bf16.gmra.mrb[24].mxu0 %v6744_v15  ;;  %7636 = vmatpush3.bf16.msra.mxu1 %v8092_v51  ;;  %v6756_v15 = vrot.slane %v5429_v52, 9  ;;  %v6800_v56 = vcombine.low %v9986_v7, %v9990_v21  ;;  %v5442_v51 = vld [vmem:[#allocation2 + $0xc0] sm:$0xe]  ;;  %v5515_v5 = vrot.slane %v8099_v48, 5  ;;  %v5595_v60 = vrot.slane %v9863_v22, 5  ;;  %v8102_v22 = vld [vmem:[%s10170_s2 + $0x138] sm:$0xff]  }
 0x176   : > { %7573 = vmatprep.mubr.bf16.mxu0 %v6745_v30  ;;  %7629 = vmatprep.subr.bf16.mxu1 %v8093_v4  ;;  %v5503_v30 = vrot.slane %v5501_v16, 4  ;;  %v6769_v29 = vrot.slane %v5442_v51, 9  ;;  %v5512_v52 = vsel %vm8645_vm14, %v5510_v11, %v5511_v9  ;;  %v5594_v49 = vrot.slane %v5592_v39, 4  ;;  %v8036_v11 = vld [vmem:[#allocation2 + $0x84] sm:$0xff]  }
 0x177   : > { %v5599_v31 = vrot.slane %v9895_v45, 5 }
 0x178   : > { %7362 = vmatmul.mubr.bf16.gmra.mrb[8].mxu1 %v8029_v27  ;;  %v8034_v27 = vld [vmem:[#allocation2 + $0x6c] sm:$0xff]   ;;  %v5505_v54 = vsel %vm8645_vm14, %v5503_v30, %v5504_v1  ;;  %v10012_v35 = vsel %vm8645_vm14, %v6769_v29, %v5592_v39  ;;  %v8101_v30 = vld [vmem:[#allocation2 + $0x44] sm:$0x1]  ;;  %v10021_v1 = vsel %vm8645_vm14, %v5594_v49, %v5595_v60  ;;  %v8038_v60 = vld [vmem:[#allocation2 + $0x9c] sm:$0xff]  }
 0x179   : > { %7365 = vmatprep.mubr.bf16.mxu1 %v8031_v59  ;;  %7637 = vmatpush3.bf16.msra.mxu1 %v8093_v4  ;;  %v5502_v59 = vsel %vm8645_vm14, %v6756_v15, %v5501_v16  ;;  %v5509_v4 = vsel %vm8645_vm14, %v6757_v53, %v5508_v13  ;;  %v6770_v16 = vrot.slane %v5443_v17, 9  ;;  %v5602_v13 = vrot.slane %v9926_v33, 5  ;;  %v8035_v53 = vld [vmem:[#allocation2 + $0x78] sm:$0xff]  }
 0x17a   : > { %7630 = vmatprep.subr.bf16.mxu1 %v8097_v47  ;;  %v6788_v14 = vcombine.low %v5502_v59, %v5505_v54  ;;  %v6789_v15 = vcombine.low %v5509_v4, %v5512_v52  ;;  %v5518_v50 = vrot.slane %v8101_v30, 5  ;;  %v6801_v51 = vcombine.low %v10012_v35, %v10021_v1  ;;  %v8103_v59 = vld [vmem:[#allocation2 + $0x70] sm:$0xf] }
 0x17b   : > { %v10027_v45 = vsel %vm8645_vm14, %v6770_v16, %v5599_v31  ;;  %v5601_v33 = vrot.slane %v5599_v31, 4  ;;  %v3285_v54 = vshll.u32 %v8103_v59, 16  ;;  %v8037_v52 = vld [vmem:[#allocation2 + $0x90] sm:$0xff]   ;;  %v10267_v16 = vcombine.low %v9738_v43, %v9750_v34 }
 0x17c   : > { %v10268_v34 = vcombine.low %v9763_v37, %v9777_v0  ;;  %v8107_v37 = vld [vmem:[#allocation2 + $0x94] sm:$0xf] }
 0x17d   : > { %7574 = vmatmul.mubr.bf16.gmra.mrb[28].mxu0 %v6746_v6  ;;  %7638 = vmatpush3.bf16.msra.mxu1 %v8097_v47  ;;  %v6758_v6 = vrot.slane %v5431_v12, 9  ;;  %v3059_v47 = vld [vmem:[#allocation2 + $0x6c] sm:$0xf]  ;;  %v10033_v9 = vsel %vm8645_vm14, %v5601_v33, %v5602_v13  ;;  %v3289_v12 = vshrl.u32 %v8103_v59, 16  ;;  %v3287_v39 = vrot.slane %v3285_v54, 5 }
 0x17e   : > { %7593 = vmatprep.mubr.bf16.mxu0 %v6787_v41  ;;  %7631 = vmatprep.subr.bf16.mxu1 %v8100_v57  ;;  %v5517_v41 = vrot.slane %v5515_v5, 4  ;;  %v3276_v17 = vshrl.u32 %v3059_v47, 16  ;;  %v6802_v29 = vcombine.low %v10027_v45, %v10033_v9  ;;  %v3324_v13 = vshrl.u32 %v3065_v55, 16 }
 0x17f   : > { %v5516_v25 = vsel %vm8645_vm14, %v6758_v6, %v5515_v5  ;;  %v3291_v4 = vrot.slane %v3289_v12, 4  ;;  %v8104_v6 = vld [vmem:[#allocation2 + $0x74] sm:$0x1]  ;;  %v3071_v12 = vld [vmem:[#allocation2 + $0x9c] sm:$0xf]  ;;  %v3357_v0 = vshll.u32 %v8107_v37, 16 }
 0x180   : > { %7366 = vmatmul.mubr.bf16.gmra.mrb[12].mxu1 %v8032_v23  ;;  %v5519_v23 = vsel %vm8645_vm14, %v5517_v41, %v5518_v50  ;;  %v3278_v5 = vrot.slane %v3276_v17, 4  ;;  %v3295_v31 = vshll.u32 %v8104_v6, 16  ;;  %v8105_v41 = vld [vmem:[#allocation2 + $0x88] sm:$0xf] }
 0x181   : > { %7369 = vmatprep.mubr.bf16.mxu1 %v8034_v27  ;;  %7639 = vmatpush3.bf16.msra.mxu1 %v8100_v57  ;;  %v3279_v27 = vshll.u32 %v3059_v47, 16  ;;  %v6790_v48 = vcombine.low %v5516_v25, %v5519_v23  ;;  %v3333_v30 = vshll.u32 %v8105_v41, 16  ;;  %v3337_v50 = vshrl.u32 %v8105_v41, 16  ;;  %v3068_v47 = vld [vmem:[#allocation2 + $0x90] sm:$0xf]  ;;  %v8040_v25 = vld [vmem:[#allocation2 + $0xb4] sm:$0xff]  }
 0x182   : > { %7632 = vmatprep.subr.bf16.mxu1 %v8102_v22  ;;  %v3326_v23 = vrot.slane %v3324_v13, 4  ;;  %v3348_v59 = vshrl.u32 %v3068_v47, 16  ;;  %v3351_v54 = vshll.u32 %v3068_v47, 16  ;;  %v8041_v13 = vld [vmem:[#allocation2 + $0xc0] sm:$0xff]  }
 0x183   : > { %v3281_v57 = vrot.slane %v3279_v27, 5  ;;  %v10045_v17 = vrot.slane %v3333_v30, 5  ;;  %v3339_v27 = vrot.slane %v3337_v50, 4  ;;  %v10055_v30 = vrot.slane %v3357_v0, 5 }
 0x185   : > { %7594 = vmatmul.mubr.bf16.vlgmr.msra.gmra.mrb[0].mxu0 %v6788_v14  ;;  %7640 = vmatpush3.bf16.msra.mxu1 %v8102_v22  ;;  %v3282_v49 = vor.u32 %v3281_v57, %v3278_v5  ;;  %v3292_v14 = vor.u32 %v3291_v4, %v3287_v39  ;;  %v8106_v4 = vld [vmem:[#allocation2 + $0x8c] sm:$0x1] }
 0x186   : > { %7597 = vmatprep.mubr.bf16.mxu0 %v6789_v15  ;;  %v3327_v15 = vshll.u32 %v3065_v55, 16  ;;  %v3372_v55 = vshrl.u32 %v3071_v12, 16 }
 0x187   : > { %v3283_v22 = vrot.slane %v3282_v49, 4  ;;  %v3293_v33 = vrot.slane %v3292_v14, 4  ;;  %v8108_v49 = vld [vmem:[#allocation2 + $0xa0] sm:$0xf] }
 0x188   : > { %7370 = vmatmul.mubr.bf16.gmra.mrb[16].mxu1 %v8035_v53  ;;  %v3297_v53 = vrot.slane %v3295_v31, 5  ;;  %v3329_v43 = vrot.slane %v3327_v15, 5  ;;  %v3381_v14 = vshll.u32 %v8108_v49, 16  ;;  %v3385_v6 = vshrl.u32 %v8108_v49, 16  ;;  %v8112_v49 = vld [vmem:[#allocation2 + $0xb8] sm:$0xf] }
 0x189   : > { %7373 = vmatprep.mubr.bf16.mxu1 %v8036_v11  ;;  %v8039_v11 = vld [vmem:[#allocation2 + $0xa8] sm:$0xff]   ;;  %v3288_v5 = vsel %vm8320_vm11, %v3283_v22, %v3287_v39  ;;  %v3350_v31 = vrot.slane %v3348_v59, 4  ;;  %v3353_v39 = vrot.slane %v3351_v54, 5  ;;  %v3374_v22 = vrot.slane %v3372_v55, 4 }
 0x18a   : > { %v3298_v57 = vsel %vm8320_vm11, %v3293_v33, %v3297_v53  ;;  %v10057_v33 = vrot.slane %v3381_v14, 5  ;;  %v3387_v53 = vrot.slane %v3385_v6, 4  ;;  %v3429_v14 = vshll.u32 %v8112_v49, 16 }
 0x18b   : > { %v6603_v15 = vcombine.low %v3288_v5, %v3298_v57  ;;  %v3433_v6 = vshrl.u32 %v8112_v49, 16 }
 0x18d   : > { %7598 = vmatmul.mubr.bf16.gmra.mrb[4].mxu0 %v6790_v48  ;;  %v10269_v48 = vcombine.low %v9770_v44, %v9790_v8  ;;  %v3330_v44 = vor.u32 %v3329_v43, %v3326_v23  ;;  %v3340_v8 = vor.u32 %v3339_v27, %v10045_v17  ;;  %v8109_v27 = vld [vmem:[#allocation2 + $0x98] sm:$0x1] }
 0x18e   : > { %7601 = vmatprep.mubr.bf16.mxu0 %v10267_v16  ;;  %v3375_v16 = vshll.u32 %v3071_v12, 16  ;;  %v3367_v59 = vshll.u32 %v8109_v27, 16  ;;  %v8110_v12 = vld [vmem:[#allocation2 + $0xa4] sm:$0x1] }
 0x18f   : > { %v3331_v23 = vrot.slane %v3330_v44, 4  ;;  %v3341_v43 = vrot.slane %v3340_v8, 4 }
 0x190   : > { %7374 = vmatmul.mubr.bf16.gmra.mrb[20].mxu1 %v8037_v52  ;;  %v3343_v52 = vshll.u32 %v8106_v4, 16  ;;  %v3377_v47 = vrot.slane %v3375_v16, 5  ;;  %v3077_v4 = vld [vmem:[#allocation2 + $0xb4] sm:$0xf] }
 0x191   : > { %7377 = vmatprep.mubr.bf16.mxu1 %v8038_v60  ;;  %v3361_v60 = vshrl.u32 %v8107_v37, 16  ;;  %v3336_v26 = vsel %vm8320_vm11, %v3331_v23, %v10045_v17  ;;  %v3420_v55 = vshrl.u32 %v3077_v4, 16  ;;  %v3423_v16 = vshll.u32 %v3077_v4, 16 }
 0x192   : > { %v3345_v41 = vrot.slane %v3343_v52, 5  ;;  %v3378_v52 = vor.u32 %v3377_v47, %v3374_v22 }
 0x193   : > { %v3363_v50 = vrot.slane %v3361_v60, 4  ;;  %v3369_v60 = vrot.slane %v3367_v59, 5  ;;  %v3425_v47 = vrot.slane %v3423_v16, 5  ;;  %v8116_v16 = vld [vmem:[#allocation2 + $0xc8] sm:$0x1] }
 0x194   : > { %v3346_v62 = vsel %vm8320_vm11, %v3341_v43, %v3345_v41  ;;  %v3422_v41 = vrot.slane %v3420_v55, 4  ;;  %v3463_v49 = vshll.u32 %v8116_v16, 16 }
 0x195   : > { %7602 = vmatmul.mubr.bf16.gmra.mrb[8].mxu0 %v10268_v34  ;;  %v3354_v34 = vor.u32 %v3353_v39, %v3350_v31  ;;  %v3364_v54 = vor.u32 %v3363_v50, %v10055_v30  ;;  %v6605_v17 = vcombine.low %v3336_v26, %v3346_v62 }
 0x196   : > { %7605 = vmatprep.mubr.bf16.mxu0 %v10269_v48  ;;  %v3391_v48 = vshll.u32 %v8110_v12, 16  ;;  %v3426_v12 = vor.u32 %v3425_v47, %v3422_v41 }
 0x197   : > { %v3365_v44 = vrot.slane %v3364_v54, 4 }
 0x198   : > { %7378 = vmatmul.mubr.bf16.gmra.mrb[24].mxu1 %v8039_v11  ;;  %v3074_v11 = vld [vmem:[#allocation2 + $0xa8] sm:$0xf]  ;;  %v3393_v8 = vrot.slane %v3391_v48, 5  ;;  %v3427_v62 = vrot.slane %v3426_v12, 4 }
 0x199   : > { %7381 = vmatprep.mubr.bf16.mxu1 %v8040_v25  ;;  %v10270_v25 = vcombine.low %v9781_v19, %v9802_v32  ;;  %v3396_v5 = vshrl.u32 %v3074_v11, 16  ;;  %v3399_v57 = vshll.u32 %v3074_v11, 16  ;;  %v3388_v19 = vor.u32 %v3387_v53, %v10057_v33  ;;  %v8111_v32 = vld [vmem:[#allocation2 + $0xac] sm:$0xf] }
 0x19a   : > { %v3405_v37 = vshll.u32 %v8111_v32, 16  ;;  %v3409_v0 = vshrl.u32 %v8111_v32, 16  ;;  %v3431_v53 = vrot.slane %v3429_v14, 5  ;;  %v3435_v11 = vrot.slane %v3433_v6, 4 }
 0x19b   : > { %v3398_v31 = vrot.slane %v3396_v5, 4  ;;  %v3401_v39 = vrot.slane %v3399_v57, 5  ;;  %v3370_v43 = vsel %vm8320_vm11, %v3365_v44, %v3369_v60  ;;  %v8115_v5 = vld [vmem:[#allocation2 + $0xbc] sm:$0x1] }
 0x19c   : > { %v3407_v50 = vrot.slane %v3405_v37, 5  ;;  %v3411_v22 = vrot.slane %v3409_v0, 4  ;;  %v3436_v48 = vor.u32 %v3435_v11, %v3431_v53  ;;  %v3439_v57 = vshll.u32 %v8115_v5, 16 }
 0x19d   : > { %7606 = vmatmul.mubr.bf16.gmra.mrb[12].mxu0 %v10270_v25  ;;  %v3080_v25 = vld [vmem:[#allocation2 + $0xc0] sm:$0xf]  ;;  %v3402_v38 = vor.u32 %v3401_v39, %v3398_v31  ;;  %v3432_v14 = vsel %vm8320_vm11, %v3427_v62, %v3431_v53 }
 0x19e   : > { %7609 = vmatprep.mubr.bf16.mxu0 %v6795_v40  ;;  %v3355_v40 = vrot.slane %v3354_v34, 4  ;;  %v8113_v34 = vld [vmem:[#allocation2 + $0xb0] sm:$0x1]  ;;  %v3412_v58 = vor.u32 %v3411_v22, %v3407_v50  ;;  %v3447_v27 = vshll.u32 %v3080_v25, 16  ;;  %v3441_v60 = vrot.slane %v3439_v57, 5 }
 0x19f   : > { %v3415_v61 = vshll.u32 %v8113_v34, 16 }
 0x1a0   : > { %7382 = vmatmul.mubr.bf16.gmra.mrb[28].mxu1 %v8041_v13  ;;  %v3379_v13 = vrot.slane %v3378_v52, 4  ;;  %v3360_v23 = vsel %vm8320_vm11, %v3355_v40, %v10055_v30  ;;  %v8114_v30 = vld [vmem:[#allocation2 + $0xc4] sm:$0xf]  ;;  %v3403_v52 = vrot.slane %v3402_v38, 4  ;;  %v3449_v37 = vrot.slane %v3447_v27, 5 }
 0x1a1   : > { %7417 = vmatprep.mubr.bf16.mxu1 %v6603_v15  ;;  %v3389_v15 = vrot.slane %v3388_v19, 4  ;;  %v3453_v59 = vshll.u32 %v8114_v30, 16  ;;  %v3457_v54 = vshrl.u32 %v8114_v30, 16  ;;  %v3413_v19 = vrot.slane %v3412_v58, 4 }
 0x1a2   : > { %v3384_v36 = vsel %vm8320_vm11, %v3379_v13, %v10057_v33  ;;  %v3417_v33 = vrot.slane %v3415_v61, 5  ;;  %v3437_v40 = vrot.slane %v3436_v48, 4  ;;  %v3408_v55 = vsel %vm8320_vm11, %v3403_v52, %v3407_v50 }
 0x1a3   : > { %v3455_v0 = vrot.slane %v3453_v59, 5  ;;  %v3459_v26 = vrot.slane %v3457_v54, 4 }
 0x1a4   : > { %v3418_v3 = vsel %vm8320_vm11, %v3413_v19, %v3417_v33  ;;  %v3442_v46 = vsel %vm8320_vm11, %v3437_v40, %v3441_v60 }
 0x1a5   : > { %7610 = vmatmul.mubr.bf16.gmra.mrb[16].mxu0 %v6796_v18  ;;  %v3394_v18 = vsel %vm8320_vm11, %v3389_v15, %v3393_v8  ;;  %v6608_v28 = vcombine.low %v3408_v55, %v3418_v3  ;;  %v3465_v8 = vrot.slane %v3463_v49, 5 }
 0x1a6   : > { %7613 = vmatprep.mubr.bf16.mxu0 %v6797_v42  ;;  %v3444_v42 = vshrl.u32 %v3080_v25, 16  ;;  %v6607_v4 = vcombine.low %v3384_v36, %v3394_v18 }
 0x1a8   : > { %7418 = vmatmul.mubr.bf16.vlgmr.msra.gmra.mrb[16].mxu1 %v9886_v2  ;;  %v6606_v2 = vcombine.low %v3360_v23, %v3370_v43  ;;  %v3446_v32 = vrot.slane %v3444_v42, 4 }
 0x1a9   : > { %7421 = vmatprep.mubr.bf16.mxu1 %v6605_v17 }
 0x1aa   : > { %v3450_v24 = vor.u32 %v3449_v37, %v3446_v32 }
 0x1ac   : > { %v3451_v6 = vrot.slane %v3450_v24, 4 }
 0x1ad   : > { %7614 = vmatmul.mubr.bf16.gmra.mrb[20].mxu0 %v6798_v63  ;;  %v3460_v63 = vor.u32 %v3459_v26, %v3455_v0 }
 0x1ae   : > { %7617 = vmatprep.mubr.bf16.mxu0 %v6799_v20  ;;  %v6609_v20 = vcombine.low %v3432_v14, %v3442_v46  ;;  %v3456_v31 = vsel %vm8320_vm11, %v3451_v6, %v3455_v0 }
 0x1af   : > { %v3461_v44 = vrot.slane %v3460_v63, 4 }
 0x1b0   : > { %7422 = vmatmul.mubr.bf16.gmra.mrb[20].mxu1 %v6606_v2 }
 0x1b1   : > { %7425 = vmatprep.mubr.bf16.mxu1 %v6607_v4  ;;  %v3466_v39 = vsel %vm8320_vm11, %v3461_v44, %v3465_v8 }
 0x1b2   : > { %v6610_v13 = vcombine.low %v3456_v31, %v3466_v39 }
 0x1b5   : > { %7618 = vmatmul.mubr.bf16.gmra.mrb[24].mxu0 %v6800_v56 }
 0x1b6   : > { %7621 = vmatprep.mubr.bf16.mxu0 %v6801_v51 }
 0x1b8   : > { %7426 = vmatmul.mubr.bf16.gmra.mrb[24].mxu1 %v6608_v28 }
 0x1b9   : > { %7429 = vmatprep.mubr.bf16.mxu1 %v6609_v20 }
 0x1bd   : > { %7622 = vmatmul.mubr.bf16.gmra.mrb[28].mxu0 %v6802_v29 }
 0x1c0   : > { %7430 = vmatmul.mubr.bf16.gmra.mrb[28].mxu1 %v6610_v13 }
 0x23b   : > { %v7355_v7 = vpop.f32.mrb[0].mxu1 }
 0x23c   : > { %v2876_v21 = vpop.f32.mrb[1].mxu1 }
 0x23d   : > { %v7356_v56 = vpop.f32.mrb[2].mxu1 }
 0x23e   : > { %v2879_v15 = vpop.f32.mrb[3].mxu1 }
 0x243   : > { %v7359_v35 = vpop.f32.mrb[4].mxu1 }
 0x244   : > { %v2892_v1 = vpop.f32.mrb[5].mxu1 }
 0x245   : > { %v7360_v51 = vpop.f32.mrb[6].mxu1 }
 0x246   : > { %v2895_v50 = vpop.f32.mrb[7].mxu1 }
 0x24b   : > { %v7363_v22 = vpop.f32.mrb[8].mxu1 }
 0x24c   : > { %v2908_v17 = vpop.f32.mrb[9].mxu1 }
 0x24d   : > { %v7364_v41 = vpop.f32.mrb[10].mxu1 }
 0x24e   : > { %v2911_v10 = vpop.f32.mrb[11].mxu1 }
 0x253   : > { %v10116_v47 = vpop.f32.mrb[12].mxu1 }
 0x254   : > { %v10118_v53 = vpop.f32.mrb[13].mxu1 }
 0x255   : > { %v10120_v45 = vpop.f32.mrb[14].mxu1 }
 0x256   : > { %v10122_v9 = vpop.f32.mrb[15].mxu1 }
 0x258   : > { %v7595_v29 = vpop.f32.mrb[0].mxu0 }
 0x259   : > { %v7641_v11 = vadd.f32 %v7595_v29, %v7355_v7  ;;  %v5767_v25 = vpop.f32.mrb[1].mxu0 }
 0x25a   : > { %v7642_v23 = vadd.f32 %v5767_v25, %v2876_v21  ;;  %v7596_v43 = vpop.f32.mrb[2].mxu0 }
 0x25b   : > { %v7643_v34 = vadd.f32 %v7596_v43, %v7356_v56  ;;  %v5770_v61 = vpop.f32.mrb[3].mxu0  ;;  %v6126_v30 = vmul.f32 %v7641_v11, %v7641_v11 }
 0x25c   : > { %v7644_v36 = vadd.f32 %v5770_v61, %v2879_v15  ;;  %v6124_v38 = vmul.f32 %v7642_v23, %v7642_v23 }
 0x25d   : > { %v6890_v18 = vpack.c.bf16 %v7643_v34, %v7641_v11  ;;  %v6127_v57 = vmul.f32 %v7643_v34, %v7643_v34 }
 0x25e   : > { %v6885_v58 = vpack.c.bf16 %v7644_v36, %v7642_v23  ;;  %v6086_v42 = vadd.f32 %v7644_v36, %v7642_v23  ;;  %v6125_v27 = vmul.f32 %v7644_v36, %v7644_v36 }
 0x25f   : > { %6962 = vst [vmem:[%s10129_s26 + $0x8] sm:$0xff] %v6890_v18  }
 0x260   : > { %6886 = vst [vmem:[%s10129_s26] sm:$0xff] %v6885_v58   ;;  %v6087_v59 = vadd.f32 %v7641_v11, %v6086_v42  ;;  %v6156_v54 = vadd.f32 %v6125_v27, %v6124_v38  ;;  %v7599_v12 = vpop.f32.mrb[4].mxu0 }
 0x261   : > { %v7645_v48 = vadd.f32 %v7599_v12, %v7359_v35  ;;  %v5783_v5 = vpop.f32.mrb[5].mxu0 }
 0x262   : > { %v6157_v2 = vadd.f32 %v6156_v54, %v6126_v30  ;;  %v7646_v4 = vadd.f32 %v5783_v5, %v2892_v1  ;;  %v6088_v52 = vadd.f32 %v7643_v34, %v6087_v59  ;;  %v7600_v19 = vpop.f32.mrb[6].mxu0 }
 0x263   : > { %v7647_v33 = vadd.f32 %v7600_v19, %v7360_v51  ;;  %v5786_v32 = vpop.f32.mrb[7].mxu0  ;;  %v6130_v63 = vmul.f32 %v7645_v48, %v7645_v48 }
 0x264   : > { %v6089_v37 = vadd.f32 %v7646_v4, %v6088_v52  ;;  %v6128_v0 = vmul.f32 %v7646_v4, %v7646_v4  ;;  %v6158_v26 = vadd.f32 %v6157_v2, %v6127_v57  ;;  %v7648_v62 = vadd.f32 %v5786_v32, %v2895_v50 }
 0x265   : > { %v6900_v40 = vpack.c.bf16 %v7647_v33, %v7645_v48  ;;  %v6131_v20 = vmul.f32 %v7647_v33, %v7647_v33 }
 0x266   : > { %v6159_v60 = vadd.f32 %v6158_v26, %v6128_v0  ;;  %v6895_v55 = vpack.c.bf16 %v7648_v62, %v7646_v4  ;;  %v6090_v3 = vadd.f32 %v7648_v62, %v6089_v37  ;;  %v6129_v24 = vmul.f32 %v7648_v62, %v7648_v62 }
 0x267   : > { %6964 = vst [vmem:[%s10129_s26 + $0x18] sm:$0xff] %v6900_v40  }
 0x268   : > { %6963 = vst [vmem:[%s10129_s26 + $0x10] sm:$0xff] %v6895_v55   ;;  %v6091_v16 = vadd.f32 %v7645_v48, %v6090_v3  ;;  %v6160_v49 = vadd.f32 %v6159_v60, %v6129_v24  ;;  %v7603_v14 = vpop.f32.mrb[8].mxu0 }
 0x269   : > { %v7649_v46 = vadd.f32 %v7603_v14, %v7363_v22  ;;  %v5799_v28 = vpop.f32.mrb[9].mxu0 }
 0x26a   : > { %v6161_v6 = vadd.f32 %v6160_v49, %v6130_v63  ;;  %v7650_v44 = vadd.f32 %v5799_v28, %v2908_v17  ;;  %v6092_v8 = vadd.f32 %v7647_v33, %v6091_v16  ;;  %v7604_v31 = vpop.f32.mrb[10].mxu0 }
 0x26b   : > { %v7651_v39 = vadd.f32 %v7604_v31, %v7364_v41  ;;  %v5802_v13 = vpop.f32.mrb[11].mxu0  ;;  %v6134_v22 = vmul.f32 %v7649_v46, %v7649_v46 }
 0x26c   : > { %v6093_v7 = vadd.f32 %v7650_v44, %v6092_v8  ;;  %v6132_v21 = vmul.f32 %v7650_v44, %v7650_v44  ;;  %v6162_v56 = vadd.f32 %v6161_v6, %v6131_v20  ;;  %v7652_v15 = vadd.f32 %v5802_v13, %v2911_v10 }
 0x26d   : > { %v6910_v35 = vpack.c.bf16 %v7651_v39, %v7649_v46  ;;  %v6135_v41 = vmul.f32 %v7651_v39, %v7651_v39 }
 0x26e   : > { %v6163_v1 = vadd.f32 %v6162_v56, %v6132_v21  ;;  %v6905_v51 = vpack.c.bf16 %v7652_v15, %v7650_v44  ;;  %v6094_v50 = vadd.f32 %v7652_v15, %v6093_v7  ;;  %v6133_v29 = vmul.f32 %v7652_v15, %v7652_v15 }
 0x26f   : > { %6966 = vst [vmem:[%s10129_s26 + $0x28] sm:$0xff] %v6910_v35  }
 0x270   : > { %6965 = vst [vmem:[%s10129_s26 + $0x20] sm:$0xff] %v6905_v51   ;;  %v6095_v11 = vadd.f32 %v7649_v46, %v6094_v50  ;;  %v6164_v25 = vadd.f32 %v6163_v1, %v6133_v29  ;;  %v7607_v17 = vpop.f32.mrb[12].mxu0 }
 0x271   : > { %v7653_v23 = vadd.f32 %v7607_v17, %v10116_v47  ;;  %v5815_v43 = vpop.f32.mrb[13].mxu0 }
 0x272   : > { %v6165_v34 = vadd.f32 %v6164_v25, %v6134_v22  ;;  %v7654_v61 = vadd.f32 %v5815_v43, %v10118_v53  ;;  %v6096_v10 = vadd.f32 %v7651_v39, %v6095_v11  ;;  %v7608_v36 = vpop.f32.mrb[14].mxu0 }
 0x273   : > { %v7655_v18 = vadd.f32 %v7608_v36, %v10120_v45  ;;  %v5818_v38 = vpop.f32.mrb[15].mxu0  ;;  %v6138_v5 = vmul.f32 %v7653_v23, %v7653_v23 }
 0x274   : > { %v6097_v58 = vadd.f32 %v7654_v61, %v6096_v10  ;;  %v6136_v42 = vmul.f32 %v7654_v61, %v7654_v61  ;;  %v6166_v27 = vadd.f32 %v6165_v34, %v6135_v41  ;;  %v7656_v30 = vadd.f32 %v5818_v38, %v10122_v9 }
 0x275   : > { %v6920_v59 = vpack.c.bf16 %v7655_v18, %v7653_v23  ;;  %v6139_v52 = vmul.f32 %v7655_v18, %v7655_v18 }
 0x276   : > { %v6167_v54 = vadd.f32 %v6166_v27, %v6136_v42  ;;  %v6915_v47 = vpack.c.bf16 %v7656_v30, %v7654_v61  ;;  %v6098_v12 = vadd.f32 %v7656_v30, %v6097_v58  ;;  %v6137_v48 = vmul.f32 %v7656_v30, %v7656_v30 }
 0x277   : > { %6968 = vst [vmem:[%s10129_s26 + $0x38] sm:$0xff] %v6920_v59  }
 0x278   : > { %6967 = vst [vmem:[%s10129_s26 + $0x30] sm:$0xff] %v6915_v47   ;;  %v6099_v53 = vadd.f32 %v7653_v23, %v6098_v12  ;;  %v6168_v57 = vadd.f32 %v6167_v54, %v6137_v48  ;;  %v7611_v2 = vpop.f32.mrb[16].mxu0 }
 0x279   : > { %v5831_v4 = vpop.f32.mrb[17].mxu0 }
 0x27a   : > { %v6169_v45 = vadd.f32 %v6168_v57, %v6138_v5  ;;  %v6100_v19 = vadd.f32 %v7655_v18, %v6099_v53  ;;  %v7612_v33 = vpop.f32.mrb[18].mxu0 }
 0x27b   : > { %v7419_v32 = vpop.f32.mrb[16].mxu1  ;;  %v5834_v37 = vpop.f32.mrb[19].mxu0 }
 0x27c   : > { %v3694_v0 = vpop.f32.mrb[17].mxu1  ;;  %v7657_v9 = vadd.f32 %v7611_v2, %v7419_v32  ;;  %v6170_v26 = vadd.f32 %v6169_v45, %v6139_v52 }
 0x27d   : > { %v7420_v62 = vpop.f32.mrb[18].mxu1  ;;  %v7658_v40 = vadd.f32 %v5831_v4, %v3694_v0 }
 0x27e   : > { %v3697_v60 = vpop.f32.mrb[19].mxu1  ;;  %v7659_v55 = vadd.f32 %v7612_v33, %v7420_v62  ;;  %v6142_v8 = vmul.f32 %v7657_v9, %v7657_v9 }
 0x27f   : > { %v6101_v3 = vadd.f32 %v7658_v40, %v6100_v19  ;;  %v6140_v24 = vmul.f32 %v7658_v40, %v7658_v40  ;;  %v7660_v63 = vadd.f32 %v5834_v37, %v3697_v60 }
 0x280   : > { %v6930_v16 = vpack.c.bf16 %v7659_v55, %v7657_v9  ;;  %v7615_v49 = vpop.f32.mrb[20].mxu0  ;;  %v6143_v15 = vmul.f32 %v7659_v55, %v7659_v55 }
 0x281   : > { %v6171_v14 = vadd.f32 %v6170_v26, %v6140_v24  ;;  %v6925_v46 = vpack.c.bf16 %v7660_v63, %v7658_v40  ;;  %v6102_v28 = vadd.f32 %v7660_v63, %v6101_v3  ;;  %v6141_v20 = vmul.f32 %v7660_v63, %v7660_v63  ;;  %v5847_v6 = vpop.f32.mrb[21].mxu0 }
 0x282   : > { %6970 = vst [vmem:[%s10129_s26 + $0x48] sm:$0xff] %v6930_v16   ;;  %v7616_v44 = vpop.f32.mrb[22].mxu0 }
 0x283   : > { %6969 = vst [vmem:[%s10129_s26 + $0x40] sm:$0xff] %v6925_v46   ;;  %v6103_v31 = vadd.f32 %v7657_v9, %v6102_v28  ;;  %v6172_v39 = vadd.f32 %v6171_v14, %v6141_v20  ;;  %v7423_v13 = vpop.f32.mrb[20].mxu1  ;;  %v5850_v7 = vpop.f32.mrb[23].mxu0 }
 0x284   : > { %v3710_v21 = vpop.f32.mrb[21].mxu1  ;;  %v7661_v56 = vadd.f32 %v7615_v49, %v7423_v13 }
 0x285   : > { %v6173_v35 = vadd.f32 %v6172_v39, %v6142_v8  ;;  %v7424_v1 = vpop.f32.mrb[22].mxu1  ;;  %v7662_v51 = vadd.f32 %v5847_v6, %v3710_v21  ;;  %v6104_v50 = vadd.f32 %v7659_v55, %v6103_v31 }
 0x286   : > { %v3713_v29 = vpop.f32.mrb[23].mxu1  ;;  %v7663_v22 = vadd.f32 %v7616_v44, %v7424_v1  ;;  %v6146_v58 = vmul.f32 %v7661_v56, %v7661_v56 }
 0x287   : > { %v6105_v11 = vadd.f32 %v7662_v51, %v6104_v50  ;;  %v6144_v25 = vmul.f32 %v7662_v51, %v7662_v51  ;;  %v6174_v17 = vadd.f32 %v6173_v35, %v6143_v15  ;;  %v7664_v23 = vadd.f32 %v5850_v7, %v3713_v29 }
 0x288   : > { %v6940_v43 = vpack.c.bf16 %v7663_v22, %v7661_v56  ;;  %v7619_v41 = vpop.f32.mrb[24].mxu0  ;;  %v6147_v12 = vmul.f32 %v7663_v22, %v7663_v22 }
 0x289   : > { %v6175_v34 = vadd.f32 %v6174_v17, %v6144_v25  ;;  %v6935_v61 = vpack.c.bf16 %v7664_v23, %v7662_v51  ;;  %v6106_v10 = vadd.f32 %v7664_v23, %v6105_v11  ;;  %v6145_v36 = vmul.f32 %v7664_v23, %v7664_v23  ;;  %v5863_v18 = vpop.f32.mrb[25].mxu0 }
 0x28a   : > { %6972 = vst [vmem:[%s10129_s26 + $0x58] sm:$0xff] %v6940_v43   ;;  %v7620_v38 = vpop.f32.mrb[26].mxu0 }
 0x28b   : > { %6971 = vst [vmem:[%s10129_s26 + $0x50] sm:$0xff] %v6935_v61   ;;  %v6107_v42 = vadd.f32 %v7661_v56, %v6106_v10  ;;  %v6176_v27 = vadd.f32 %v6175_v34, %v6145_v36  ;;  %v7427_v30 = vpop.f32.mrb[24].mxu1  ;;  %v5866_v59 = vpop.f32.mrb[27].mxu0 }
 0x28c   : > { %v3726_v54 = vpop.f32.mrb[25].mxu1  ;;  %v7665_v47 = vadd.f32 %v7619_v41, %v7427_v30 }
 0x28d   : > { %v6177_v48 = vadd.f32 %v6176_v27, %v6146_v58  ;;  %v7428_v5 = vpop.f32.mrb[26].mxu1  ;;  %v7666_v53 = vadd.f32 %v5863_v18, %v3726_v54  ;;  %v6108_v57 = vadd.f32 %v7663_v22, %v6107_v42 }
 0x28e   : > { %v3729_v2 = vpop.f32.mrb[27].mxu1  ;;  %v7667_v4 = vadd.f32 %v7620_v38, %v7428_v5  ;;  %v6150_v55 = vmul.f32 %v7665_v47, %v7665_v47 }
 0x28f   : > { %v6109_v52 = vadd.f32 %v7666_v53, %v6108_v57  ;;  %v6148_v45 = vmul.f32 %v7666_v53, %v7666_v53  ;;  %v6178_v19 = vadd.f32 %v6177_v48, %v6147_v12  ;;  %v7668_v33 = vadd.f32 %v5866_v59, %v3729_v2 }
 0x290   : > { %v6950_v32 = vpack.c.bf16 %v7667_v4, %v7665_v47  ;;  %v7623_v37 = vpop.f32.mrb[28].mxu0  ;;  %v6151_v46 = vmul.f32 %v7667_v4, %v7667_v4 }
 0x291   : > { %v6179_v0 = vadd.f32 %v6178_v19, %v6148_v45  ;;  %v6945_v9 = vpack.c.bf16 %v7668_v33, %v7666_v53  ;;  %v6110_v26 = vadd.f32 %v7668_v33, %v6109_v52  ;;  %v6149_v62 = vmul.f32 %v7668_v33, %v7668_v33  ;;  %v5879_v40 = vpop.f32.mrb[29].mxu0 }
 0x292   : > { %6974 = vst [vmem:[%s10129_s26 + $0x68] sm:$0xff] %v6950_v32   ;;  %v7624_v60 = vpop.f32.mrb[30].mxu0 }
 0x293   : > { %6973 = vst [vmem:[%s10129_s26 + $0x60] sm:$0xff] %v6945_v9   ;;  %v6111_v3 = vadd.f32 %v7665_v47, %v6110_v26  ;;  %v6180_v24 = vadd.f32 %v6179_v0, %v6149_v62  ;;  %v7431_v63 = vpop.f32.mrb[28].mxu1  ;;  %v5882_v16 = vpop.f32.mrb[31].mxu0 }
 0x294   : > { %v3742_v49 = vpop.f32.mrb[29].mxu1  ;;  %v7669_v14 = vadd.f32 %v7623_v37, %v7431_v63 }
 0x295   : > { %v6181_v28 = vadd.f32 %v6180_v24, %v6150_v55  ;;  %v7432_v20 = vpop.f32.mrb[30].mxu1  ;;  %v7670_v6 = vadd.f32 %v5879_v40, %v3742_v49  ;;  %v6112_v44 = vadd.f32 %v7667_v4, %v6111_v3 }
 0x296   : > { %v3745_v8 = vpop.f32.mrb[31].mxu1  ;;  %v7671_v31 = vadd.f32 %v7624_v60, %v7432_v20  ;;  %v6154_v50 = vmul.f32 %v7669_v14, %v7669_v14 }
 0x297   : > { %v6113_v39 = vadd.f32 %v7670_v6, %v6112_v44  ;;  %v6152_v13 = vmul.f32 %v7670_v6, %v7670_v6  ;;  %v6182_v7 = vadd.f32 %v6181_v28, %v6151_v46  ;;  %v7672_v21 = vadd.f32 %v5882_v16, %v3745_v8 }
 0x298   : > { %v6960_v56 = vpack.c.bf16 %v7671_v31, %v7669_v14  ;;  %v6155_v11 = vmul.f32 %v7671_v31, %v7671_v31 }
 0x299   : > { %v6183_v15 = vadd.f32 %v6182_v7, %v6152_v13  ;;  %v6955_v35 = vpack.c.bf16 %v7672_v21, %v7670_v6  ;;  %v6114_v1 = vadd.f32 %v7672_v21, %v6113_v39  ;;  %v6153_v51 = vmul.f32 %v7672_v21, %v7672_v21 }
 0x29a   : > { %6976 = vst [vmem:[%s10129_s26 + $0x78] sm:$0xff] %v6960_v56  }
 0x29b   : > { %6975 = vst [vmem:[%s10129_s26 + $0x70] sm:$0xff] %v6955_v35   ;;  %v6115_v29 = vadd.f32 %v7669_v14, %v6114_v1  ;;  %v6184_v22 = vadd.f32 %v6183_v15, %v6153_v51 }
 0x29d   : > { %v6116_v25 = vadd.f32 %v7671_v31, %v6115_v29  ;;  %v6185_v17 = vadd.f32 %v6184_v22, %v6154_v50 }
 0x29f   : > { %v6117_v23 = vrot.slane %v6116_v25, 4  ;;  %v6186_v43 = vadd.f32 %v6185_v17, %v6155_v11 }
 0x2a1   : > { %v6118_v41 = vadd.f32 %v6117_v23, %v6116_v25  ;;  %v6187_v34 = vrot.slane %v6186_v43, 4 }
 0x2a3   : > { %v6119_v61 = vrot.slane %v6118_v41, 2  ;;  %v6188_v10 = vadd.f32 %v6187_v34, %v6186_v43 }
 0x2a5   : > { %v6120_v36 = vadd.f32 %v6119_v61, %v6118_v41  ;;  %v6189_v18 = vrot.slane %v6188_v10, 2 }
 0x2a7   : > { %v6121_v38 = vrot.slane %v6120_v36, 1  ;;  %v6190_v58 = vadd.f32 %v6189_v18, %v6188_v10 }
 0x2a9   : > { %v6122_v42 = vadd.f32 %v6121_v38, %v6120_v36  ;;  %v6191_v27 = vrot.slane %v6190_v58, 1 }
 0x2ab   : > { %6123 = vst [vmem:[%s323_s28] sm:$0x1] %v6122_v42  ;;  %v6192_v30 = vadd.f32 %v6191_v27, %v6190_v58 }
 0x2ad   : > { %6193 = vst [vmem:[%s329_s8] sm:$0x1] %v6192_v30 }
 0x2ae PF: > { %s18_s25 = sadd.s32 1, %s8139_s25   ;;  %s10271_s24 = smov %s8135_s1 }
 0x2af   : > { %p15_p5 = scmp.ge.s32.totalorder %s18_s25, 4   ;;  %s10272_s1 = smov %s10274_s3 }
 0x2b1   :  { %17 = sbr.rel (!%p15_p5) target bundleno = 2 (0x2), region = 217 }
 0x2b8   :  { %6262 = vsyncmov [#allocation4] }
 0x2bb   :  { %s6263_s9 = vpop.sfrf %6262 }
 0x2bc   :  { %p6845_p6 = scmp.ne.s32.totalorder %s6263_s9, 0 }
 0x2be   :  { %6267 = shalt.err (%p6845_p6)  }
 0x2bf   :  { %6269 = vsyncmov [#allocation4 + $0x1] }
 0x2c2   :  { %s6270_s10 = vpop.sfrf %6269 }
 0x2c3   :  { %p6846_p7 = scmp.ne.s32.totalorder %s6270_s10, 0 }
 0x2c5   :  { %6274 = shalt.err (%p6846_p7)  }

// kernel: basic_block.4
= control target key start
LH: loop header
LB: loop body
LE: loop exit
PB: predicated region body
PF: predicated region fallthrough
CT: control target
= control target key end

     0   :  { %s8595_s24 = smov 0   ;;  %s8597_s1 = smov 0   ;;  %s10654_s0 = inlined_call_operand.vmem [shape: bf16[2,16,16,128], index: 0, kind: input, shape index: {}, may-alias: {0,1}]   ;;  %s10655_s1 = inlined_call_operand.vmem [shape: bf16[2,16,16,128], index: 1, kind: input, shape index: {}, may-alias: {0,1}]   ;;  %s10656_s2 = inlined_call_operand.vmem [shape: bf16[3,3,128,128], index: 2, kind: input, shape index: {}]   ;;  %s10657_s3 = inlined_call_operand.vmem [shape: f32[1,128], index: 3, kind: input, shape index: {}]   ;;  %s10658_s4 = inlined_call_operand.vmem [shape: f32[1,128], index: 4, kind: input, shape index: {}]   ;;  %s10659_s5 = inlined_call_operand.vmem [shape: bf16[2,16,16,128], index: 5, kind: output, shape index: {0}]   ;;  %s10660_s6 = inlined_call_operand.vmem [shape: f32[2,1,1,128], index: 6, kind: output, shape index: {1}]   ;;  %s10661_s7 = inlined_call_operand.vmem [shape: f32[2,1,1,128], index: 7, kind: output, shape index: {2}]  }
   0x1   :  { %s8599_s25 = smov 0  }
   0x2 LB: > { %s30_s26 = sadd.s32 1, %s8548_s1  ;;  %p6660_p0 = scmp.ge.s32.totalorder %s8552_s25, 1  ;;  %s8552_s25 = sphi %s8599_s25, %s18_s25   ;;  %s8548_s1 = sphi %s8597_s1, %s10739_s1   ;;  %s8544_s24 = sphi %s8595_s24, %s10738_s24  }
   0x3   : > { %p32_p1 = scmp.ge.s32.totalorder %s30_s26, 2  ;;  %p244_p2 = scmp.lt.s32.totalorder %s8552_s25, 3 }
   0x5   : > { %s10741_s26 = smov (%p32_p1, %s30_s26), 0  ;;  %p245_p3 = pnand %p6660_p0, %p244_p2 }
   0x7   : > { %248 = sbr.rel (%p245_p3) target bundleno = 724 (0x2d4), region = 36 }
   0xe   : > { %v8327_v0 = vld [vmem:[%s10656_s2 + $0x40] sm:$0xff]   ;;  %v8329_v2 = vld [vmem:[%s10656_s2 + $0x48] sm:$0xff]   ;;  %v10662_v3 = vmov 0   ;;  %v8331_v5 = vld [vmem:[%s10656_s2 + $0x50] sm:$0xff]   ;;  %p297_p4 = scmp.lt.s32.totalorder %s8544_s24, 1  ;;  %vm1040_vm0 = vcmask 1040384  }
   0xf   : > { %v8328_v1 = vld [vmem:[%s10656_s2 + $0x100] sm:$0xff]   ;;  %7598 = vmatprep.subr.bf16.mxu1 %v8327_v0  ;;  %1313 = vst [vmem:[#allocation2 + $0x4] sm:$0xf] %v10662_v3  ;;  %1372 = vst [vmem:[#allocation2 + $0xd0] sm:$0xf] %v10662_v3  ;;  %v8330_v4 = vld [vmem:[%s10656_s2 + $0x108] sm:$0xff]  }
  0x10   : > { %7790 = vmatprep.subr.bf16.mxu0 %v8328_v1  ;;  %7599 = vmatpush3.bf16.msra.mxu1 %v8327_v0  ;;  %v8332_v6 = vld [vmem:[%s10656_s2 + $0x110] sm:$0xff]   ;;  %v8333_v7 = vld [vmem:[%s10656_s2 + $0x58] sm:$0xff]   ;;  %s10743_s24 = smov (!%p297_p4, %s8544_s24), 1  ;;  %v8335_v9 = vld [vmem:[%s10656_s2 + $0x60] sm:$0xff]   ;;  %vm709_vm1 = vsmask.f32 256 }
  0x11   : > { %7791 = vmatpush3.bf16.msra.mxu0 %v8328_v1  ;;  %7600 = vmatprep.subr.bf16.mxu1 %v8329_v2  ;;  %v8334_v8 = vld [vmem:[%s10656_s2 + $0x118] sm:$0xff]   ;;  %s7137_s22 = sshll.u32 %s10743_s24, 7  ;;  %v8336_v10 = vld [vmem:[%s10656_s2 + $0x120] sm:$0xff]   ;;  %v8337_v11 = vld [vmem:[%s10656_s2 + $0x68] sm:$0xff]   ;;  %vm1034_vm2 = vsmask.f32 7938  ;;  %s323_s17 = scalar_lea.vmem %s10660_s6, %s10743_s24 }
  0x12   : > { %7792 = vmatprep.subr.bf16.mxu0 %v8330_v4  ;;  %s8657_s30 = scalar_lea.vmem %s10654_s0, %s7137_s22  ;;  %v8338_v12 = vld [vmem:[%s10656_s2 + $0x128] sm:$0xff]   ;;  %v1150_v13 = vld [vmem:[#allocation2] sm:$0x1]  ;;  %vm8667_vm3 = vmand %vm1040_vm0, %vm709_vm1  ;;  %v10676_v18 = vmov 0  ;;  %vm1438_vm5 = vsmask.f32 3328  ;;  %s10615_s15 = scalar_lea.vmem %s10659_s5, %s7137_s22 }
  0x13   : > { %v1205_v15 = vld [vmem:[#allocation2 + $0x8] sm:$0x1]  ;;  %v1151_v17 = vsel %vm8667_vm3, 0, %v1150_v13  ;;  %vm8675_vm4 = vmand %vm1040_vm0, %vm1034_vm2  ;;  %v7209_v21 = vld [vmem:[%s8657_s30] sm:$0xff]   ;;  %vm1033_vm6 = vcmask 1043456   ;;  %vm2468_vm12 = vcmask 1042432   ;;  %s329_s20 = scalar_lea.vmem %s10661_s7, %s10743_s24 }
  0x14   : > { %7601 = vmatpush3.bf16.msra.mxu1 %v8329_v2  ;;  %v10677_v18 = vsel %vm8675_vm4, 4294967295, %v10676_v18  ;;  %1152 = vst [vmem:[#allocation2] sm:$0x1] %v1151_v17  ;;  %v1206_v22 = vsel %vm8675_vm4, 0, %v1205_v15  ;;  %v8685_v23 = vld [vmem:[%s10657_s3] ss:$0 sm:$0xff]  ;;  %v7210_v24 = vunpack.c.l.bf16 %v7209_v21  ;;  %v7211_v25 = vunpack.c.h.bf16 %v7209_v21  ;;  %vm8737_vm10 = vmand %vm1033_vm6, %vm1034_vm2 }
  0x15   : > { %7793 = vmatpush3.bf16.msra.mxu0 %v8330_v4  ;;  %7602 = vmatprep.subr.bf16.mxu1 %v8331_v5  ;;  %10678 = vst [vmem:[#allocation7_spill] sm:$0xff] %v10677_v18  ;;  %v8339_v26 = vld [vmem:[%s10656_s2 + $0x70] sm:$0xff]   ;;  %1207 = vst [vmem:[#allocation2 + $0x8] sm:$0x1] %v1206_v22  ;;  %v8694_v27 = vld [vmem:[%s10658_s4] ss:$0 sm:$0xff] }
  0x16   : > { %7794 = vmatprep.subr.bf16.mxu0 %v8332_v6  ;;  %v1375_v16 = vld [vmem:[#allocation2 + $0x4] sm:$0xf]  ;;  %1312 = vst [vmem:[#allocation2] sm:$0xf] %v10662_v3  ;;  %v8340_v28 = vld [vmem:[%s10656_s2 + $0x130] sm:$0xff]   ;;  %v511_v31 = vmul.f32 %v7210_v24, %v8685_v23  ;;  %v512_v32 = vmul.f32 %v7211_v25, %v8685_v23  ;;  %v7352_v35 = vld [vmem:[%s8657_s30 + $0x8] sm:$0xff]  }
  0x17   : > { %v1451_v19 = vshll.u32 %v1375_v16, 16  ;;  %v1455_v20 = vshrl.u32 %v1375_v16, 16  ;;  %1314 = vst [vmem:[#allocation2 + $0x8] sm:$0x1] %v10662_v3  ;;  %v8341_v36 = vld [vmem:[%s10656_s2 + $0x78] sm:$0xff]   ;;  %v7214_v38 = vunpack.c.l.bf16 %v7352_v35  ;;  %v7215_v39 = vunpack.c.h.bf16 %v7352_v35  ;;  %v7353_v45 = vld [vmem:[%s8657_s30 + $0x10] sm:$0xff]  }
  0x18   : > { %7603 = vmatpush3.bf16.msra.mxu1 %v8331_v5  ;;  %v549_v33 = vadd.f32 %v8694_v27, %v511_v31  ;;  %v550_v34 = vadd.f32 %v8694_v27, %v512_v32  ;;  %v8342_v37 = vld [vmem:[%s10656_s2 + $0x138] sm:$0xff]   ;;  %vm1439_vm7 = vsmask.f32 7440  ;;  %vm710_vm8 = vsmask.f32 4368  ;;  %v8720_v54 = vld [vmem:[%s10656_s2] sm:$0xff]  }
  0x19   : > { %7795 = vmatpush3.bf16.msra.mxu0 %v8332_v6  ;;  %7604 = vmatprep.subr.bf16.mxu1 %v8333_v7  ;;  %v8700_v29 = vrot.slane %v1451_v19, 5  ;;  %v1457_v30 = vrot.slane %v1455_v20, 4  ;;  %v513_v43 = vmul.f32 %v7214_v38, %v8685_v23  ;;  %v514_v44 = vmul.f32 %v7215_v39, %v8685_v23  ;;  %v8725_v55 = vld [vmem:[%s10656_s2 + $0x140] sm:$0xff]   ;;  %vm8731_vm9 = vmor %vm1438_vm5, %vm1439_vm7  ;;  %v8399_v14 = vld [vmem:[%s10656_s2 + $0xb8] sm:$0xff]  }
  0x1a   : > { %7796 = vmatprep.subr.bf16.mxu0 %v8334_v8  ;;  %v581_v41 = vmax.f32 %v549_v33, 0.0  ;;  %v582_v42 = vmax.f32 %v550_v34, 0.0  ;;  %v7218_v49 = vunpack.c.l.bf16 %v7353_v45  ;;  %v7219_v50 = vunpack.c.h.bf16 %v7353_v45  ;;  %vm8748_vm11 = vmor %vm709_vm1, %vm710_vm8  ;;  %v7355_v38 = vld [vmem:[%s8657_s30 + $0x20] sm:$0xff]  }
  0x1b   : > { %v1458_v40 = vor.u32 %v1457_v30, %v8700_v29  ;;  %v551_v56 = vadd.f32 %v8694_v27, %v513_v43  ;;  %v552_v57 = vadd.f32 %v8694_v27, %v514_v44  ;;  %v1045_v44 = vld [vmem:[#allocation2 + $0x18] sm:$0xf]  ;;  %vm2469_vm13 = vcmask 1046532  }
  0x1c   : > { %7605 = vmatpush3.bf16.msra.mxu1 %v8333_v7  ;;  %v7140_v47 = vpack.c.bf16 %v581_v41, %v581_v41  ;;  %v7141_v48 = vpack.c.bf16 %v582_v42, %v582_v42  ;;  %v515_v13 = vmul.f32 %v7218_v49, %v8685_v23  ;;  %v516_v15 = vmul.f32 %v7219_v50, %v8685_v23  ;;  %v1049_v49 = vld [vmem:[#allocation2 + $0x20] sm:$0x1]  ;;  %vm9097_vm14 = vmor %vm2468_vm12, %vm2469_vm13 }
  0x1d   : > { %7797 = vmatpush3.bf16.msra.mxu0 %v8334_v8  ;;  %7606 = vmatprep.subr.bf16.mxu1 %v8335_v9  ;;  %v1374_v46 = vld [vmem:[#allocation2] sm:$0xf]  ;;  %v1459_v58 = vrot.slane %v1458_v40, 4  ;;  %v583_v6 = vmax.f32 %v551_v56, 0.0  ;;  %v584_v7 = vmax.f32 %v552_v57, 0.0 }
  0x1e   : > { %7798 = vmatprep.subr.bf16.mxu0 %v8336_v10  ;;  %v1422_v51 = vld [vmem:[#allocation2 + $0x8] sm:$0x1]  ;;  %v1442_v52 = vshrl.u32 %v1374_v46, 16  ;;  %v1445_v53 = vshll.u32 %v1374_v46, 16  ;;  %v713_v60 = vshrl.u32 %v7140_v47, 16  ;;  %v716_v61 = vshll.u32 %v7140_v47, 16 }
  0x1f   : > { %v1461_v59 = vshll.u32 %v1422_v51, 16  ;;  %v721_v1 = vshrl.u32 %v7141_v48, 16  ;;  %v724_v2 = vshll.u32 %v7141_v48, 16  ;;  %v7142_v21 = vpack.c.bf16 %v583_v6, %v583_v6 }
  0x20   : > { %7607 = vmatpush3.bf16.msra.mxu1 %v8335_v9  ;;  %v1444_v63 = vrot.slane %v1442_v52, 4  ;;  %v1447_v0 = vrot.slane %v1445_v53, 5  ;;  %v715_v5 = vrot.slane %v713_v60, 7  ;;  %v553_v33 = vadd.f32 %v8694_v27, %v515_v13 }
  0x21   : > { %7799 = vmatpush3.bf16.msra.mxu0 %v8336_v10  ;;  %7608 = vmatprep.subr.bf16.mxu1 %v8337_v11  ;;  %v1463_v4 = vrot.slane %v1461_v59, 5  ;;  %v723_v9 = vrot.slane %v721_v1, 7  ;;  %v730_v31 = vshrl.u32 %v7142_v21, 16  ;;  %v733_v32 = vshll.u32 %v7142_v21, 16 }
  0x22   : > { %7800 = vmatprep.subr.bf16.mxu0 %v8338_v12  ;;  %v1448_v8 = vor.u32 %v1447_v0, %v1444_v63  ;;  %v718_v19 = vor.u32 %v716_v61, %v715_v5  ;;  %v719_v20 = vrot.slane %v715_v5, 4  ;;  %v554_v42 = vadd.f32 %v8694_v27, %v516_v15 }
  0x23   : > { %v1464_v16 = vsel %vm8731_vm9, %v1459_v58, %v1463_v4  ;;  %v726_v24 = vor.u32 %v724_v2, %v723_v9  ;;  %v728_v25 = vrot.slane %v723_v9, 4  ;;  %v732_v40 = vrot.slane %v730_v31, 7 }
  0x24   : > { %7609 = vmatpush3.bf16.msra.mxu1 %v8337_v11  ;;  %v1036_v11 = vld [vmem:[#allocation2 + $0xc] sm:$0xf]  ;;  %v1449_v22 = vrot.slane %v1448_v8, 4  ;;  %v585_v45 = vmax.f32 %v553_v33, 0.0  ;;  %v586_v50 = vmax.f32 %v554_v42, 0.0  ;;  %v7226_v51 = vunpack.c.l.bf16 %v7355_v38 }
  0x25   : > { %7801 = vmatpush3.bf16.msra.mxu0 %v8338_v12  ;;  %7610 = vmatprep.subr.bf16.mxu1 %v8339_v26  ;;  %v1042_v12 = vld [vmem:[#allocation2 + $0x14] sm:$0x1]  ;;  %v1037_v30 = vsel %vm8737_vm10, %v718_v19, %v1036_v11  ;;  %v727_v35 = vsel %vm8748_vm11, %v719_v20, %v726_v24  ;;  %v735_v47 = vor.u32 %v733_v32, %v732_v40  ;;  %v736_v48 = vrot.slane %v732_v40, 4  ;;  %v1056_v32 = vld [vmem:[#allocation2 + $0x2c] sm:$0x1] }
  0x26   : > { %7802 = vmatprep.subr.bf16.mxu0 %v8340_v28  ;;  %v1454_v34 = vsel %vm8731_vm9, %v1449_v22, %v8700_v29  ;;  %1038 = vst [vmem:[#allocation2 + $0xc] sm:$0xf] %v1037_v30  ;;  %1039 = vst [vmem:[#allocation2 + $0x10] sm:$0xf] %v727_v35  ;;  %v7144_v56 = vpack.c.bf16 %v585_v45, %v585_v45  ;;  %v7145_v59 = vpack.c.bf16 %v586_v50, %v586_v50  ;;  %v8801_v50 = vld [vmem:[%s8657_s30 + $0x28] sm:$0xff]  }
  0x27   : > { %v6725_v39 = vcombine.low %v1454_v34, %v1464_v16  ;;  %v1046_v58 = vsel %vm8737_vm10, %v735_v47, %v1045_v44  ;;  %v7227_v61 = vunpack.c.h.bf16 %v7355_v38  ;;  %v519_v16 = vmul.f32 %v7226_v51, %v8685_v23 }
  0x28   : > { %7611 = vmatpush3.bf16.msra.mxu1 %v8339_v26  ;;  %v7143_v26 = vpack.c.bf16 %v584_v7, %v584_v7  ;;  %1047 = vst [vmem:[#allocation2 + $0x18] sm:$0xf] %v1046_v58  ;;  %v747_v1 = vshrl.u32 %v7144_v56, 16  ;;  %v750_v2 = vshll.u32 %v7144_v56, 16  ;;  %v755_v5 = vshrl.u32 %v7145_v59, 16 }
  0x29   : > { %7803 = vmatpush3.bf16.msra.mxu0 %v8340_v28  ;;  %7612 = vmatprep.subr.bf16.mxu1 %v8341_v36  ;;  %v7354_v28 = vld [vmem:[%s8657_s30 + $0x18] sm:$0xff]   ;;  %v758_v6 = vshll.u32 %v7145_v59, 16  ;;  %v1052_v7 = vld [vmem:[#allocation2 + $0x24] sm:$0xf]  ;;  %v520_v19 = vmul.f32 %v7227_v61, %v8685_v23 }
  0x2a   : > { %7804 = vmatprep.subr.bf16.mxu0 %v8342_v37  ;;  %v741_v41 = vshll.u32 %v7143_v26, 16  ;;  %v7222_v29 = vunpack.c.l.bf16 %v7354_v28  ;;  %v7223_v46 = vunpack.c.h.bf16 %v7354_v28  ;;  %7614 = vmatprep.mubr.bf16.mxu1 %v6725_v39  ;;  %v749_v15 = vrot.slane %v747_v1, 7 }
  0x2c   : > { %7613 = vmatpush3.bf16.msra.mxu1 %v8341_v36  ;;  %v1043_v36 = vsel %vm8667_vm3, %v728_v25, %v1042_v12  ;;  %v517_v57 = vmul.f32 %v7222_v29, %v8685_v23  ;;  %v518_v60 = vmul.f32 %v7223_v46, %v8685_v23  ;;  %v757_v25 = vrot.slane %v755_v5, 7 }
  0x2d   : > { %7805 = vmatpush3.bf16.msra.mxu0 %v8342_v37  ;;  %7646 = vmatprep.subr.bf16.mxu1 %v8720_v54  ;;  %v738_v37 = vshrl.u32 %v7143_v26, 16  ;;  %1044 = vst [vmem:[#allocation2 + $0x14] sm:$0x1] %v1043_v36  ;;  %v1153_v4 = vld [vmem:[#allocation2 + $0xc] sm:$0x1]  ;;  %v752_v30 = vor.u32 %v750_v2, %v749_v15  ;;  %v753_v31 = vrot.slane %v749_v15, 4  ;;  %v8816_v5 = vadd.f32 %v8694_v27, %v520_v19 }
  0x2e   : > { %7838 = vmatprep.subr.bf16.mxu0 %v8725_v55  ;;  %v555_v8 = vadd.f32 %v8694_v27, %v517_v57  ;;  %v556_v9 = vadd.f32 %v8694_v27, %v518_v60  ;;  %v1154_v11 = vsel %vm8667_vm3, 0, %v1153_v4  ;;  %v1377_v13 = vld [vmem:[#allocation2 + $0x10] sm:$0xf]  ;;  %v760_v35 = vor.u32 %v758_v6, %v757_v25 }
  0x2f   : > { %v740_v43 = vrot.slane %v738_v37, 7  ;;  %1155 = vst [vmem:[#allocation2 + $0xc] sm:$0x1] %v1154_v11  ;;  %v1475_v21 = vshll.u32 %v1377_v13, 16  ;;  %v1479_v22 = vshrl.u32 %v1377_v13, 16  ;;  %v762_v36 = vrot.slane %v757_v25, 4 }
  0x30   : > { %v3292_v24 = vld [vmem:[#allocation2 + $0x10] sm:$0xf]  ;;  %v1053_v39 = vsel %vm8737_vm10, %v752_v30, %v1052_v7  ;;  %v587_v40 = vmax.f32 %v555_v8, 0.0  ;;  %v1156_v42 = vld [vmem:[#allocation2 + $0x18] sm:$0x1]  ;;  %v588_v45 = vmax.f32 %v556_v9, 0.0  ;;  %v7230_v6 = vunpack.c.l.bf16 %v8801_v50 }
  0x31   : > { %v743_v52 = vor.u32 %v741_v41, %v740_v43  ;;  %v745_v53 = vrot.slane %v740_v43, 4  ;;  %v3349_v26 = vshll.u32 %v3292_v24, 16  ;;  %v3353_v28 = vshrl.u32 %v3292_v24, 16  ;;  %1054 = vst [vmem:[#allocation2 + $0x24] sm:$0xf] %v1053_v39 }
  0x32   : > { %v8782_v33 = vrot.slane %v1475_v21, 5  ;;  %v1481_v34 = vrot.slane %v1479_v22, 4  ;;  %v761_v43 = vsel %vm8748_vm11, %v753_v31, %v760_v35  ;;  %v1057_v44 = vsel %vm8667_vm3, %v762_v36, %v1056_v32 }
  0x33   : > { %v744_v63 = vsel %vm8748_vm11, %v736_v48, %v743_v52  ;;  %v1050_v0 = vsel %vm8667_vm3, %v745_v53, %v1049_v49  ;;  %v8784_v37 = vrot.slane %v3349_v26, 5  ;;  %v3355_v38 = vrot.slane %v3353_v28, 4  ;;  %1055 = vst [vmem:[#allocation2 + $0x28] sm:$0xf] %v761_v43  ;;  %1058 = vst [vmem:[#allocation2 + $0x2c] sm:$0x1] %v1057_v44 }
  0x34   : > { %1048 = vst [vmem:[#allocation2 + $0x1c] sm:$0xf] %v744_v63  ;;  %1051 = vst [vmem:[#allocation2 + $0x20] sm:$0x1] %v1050_v0  ;;  %v1208_v12 = vld [vmem:[#allocation2 + $0x14] sm:$0x1]  ;;  %v1482_v41 = vor.u32 %v1481_v34, %v8782_v33  ;;  %v8798_v49 = vpack.c.bf16 %v587_v40, %v587_v40  ;;  %v8808_v61 = vpack.c.bf16 %v588_v45, %v588_v45 }
  0x35   : > { %v1209_v20 = vsel %vm8675_vm4, 0, %v1208_v12  ;;  %v3356_v29 = vor.u32 %v3355_v38, %v8784_v37  ;;  %v1157_v46 = vsel %vm8667_vm3, 0, %v1156_v42  ;;  %v8811_v63 = vadd.f32 %v8694_v27, %v519_v16 }
  0x36   : > { %1210 = vst [vmem:[#allocation2 + $0x14] sm:$0x1] %v1209_v20  ;;  %v1483_v51 = vrot.slane %v1482_v41, 4  ;;  %1158 = vst [vmem:[#allocation2 + $0x18] sm:$0x1] %v1157_v46  ;;  %v7231_v12 = vunpack.c.h.bf16 %v8801_v50 }
  0x37   : > { %v1376_v57 = vld [vmem:[#allocation2 + $0xc] sm:$0xf]  ;;  %v3357_v59 = vrot.slane %v3356_v29, 4  ;;  %v1059_v50 = vld [vmem:[#allocation2 + $0x30] sm:$0xf] }
  0x38   : > { %v3291_v58 = vld [vmem:[#allocation2 + $0xc] sm:$0xf]  ;;  %v1466_v1 = vshrl.u32 %v1376_v57, 16  ;;  %v1469_v2 = vshll.u32 %v1376_v57, 16 }
  0x39   : > { %v3340_v8 = vshrl.u32 %v3291_v58, 16  ;;  %v3343_v9 = vshll.u32 %v3291_v58, 16 }
  0x3a   : > { %v1468_v13 = vrot.slane %v1466_v1, 4  ;;  %v1471_v15 = vrot.slane %v1469_v2, 5 }
  0x3b   : > { %v1211_v47 = vld [vmem:[#allocation2 + $0x20] sm:$0x1]  ;;  %v8796_v48 = vld [vmem:[#allocation2 + $0x1c] sm:$0xf]  ;;  %v3342_v22 = vrot.slane %v3340_v8, 4  ;;  %v3345_v24 = vrot.slane %v3343_v9, 5 }
  0x3c   : > { %v1212_v52 = vsel %vm8675_vm4, 0, %v1211_v47  ;;  %v3373_v53 = vshll.u32 %v8796_v48, 16  ;;  %v3377_v56 = vshrl.u32 %v8796_v48, 16  ;;  %v4118_v60 = vrot.slane %v8796_v48, 5  ;;  %v1379_v11 = vld [vmem:[#allocation2 + $0x1c] sm:$0xf] }
  0x3d   : > { %1213 = vst [vmem:[#allocation2 + $0x20] sm:$0x1] %v1212_v52  ;;  %v1423_v0 = vld [vmem:[#allocation2 + $0x14] sm:$0x1]  ;;  %v1472_v19 = vor.u32 %v1471_v15, %v1468_v13  ;;  %v3346_v32 = vor.u32 %v3345_v24, %v3342_v22  ;;  %v3294_v34 = vld [vmem:[#allocation2 + $0x18] sm:$0xf] }
  0x3e   : > { %v8813_v4 = vld [vmem:[#allocation2 + $0x14] sm:$0x1]  ;;  %v1485_v7 = vshll.u32 %v1423_v0, 16  ;;  %v3375_v25 = vrot.slane %v3373_v53, 5  ;;  %v3379_v28 = vrot.slane %v3377_v56, 4  ;;  %v8824_v30 = vrot.slane %v4118_v60, 4 }
  0x3f   : > { %v3359_v16 = vshll.u32 %v8813_v4, 16  ;;  %v4114_v20 = vrot.slane %v8813_v4, 5  ;;  %v1378_v35 = vld [vmem:[#allocation2 + $0x18] sm:$0xf]  ;;  %v1499_v36 = vshll.u32 %v1379_v11, 16  ;;  %v1503_v38 = vshrl.u32 %v1379_v11, 16 }
  0x40   : > { %v1487_v21 = vrot.slane %v1485_v7, 5  ;;  %v1473_v39 = vrot.slane %v1472_v19, 4  ;;  %v3364_v42 = vshrl.u32 %v3294_v34, 16  ;;  %v3367_v43 = vshll.u32 %v3294_v34, 16  ;;  %v1159_v47 = vld [vmem:[#allocation2 + $0x24] sm:$0x1] }
  0x41   : > { %v3361_v26 = vrot.slane %v3359_v16, 5  ;;  %v3347_v44 = vrot.slane %v3346_v32, 4  ;;  %v3380_v45 = vor.u32 %v3379_v28, %v3375_v25  ;;  %v1490_v58 = vshrl.u32 %v1378_v35, 16  ;;  %v1381_v8 = vld [vmem:[#allocation2 + $0x28] sm:$0xf] }
  0x42   : > { %v1488_v31 = vsel %vm8731_vm9, %v1483_v51, %v1487_v21  ;;  %v1214_v51 = vld [vmem:[#allocation2 + $0x2c] sm:$0x1]  ;;  %v1478_v52 = vsel %vm8731_vm9, %v1473_v39, %v8782_v33  ;;  %v3366_v53 = vrot.slane %v3364_v42, 4  ;;  %v3369_v56 = vrot.slane %v3367_v43, 5  ;;  %v3298_v15 = vld [vmem:[#allocation2 + $0x28] sm:$0xf] }
  0x43   : > { %v3362_v40 = vsel %vm8731_vm9, %v3357_v59, %v3361_v26  ;;  %v8346_v59 = vld [vmem:[%s10656_s2 + $0x8] sm:$0xff]   ;;  %v6726_v0 = vcombine.low %v1478_v52, %v1488_v31  ;;  %v3352_v1 = vsel %vm8731_vm9, %v3347_v44, %v8784_v37  ;;  %v3381_v2 = vrot.slane %v3380_v45, 4 }
  0x44   : > { %v8830_v41 = vld [vmem:[#allocation2 + $0x20] sm:$0x1]  ;;  %v6885_v9 = vcombine.low %v3352_v1, %v3362_v40  ;;  %v3370_v11 = vor.u32 %v3369_v56, %v3366_v53  ;;  %v1492_v13 = vrot.slane %v1490_v58, 4  ;;  %v1493_v33 = vshll.u32 %v1378_v35, 16  ;;  %v8345_v43 = vld [vmem:[%s10656_s2 + $0x148] sm:$0xff]   ;;  %v8352_v1 = vld [vmem:[%s10656_s2 + $0x18] sm:$0xff]  }
  0x45   : > { %v3383_v29 = vshll.u32 %v8830_v41, 16  ;;  %v4121_v46 = vrot.slane %v8830_v41, 5  ;;  %v1424_v57 = vld [vmem:[#allocation2 + $0x20] sm:$0x1]  ;;  %7615 = vmatmul.mubr.bf16.vlgmr.msra.gmra.mrb[0].mxu1 %v6726_v0  ;;  %v1501_v21 = vrot.slane %v1499_v36, 5  ;;  %v1505_v22 = vrot.slane %v1503_v38, 4 }
  0x46   : > { %v1509_v24 = vshll.u32 %v1424_v57, 16  ;;  %7806 = vmatprep.mubr.bf16.mxu0 %v6885_v9  ;;  %7647 = vmatpush3.bf16.msra.mxu1 %v8720_v54  ;;  %v3371_v19 = vrot.slane %v3370_v11, 4  ;;  %v1495_v37 = vrot.slane %v1493_v33, 5  ;;  %v1160_v26 = vsel %vm8667_vm3, 0, %v1159_v47  ;;  %v8349_v36 = vld [vmem:[%s10656_s2 + $0x10] sm:$0xff]  }
  0x47   : > { %v3385_v7 = vrot.slane %v3383_v29, 5  ;;  %v1215_v28 = vsel %vm8675_vm4, 0, %v1214_v51  ;;  %v1506_v31 = vor.u32 %v1505_v22, %v1501_v21  ;;  %1161 = vst [vmem:[#allocation2 + $0x24] sm:$0x1] %v1160_v26  ;;  %v1523_v34 = vshll.u32 %v1381_v8, 16  ;;  %7648 = vmatprep.subr.bf16.mxu1 %v8346_v59  ;;  %v8869_v0 = vld [vmem:[%s8657_s30 + $0x30] sm:$0xff]  }
  0x48   : > { %v1511_v32 = vrot.slane %v1509_v24, 5  ;;  %1216 = vst [vmem:[#allocation2 + $0x2c] sm:$0x1] %v1215_v28  ;;  %v1527_v35 = vshrl.u32 %v1381_v8, 16  ;;  %v3376_v54 = vsel %vm8731_vm9, %v3371_v19, %v3375_v25  ;;  %v1496_v38 = vor.u32 %v1495_v37, %v1492_v13  ;;  %v8347_v11 = vld [vmem:[%s10656_s2 + $0x150] sm:$0xff]  }
  0x49   : > { %v3386_v16 = vsel %vm8731_vm9, %v3381_v2, %v3385_v7  ;;  %v3397_v39 = vshll.u32 %v3298_v15, 16  ;;  %v3401_v40 = vshrl.u32 %v3298_v15, 16  ;;  %v1507_v44 = vrot.slane %v1506_v31, 4 }
  0x4a   : > { %v6886_v42 = vcombine.low %v3376_v54, %v3386_v16  ;;  %v8858_v45 = vrot.slane %v1523_v34, 5  ;;  %v1529_v29 = vrot.slane %v1527_v35, 4  ;;  %v1497_v47 = vrot.slane %v1496_v38, 4  ;;  %7649 = vmatpush3.bf16.msra.mxu1 %v8346_v59 }
  0x4b   : > { %v8860_v51 = vrot.slane %v3397_v39, 5  ;;  %v3403_v52 = vrot.slane %v3401_v40, 4  ;;  %v764_v25 = vshrl.u32 %v8798_v49, 16  ;;  %v1512_v53 = vsel %vm8731_vm9, %v1507_v44, %v1511_v32  ;;  %7650 = vmatprep.subr.bf16.mxu1 %v8349_v36  ;;  %v8348_v32 = vld [vmem:[%s10656_s2 + $0x158] sm:$0xff]  }
  0x4c   : > { %7807 = vmatmul.mubr.bf16.vlgmr.msra.gmra.mrb[0].mxu0 %v6886_v42  ;;  %v1530_v56 = vor.u32 %v1529_v29, %v8858_v45  ;;  %v767_v57 = vshll.u32 %v8798_v49, 16  ;;  %v772_v58 = vshrl.u32 %v8808_v61, 16  ;;  %v1502_v59 = vsel %vm8731_vm9, %v1497_v47, %v1501_v21  ;;  %v1063_v40 = vld [vmem:[#allocation2 + $0x38] sm:$0x1] }
  0x4d   : > { %7839 = vmatpush3.bf16.msra.mxu0 %v8725_v55  ;;  %v3404_v2 = vor.u32 %v3403_v52, %v8860_v51  ;;  %v766_v7 = vrot.slane %v764_v25, 7  ;;  %v775_v8 = vshll.u32 %v8808_v61, 16  ;;  %v6727_v49 = vcombine.low %v1502_v59, %v1512_v53  ;;  %v8355_v55 = vld [vmem:[%s10656_s2 + $0x20] sm:$0xff]  }
  0x4e   : > { %7840 = vmatprep.subr.bf16.mxu0 %v8345_v43  ;;  %v8879_v9 = vrot.slane %v1530_v56, 4  ;;  %v774_v13 = vrot.slane %v772_v58, 7  ;;  %v589_v33 = vmax.f32 %v8811_v63, 0.0  ;;  %v1380_v15 = vld [vmem:[#allocation2 + $0x24] sm:$0xf]  ;;  %7651 = vmatpush3.bf16.msra.mxu1 %v8349_v36  ;;  %v521_v61 = vmul.f32 %v7230_v6, %v8685_v23  ;;  %v8357_v56 = vld [vmem:[%s10656_s2 + $0x28] sm:$0xff]  }
  0x4f   : > { %v1425_v16 = vld [vmem:[#allocation2 + $0x2c] sm:$0x1]  ;;  %v3297_v21 = vld [vmem:[#allocation2 + $0x24] sm:$0xf]  ;;  %v769_v22 = vor.u32 %v767_v57, %v766_v7  ;;  %v522_v24 = vmul.f32 %v7231_v12, %v8685_v23  ;;  %v7234_v19 = vunpack.c.l.bf16 %v8869_v0  ;;  %7618 = vmatprep.mubr.bf16.mxu1 %v6727_v49  ;;  %v1514_v63 = vshrl.u32 %v1380_v15, 16  ;;  %7652 = vmatprep.subr.bf16.mxu1 %v8352_v1 }
  0x50   : > { %v1517_v37 = vshll.u32 %v1380_v15, 16  ;;  %v1533_v26 = vshll.u32 %v1425_v16, 16  ;;  %v3299_v28 = vld [vmem:[#allocation2 + $0x2c] sm:$0x1]  ;;  %v3388_v31 = vshrl.u32 %v3297_v21, 16  ;;  %v3391_v34 = vshll.u32 %v3297_v21, 16 }
  0x51   : > { %7841 = vmatpush3.bf16.msra.mxu0 %v8345_v43  ;;  %v3405_v6 = vrot.slane %v3404_v2, 4  ;;  %v3407_v35 = vshll.u32 %v3299_v28, 16  ;;  %v770_v36 = vrot.slane %v766_v7, 4  ;;  %v1516_v12 = vrot.slane %v1514_v63, 4  ;;  %v8924_v63 = vld [vmem:[%s8657_s30 + $0x38] sm:$0xff]  }
  0x52   : > { %v1519_v54 = vrot.slane %v1517_v37, 5  ;;  %v1535_v38 = vrot.slane %v1533_v26, 5  ;;  %v3390_v39 = vrot.slane %v3388_v31, 4  ;;  %7842 = vmatprep.subr.bf16.mxu0 %v8347_v11  ;;  %v3393_v42 = vrot.slane %v3391_v34, 5  ;;  %7653 = vmatpush3.bf16.msra.mxu1 %v8352_v1  ;;  %v1066_v28 = vld [vmem:[#allocation2 + $0x3c] sm:$0xf] }
  0x53   : > { %v3409_v44 = vrot.slane %v3407_v35, 5  ;;  %v777_v29 = vor.u32 %v775_v8, %v774_v13  ;;  %v779_v47 = vrot.slane %v774_v13, 4  ;;  %v1060_v25 = vsel %vm8737_vm10, %v769_v22, %v1059_v50  ;;  %7654 = vmatprep.subr.bf16.mxu1 %v8355_v55  ;;  %v8350_v8 = vld [vmem:[%s10656_s2 + $0x160] sm:$0xff]   ;;  %v8351_v31 = vld [vmem:[%s10656_s2 + $0x168] sm:$0xff]  }
  0x54   : > { %v1520_v52 = vor.u32 %v1519_v54, %v1516_v12  ;;  %v1536_v43 = vsel %vm8731_vm9, %v8879_v9, %v1535_v38  ;;  %v590_v53 = vmax.f32 %v8816_v5, 0.0  ;;  %v3394_v57 = vor.u32 %v3393_v42, %v3390_v39  ;;  %1061 = vst [vmem:[#allocation2 + $0x30] sm:$0xf] %v1060_v25  ;;  %v1070_v38 = vld [vmem:[#allocation2 + $0x44] sm:$0x1] }
  0x55   : > { %v3410_v58 = vsel %vm8731_vm9, %v3405_v6, %v3409_v44  ;;  %v778_v1 = vsel %vm8748_vm11, %v770_v36, %v777_v29  ;;  %v1064_v59 = vsel %vm8667_vm3, %v779_v47, %v1063_v40  ;;  %7843 = vmatpush3.bf16.msra.mxu0 %v8347_v11  ;;  %v7148_v5 = vpack.c.bf16 %v589_v33, %v589_v33 }
  0x56   : > { %v1521_v2 = vrot.slane %v1520_v52, 4  ;;  %1062 = vst [vmem:[#allocation2 + $0x34] sm:$0xf] %v778_v1  ;;  %1065 = vst [vmem:[#allocation2 + $0x38] sm:$0x1] %v1064_v59  ;;  %7844 = vmatprep.subr.bf16.mxu0 %v8348_v32  ;;  %v7149_v7 = vpack.c.bf16 %v590_v53, %v590_v53  ;;  %v559_v49 = vadd.f32 %v8694_v27, %v521_v61  ;;  %v3395_v9 = vrot.slane %v3394_v57, 4 }
  0x57   : > { %v560_v13 = vadd.f32 %v8694_v27, %v522_v24  ;;  %v7235_v15 = vunpack.c.h.bf16 %v8869_v0  ;;  %v523_v11 = vmul.f32 %v7234_v19, %v8685_v23  ;;  %7655 = vmatpush3.bf16.msra.mxu1 %v8355_v55  ;;  %v781_v33 = vshrl.u32 %v7148_v5, 16  ;;  %v8353_v57 = vld [vmem:[%s10656_s2 + $0x170] sm:$0xff]  }
  0x58   : > { %v1526_v16 = vsel %vm8731_vm9, %v1521_v2, %v8858_v45  ;;  %v784_v21 = vshll.u32 %v7148_v5, 16  ;;  %v789_v22 = vshrl.u32 %v7149_v7, 16  ;;  %7656 = vmatprep.subr.bf16.mxu1 %v8357_v56  ;;  %v3400_v61 = vsel %vm8731_vm9, %v3395_v9, %v8860_v51  ;;  %v1073_v9 = vld [vmem:[#allocation2 + $0x48] sm:$0xf] }
  0x59   : > { %v6728_v37 = vcombine.low %v1526_v16, %v1536_v43  ;;  %7845 = vmatpush3.bf16.msra.mxu0 %v8348_v32  ;;  %v792_v0 = vshll.u32 %v7149_v7, 16  ;;  %v591_v24 = vmax.f32 %v559_v49, 0.0  ;;  %v6887_v19 = vcombine.low %v3400_v61, %v3410_v58 }
  0x5a   : > { %v783_v55 = vrot.slane %v781_v33, 7  ;;  %v791_v26 = vrot.slane %v789_v22, 7  ;;  %7846 = vmatprep.subr.bf16.mxu0 %v8350_v8  ;;  %v592_v45 = vmax.f32 %v560_v13, 0.0  ;;  %v524_v6 = vmul.f32 %v7235_v15, %v8685_v23  ;;  %v8354_v33 = vld [vmem:[%s10656_s2 + $0x178] sm:$0xff]  }
  0x5b   : > { %7619 = vmatmul.mubr.bf16.gmra.mrb[4].mxu1 %v6728_v37  ;;  %v7150_v34 = vpack.c.bf16 %v591_v24, %v591_v24  ;;  %v561_v35 = vadd.f32 %v8694_v27, %v523_v11  ;;  %v7238_v51 = vunpack.c.l.bf16 %v8924_v63  ;;  %7810 = vmatprep.mubr.bf16.mxu0 %v6887_v19  ;;  %v1162_v32 = vld [vmem:[#allocation2 + $0x30] sm:$0x1] }
  0x5c   : > { %v786_v36 = vor.u32 %v784_v21, %v783_v55  ;;  %v787_v50 = vrot.slane %v783_v55, 4  ;;  %v794_v12 = vor.u32 %v792_v0, %v791_v26  ;;  %v796_v54 = vrot.slane %v791_v26, 4  ;;  %7657 = vmatpush3.bf16.msra.mxu1 %v8357_v56 }
  0x5d   : > { %v1163_v39 = vsel %vm8667_vm3, 0, %v1162_v32  ;;  %v1217_v40 = vld [vmem:[#allocation2 + $0x38] sm:$0x1]  ;;  %v3301_v42 = vld [vmem:[#allocation2 + $0x34] sm:$0xf]  ;;  %v7151_v44 = vpack.c.bf16 %v592_v45, %v592_v45  ;;  %v798_v29 = vshrl.u32 %v7150_v34, 16  ;;  %7847 = vmatpush3.bf16.msra.mxu0 %v8350_v8  ;;  %v562_v47 = vadd.f32 %v8694_v27, %v524_v6 }
  0x5e   : > { %1164 = vst [vmem:[#allocation2 + $0x30] sm:$0x1] %v1163_v39  ;;  %v1218_v52 = vsel %vm8675_vm4, 0, %v1217_v40  ;;  %v3421_v43 = vshll.u32 %v3301_v42, 16  ;;  %v3425_v25 = vshrl.u32 %v3301_v42, 16  ;;  %v795_v56 = vsel %vm8748_vm11, %v787_v50, %v794_v12  ;;  %7848 = vmatprep.subr.bf16.mxu0 %v8351_v31 }
  0x5f   : > { %v1383_v53 = vld [vmem:[#allocation2 + $0x34] sm:$0xf]  ;;  %1219 = vst [vmem:[#allocation2 + $0x38] sm:$0x1] %v1218_v52  ;;  %v1067_v59 = vsel %vm8737_vm10, %v786_v36, %v1066_v28  ;;  %1069 = vst [vmem:[#allocation2 + $0x40] sm:$0xf] %v795_v56  ;;  %v1071_v2 = vsel %vm8667_vm3, %v796_v54, %v1070_v38  ;;  %v7239_v55 = vunpack.c.h.bf16 %v8924_v63 }
  0x60   : > { %v1547_v58 = vshll.u32 %v1383_v53, 16  ;;  %v1551_v1 = vshrl.u32 %v1383_v53, 16  ;;  %v8949_v5 = vrot.slane %v3421_v43, 5  ;;  %v3427_v7 = vrot.slane %v3425_v25, 4  ;;  %1068 = vst [vmem:[#allocation2 + $0x3c] sm:$0xf] %v1067_v59 }
  0x61   : > { %1072 = vst [vmem:[#allocation2 + $0x44] sm:$0x1] %v1071_v2  ;;  %v800_v8 = vrot.slane %v798_v29, 7  ;;  %v801_v49 = vshll.u32 %v7150_v34, 16  ;;  %v806_v11 = vshrl.u32 %v7151_v44, 16  ;;  %v809_v16 = vshll.u32 %v7151_v44, 16  ;;  %7849 = vmatpush3.bf16.msra.mxu0 %v8351_v31 }
  0x62   : > { %v8951_v13 = vrot.slane %v1547_v58, 5  ;;  %v1553_v15 = vrot.slane %v1551_v1, 4  ;;  %v3428_v21 = vor.u32 %v3427_v7, %v8949_v5  ;;  %v593_v61 = vmax.f32 %v561_v35, 0.0  ;;  %7850 = vmatprep.subr.bf16.mxu0 %v8353_v57  ;;  %v8971_v34 = vld [vmem:[%s10656_s2 + $0x180] sm:$0xff]  }
  0x63   : > { %v803_v22 = vor.u32 %v801_v49, %v800_v8  ;;  %v804_v37 = vrot.slane %v800_v8, 4  ;;  %v8958_v24 = vrot.slane %v806_v11, 7  ;;  %v594_v19 = vmax.f32 %v562_v47, 0.0 }
  0x64   : > { %v1554_v0 = vor.u32 %v1553_v15, %v8951_v13  ;;  %v8961_v26 = vrot.slane %v3428_v21, 4  ;;  %v8965_v45 = vpack.c.bf16 %v593_v61, %v593_v61  ;;  %v525_v31 = vmul.f32 %v7238_v51, %v8685_v23 }
  0x65   : > { %v1074_v28 = vsel %vm8737_vm10, %v803_v22, %v1073_v9  ;;  %v3300_v6 = vld [vmem:[#allocation2 + $0x30] sm:$0xf]  ;;  %v811_v63 = vor.u32 %v809_v16, %v8958_v24  ;;  %v813_v36 = vrot.slane %v8958_v24, 4  ;;  %v8977_v50 = vpack.c.bf16 %v594_v19, %v594_v19  ;;  %7851 = vmatpush3.bf16.msra.mxu0 %v8353_v57 }
  0x66   : > { %v1382_v35 = vld [vmem:[#allocation2 + $0x30] sm:$0xf]  ;;  %v8973_v32 = vrot.slane %v1554_v0, 4  ;;  %1075 = vst [vmem:[#allocation2 + $0x48] sm:$0xf] %v1074_v28  ;;  %v3412_v51 = vshrl.u32 %v3300_v6, 16  ;;  %v8982_v39 = vmul.f32 %v7239_v55, %v8685_v23  ;;  %v8985_v40 = vadd.f32 %v8694_v27, %v525_v31  ;;  %7852 = vmatprep.subr.bf16.mxu0 %v8354_v33 }
  0x67   : > { %v8979_v12 = vld [vmem:[#allocation2 + $0x38] sm:$0x1]  ;;  %v3415_v54 = vshll.u32 %v3300_v6, 16  ;;  %v1538_v44 = vshrl.u32 %v1382_v35, 16  ;;  %v1541_v29 = vshll.u32 %v1382_v35, 16  ;;  %v812_v23 = vsel %vm8748_vm11, %v804_v37, %v811_v63  ;;  %v8359_v27 = vld [vmem:[%s10656_s2 + $0x30] sm:$0xff]  }
  0x68   : > { %v1426_v38 = vld [vmem:[#allocation2 + $0x38] sm:$0x1]  ;;  %v3431_v42 = vshll.u32 %v8979_v12, 16  ;;  %v1165_v52 = vld [vmem:[#allocation2 + $0x3c] sm:$0x1]  ;;  %v3414_v43 = vrot.slane %v3412_v51, 4  ;;  %7658 = vmatprep.subr.bf16.mxu1 %v8359_v27 }
  0x69   : > { %v1557_v47 = vshll.u32 %v1426_v38, 16  ;;  %v3417_v25 = vrot.slane %v3415_v54, 5  ;;  %v1166_v53 = vsel %vm8667_vm3, 0, %v1165_v52  ;;  %v1220_v56 = vld [vmem:[#allocation2 + $0x44] sm:$0x1]  ;;  %v1540_v1 = vrot.slane %v1538_v44, 4  ;;  %7853 = vmatpush3.bf16.msra.mxu0 %v8354_v33  ;;  %7659 = vmatpush3.bf16.msra.mxu1 %v8359_v27 }
  0x6a   : > { %v1077_v57 = vld [vmem:[#allocation2 + $0x50] sm:$0x1]  ;;  %v3433_v58 = vrot.slane %v3431_v42, 5  ;;  %v1543_v59 = vrot.slane %v1541_v29, 5  ;;  %1167 = vst [vmem:[#allocation2 + $0x3c] sm:$0x1] %v1166_v53  ;;  %7886 = vmatprep.subr.bf16.mxu0 %v8971_v34 }
  0x6b   : > { %v1559_v2 = vrot.slane %v1557_v47, 5  ;;  %v1385_v7 = vld [vmem:[#allocation2 + $0x40] sm:$0xf]  ;;  %1076 = vst [vmem:[#allocation2 + $0x4c] sm:$0xf] %v812_v23  ;;  %v3418_v8 = vor.u32 %v3417_v25, %v3414_v43  ;;  %v1221_v49 = vsel %vm8675_vm4, 0, %v1220_v56 }
  0x6c   : > { %v1571_v9 = vshll.u32 %v1385_v7, 16  ;;  %v1575_v15 = vshrl.u32 %v1385_v7, 16  ;;  %v8997_v11 = vld [vmem:[#allocation2 + $0x40] sm:$0xf]  ;;  %v3434_v16 = vsel %vm8731_vm9, %v8961_v26, %v3433_v58  ;;  %v1544_v21 = vor.u32 %v1543_v59, %v1540_v1  ;;  %1222 = vst [vmem:[#allocation2 + $0x44] sm:$0x1] %v1221_v49 }
  0x6d   : > { %v1560_v33 = vsel %vm8731_vm9, %v8973_v32, %v1559_v2  ;;  %v3445_v22 = vshll.u32 %v8997_v11, 16  ;;  %v3419_v37 = vrot.slane %v3418_v8, 4  ;;  %v3449_v24 = vshrl.u32 %v8997_v11, 16  ;;  %v1168_v19 = vld [vmem:[#allocation2 + $0x48] sm:$0x1] }
  0x6e   : > { %v9007_v61 = vrot.slane %v1571_v9, 5  ;;  %v1577_v0 = vrot.slane %v1575_v15, 4  ;;  %v1545_v55 = vrot.slane %v1544_v21, 4  ;;  %v1078_v26 = vsel %vm8667_vm3, %v813_v36, %v1077_v57  ;;  %v1080_v43 = vld [vmem:[#allocation2 + $0x54] sm:$0xf] }
  0x6f   : > { %v9010_v28 = vrot.slane %v3445_v22, 5  ;;  %v1169_v31 = vsel %vm8667_vm3, 0, %v1168_v19  ;;  %v3424_v6 = vsel %vm8731_vm9, %v3419_v37, %v8949_v5  ;;  %v3451_v32 = vrot.slane %v3449_v24, 4  ;;  %1079 = vst [vmem:[#allocation2 + $0x50] sm:$0x1] %v1078_v26 }
  0x70   : > { %v1578_v35 = vor.u32 %v1577_v0, %v9007_v61  ;;  %1170 = vst [vmem:[#allocation2 + $0x48] sm:$0x1] %v1169_v31  ;;  %v815_v63 = vshrl.u32 %v8965_v45, 16  ;;  %v6888_v51 = vcombine.low %v3424_v6, %v3434_v16  ;;  %v1550_v54 = vsel %vm8731_vm9, %v1545_v55, %v8951_v13  ;;  %v9033_v59 = vld [vmem:[%s10658_s4] ss:$0 sm:$0xff] }
  0x71   : > { %v818_v36 = vshll.u32 %v8965_v45, 16  ;;  %v823_v38 = vshrl.u32 %v8977_v50, 16  ;;  %v6729_v42 = vcombine.low %v1550_v54, %v1560_v33  ;;  %v1384_v44 = vld [vmem:[#allocation2 + $0x3c] sm:$0xf]  ;;  %v3452_v47 = vor.u32 %v3451_v32, %v9010_v28 }
  0x72   : > { %v1579_v29 = vrot.slane %v1578_v35, 4  ;;  %v3303_v5 = vld [vmem:[#allocation2 + $0x3c] sm:$0xf]  ;;  %v9027_v52 = vrot.slane %v815_v63, 7  ;;  %7811 = vmatmul.mubr.bf16.gmra.mrb[4].mxu0 %v6888_v51  ;;  %v1562_v25 = vshrl.u32 %v1384_v44, 16  ;;  %v1565_v53 = vshll.u32 %v1384_v44, 16 }
  0x73   : > { %v3436_v56 = vshrl.u32 %v3303_v5, 16  ;;  %v3439_v23 = vshll.u32 %v3303_v5, 16  ;;  %v3307_v57 = vld [vmem:[#allocation2 + $0x4c] sm:$0xf]  ;;  %7622 = vmatprep.mubr.bf16.mxu1 %v6729_v42  ;;  %v1427_v13 = vld [vmem:[#allocation2 + $0x44] sm:$0x1]  ;;  %v9037_v2 = vadd.f32 %v9033_v59, %v8982_v39 }
  0x74   : > { %v3305_v45 = vld [vmem:[#allocation2 + $0x44] sm:$0x1]  ;;  %v3453_v27 = vrot.slane %v3452_v47, 4  ;;  %v3469_v58 = vshll.u32 %v3307_v57, 16  ;;  %v820_v1 = vor.u32 %v818_v36, %v9027_v52  ;;  %v1564_v7 = vrot.slane %v1562_v25, 4 }
  0x75   : > { %v1567_v8 = vrot.slane %v1565_v53, 5  ;;  %v1581_v49 = vshll.u32 %v1427_v13, 16  ;;  %v3438_v9 = vrot.slane %v3436_v56, 4  ;;  %v1387_v15 = vld [vmem:[#allocation2 + $0x4c] sm:$0xf]  ;;  %v3441_v16 = vrot.slane %v3439_v23, 5 }
  0x76   : > { %v3455_v21 = vshll.u32 %v3305_v45, 16  ;;  %v9039_v33 = vrot.slane %v3469_v58, 5  ;;  %v3473_v22 = vshrl.u32 %v3307_v57, 16  ;;  %v1223_v24 = vld [vmem:[#allocation2 + $0x50] sm:$0x1]  ;;  %v1595_v55 = vshll.u32 %v1387_v15, 16 }
  0x77   : > { %v1568_v37 = vor.u32 %v1567_v8, %v1564_v7  ;;  %v1583_v0 = vrot.slane %v1581_v49, 5  ;;  %v3306_v19 = vld [vmem:[#allocation2 + $0x48] sm:$0xf]  ;;  %v1081_v26 = vsel %vm8737_vm10, %v820_v1, %v1080_v43  ;;  %v3442_v39 = vor.u32 %v3441_v16, %v3438_v9  ;;  %v7359_v23 = vld [vmem:[%s8657_s30 + $0x40] sm:$0xff]   ;;  %v1084_v8 = vld [vmem:[#allocation2 + $0x5c] sm:$0x1] }
  0x78   : > { %v3457_v31 = vrot.slane %v3455_v21, 5  ;;  %v1224_v6 = vsel %vm8675_vm4, 0, %v1223_v24  ;;  %v3460_v35 = vshrl.u32 %v3306_v19, 16  ;;  %v1386_v32 = vld [vmem:[#allocation2 + $0x48] sm:$0xf]  ;;  %v3463_v54 = vshll.u32 %v3306_v19, 16 }
  0x79   : > { %1082 = vst [vmem:[#allocation2 + $0x54] sm:$0xf] %v1081_v26  ;;  %v1569_v63 = vrot.slane %v1568_v37, 4  ;;  %v1584_v51 = vsel %vm8731_vm9, %v1579_v29, %v1583_v0  ;;  %1225 = vst [vmem:[#allocation2 + $0x50] sm:$0x1] %v1224_v6  ;;  %v3475_v36 = vrot.slane %v3473_v22, 4 }
  0x7a   : > { %v3443_v42 = vrot.slane %v3442_v39, 4  ;;  %v3458_v44 = vsel %vm8731_vm9, %v3453_v27, %v3457_v31  ;;  %v3462_v5 = vrot.slane %v3460_v35, 4  ;;  %v1586_v47 = vshrl.u32 %v1386_v32, 16  ;;  %v8469_v17 = vld [vmem:[#allocation2 + $0x3c] sm:$0xf] }
  0x7b   : > { %v1574_v43 = vsel %vm8731_vm9, %v1569_v63, %v9007_v61  ;;  %v3465_v25 = vrot.slane %v3463_v54, 5  ;;  %v3476_v53 = vor.u32 %v3475_v36, %v9039_v33  ;;  %v1589_v56 = vshll.u32 %v1386_v32, 16  ;;  %v4045_v36 = vld [vmem:[#allocation2 + $0xc] sm:$0xe] }
  0x7c   : > { %v6730_v57 = vcombine.low %v1574_v43, %v1584_v51  ;;  %v3448_v29 = vsel %vm8731_vm9, %v3443_v42, %v9010_v28  ;;  %v1588_v13 = vrot.slane %v1586_v47, 4  ;;  %v1597_v45 = vrot.slane %v1595_v55, 5  ;;  %v9083_v47 = vld [vmem:[%s10657_s3] ss:$0 sm:$0xff] }
  0x7d   : > { %v6889_v58 = vcombine.low %v3448_v29, %v3458_v44  ;;  %v3466_v27 = vor.u32 %v3465_v25, %v3462_v5  ;;  %v3477_v1 = vrot.slane %v3476_v53, 4  ;;  %v1591_v7 = vrot.slane %v1589_v56, 5 }
  0x7e   : > { %7623 = vmatmul.mubr.bf16.gmra.mrb[8].mxu1 %v6730_v57  ;;  %v1599_v49 = vshrl.u32 %v1387_v15, 16  ;;  %v821_v61 = vrot.slane %v9027_v52, 4  ;;  %v825_v9 = vrot.slane %v823_v38, 7  ;;  %v826_v16 = vshll.u32 %v8977_v50, 16 }
  0x7f   : > { %7814 = vmatprep.mubr.bf16.mxu0 %v6889_v58  ;;  %v3467_v21 = vrot.slane %v3466_v27, 4  ;;  %v1592_v22 = vor.u32 %v1591_v7, %v1588_v13  ;;  %v595_v37 = vmax.f32 %v8985_v40, 0.0  ;;  %v596_v0 = vmax.f32 %v9037_v2, 0.0  ;;  %v8361_v40 = vld [vmem:[%s10656_s2 + $0x38] sm:$0xff]  }
  0x80   : > { %v1171_v28 = vld [vmem:[#allocation2 + $0x54] sm:$0x1]  ;;  %v9063_v24 = vld [vmem:[#allocation2 + $0x50] sm:$0x1]  ;;  %v1601_v55 = vrot.slane %v1599_v49, 4  ;;  %v828_v15 = vor.u32 %v826_v16, %v825_v9  ;;  %v830_v26 = vrot.slane %v825_v9, 4  ;;  %v7242_v52 = vunpack.c.l.bf16 %v7359_v23  ;;  %7660 = vmatprep.subr.bf16.mxu1 %v8361_v40 }
  0x81   : > { %v1428_v19 = vld [vmem:[#allocation2 + $0x50] sm:$0x1]  ;;  %v3472_v38 = vsel %vm8731_vm9, %v3467_v21, %v9039_v33  ;;  %v3479_v50 = vshll.u32 %v9063_v24, 16  ;;  %v1593_v39 = vrot.slane %v1592_v22, 4  ;;  %v1172_v32 = vsel %vm8667_vm3, 0, %v1171_v28  ;;  %7661 = vmatpush3.bf16.msra.mxu1 %v8361_v40 }
  0x82   : > { %v1605_v31 = vshll.u32 %v1428_v19, 16  ;;  %v1602_v2 = vor.u32 %v1601_v55, %v1597_v45  ;;  %v829_v6 = vsel %vm8748_vm11, %v821_v61, %v828_v15  ;;  %v1085_v35 = vsel %vm8667_vm3, %v830_v26, %v1084_v8  ;;  %1173 = vst [vmem:[#allocation2 + $0x54] sm:$0x1] %v1172_v32  ;;  %v9093_v8 = vld [vmem:[%s8657_s30 + $0x48] sm:$0xff]   ;;  %v8449_v61 = vld [vmem:[#allocation2 + $0x10] sm:$0xf] }
  0x83   : > { %v3481_v63 = vrot.slane %v3479_v50, 5  ;;  %v1598_v33 = vsel %vm8731_vm9, %v1593_v39, %v1597_v45  ;;  %1083 = vst [vmem:[#allocation2 + $0x58] sm:$0xf] %v829_v6  ;;  %1086 = vst [vmem:[#allocation2 + $0x5c] sm:$0x1] %v1085_v35  ;;  %v7154_v54 = vpack.c.bf16 %v595_v37, %v595_v37  ;;  %v7155_v44 = vpack.c.bf16 %v596_v0, %v596_v0  ;;  %v8365_v0 = vld [vmem:[%s10656_s2 + $0x80] sm:$0xff]  }
  0x84   : > { %v1607_v51 = vrot.slane %v1605_v31, 5  ;;  %v1603_v42 = vrot.slane %v1602_v2, 4  ;;  %v7243_v5 = vunpack.c.h.bf16 %v7359_v23  ;;  %v527_v43 = vmul.f32 %v9083_v47, %v7242_v52  ;;  %v1087_v52 = vld [vmem:[#allocation2 + $0x60] sm:$0xf]  ;;  %7694 = vmatprep.subr.bf16.mxu1 %v8365_v0 }
  0x85   : > { %v3482_v25 = vsel %vm8731_vm9, %v3477_v1, %v3481_v63  ;;  %v832_v53 = vshrl.u32 %v7154_v54, 16  ;;  %v835_v56 = vshll.u32 %v7154_v54, 16  ;;  %v840_v23 = vshrl.u32 %v7155_v44, 16 }
  0x86   : > { %v6890_v57 = vcombine.low %v3472_v38, %v3482_v25  ;;  %v1608_v29 = vsel %vm8731_vm9, %v1603_v42, %v1607_v51  ;;  %v843_v13 = vshll.u32 %v7155_v44, 16  ;;  %v528_v27 = vmul.f32 %v9083_v47, %v7243_v5 }
  0x87   : > { %v6731_v45 = vcombine.low %v1598_v33, %v1608_v29  ;;  %v834_v58 = vrot.slane %v832_v53, 7  ;;  %v565_v7 = vadd.f32 %v9033_v59, %v527_v43  ;;  %v842_v49 = vrot.slane %v840_v23, 7 }
  0x88   : > { %7815 = vmatmul.mubr.bf16.gmra.mrb[8].mxu0 %v6890_v57  ;;  %v6909_v1 = vrot.slane %v4045_v36, 9  ;;  %v4111_v9 = vrot.slane %v8449_v61, 5  ;;  %v566_v22 = vadd.f32 %v9033_v59, %v528_v27  ;;  %v9113_v50 = vsel %vm9097_vm14, %v8824_v30, %v4121_v46  ;;  %v1091_v46 = vld [vmem:[#allocation2 + $0x68] sm:$0x1] }
  0x89   : > { %7626 = vmatprep.mubr.bf16.mxu1 %v6731_v45  ;;  %v837_v16 = vor.u32 %v835_v56, %v834_v58  ;;  %v838_v21 = vrot.slane %v834_v58, 4  ;;  %v597_v28 = vmax.f32 %v565_v7, 0.0  ;;  %v1388_v55 = vld [vmem:[#allocation2 + $0x54] sm:$0xf]  ;;  %v845_v26 = vor.u32 %v843_v13, %v842_v49 }
  0x8a   : > { %v1226_v19 = vld [vmem:[#allocation2 + $0x5c] sm:$0x1]  ;;  %v1389_v15 = vld [vmem:[#allocation2 + $0x58] sm:$0xf]  ;;  %v9106_v38 = vsel %vm9097_vm14, %v6909_v1, %v4111_v9  ;;  %v7246_v39 = vunpack.c.l.bf16 %v9093_v8  ;;  %v1610_v40 = vshrl.u32 %v1388_v55, 16  ;;  %v1613_v2 = vshll.u32 %v1388_v55, 16 }
  0x8b   : > { %v1227_v31 = vsel %vm8675_vm4, 0, %v1226_v19  ;;  %v1619_v6 = vshll.u32 %v1389_v15, 16  ;;  %v3309_v35 = vld [vmem:[#allocation2 + $0x54] sm:$0xf]  ;;  %v1623_v32 = vshrl.u32 %v1389_v15, 16  ;;  %v846_v30 = vsel %vm8748_vm11, %v838_v21, %v845_v26 }
  0x8c   : > { %1228 = vst [vmem:[#allocation2 + $0x5c] sm:$0x1] %v1227_v31  ;;  %v9118_v63 = vld [vmem:[#allocation2 + $0x58] sm:$0xf]  ;;  %v3484_v41 = vshrl.u32 %v3309_v35, 16  ;;  %v3487_v33 = vshll.u32 %v3309_v35, 16  ;;  %v1088_v29 = vsel %vm8737_vm10, %v837_v16, %v1087_v52  ;;  %v7156_v1 = vpack.c.bf16 %v597_v28, %v597_v28 }
  0x8d   : > { %v1612_v51 = vrot.slane %v1610_v40, 4  ;;  %v1615_v54 = vrot.slane %v1613_v2, 5  ;;  %v1621_v36 = vrot.slane %v1619_v6, 5  ;;  %v3493_v42 = vshll.u32 %v9118_v63, 16  ;;  %1090 = vst [vmem:[#allocation2 + $0x64] sm:$0xf] %v846_v30 }
  0x8e   : > { %v1625_v44 = vrot.slane %v1623_v32, 4  ;;  %v3486_v5 = vrot.slane %v3484_v41, 4  ;;  %v3489_v43 = vrot.slane %v3487_v33, 5  ;;  %v3497_v25 = vshrl.u32 %v9118_v63, 16  ;;  %1089 = vst [vmem:[#allocation2 + $0x60] sm:$0xf] %v1088_v29 }
  0x8f   : > { %v1616_v53 = vor.u32 %v1615_v54, %v1612_v51  ;;  %v3495_v56 = vrot.slane %v3493_v42, 5  ;;  %v847_v57 = vrot.slane %v842_v49, 4  ;;  %v598_v58 = vmax.f32 %v566_v22, 0.0  ;;  %v1094_v33 = vld [vmem:[#allocation2 + $0x6c] sm:$0xf] }
  0x90   : > { %v1626_v23 = vor.u32 %v1625_v44, %v1621_v36  ;;  %v3490_v13 = vor.u32 %v3489_v43, %v3486_v5  ;;  %v3499_v45 = vrot.slane %v3497_v25, 4  ;;  %v4113_v61 = vrot.slane %v4111_v9, 4 }
  0x91   : > { %v1617_v27 = vrot.slane %v1616_v53, 4  ;;  %v1092_v7 = vsel %vm8667_vm3, %v847_v57, %v1091_v46  ;;  %v7157_v55 = vpack.c.bf16 %v598_v58, %v598_v58  ;;  %v849_v26 = vshrl.u32 %v7156_v1, 16  ;;  %v4046_v57 = vld [vmem:[#allocation2 + $0x18] sm:$0xe] }
  0x92   : > { %v1627_v21 = vrot.slane %v1626_v23, 4  ;;  %v3491_v0 = vrot.slane %v3490_v13, 4  ;;  %v3500_v19 = vor.u32 %v3499_v45, %v3495_v56  ;;  %1093 = vst [vmem:[#allocation2 + $0x68] sm:$0x1] %v1092_v7  ;;  %v852_v52 = vshll.u32 %v7156_v1, 16 }
  0x93   : > { %v1429_v49 = vld [vmem:[#allocation2 + $0x5c] sm:$0x1]  ;;  %v1622_v16 = vsel %vm8731_vm9, %v1617_v27, %v1621_v36  ;;  %v9136_v22 = vsel %vm9097_vm14, %v4113_v61, %v4114_v20  ;;  %v851_v41 = vrot.slane %v849_v26, 7  ;;  %v857_v4 = vshrl.u32 %v7157_v55, 16  ;;  %v1098_v27 = vld [vmem:[#allocation2 + $0x74] sm:$0x1] }
  0x94   : > { %v9130_v15 = vld [vmem:[#allocation2 + $0x5c] sm:$0x1]  ;;  %v1629_v9 = vshll.u32 %v1429_v49, 16  ;;  %v3496_v28 = vsel %vm8731_vm9, %v3491_v0, %v3495_v56  ;;  %v3501_v31 = vrot.slane %v3500_v19, 4  ;;  %v9141_v2 = vld [vmem:[#allocation2 + $0x64] sm:$0xf]  ;;  %v6941_v26 = vcombine.low %v9106_v38, %v9136_v22 }
  0x95   : > { %v3503_v40 = vshll.u32 %v9130_v15, 16  ;;  %v3517_v6 = vshll.u32 %v9141_v2, 16  ;;  %v3521_v35 = vshrl.u32 %v9141_v2, 16  ;;  %v1391_v32 = vld [vmem:[#allocation2 + $0x64] sm:$0xf]  ;;  %v854_v44 = vor.u32 %v852_v52, %v851_v41  ;;  %v7361_v0 = vld [vmem:[%s8657_s30 + $0x50] sm:$0xff]  }
  0x96   : > { %v1631_v30 = vrot.slane %v1629_v9, 5  ;;  %v1643_v46 = vshll.u32 %v1391_v32, 16  ;;  %v1647_v51 = vshrl.u32 %v1391_v32, 16  ;;  %v1174_v54 = vld [vmem:[#allocation2 + $0x60] sm:$0x1]  ;;  %v855_v5 = vrot.slane %v851_v41, 4 }
  0x97   : > { %v3505_v20 = vrot.slane %v3503_v40, 5  ;;  %v9145_v36 = vrot.slane %v3517_v6, 5  ;;  %v3523_v42 = vrot.slane %v3521_v35, 4  ;;  %v1175_v53 = vsel %vm8667_vm3, 0, %v1174_v54  ;;  %v4047_v19 = vld [vmem:[#allocation2 + $0x24] sm:$0xe] }
  0x98   : > { %v1632_v43 = vsel %vm8731_vm9, %v1627_v21, %v1631_v30  ;;  %v9153_v56 = vrot.slane %v1643_v46, 5  ;;  %1176 = vst [vmem:[#allocation2 + $0x60] sm:$0x1] %v1175_v53  ;;  %v1649_v58 = vrot.slane %v1647_v51, 4  ;;  %v859_v1 = vrot.slane %v857_v4, 7  ;;  %v9179_v41 = vld [vmem:[%s8657_s30 + $0x58] sm:$0xff]  }
  0x99   : > { %v3506_v25 = vsel %vm8731_vm9, %v3501_v31, %v3505_v20  ;;  %v6732_v29 = vcombine.low %v1622_v16, %v1632_v43  ;;  %v1229_v13 = vld [vmem:[#allocation2 + $0x68] sm:$0x1]  ;;  %v3524_v45 = vor.u32 %v3523_v42, %v9145_v36  ;;  %v860_v61 = vshll.u32 %v7157_v55, 16 }
  0x9a   : > { %v6891_v23 = vcombine.low %v3496_v28, %v3506_v25  ;;  %v1230_v7 = vsel %vm8675_vm4, 0, %v1229_v13  ;;  %v1095_v21 = vsel %vm8737_vm10, %v854_v44, %v1094_v33  ;;  %v1650_v16 = vor.u32 %v1649_v58, %v9153_v56  ;;  %v9192_v42 = vld [vmem:[#allocation2 + $0x28] sm:$0xf] }
  0x9b   : > { %7627 = vmatmul.mubr.bf16.gmra.mrb[12].mxu1 %v6732_v29  ;;  %1231 = vst [vmem:[#allocation2 + $0x68] sm:$0x1] %v1230_v7  ;;  %v9161_v49 = vrot.slane %v3524_v45, 4  ;;  %1096 = vst [vmem:[#allocation2 + $0x6c] sm:$0xf] %v1095_v21  ;;  %v6910_v52 = vrot.slane %v4046_v57, 9  ;;  %v862_v9 = vor.u32 %v860_v61, %v859_v1  ;;  %v7247_v28 = vunpack.c.h.bf16 %v9093_v8 }
  0x9c   : > { %7818 = vmatprep.mubr.bf16.mxu0 %v6891_v23  ;;  %v864_v55 = vrot.slane %v859_v1, 4  ;;  %v529_v31 = vmul.f32 %v9083_v47, %v7246_v39  ;;  %v9170_v40 = vrot.slane %v1650_v16, 4  ;;  %v7250_v35 = vunpack.c.l.bf16 %v7361_v0 }
  0x9d   : > { %v9176_v6 = vsel %vm9097_vm14, %v6910_v52, %v4118_v60  ;;  %v7251_v32 = vunpack.c.h.bf16 %v7361_v0  ;;  %v863_v4 = vsel %vm8748_vm11, %v855_v5, %v862_v9  ;;  %v530_v33 = vmul.f32 %v9083_v47, %v7247_v28  ;;  %v9195_v5 = vld [vmem:[#allocation2 + $0x2c] sm:$0x1] }
  0x9e   : > { %v1099_v8 = vsel %vm8667_vm3, %v864_v55, %v1098_v27  ;;  %v6942_v39 = vcombine.low %v9176_v6, %v9113_v50  ;;  %1097 = vst [vmem:[#allocation2 + $0x70] sm:$0xf] %v863_v4  ;;  %v567_v48 = vadd.f32 %v9033_v59, %v529_v31  ;;  %v531_v60 = vmul.f32 %v9083_v47, %v7250_v35 }
  0x9f   : > { %1100 = vst [vmem:[#allocation2 + $0x74] sm:$0x1] %v1099_v8  ;;  %v532_v30 = vmul.f32 %v9083_v47, %v7251_v32  ;;  %v6911_v20 = vrot.slane %v4047_v19, 9  ;;  %v3312_v46 = vld [vmem:[#allocation2 + $0x60] sm:$0xf]  ;;  %v568_v54 = vadd.f32 %v9033_v59, %v530_v33  ;;  %v4125_v44 = vrot.slane %v9192_v42, 5 }
  0xa0   : > { %v1390_v51 = vld [vmem:[#allocation2 + $0x60] sm:$0xf]  ;;  %v4128_v43 = vrot.slane %v9195_v5, 5  ;;  %v7254_v25 = vunpack.c.l.bf16 %v9179_v41  ;;  %v3508_v53 = vshrl.u32 %v3312_v46, 16  ;;  %v3511_v57 = vshll.u32 %v3312_v46, 16 }
  0xa1   : > { %v1634_v29 = vshrl.u32 %v1390_v51, 16  ;;  %v1637_v23 = vshll.u32 %v1390_v51, 16  ;;  %v569_v27 = vadd.f32 %v9033_v59, %v531_v60  ;;  %v570_v7 = vadd.f32 %v9033_v59, %v532_v30 }
  0xa2   : > { %v9199_v13 = vld [vmem:[#allocation2 + $0x68] sm:$0x1]  ;;  %v1177_v58 = vld [vmem:[#allocation2 + $0x6c] sm:$0x1]  ;;  %v9205_v1 = vsel %vm9097_vm14, %v6911_v20, %v4125_v44  ;;  %v7255_v61 = vunpack.c.h.bf16 %v9179_v41  ;;  %v3510_v21 = vrot.slane %v3508_v53, 4  ;;  %v3513_v0 = vrot.slane %v3511_v57, 5 }
  0xa3   : > { %v1430_v45 = vld [vmem:[#allocation2 + $0x68] sm:$0x1]  ;;  %v3527_v19 = vshll.u32 %v9199_v13, 16  ;;  %v1636_v16 = vrot.slane %v1634_v29, 4  ;;  %v1639_v52 = vrot.slane %v1637_v23, 5  ;;  %v1178_v55 = vsel %vm8667_vm3, 0, %v1177_v58 }
  0xa4   : > { %v1653_v9 = vshll.u32 %v1430_v45, 16  ;;  %v599_v28 = vmax.f32 %v567_v48, 0.0  ;;  %v3514_v31 = vor.u32 %v3513_v0, %v3510_v21  ;;  %1179 = vst [vmem:[#allocation2 + $0x6c] sm:$0x1] %v1178_v55  ;;  %v600_v32 = vmax.f32 %v568_v54, 0.0 }
  0xa5   : > { %v3529_v35 = vrot.slane %v3527_v19, 5  ;;  %v601_v4 = vmax.f32 %v569_v27, 0.0  ;;  %v1640_v8 = vor.u32 %v1639_v52, %v1636_v16  ;;  %v1393_v30 = vld [vmem:[#allocation2 + $0x70] sm:$0xf]  ;;  %v602_v46 = vmax.f32 %v570_v7, 0.0 }
  0xa6   : > { %v1655_v33 = vrot.slane %v1653_v9, 5  ;;  %v1232_v60 = vld [vmem:[#allocation2 + $0x74] sm:$0x1]  ;;  %v7158_v20 = vpack.c.bf16 %v599_v28, %v599_v28  ;;  %v3515_v51 = vrot.slane %v3514_v31, 4  ;;  %v1667_v48 = vshll.u32 %v1393_v30, 16 }
  0xa7   : > { %v3530_v42 = vsel %vm8731_vm9, %v9161_v49, %v3529_v35  ;;  %v1233_v53 = vsel %vm8675_vm4, 0, %v1232_v60  ;;  %v1641_v57 = vrot.slane %v1640_v8, 4  ;;  %v1671_v29 = vshrl.u32 %v1393_v30, 16  ;;  %v1101_v16 = vld [vmem:[#allocation2 + $0x78] sm:$0xf] }
  0xa8   : > { %v1656_v54 = vsel %vm8731_vm9, %v9170_v40, %v1655_v33  ;;  %1234 = vst [vmem:[#allocation2 + $0x74] sm:$0x1] %v1233_v53  ;;  %v7159_v23 = vpack.c.bf16 %v600_v32, %v600_v32  ;;  %v3520_v45 = vsel %vm8731_vm9, %v3515_v51, %v9145_v36  ;;  %v9222_v58 = vrot.slane %v1667_v48, 5  ;;  %v1105_v55 = vld [vmem:[#allocation2 + $0x80] sm:$0x1] }
  0xa9   : > { %v866_v27 = vshrl.u32 %v7158_v20, 16  ;;  %v869_v49 = vshll.u32 %v7158_v20, 16  ;;  %v6892_v7 = vcombine.low %v3520_v45, %v3530_v42  ;;  %v1646_v21 = vsel %vm8731_vm9, %v1641_v57, %v9153_v56 }
  0xaa   : > { %v1673_v0 = vrot.slane %v1671_v29, 4  ;;  %v874_v19 = vshrl.u32 %v7159_v23, 16  ;;  %v6733_v40 = vcombine.low %v1646_v21, %v1656_v54  ;;  %v877_v9 = vshll.u32 %v7159_v23, 16 }
  0xab   : > { %v868_v52 = vrot.slane %v866_v27, 7  ;;  %v7160_v28 = vpack.c.bf16 %v601_v4, %v601_v4  ;;  %7819 = vmatmul.mubr.bf16.gmra.mrb[12].mxu0 %v6892_v7  ;;  %v1392_v31 = vld [vmem:[#allocation2 + $0x6c] sm:$0xf]  ;;  %v7161_v32 = vpack.c.bf16 %v602_v46, %v602_v46  ;;  %v4127_v8 = vrot.slane %v4125_v44, 4 }
  0xac   : > { %v1674_v36 = vor.u32 %v1673_v0, %v9222_v58  ;;  %v876_v35 = vrot.slane %v874_v19, 7  ;;  %7630 = vmatprep.mubr.bf16.mxu1 %v6733_v40  ;;  %v1658_v33 = vshrl.u32 %v1392_v31, 16  ;;  %v1661_v60 = vshll.u32 %v1392_v31, 16  ;;  %7854 = vmatprep.mubr.bf16.mxu0 %v6941_v26  ;;  %v4048_v26 = vld [vmem:[#allocation2 + $0x30] sm:$0xe] }
  0xad   : > { %v871_v56 = vor.u32 %v869_v49, %v868_v52  ;;  %v872_v30 = vrot.slane %v868_v52, 4  ;;  %v883_v4 = vshrl.u32 %v7160_v28, 16  ;;  %v886_v44 = vshll.u32 %v7160_v28, 16  ;;  %v1108_v49 = vld [vmem:[#allocation2 + $0x84] sm:$0xf]  ;;  %v8358_v52 = vld [vmem:[%s10656_s2 + $0x188] sm:$0xff]  }
  0xae   : > { %v1675_v20 = vrot.slane %v1674_v36, 4  ;;  %v879_v51 = vor.u32 %v877_v9, %v876_v35  ;;  %v881_v42 = vrot.slane %v876_v35, 4  ;;  %v1660_v48 = vrot.slane %v1658_v33, 4  ;;  %v8452_v31 = vld [vmem:[#allocation2 + $0x34] sm:$0xf] }
  0xaf   : > { %v1431_v53 = vld [vmem:[#allocation2 + $0x74] sm:$0x1]  ;;  %v1663_v57 = vrot.slane %v1661_v60, 5  ;;  %v1102_v46 = vsel %vm8737_vm10, %v871_v56, %v1101_v16  ;;  %v885_v22 = vrot.slane %v883_v4, 7  ;;  %v891_v45 = vshrl.u32 %v7161_v32, 16 }
  0xb0   : > { %v1677_v54 = vshll.u32 %v1431_v53, 16  ;;  %v880_v29 = vsel %vm8748_vm11, %v872_v30, %v879_v51  ;;  %1103 = vst [vmem:[#allocation2 + $0x78] sm:$0xf] %v1102_v46  ;;  %v1106_v38 = vsel %vm8667_vm3, %v881_v42, %v1105_v55  ;;  %v894_v27 = vshll.u32 %v7161_v32, 16  ;;  %v1112_v16 = vld [vmem:[#allocation2 + $0x8c] sm:$0x1] }
  0xb1   : > { %v1664_v23 = vor.u32 %v1663_v57, %v1660_v48  ;;  %1104 = vst [vmem:[#allocation2 + $0x7c] sm:$0xf] %v880_v29  ;;  %1107 = vst [vmem:[#allocation2 + $0x80] sm:$0x1] %v1106_v38  ;;  %v4129_v7 = vsel %vm9097_vm14, %v4127_v8, %v4128_v43  ;;  %v888_v0 = vor.u32 %v886_v44, %v885_v22  ;;  %v889_v19 = vrot.slane %v885_v22, 4  ;;  %v7363_v32 = vld [vmem:[%s8657_s30 + $0x60] sm:$0xff]  }
  0xb2   : > { %v1679_v21 = vrot.slane %v1677_v54, 5  ;;  %v6943_v40 = vcombine.low %v9205_v1, %v4129_v7  ;;  %v893_v55 = vrot.slane %v891_v45, 7  ;;  %v6912_v28 = vrot.slane %v4048_v26, 9  ;;  %v4049_v42 = vld [vmem:[#allocation2 + $0x3c] sm:$0xe] }
  0xb3   : > { %v1665_v9 = vrot.slane %v1664_v23, 4  ;;  %v4132_v36 = vrot.slane %v8452_v31, 5  ;;  %7855 = vmatmul.mubr.bf16.vlgmr.msra.gmra.mrb[0].mxu0 %v6942_v39  ;;  %v1109_v43 = vsel %vm8737_vm10, %v888_v0, %v1108_v49  ;;  %v4135_v1 = vrot.slane %v8979_v12, 5  ;;  %v8362_v45 = vld [vmem:[%s10656_s2 + $0x198] sm:$0xff]   ;;  %v1115_v31 = vld [vmem:[#allocation2 + $0x90] sm:$0xf] }
  0xb4   : > { %v1680_v5 = vsel %vm8731_vm9, %v1675_v20, %v1679_v21  ;;  %v533_v35 = vmul.f32 %v9083_v47, %v7254_v25  ;;  %7887 = vmatpush3.bf16.msra.mxu0 %v8971_v34  ;;  %v896_v33 = vor.u32 %v894_v27, %v893_v55  ;;  %v898_v60 = vrot.slane %v893_v55, 4  ;;  %1110 = vst [vmem:[#allocation2 + $0x84] sm:$0xf] %v1109_v43  ;;  %v8360_v34 = vld [vmem:[%s10656_s2 + $0x190] sm:$0xff]  }
  0xb5   : > { %v1670_v8 = vsel %vm8731_vm9, %v1665_v9, %v9222_v58  ;;  %7858 = vmatprep.mubr.bf16.mxu0 %v6943_v40  ;;  %v4133_v50 = vsel %vm9097_vm14, %v6912_v28, %v4132_v36  ;;  %7888 = vmatprep.subr.bf16.mxu0 %v8358_v52  ;;  %v4134_v12 = vrot.slane %v4132_v36, 4  ;;  %v534_v39 = vmul.f32 %v9083_v47, %v7255_v61  ;;  %v9291_v9 = vld [vmem:[%s8657_s30 + $0x68] sm:$0xff]  }
  0xb6   : > { %v6734_v6 = vcombine.low %v1670_v8, %v1680_v5  ;;  %v571_v25 = vadd.f32 %v9033_v59, %v533_v35  ;;  %v897_v56 = vsel %vm8748_vm11, %v889_v19, %v896_v33  ;;  %v1113_v30 = vsel %vm8667_vm3, %v898_v60, %v1112_v16  ;;  %v8366_v5 = vld [vmem:[%s10656_s2 + $0x1a0] sm:$0xff]  }
  0xb7   : > { %v1180_v58 = vld [vmem:[#allocation2 + $0x78] sm:$0x1]  ;;  %v7258_v20 = vunpack.c.l.bf16 %v7363_v32  ;;  %v7259_v51 = vunpack.c.h.bf16 %v7363_v32  ;;  %1111 = vst [vmem:[#allocation2 + $0x88] sm:$0xf] %v897_v56  ;;  %1114 = vst [vmem:[#allocation2 + $0x8c] sm:$0x1] %v1113_v30  ;;  %v4136_v53 = vsel %vm9097_vm14, %v4134_v12, %v4135_v1  ;;  %v572_v48 = vadd.f32 %v9033_v59, %v534_v39 }
  0xb8   : > { %7631 = vmatmul.mubr.bf16.gmra.mrb[16].mxu1 %v6734_v6  ;;  %v1181_v41 = vsel %vm8667_vm3, 0, %v1180_v58  ;;  %v1235_v61 = vld [vmem:[#allocation2 + $0x80] sm:$0x1]  ;;  %v1395_v4 = vld [vmem:[#allocation2 + $0x7c] sm:$0xf]  ;;  %v603_v57 = vmax.f32 %v571_v25, 0.0  ;;  %v6944_v29 = vcombine.low %v4133_v50, %v4136_v53  ;;  %7889 = vmatpush3.bf16.msra.mxu0 %v8358_v52  ;;  %v7262_v50 = vunpack.c.l.bf16 %v9291_v9 }
  0xb9   : > { %1182 = vst [vmem:[#allocation2 + $0x78] sm:$0x1] %v1181_v41  ;;  %v1236_v46 = vsel %vm8675_vm4, 0, %v1235_v61  ;;  %v1691_v44 = vshll.u32 %v1395_v4, 16  ;;  %v1695_v54 = vshrl.u32 %v1395_v4, 16  ;;  %v604_v38 = vmax.f32 %v572_v48, 0.0  ;;  %7890 = vmatprep.subr.bf16.mxu0 %v8360_v34 }
  0xba   : > { %1237 = vst [vmem:[#allocation2 + $0x80] sm:$0x1] %v1236_v46  ;;  %v7162_v22 = vpack.c.bf16 %v603_v57, %v603_v57  ;;  %v535_v26 = vmul.f32 %v9083_v47, %v7258_v20  ;;  %v536_v23 = vmul.f32 %v9083_v47, %v7259_v51  ;;  %v6913_v7 = vrot.slane %v4049_v42, 9  ;;  %v1119_v48 = vld [vmem:[#allocation2 + $0x98] sm:$0x1]  ;;  %v8370_v57 = vld [vmem:[%s10656_s2 + $0x1a8] sm:$0xff]  }
  0xbb   : > { %v9286_v27 = vrot.slane %v1691_v44, 5  ;;  %v1697_v49 = vrot.slane %v1695_v54, 4  ;;  %v4139_v21 = vrot.slane %v8997_v11, 5  ;;  %v1183_v0 = vld [vmem:[#allocation2 + $0x84] sm:$0x1]  ;;  %7859 = vmatmul.mubr.bf16.gmra.mrb[4].mxu0 %v6944_v29  ;;  %v7163_v19 = vpack.c.bf16 %v604_v38, %v604_v38 }
  0xbc   : > { %v900_v16 = vshrl.u32 %v7162_v22, 16  ;;  %v903_v40 = vshll.u32 %v7162_v22, 16  ;;  %v573_v52 = vadd.f32 %v9033_v59, %v535_v26  ;;  %v1184_v28 = vsel %vm8667_vm3, 0, %v1183_v0  ;;  %7891 = vmatpush3.bf16.msra.mxu0 %v8360_v34 }
  0xbd   : > { %v1698_v55 = vor.u32 %v1697_v49, %v9286_v27  ;;  %v574_v36 = vadd.f32 %v9033_v59, %v536_v23  ;;  %v9299_v11 = vsel %vm9097_vm14, %v6913_v7, %v4139_v21  ;;  %1185 = vst [vmem:[#allocation2 + $0x84] sm:$0x1] %v1184_v28  ;;  %v908_v1 = vshrl.u32 %v7163_v19, 16  ;;  %7892 = vmatprep.subr.bf16.mxu0 %v8362_v45 }
  0xbe   : > { %v902_v43 = vrot.slane %v900_v16, 7  ;;  %v911_v35 = vshll.u32 %v7163_v19, 16  ;;  %v605_v32 = vmax.f32 %v573_v52, 0.0  ;;  %v1238_v33 = vld [vmem:[#allocation2 + $0x8c] sm:$0x1]  ;;  %v7263_v6 = vunpack.c.h.bf16 %v9291_v9 }
  0xbf   : > { %v9304_v8 = vrot.slane %v1698_v55, 4  ;;  %v1397_v60 = vld [vmem:[#allocation2 + $0x88] sm:$0xf]  ;;  %v606_v59 = vmax.f32 %v574_v36, 0.0  ;;  %v1239_v39 = vsel %vm8675_vm4, 0, %v1238_v33  ;;  %v910_v42 = vrot.slane %v908_v1, 7 }
  0xc0   : > { %v9308_v12 = vld [vmem:[#allocation2 + $0x78] sm:$0xf]  ;;  %v1715_v25 = vshll.u32 %v1397_v60, 16  ;;  %v1719_v34 = vshrl.u32 %v1397_v60, 16  ;;  %v905_v58 = vor.u32 %v903_v40, %v902_v43  ;;  %1240 = vst [vmem:[#allocation2 + $0x8c] sm:$0x1] %v1239_v39  ;;  %7893 = vmatpush3.bf16.msra.mxu0 %v8362_v45  ;;  %v7164_v26 = vpack.c.bf16 %v605_v32, %v605_v32 }
  0xc1   : > { %v1432_v56 = vld [vmem:[#allocation2 + $0x80] sm:$0x1]  ;;  %v1682_v30 = vshrl.u32 %v9308_v12, 16  ;;  %v1685_v20 = vshll.u32 %v9308_v12, 16  ;;  %v906_v51 = vrot.slane %v902_v43, 4  ;;  %7894 = vmatprep.subr.bf16.mxu0 %v8366_v5  ;;  %v913_v54 = vor.u32 %v911_v35, %v910_v42 }
  0xc2   : > { %v1701_v41 = vshll.u32 %v1432_v56, 16  ;;  %v9314_v61 = vrot.slane %v1715_v25, 5  ;;  %v1721_v4 = vrot.slane %v1719_v34, 4  ;;  %v1116_v53 = vsel %vm8737_vm10, %v905_v58, %v1115_v31  ;;  %v9328_v16 = vld [vmem:[#allocation2 + $0x48] sm:$0xe]  ;;  %v8374_v31 = vld [vmem:[%s10656_s2 + $0x1b0] sm:$0xff]  }
  0xc3   : > { %v1684_v46 = vrot.slane %v1682_v30, 4  ;;  %v1687_v44 = vrot.slane %v1685_v20, 5  ;;  %v915_v29 = vrot.slane %v910_v42, 4  ;;  %1117 = vst [vmem:[#allocation2 + $0x90] sm:$0xf] %v1116_v53  ;;  %v7165_v23 = vpack.c.bf16 %v606_v59, %v606_v59 }
  0xc4   : > { %v1703_v38 = vrot.slane %v1701_v41, 5  ;;  %v1722_v22 = vor.u32 %v1721_v4, %v9314_v61  ;;  %v9322_v49 = vld [vmem:[#allocation2 + $0x84] sm:$0xf]  ;;  %v914_v7 = vsel %vm8748_vm11, %v906_v51, %v913_v54  ;;  %v4141_v19 = vrot.slane %v4139_v21, 4  ;;  %7895 = vmatpush3.bf16.msra.mxu0 %v8366_v5  ;;  %v1122_v20 = vld [vmem:[#allocation2 + $0x9c] sm:$0xf] }
  0xc5   : > { %v1688_v45 = vor.u32 %v1687_v44, %v1684_v46  ;;  %v1120_v0 = vsel %vm8667_vm3, %v915_v29, %v1119_v48  ;;  %v1706_v52 = vshrl.u32 %v9322_v49, 16  ;;  %v1709_v55 = vshll.u32 %v9322_v49, 16  ;;  %1118 = vst [vmem:[#allocation2 + $0x94] sm:$0xf] %v914_v7  ;;  %7896 = vmatprep.subr.bf16.mxu0 %v8370_v57  ;;  %v8453_v33 = vld [vmem:[#allocation2 + $0x44] sm:$0x1] }
  0xc6   : > { %v1704_v40 = vsel %vm8731_vm9, %v9304_v8, %v1703_v38  ;;  %v1723_v28 = vrot.slane %v1722_v22, 4  ;;  %1121 = vst [vmem:[#allocation2 + $0x98] sm:$0x1] %v1120_v0  ;;  %v917_v36 = vshrl.u32 %v7164_v26, 16  ;;  %v920_v43 = vshll.u32 %v7164_v26, 16  ;;  %v8378_v41 = vld [vmem:[%s10656_s2 + $0x1b8] sm:$0xff]  }
  0xc7   : > { %v1689_v21 = vrot.slane %v1688_v45, 4  ;;  %v925_v5 = vshrl.u32 %v7165_v23, 16  ;;  %v1433_v1 = vld [vmem:[#allocation2 + $0x8c] sm:$0x1]  ;;  %v1708_v35 = vrot.slane %v1706_v52, 4  ;;  %v1711_v32 = vrot.slane %v1709_v55, 5 }
  0xc8   : > { %v928_v8 = vshll.u32 %v7165_v23, 16  ;;  %v4142_v60 = vrot.slane %v8453_v33, 5  ;;  %v1725_v39 = vshll.u32 %v1433_v1, 16  ;;  %v919_v25 = vrot.slane %v917_v36, 7  ;;  %7897 = vmatpush3.bf16.msra.mxu0 %v8370_v57  ;;  %v1126_v54 = vld [vmem:[#allocation2 + $0xa4] sm:$0x1] }
  0xc9   : > { %v1694_v59 = vsel %vm8731_vm9, %v1689_v21, %v9286_v27  ;;  %v927_v34 = vrot.slane %v925_v5, 7  ;;  %v1712_v56 = vor.u32 %v1711_v32, %v1708_v35  ;;  %v6914_v42 = vrot.slane %v9328_v16, 9  ;;  %7898 = vmatprep.subr.bf16.mxu0 %v8374_v31  ;;  %v7365_v38 = vld [vmem:[%s8657_s30 + $0x70] sm:$0xff]   ;;  %v8454_v7 = vld [vmem:[#allocation2 + $0x4c] sm:$0xf] }
  0xca   : > { %v6735_v58 = vcombine.low %v1694_v59, %v1704_v40  ;;  %v1186_v30 = vld [vmem:[#allocation2 + $0x90] sm:$0x1]  ;;  %v4143_v51 = vsel %vm9097_vm14, %v4141_v19, %v4142_v60  ;;  %v1727_v27 = vrot.slane %v1725_v39, 5  ;;  %v922_v53 = vor.u32 %v920_v43, %v919_v25  ;;  %v4051_v55 = vld [vmem:[#allocation2 + $0x54] sm:$0xe] }
  0xcb   : > { %v1187_v4 = vsel %vm8667_vm3, 0, %v1186_v30  ;;  %v923_v48 = vrot.slane %v919_v25, 4  ;;  %v1713_v57 = vrot.slane %v1712_v56, 4  ;;  %v930_v46 = vor.u32 %v928_v8, %v927_v34  ;;  %v9390_v59 = vld [vmem:[%s10658_s4] ss:$0 sm:$0xff] }
  0xcc   : > { %7634 = vmatprep.mubr.bf16.mxu1 %v6735_v58  ;;  %1188 = vst [vmem:[#allocation2 + $0x90] sm:$0x1] %v1187_v4  ;;  %v932_v44 = vrot.slane %v927_v34, 4  ;;  %v6945_v29 = vcombine.low %v9299_v11, %v4143_v51  ;;  %v1728_v22 = vsel %vm8731_vm9, %v1723_v28, %v1727_v27  ;;  %v9353_v23 = vld [vmem:[#allocation2 + $0x94] sm:$0xf]  ;;  %v1123_v45 = vsel %vm8737_vm10, %v922_v53, %v1122_v20 }
  0xcd   : > { %v1241_v26 = vld [vmem:[#allocation2 + $0x98] sm:$0x1]  ;;  %v4146_v0 = vrot.slane %v8454_v7, 5  ;;  %v4149_v19 = vrot.slane %v9063_v24, 5  ;;  %7899 = vmatpush3.bf16.msra.mxu0 %v8374_v31  ;;  %v1718_v16 = vsel %vm8731_vm9, %v1713_v57, %v9314_v61  ;;  %v1739_v40 = vshll.u32 %v9353_v23, 16  ;;  %v9368_v24 = vld [vmem:[%s10656_s2 + $0x1c0] sm:$0xff]  }
  0xce   : > { %v1242_v11 = vsel %vm8675_vm4, 0, %v1241_v26  ;;  %v1743_v52 = vshrl.u32 %v9353_v23, 16  ;;  %1124 = vst [vmem:[#allocation2 + $0x9c] sm:$0xf] %v1123_v45  ;;  %7862 = vmatprep.mubr.bf16.mxu0 %v6945_v29  ;;  %7900 = vmatprep.subr.bf16.mxu0 %v8378_v41  ;;  %v6736_v28 = vcombine.low %v1718_v16, %v1728_v22  ;;  %v931_v61 = vsel %vm8748_vm11, %v923_v48, %v930_v46 }
  0xcf   : > { %1243 = vst [vmem:[#allocation2 + $0x98] sm:$0x1] %v1242_v11  ;;  %v1127_v31 = vsel %vm8667_vm3, %v932_v44, %v1126_v54  ;;  %v4147_v21 = vsel %vm9097_vm14, %v6914_v42, %v4146_v0  ;;  %v9376_v36 = vrot.slane %v1739_v40, 5  ;;  %1125 = vst [vmem:[#allocation2 + $0xa0] sm:$0xf] %v931_v61  ;;  %v4148_v5 = vrot.slane %v4146_v0, 4 }
  0xd0   : > { %v1745_v43 = vrot.slane %v1743_v52, 4  ;;  %1128 = vst [vmem:[#allocation2 + $0xa4] sm:$0x1] %v1127_v31  ;;  %v537_v1 = vmul.f32 %v9083_v47, %v7262_v50  ;;  %7635 = vmatmul.mubr.bf16.gmra.mrb[20].mxu1 %v6736_v28  ;;  %v538_v35 = vmul.f32 %v9083_v47, %v7263_v6  ;;  %v7266_v32 = vunpack.c.l.bf16 %v7365_v38 }
  0xd1   : > { %v7267_v8 = vunpack.c.h.bf16 %v7365_v38  ;;  %7901 = vmatpush3.bf16.msra.mxu0 %v8378_v41  ;;  %v4150_v60 = vsel %vm9097_vm14, %v4148_v5, %v4149_v19  ;;  %v6915_v39 = vrot.slane %v4051_v55, 9  ;;  %v4153_v51 = vrot.slane %v9118_v63, 5 }
  0xd2   : > { %v1746_v33 = vor.u32 %v1745_v43, %v9376_v36  ;;  %v575_v50 = vadd.f32 %v9390_v59, %v537_v1  ;;  %7934 = vmatprep.subr.bf16.mxu0 %v9368_v24  ;;  %v6946_v6 = vcombine.low %v4147_v21, %v4150_v60  ;;  %v576_v25 = vadd.f32 %v9390_v59, %v538_v35 }
  0xd3   : > { %v9394_v9 = vld [vmem:[#allocation2 + $0x90] sm:$0xf]  ;;  %v539_v34 = vmul.f32 %v9083_v47, %v7266_v32  ;;  %v540_v58 = vmul.f32 %v9083_v47, %v7267_v8  ;;  %v9410_v26 = vsel %vm9097_vm14, %v6915_v39, %v4153_v51  ;;  %v1129_v8 = vld [vmem:[#allocation2 + $0xa8] sm:$0xf] }
  0xd4   : > { %v1730_v56 = vshrl.u32 %v9394_v9, 16  ;;  %v1733_v30 = vshll.u32 %v9394_v9, 16  ;;  %v607_v20 = vmax.f32 %v575_v50, 0.0  ;;  %v1747_v42 = vrot.slane %v1746_v33, 4  ;;  %7863 = vmatmul.mubr.bf16.gmra.mrb[8].mxu0 %v6946_v6  ;;  %v1133_v33 = vld [vmem:[#allocation2 + $0xb0] sm:$0x1] }
  0xd5   : > { %v1189_v41 = vld [vmem:[#allocation2 + $0x9c] sm:$0x1]  ;;  %v608_v27 = vmax.f32 %v576_v25, 0.0  ;;  %v577_v4 = vadd.f32 %v9390_v59, %v539_v34  ;;  %v578_v53 = vadd.f32 %v9390_v59, %v540_v58  ;;  %v4155_v50 = vrot.slane %v4153_v51, 4 }
  0xd6   : > { %v1434_v48 = vld [vmem:[#allocation2 + $0x98] sm:$0x1]  ;;  %v1732_v57 = vrot.slane %v1730_v56, 4  ;;  %v1735_v46 = vrot.slane %v1733_v30, 5  ;;  %v1190_v47 = vsel %vm8667_vm3, 0, %v1189_v41  ;;  %v7166_v44 = vpack.c.bf16 %v607_v20, %v607_v20 }
  0xd7   : > { %v1749_v54 = vshll.u32 %v1434_v48, 16  ;;  %1191 = vst [vmem:[#allocation2 + $0x9c] sm:$0x1] %v1190_v47  ;;  %v1244_v29 = vld [vmem:[#allocation2 + $0xa4] sm:$0x1]  ;;  %v7167_v63 = vpack.c.bf16 %v608_v27, %v608_v27  ;;  %v609_v22 = vmax.f32 %v577_v4, 0.0 }
  0xd8   : > { %v9406_v38 = vld [vmem:[#allocation2 + $0xa0] sm:$0xf]  ;;  %v1736_v45 = vor.u32 %v1735_v46, %v1732_v57  ;;  %v1245_v7 = vsel %vm8675_vm4, 0, %v1244_v29  ;;  %v934_v11 = vshrl.u32 %v7166_v44, 16  ;;  %v937_v40 = vshll.u32 %v7166_v44, 16 }
  0xd9   : > { %v1763_v0 = vshll.u32 %v9406_v38, 16  ;;  %v1767_v19 = vshrl.u32 %v9406_v38, 16  ;;  %v1751_v16 = vrot.slane %v1749_v54, 5  ;;  %1246 = vst [vmem:[#allocation2 + $0xa4] sm:$0x1] %v1245_v7  ;;  %v942_v52 = vshrl.u32 %v7167_v63, 16 }
  0xda   : > { %v1737_v55 = vrot.slane %v1736_v45, 4  ;;  %v945_v31 = vshll.u32 %v7167_v63, 16  ;;  %v936_v43 = vrot.slane %v934_v11, 7  ;;  %v610_v1 = vmax.f32 %v578_v53, 0.0  ;;  %v4052_v41 = vld [vmem:[#allocation2 + $0x60] sm:$0xe] }
  0xdb   : > { %v9416_v28 = vrot.slane %v1763_v0, 5  ;;  %v1769_v61 = vrot.slane %v1767_v19, 4  ;;  %v1752_v21 = vsel %vm8731_vm9, %v1747_v42, %v1751_v16  ;;  %v944_v5 = vrot.slane %v942_v52, 7 }
  0xdc   : > { %v1742_v35 = vsel %vm8731_vm9, %v1737_v55, %v9376_v36  ;;  %v7168_v60 = vpack.c.bf16 %v609_v22, %v609_v22  ;;  %v939_v6 = vor.u32 %v937_v40, %v936_v43  ;;  %v940_v25 = vrot.slane %v936_v43, 4  ;;  %v1136_v22 = vld [vmem:[#allocation2 + $0xb4] sm:$0xf]  ;;  %v1140_v40 = vld [vmem:[#allocation2 + $0xbc] sm:$0x1] }
  0xdd   : > { %v1770_v32 = vor.u32 %v1769_v61, %v9416_v28  ;;  %v6737_v39 = vcombine.low %v1742_v35, %v1752_v21  ;;  %v947_v34 = vor.u32 %v945_v31, %v944_v5  ;;  %v949_v30 = vrot.slane %v944_v5, 4  ;;  %v3316_v5 = vld [vmem:[#allocation2 + $0x70] sm:$0xf] }
  0xde   : > { %v9424_v58 = vld [vmem:[#allocation2 + $0x9c] sm:$0xf]  ;;  %v7169_v20 = vpack.c.bf16 %v610_v1, %v610_v1  ;;  %v951_v42 = vshrl.u32 %v7168_v60, 16  ;;  %v1130_v51 = vsel %vm8737_vm10, %v939_v6, %v1129_v8  ;;  %v954_v46 = vshll.u32 %v7168_v60, 16  ;;  %v4053_v1 = vld [vmem:[#allocation2 + $0x6c] sm:$0xe] }
  0xdf   : > { %v1771_v56 = vrot.slane %v1770_v32, 4  ;;  %7638 = vmatprep.mubr.bf16.mxu1 %v6737_v39  ;;  %v1754_v36 = vshrl.u32 %v9424_v58, 16  ;;  %v1757_v27 = vshll.u32 %v9424_v58, 16  ;;  %v948_v4 = vsel %vm8748_vm11, %v940_v25, %v947_v34  ;;  %1131 = vst [vmem:[#allocation2 + $0xa8] sm:$0xf] %v1130_v51 }
  0xe0   : > { %v1435_v53 = vld [vmem:[#allocation2 + $0xa4] sm:$0x1]  ;;  %1132 = vst [vmem:[#allocation2 + $0xac] sm:$0xf] %v948_v4  ;;  %v1134_v48 = vsel %vm8667_vm3, %v949_v30, %v1133_v33  ;;  %v953_v57 = vrot.slane %v951_v42, 7  ;;  %v959_v47 = vshrl.u32 %v7169_v20, 16 }
  0xe1   : > { %v1756_v44 = vrot.slane %v1754_v36, 4  ;;  %v1759_v54 = vrot.slane %v1757_v27, 5  ;;  %v1773_v29 = vshll.u32 %v1435_v53, 16  ;;  %1135 = vst [vmem:[#allocation2 + $0xb0] sm:$0x1] %v1134_v48  ;;  %v962_v63 = vshll.u32 %v7169_v20, 16 }
  0xe2   : > { %v956_v45 = vor.u32 %v954_v46, %v953_v57  ;;  %v957_v7 = vrot.slane %v953_v57, 4  ;;  %v961_v0 = vrot.slane %v959_v47, 7  ;;  %v4156_v19 = vrot.slane %v9130_v15, 5  ;;  %v3317_v8 = vld [vmem:[#allocation2 + $0x74] sm:$0x1] }
  0xe3   : > { %v1760_v16 = vor.u32 %v1759_v54, %v1756_v44  ;;  %v1775_v11 = vrot.slane %v1773_v29, 5  ;;  %v6916_v52 = vrot.slane %v4052_v41, 9  ;;  %v4160_v55 = vrot.slane %v9141_v2, 5  ;;  %v9465_v51 = vld [vmem:[#allocation2 + $0x7c] sm:$0xf] }
  0xe4   : > { %v964_v61 = vor.u32 %v962_v63, %v961_v0  ;;  %v966_v31 = vrot.slane %v961_v0, 4  ;;  %v1137_v21 = vsel %vm8737_vm10, %v956_v45, %v1136_v22  ;;  %v4157_v43 = vsel %vm9097_vm14, %v4155_v50, %v4156_v19  ;;  %v4054_v53 = vld [vmem:[#allocation2 + $0x78] sm:$0xe]  ;;  %v9469_v44 = vld [vmem:[#allocation2 + $0x80] sm:$0x1] }
  0xe5   : > { %v1761_v35 = vrot.slane %v1760_v16, 4  ;;  %v1776_v15 = vsel %vm8731_vm9, %v1771_v56, %v1775_v11  ;;  %1138 = vst [vmem:[#allocation2 + $0xb4] sm:$0xf] %v1137_v21  ;;  %v6947_v32 = vcombine.low %v9410_v26, %v4157_v43  ;;  %v4162_v60 = vrot.slane %v4160_v55, 4  ;;  %v3322_v0 = vld [vmem:[#allocation2 + $0x88] sm:$0xf] }
  0xe6   : > { %v965_v2 = vsel %vm8748_vm11, %v957_v7, %v964_v61  ;;  %v1141_v33 = vsel %vm8667_vm3, %v966_v31, %v1140_v40  ;;  %v4163_v39 = vrot.slane %v9199_v13, 5  ;;  %v1192_v6 = vld [vmem:[#allocation2 + $0xa8] sm:$0x1]  ;;  %v4161_v26 = vsel %vm9097_vm14, %v6916_v52, %v4160_v55  ;;  %v4055_v19 = vld [vmem:[#allocation2 + $0x84] sm:$0xe] }
  0xe7   : > { %v1766_v50 = vsel %vm8731_vm9, %v1761_v35, %v9416_v28  ;;  %v9451_v25 = vld [vmem:[#allocation2 + $0xac] sm:$0xf]  ;;  %1139 = vst [vmem:[#allocation2 + $0xb8] sm:$0xf] %v965_v2  ;;  %1142 = vst [vmem:[#allocation2 + $0xbc] sm:$0x1] %v1141_v33  ;;  %7866 = vmatprep.mubr.bf16.mxu0 %v6947_v32 }
  0xe8   : > { %v6917_v34 = vrot.slane %v4053_v1, 9  ;;  %v4167_v56 = vrot.slane %v3316_v5, 5  ;;  %v6738_v30 = vcombine.low %v1766_v50, %v1776_v15  ;;  %v1193_v20 = vsel %vm8667_vm3, 0, %v1192_v6  ;;  %v1247_v13 = vld [vmem:[#allocation2 + $0xb0] sm:$0x1] }
  0xe9   : > { %v1787_v42 = vshll.u32 %v9451_v25, 16  ;;  %v1791_v28 = vshrl.u32 %v9451_v25, 16  ;;  %1194 = vst [vmem:[#allocation2 + $0xa8] sm:$0x1] %v1193_v20  ;;  %v1248_v41 = vsel %vm8675_vm4, 0, %v1247_v13  ;;  %v4164_v36 = vsel %vm9097_vm14, %v4162_v60, %v4163_v39 }
  0xea   : > { %v4168_v27 = vsel %vm9097_vm14, %v6917_v34, %v4167_v56  ;;  %v4169_v4 = vrot.slane %v4167_v56, 4  ;;  %7639 = vmatmul.mubr.bf16.gmra.mrb[24].mxu1 %v6738_v30  ;;  %1249 = vst [vmem:[#allocation2 + $0xb0] sm:$0x1] %v1248_v41  ;;  %v6948_v46 = vcombine.low %v4161_v26, %v4164_v36  ;;  %v4170_v47 = vrot.slane %v3317_v8, 5  ;;  %v3323_v21 = vld [vmem:[#allocation2 + $0x8c] sm:$0x1] }
  0xeb   : > { %v9467_v48 = vrot.slane %v1787_v42, 5  ;;  %v1793_v57 = vrot.slane %v1791_v28, 4  ;;  %v6918_v63 = vrot.slane %v4054_v53, 9  ;;  %v4174_v22 = vrot.slane %v9465_v51, 5  ;;  %v4056_v43 = vld [vmem:[#allocation2 + $0x90] sm:$0xe] }
  0xec   : > { %v1195_v54 = vld [vmem:[#allocation2 + $0xb4] sm:$0x1]  ;;  %7867 = vmatmul.mubr.bf16.gmra.mrb[12].mxu0 %v6948_v46  ;;  %v4171_v29 = vsel %vm9097_vm14, %v4169_v4, %v4170_v47  ;;  %v4177_v52 = vrot.slane %v9469_v44, 5  ;;  %v6919_v15 = vrot.slane %v4055_v19, 9  ;;  %v4181_v32 = vrot.slane %v3322_v0, 5 }
  0xed   : > { %v1196_v45 = vsel %vm8667_vm3, 0, %v1195_v54  ;;  %v6949_v7 = vcombine.low %v4168_v27, %v4171_v29  ;;  %v1794_v16 = vor.u32 %v1793_v57, %v9467_v48  ;;  %v4175_v1 = vsel %vm9097_vm14, %v6918_v63, %v4174_v22  ;;  %v3325_v8 = vld [vmem:[#allocation2 + $0x94] sm:$0xf]  ;;  %v3326_v30 = vld [vmem:[#allocation2 + $0x98] sm:$0x1] }
  0xee   : > { %1197 = vst [vmem:[#allocation2 + $0xb4] sm:$0x1] %v1196_v45  ;;  %v1250_v11 = vld [vmem:[#allocation2 + $0xbc] sm:$0x1]  ;;  %v9477_v40 = vld [vmem:[#allocation2 + $0xb8] sm:$0xf]  ;;  %v4182_v56 = vsel %vm9097_vm14, %v6919_v15, %v4181_v32 }
  0xef   : > { %v1251_v55 = vsel %vm8675_vm4, 0, %v1250_v11  ;;  %v1811_v61 = vshll.u32 %v9477_v40, 16  ;;  %v1815_v31 = vshrl.u32 %v9477_v40, 16  ;;  %7870 = vmatprep.mubr.bf16.mxu0 %v6949_v7  ;;  %v4176_v35 = vrot.slane %v4174_v22, 4  ;;  %v4057_v54 = vld [vmem:[#allocation2 + $0x9c] sm:$0xe] }
  0xf0   : > { %v9484_v5 = vld [vmem:[#allocation2 + $0xa8] sm:$0xf]  ;;  %1252 = vst [vmem:[#allocation2 + $0xbc] sm:$0x1] %v1251_v55  ;;  %v1795_v6 = vrot.slane %v1794_v16, 4  ;;  %v4183_v36 = vrot.slane %v4181_v32, 4 }
  0xf1   : > { %v1436_v2 = vld [vmem:[#allocation2 + $0xb0] sm:$0x1]  ;;  %v1778_v33 = vshrl.u32 %v9484_v5, 16  ;;  %v1781_v60 = vshll.u32 %v9484_v5, 16  ;;  %v9490_v39 = vrot.slane %v1811_v61, 5  ;;  %v1817_v50 = vrot.slane %v1815_v31, 4 }
  0xf2   : > { %v1797_v26 = vshll.u32 %v1436_v2, 16  ;;  %v4178_v34 = vsel %vm9097_vm14, %v4176_v35, %v4177_v52  ;;  %v4184_v27 = vrot.slane %v3323_v21, 5  ;;  %v6920_v4 = vrot.slane %v4056_v43, 9  ;;  %v3328_v7 = vld [vmem:[#allocation2 + $0xa0] sm:$0xf] }
  0xf3   : > { %v1780_v20 = vrot.slane %v1778_v33, 4  ;;  %v1783_v13 = vrot.slane %v1781_v60, 5  ;;  %v1818_v42 = vor.u32 %v1817_v50, %v9490_v39  ;;  %v6950_v28 = vcombine.low %v4175_v1, %v4178_v34  ;;  %v3329_v0 = vld [vmem:[#allocation2 + $0xa4] sm:$0x1]  ;;  %v3331_v61 = vld [vmem:[#allocation2 + $0xac] sm:$0xf] }
  0xf4   : > { %v1799_v41 = vrot.slane %v1797_v26, 5  ;;  %v4188_v46 = vrot.slane %v3325_v8, 5  ;;  %v4191_v47 = vrot.slane %v3326_v30, 5  ;;  %v4185_v45 = vsel %vm9097_vm14, %v4183_v36, %v4184_v27  ;;  %v4058_v35 = vld [vmem:[#allocation2 + $0xa8] sm:$0xe] }
  0xf5   : > { %v1784_v53 = vor.u32 %v1783_v13, %v1780_v20  ;;  %v9497_v57 = vld [vmem:[#allocation2 + $0xb4] sm:$0xf]  ;;  %7871 = vmatmul.mubr.bf16.gmra.mrb[16].mxu0 %v6950_v28  ;;  %v6951_v11 = vcombine.low %v4182_v56, %v4185_v45  ;;  %v1819_v43 = vrot.slane %v1818_v42, 4  ;;  %v6921_v8 = vrot.slane %v4057_v54, 9  ;;  %v3332_v2 = vld [vmem:[#allocation2 + $0xb0] sm:$0x1] }
  0xf6   : > { %v1800_v29 = vsel %vm8731_vm9, %v1795_v6, %v1799_v41  ;;  %v1802_v63 = vshrl.u32 %v9497_v57, 16  ;;  %v1805_v22 = vshll.u32 %v9497_v57, 16  ;;  %v4189_v52 = vsel %vm9097_vm14, %v6920_v4, %v4188_v46  ;;  %v4059_v26 = vld [vmem:[#allocation2 + $0xb4] sm:$0xe]  ;;  %v3334_v13 = vld [vmem:[#allocation2 + $0xb8] sm:$0xf] }
  0xf7   : > { %v1785_v19 = vrot.slane %v1784_v53, 4  ;;  %v1437_v16 = vld [vmem:[#allocation2 + $0xbc] sm:$0x1]  ;;  %v4190_v55 = vrot.slane %v4188_v46, 4  ;;  %7874 = vmatprep.mubr.bf16.mxu0 %v6951_v11  ;;  %v4195_v34 = vrot.slane %v3328_v7, 5  ;;  %v4198_v56 = vrot.slane %v3329_v0, 5 }
  0xf8   : > { %v1804_v31 = vrot.slane %v1802_v63, 4  ;;  %v1807_v21 = vrot.slane %v1805_v22, 5  ;;  %v1821_v1 = vshll.u32 %v1437_v16, 16  ;;  %v6922_v30 = vrot.slane %v4058_v35, 9  ;;  %v3335_v41 = vld [vmem:[#allocation2 + $0xbc] sm:$0x1] }
  0xf9   : > { %v1790_v15 = vsel %vm8731_vm9, %v1785_v19, %v9467_v48  ;;  %v4192_v32 = vsel %vm9097_vm14, %v4190_v55, %v4191_v47  ;;  %v4202_v20 = vrot.slane %v3331_v61, 5  ;;  %v4205_v28 = vrot.slane %v3332_v2, 5  ;;  %v9514_v36 = vld [vmem:[#allocation2 + $0x4] sm:$0xf]  ;;  %v8457_v27 = vld [vmem:[#allocation2] sm:$0xf] }
  0xfa   : > { %v6739_v33 = vcombine.low %v1790_v15, %v1800_v29  ;;  %v1808_v60 = vor.u32 %v1807_v21, %v1804_v31  ;;  %v1823_v50 = vrot.slane %v1821_v1, 5  ;;  %v6952_v6 = vcombine.low %v4189_v52, %v4192_v32  ;;  %v7366_v45 = vld [vmem:[%s8657_s30 + $0x78] sm:$0xff]   ;;  %v8458_v1 = vld [vmem:[%s10657_s3] ss:$0 sm:$0xff]  ;;  %v9536_v32 = vld [vmem:[#allocation2 + $0x10] sm:$0xf] }
  0xfb   : > { %v6749_v4 = vcombine.low %v8457_v27, %v9514_v36  ;;  %v4196_v53 = vsel %vm9097_vm14, %v6921_v8, %v4195_v34  ;;  %v4197_v46 = vrot.slane %v4195_v34, 4  ;;  %v4204_v47 = vrot.slane %v4202_v20, 4  ;;  %v8460_v8 = vld [vmem:[#allocation2 + $0xc] sm:$0xf] }
  0xfc   : > { %7642 = vmatprep.mubr.bf16.mxu1 %v6739_v33  ;;  %v1809_v42 = vrot.slane %v1808_v60, 4  ;;  %v1824_v48 = vsel %vm8731_vm9, %v1819_v43, %v1823_v50  ;;  %v4203_v29 = vsel %vm9097_vm14, %v6922_v30, %v4202_v20  ;;  %v6923_v63 = vrot.slane %v4059_v26, 9  ;;  %v9541_v50 = vld [vmem:[#allocation2 + $0x1c] sm:$0xf]  ;;  %v8369_v34 = vld [vmem:[%s10656_s2 + $0x88] sm:$0xff]  }
  0xfd   : > { %7875 = vmatmul.mubr.bf16.gmra.mrb[20].mxu0 %v6952_v6  ;;  %v4209_v22 = vrot.slane %v3334_v13, 5  ;;  %v4199_v0 = vsel %vm9097_vm14, %v4197_v46, %v4198_v56  ;;  %v4206_v19 = vsel %vm9097_vm14, %v4204_v47, %v4205_v28  ;;  %v4212_v16 = vrot.slane %v3335_v41, 5  ;;  %v8462_v6 = vld [vmem:[#allocation2 + $0x18] sm:$0xf] }
  0xfe   : > { %v1814_v54 = vsel %vm8731_vm9, %v1809_v42, %v9490_v39  ;;  %v6953_v11 = vcombine.low %v4196_v53, %v4199_v0  ;;  %v6954_v39 = vcombine.low %v4203_v29, %v4206_v19  ;;  %v7270_v61 = vunpack.c.l.bf16 %v7366_v45  ;;  %v8463_v42 = vld [vmem:[%s10656_s2 + $0x80] sm:$0xff]   ;;  %v9556_v29 = vld [vmem:[#allocation2 + $0x34] sm:$0xf]  ;;  %v8377_v0 = vld [vmem:[%s10656_s2 + $0x98] sm:$0xff]  }
  0xff   : > { %v6740_v7 = vcombine.low %v1814_v54, %v1824_v48  ;;  %v4210_v52 = vsel %vm9097_vm14, %v6923_v63, %v4209_v22  ;;  %v4211_v55 = vrot.slane %v4209_v22, 4  ;;  %v7271_v31 = vunpack.c.h.bf16 %v7366_v45  ;;  %v8465_v53 = vld [vmem:[#allocation2 + $0x24] sm:$0xf]  ;;  %v8467_v63 = vld [vmem:[#allocation2 + $0x30] sm:$0xf] }
 0x100   : > { %7878 = vmatprep.mubr.bf16.mxu0 %v6953_v11  ;;  %v541_v35 = vmul.f32 %v8458_v1, %v7270_v61  ;;  %v6750_v2 = vcombine.low %v8460_v8, %v9536_v32  ;;  %v6751_v26 = vcombine.low %v8462_v6, %v9541_v50  ;;  %v6753_v22 = vcombine.low %v8467_v63, %v9556_v29  ;;  %v1143_v45 = vld [vmem:[#allocation2 + $0xc0] sm:$0xf] }
 0x101   : > { %7643 = vmatmul.mubr.bf16.gmra.mrb[28].mxu1 %v6740_v7  ;;  %v4213_v21 = vsel %vm9097_vm14, %v4211_v55, %v4212_v16  ;;  %v542_v15 = vmul.f32 %v8458_v1, %v7271_v31  ;;  %v1147_v7 = vld [vmem:[#allocation2 + $0xc8] sm:$0x1]  ;;  %v1201_v31 = vld [vmem:[#allocation2 + $0xcc] sm:$0x1]  ;;  %v2420_v63 = vld [vmem:[#allocation2] sm:$0xe] }
 0x102   : > { %7662 = vmatprep.mubr.bf16.mxu1 %v6749_v4  ;;  %v6955_v43 = vcombine.low %v4210_v52, %v4213_v21  ;;  %v579_v33 = vadd.f32 %v9390_v59, %v541_v35  ;;  %v9553_v4 = vld [vmem:[#allocation2 + $0x28] sm:$0xf]  ;;  %v8381_v21 = vld [vmem:[%s10656_s2 + $0xa0] sm:$0xff]   ;;  %v1202_v1 = vsel %vm8667_vm3, 0, %v1201_v31  ;;  %v9576_v35 = vld [vmem:[#allocation2 + $0x4c] sm:$0xf] }
 0x103   : > { %v580_v60 = vadd.f32 %v9390_v59, %v542_v15  ;;  %v8373_v59 = vld [vmem:[%s10656_s2 + $0x90] sm:$0xff]   ;;  %v6752_v46 = vcombine.low %v8465_v53, %v9553_v4  ;;  %v8471_v15 = vld [vmem:[#allocation2 + $0x48] sm:$0xf]  ;;  %1203 = vst [vmem:[#allocation2 + $0xcc] sm:$0x1] %v1202_v1  ;;  %v3565_v53 = vshll.u32 %v9465_v51, 16 }
 0x104   : > { %v611_v56 = vmax.f32 %v579_v33, 0.0  ;;  %v6755_v8 = vcombine.low %v8471_v15, %v9576_v35  ;;  %1371 = vst [vmem:[#allocation2 + $0xcc] sm:$0xf] %v10662_v3  ;;  %v8478_v31 = vld [vmem:[#allocation2 + $0x6c] sm:$0xf] }
 0x105   : > { %7879 = vmatmul.mubr.bf16.gmra.mrb[24].mxu0 %v6954_v39  ;;  %v612_v30 = vmax.f32 %v580_v60, 0.0  ;;  %v2423_v1 = vld [vmem:[#allocation2 + $0x24] sm:$0xe] }
 0x106   : > { %7882 = vmatprep.mubr.bf16.mxu0 %v6955_v43  ;;  %v7170_v20 = vpack.c.bf16 %v611_v56, %v611_v56  ;;  %v9571_v43 = vld [vmem:[#allocation2 + $0x40] sm:$0xf] }
 0x107   : > { %v7171_v13 = vpack.c.bf16 %v612_v30, %v612_v30  ;;  %v6754_v10 = vcombine.low %v8469_v17, %v9571_v43  ;;  %v6773_v17 = vrot.slane %v2420_v63, 9 }
 0x108   : > { %v968_v48 = vshrl.u32 %v7170_v20, 16  ;;  %v971_v28 = vshll.u32 %v7170_v20, 16  ;;  %v8472_v20 = vld [vmem:[#allocation2 + $0x54] sm:$0xf] }
 0x109   : > { %7663 = vmatmul.mubr.bf16.vlgmr.msra.gmra.mrb[0].mxu1 %v6750_v2  ;;  %v976_v41 = vshrl.u32 %v7171_v13, 16  ;;  %v979_v27 = vshll.u32 %v7171_v13, 16  ;;  %v8387_v2 = vld [vmem:[%s10656_s2 + $0xa8] sm:$0xff]   ;;  %v9590_v13 = vld [vmem:[#allocation2 + $0x58] sm:$0xf] }
 0x10a   : > { %7695 = vmatpush3.bf16.msra.mxu1 %v8463_v42  ;;  %7666 = vmatprep.mubr.bf16.mxu1 %v6751_v26  ;;  %v970_v47 = vrot.slane %v968_v48, 7  ;;  %v6756_v42 = vcombine.low %v8472_v20, %v9590_v13  ;;  %v9593_v48 = vld [vmem:[#allocation2 + $0x64] sm:$0xf]  ;;  %v2424_v20 = vld [vmem:[#allocation2 + $0x30] sm:$0xe] }
 0x10b   : > { %7696 = vmatprep.subr.bf16.mxu1 %v8369_v34  ;;  %v978_v54 = vrot.slane %v976_v41, 7 }
 0x10c   : > { %v973_v19 = vor.u32 %v971_v28, %v970_v47  ;;  %v974_v16 = vrot.slane %v970_v47, 4  ;;  %v8475_v28 = vld [vmem:[#allocation2 + $0x60] sm:$0xf] }
 0x10d   : > { %v981_v11 = vor.u32 %v979_v27, %v978_v54  ;;  %v983_v52 = vrot.slane %v978_v54, 4  ;;  %v6757_v41 = vcombine.low %v8475_v28, %v9593_v48 }
 0x10e   : > { %7697 = vmatpush3.bf16.msra.mxu1 %v8369_v34  ;;  %v1144_v39 = vsel %vm8737_vm10, %v973_v19, %v1143_v45  ;;  %v8393_v34 = vld [vmem:[%s10656_s2 + $0xb0] sm:$0xff]   ;;  %v8476_v45 = vld [vmem:[#allocation2 + $0x8] sm:$0x1] }
 0x10f   : > { %7698 = vmatprep.subr.bf16.mxu1 %v8373_v59  ;;  %v982_v55 = vsel %vm8748_vm11, %v974_v16, %v981_v11  ;;  %v1148_v61 = vsel %vm8667_vm3, %v983_v52, %v1147_v7  ;;  %1145 = vst [vmem:[#allocation2 + $0xc0] sm:$0xf] %v1144_v39  ;;  %v2476_v7 = vrot.slane %v8476_v45, 5  ;;  %v8382_v16 = vld [vmem:[#allocation2 + $0x18] sm:$0xff]   ;;  %v9609_v11 = vrot.slane %v3565_v53, 5 }
 0x110   : > { %1146 = vst [vmem:[#allocation2 + $0xc4] sm:$0xf] %v982_v55  ;;  %1149 = vst [vmem:[#allocation2 + $0xc8] sm:$0x1] %v1148_v61  ;;  %v2421_v55 = vld [vmem:[#allocation2 + $0xc] sm:$0xe] }
 0x111   : > { %7667 = vmatmul.mubr.bf16.gmra.mrb[4].mxu1 %v6752_v46  ;;  %v3569_v46 = vshrl.u32 %v9465_v51, 16  ;;  %v9607_v51 = vld [vmem:[%s10656_s2 + $0xc0] sm:$0xff]   ;;  %10687 = vst [vmem:[#allocation8_spill] sm:$0xff] %v9609_v11  ;;  %v2422_v39 = vld [vmem:[#allocation2 + $0x18] sm:$0xe]  ;;  %v6777_v45 = vrot.slane %v2424_v20, 9 }
 0x112   : > { %7670 = vmatprep.mubr.bf16.mxu1 %v6753_v22  ;;  %7699 = vmatpush3.bf16.msra.mxu1 %v8373_v59  ;;  %v2473_v22 = vrot.slane %v9514_v36, 5  ;;  %v9615_v61 = vld [vmem:[#allocation2 + $0x70] sm:$0xf]  ;;  %v6775_v28 = vrot.slane %v2422_v39, 9  ;;  %v8482_v53 = vld [vmem:[#allocation2 + $0x20] sm:$0x1]  ;;  %v6763_v39 = vcombine.low %v9484_v5, %v9451_v25 }
 0x113   : > { %7700 = vmatprep.subr.bf16.mxu1 %v8377_v0  ;;  %v9611_v52 = vrot.slane %v3569_v46, 4  ;;  %v2490_v46 = vrot.slane %v8482_v53, 5  ;;  %v8485_v20 = vld [vmem:[#allocation2 + $0x44] sm:$0x1]  ;;  %v2427_v53 = vld [vmem:[#allocation2 + $0x54] sm:$0xe] }
 0x116   : > { %7701 = vmatpush3.bf16.msra.mxu1 %v8377_v0  ;;  %v1198_v26 = vld [vmem:[#allocation2 + $0xc0] sm:$0x1]  ;;  %v4060_v30 = vld [vmem:[#allocation2 + $0xc0] sm:$0xe] }
 0x117   : > { %7702 = vmatprep.subr.bf16.mxu1 %v8381_v21  ;;  %v1253_v33 = vld [vmem:[#allocation2 + $0xc8] sm:$0x1]  ;;  %v3337_v6 = vld [vmem:[#allocation2 + $0xc4] sm:$0xf]  ;;  %v1199_v56 = vsel %vm8667_vm3, 0, %v1198_v26  ;;  %v6924_v27 = vrot.slane %v4060_v30, 9 }
 0x118   : > { %v1254_v60 = vsel %vm8675_vm4, 0, %v1253_v33  ;;  %1200 = vst [vmem:[#allocation2 + $0xc0] sm:$0x1] %v1199_v56  ;;  %v4216_v59 = vrot.slane %v3337_v6, 5  ;;  %v2475_v33 = vrot.slane %v2473_v22, 4 }
 0x119   : > { %7671 = vmatmul.mubr.bf16.gmra.mrb[8].mxu1 %v6754_v10  ;;  %1255 = vst [vmem:[#allocation2 + $0xc8] sm:$0x1] %v1254_v60  ;;  %v2480_v10 = vrot.slane %v9536_v32, 5  ;;  %v2487_v60 = vrot.slane %v9541_v50, 5  ;;  %v8480_v6 = vld [vmem:[#allocation2 + $0x14] sm:$0x1] }
 0x11a   : > { %7674 = vmatprep.mubr.bf16.mxu1 %v6755_v8  ;;  %7703 = vmatpush3.bf16.msra.mxu1 %v8381_v21  ;;  %v4218_v47 = vrot.slane %v4216_v59, 4  ;;  %v4217_v0 = vsel %vm9097_vm14, %v6924_v27, %v4216_v59  ;;  %v6758_v21 = vcombine.low %v8478_v31, %v9615_v61  ;;  %v9619_v8 = vld [vmem:[#allocation2 + $0x7c] sm:$0xf]  ;;  %v2483_v26 = vrot.slane %v8480_v6, 5  ;;  %v9629_v30 = vld [vmem:[#allocation2 + $0x88] sm:$0xf] }
 0x11b   : > { %7704 = vmatprep.subr.bf16.mxu1 %v8387_v2  ;;  %v2501_v50 = vrot.slane %v9556_v29, 5  ;;  %v2482_v59 = vrot.slane %v2480_v10, 4  ;;  %v8384_v27 = vld [vmem:[#allocation2 + $0x24] sm:$0xff]   ;;  %v6776_v29 = vrot.slane %v2423_v1, 9 }
 0x11d   : > { %v9663_v1 = vsel %vm9097_vm14, %v2482_v59, %v2483_v26  ;;  %v9683_v6 = vsel %vm9097_vm14, %v6777_v45, %v2501_v50  ;;  %v2429_v45 = vld [vmem:[#allocation2 + $0x6c] sm:$0xe] }
 0x11e   : > { %7705 = vmatpush3.bf16.msra.mxu1 %v8387_v2  ;;  %v6759_v2 = vcombine.low %v9308_v12, %v9619_v8  ;;  %v6760_v12 = vcombine.low %v9322_v49, %v9629_v30  ;;  %v2489_v49 = vrot.slane %v2487_v60, 4  ;;  %v6782_v32 = vrot.slane %v2429_v45, 9 }
 0x11f   : > { %7706 = vmatprep.subr.bf16.mxu1 %v8393_v34 }
 0x120   : > { %v3338_v54 = vld [vmem:[#allocation2 + $0xc8] sm:$0x1] }
 0x121   : > { %7675 = vmatmul.mubr.bf16.gmra.mrb[12].mxu1 %v6756_v42  ;;  %v4219_v19 = vrot.slane %v3338_v54, 5  ;;  %v9636_v42 = vsel %vm9097_vm14, %v6773_v17, %v2473_v22  ;;  %v8483_v54 = vld [vmem:[#allocation2 + $0x2c] sm:$0x1]  ;;  %v8484_v22 = vld [vmem:[#allocation2 + $0x38] sm:$0x1]  ;;  %v2515_v17 = vrot.slane %v9576_v35, 5  ;;  %v9671_v35 = vsel %vm9097_vm14, %v2489_v49, %v2490_v46 }
 0x122   : > { %7678 = vmatprep.mubr.bf16.mxu1 %v6757_v41  ;;  %7707 = vmatpush3.bf16.msra.mxu1 %v8393_v34  ;;  %v2494_v34 = vrot.slane %v9553_v4, 5  ;;  %v6774_v4 = vrot.slane %v2421_v55, 9  ;;  %v2425_v41 = vld [vmem:[#allocation2 + $0x3c] sm:$0xe]  ;;  %v2497_v63 = vrot.slane %v8483_v54, 5  ;;  %v2503_v55 = vrot.slane %v2501_v50, 4 }
 0x123   : > { %7708 = vmatprep.subr.bf16.mxu1 %v8399_v14  ;;  %v4220_v36 = vsel %vm9097_vm14, %v4218_v47, %v4219_v19  ;;  %v6761_v19 = vcombine.low %v9394_v9, %v9353_v23  ;;  %v8388_v23 = vld [vmem:[#allocation2 + $0x30] sm:$0xff]   ;;  %v8389_v9 = vld [vmem:[%s10656_s2 + $0x1c8] sm:$0xff]   ;;  %v2529_v54 = vrot.slane %v9593_v48, 5  ;;  %v6780_v48 = vrot.slane %v2427_v53, 9 }
 0x124   : > { %v6956_v15 = vcombine.low %v4217_v0, %v4220_v36  ;;  %v2496_v47 = vrot.slane %v2494_v34, 4  ;;  %v2504_v0 = vrot.slane %v8484_v22, 5  ;;  %v6764_v36 = vcombine.low %v9497_v57, %v9477_v40  ;;  %v8486_v49 = vld [vmem:[#allocation2 + $0x50] sm:$0x1] }
 0x125   : > { %v9653_v31 = vsel %vm9097_vm14, %v6774_v4, %v2480_v10  ;;  %v6778_v10 = vrot.slane %v2425_v41, 9  ;;  %v2511_v4 = vrot.slane %v8485_v20, 5  ;;  %v2517_v41 = vrot.slane %v2515_v17, 4  ;;  %v8395_v46 = vld [vmem:[%s10656_s2 + $0x1d0] sm:$0xff]  }
 0x126   : > { %7709 = vmatpush3.bf16.msra.mxu1 %v8399_v14  ;;  %7883 = vmatmul.mubr.bf16.gmra.mrb[28].mxu0 %v6956_v15  ;;  %v9640_v14 = vsel %vm9097_vm14, %v2475_v33, %v2476_v7  ;;  %v2508_v7 = vrot.slane %v9571_v43, 5  ;;  %v9667_v15 = vsel %vm9097_vm14, %v6775_v28, %v2487_v60  ;;  %v9679_v33 = vsel %vm9097_vm14, %v2496_v47, %v2497_v63  ;;  %v4930_v28 = vld [vmem:[#allocation2 + $0x18] sm:$0xf]  ;;  %v2428_v47 = vld [vmem:[#allocation2 + $0x60] sm:$0xe]  ;;  %v8413_v57 = vld [vmem:[%s10656_s2 + $0x1f0] sm:$0xff]  }
 0x127   : > { %7742 = vmatprep.subr.bf16.mxu1 %v9607_v51  ;;  %7902 = vmatprep.mubr.bf16.mxu0 %v8382_v16  ;;  %v6762_v16 = vcombine.low %v9424_v58, %v9406_v38  ;;  %v9687_v60 = vsel %vm9097_vm14, %v2503_v55, %v2504_v0  ;;  %v2518_v50 = vrot.slane %v8486_v49, 5  ;;  %v2536_v22 = vrot.slane %v9615_v61, 5  ;;  %v8401_v61 = vld [vmem:[%s10656_s2 + $0x1d8] sm:$0xff]  }
 0x128   : > { %v2510_v26 = vrot.slane %v2508_v7, 4  ;;  %v4979_v0 = vshrl.u32 %v4930_v28, 16  ;;  %v4982_v55 = vshll.u32 %v4930_v28, 16  ;;  %v6781_v63 = vrot.slane %v2428_v47, 9  ;;  %v8396_v58 = vld [vmem:[#allocation2 + $0x54] sm:$0xff]  }
 0x129   : > { %7679 = vmatmul.mubr.bf16.gmra.mrb[16].mxu1 %v6758_v21  ;;  %v2426_v21 = vld [vmem:[#allocation2 + $0x48] sm:$0xe]  ;;  %v9721_v28 = vsel %vm9097_vm14, %v2517_v41, %v2518_v50  ;;  %v9756_v5 = vsel %vm9097_vm14, %v6782_v32, %v2536_v22  ;;  %v4941_v41 = vld [vmem:[#allocation2 + $0x44] sm:$0x1] }
 0x12a   : > { %7682 = vmatprep.mubr.bf16.mxu1 %v6759_v2  ;;  %v9675_v2 = vsel %vm9097_vm14, %v6776_v29, %v2494_v34  ;;  %v6779_v59 = vrot.slane %v2426_v21, 9  ;;  %v8390_v21 = vld [vmem:[#allocation2 + $0x3c] sm:$0xff]   ;;  %v9710_v20 = vsel %vm9097_vm14, %v2510_v26, %v2511_v4  ;;  %v4933_v4 = vld [vmem:[#allocation2 + $0x24] sm:$0xf]  ;;  %v4981_v34 = vrot.slane %v4979_v0, 4  ;;  %10691 = vst [vmem:[#allocation12_spill] sm:$0xff] %v9756_v5 }
 0x12b   : > { %v4932_v29 = vld [vmem:[#allocation2 + $0x20] sm:$0x1]  ;;  %v4984_v43 = vrot.slane %v4982_v55, 5  ;;  %v5003_v47 = vshrl.u32 %v4933_v4, 16  ;;  %v9875_v5 = vld [vmem:[#allocation2 + $0x58] sm:$0xf] }
 0x12c   : > { %v4998_v38 = vshll.u32 %v4932_v29, 16  ;;  %v4935_v29 = vld [vmem:[#allocation2 + $0x2c] sm:$0x1] }
 0x12e   : > { %7903 = vmatmul.mubr.bf16.vlgmr.msra.gmra.mrb[0].mxu0 %v8384_v27  ;;  %v2522_v27 = vrot.slane %v9590_v13, 5  ;;  %v4931_v13 = vld [vmem:[#allocation2 + $0x1c] sm:$0xf] }
 0x12f   : > { %7935 = vmatpush3.bf16.msra.mxu0 %v9368_v24  ;;  %7906 = vmatprep.mubr.bf16.mxu0 %v8388_v23  ;;  %v8394_v23 = vld [vmem:[#allocation2 + $0x48] sm:$0xff]   ;;  %v4988_v3 = vshll.u32 %v4931_v13, 16  ;;  %v4992_v26 = vshrl.u32 %v4931_v13, 16  ;;  %v8489_v24 = vld [vmem:[#allocation2 + $0x74] sm:$0x1]  ;;  %v5006_v13 = vshll.u32 %v4933_v4, 16 }
 0x130   : > { %7936 = vmatprep.subr.bf16.mxu0 %v8389_v9  ;;  %v2524_v49 = vrot.slane %v2522_v27, 4  ;;  %v2539_v56 = vrot.slane %v8489_v24, 5  ;;  %v9727_v50 = vsel %vm9097_vm14, %v6780_v48, %v2522_v27 }
 0x131   : > { %7683 = vmatmul.mubr.bf16.gmra.mrb[20].mxu1 %v6760_v12  ;;  %v9702_v12 = vsel %vm9097_vm14, %v6778_v10, %v2508_v7  ;;  %v9714_v7 = vsel %vm9097_vm14, %v6779_v59, %v2515_v17  ;;  %v2531_v17 = vrot.slane %v2529_v54, 4  ;;  %v8488_v59 = vld [vmem:[#allocation2 + $0x68] sm:$0x1]  ;;  %v9732_v45 = vrot.slane %v4988_v3, 5 }
 0x132   : > { %7686 = vmatprep.mubr.bf16.mxu1 %v6761_v19  ;;  %v8487_v19 = vld [vmem:[#allocation2 + $0x5c] sm:$0x1]  ;;  %v2532_v53 = vrot.slane %v8488_v59, 5  ;;  %v4994_v24 = vrot.slane %v4992_v26, 4  ;;  %v9745_v3 = vsel %vm9097_vm14, %v6781_v63, %v2529_v54  ;;  %v5005_v54 = vrot.slane %v5003_v47, 4  ;;  %v8400_v26 = vld [vmem:[#allocation2 + $0x60] sm:$0xff]  }
 0x133   : > { %v2525_v10 = vrot.slane %v8487_v19, 5  ;;  %7937 = vmatpush3.bf16.msra.mxu0 %v8389_v9  ;;  %v4934_v19 = vld [vmem:[#allocation2 + $0x28] sm:$0xf]  ;;  %v2538_v9 = vrot.slane %v2536_v22, 4  ;;  %10689 = vst [vmem:[#allocation10_spill] sm:$0xff] %v9745_v3  ;;  %v5008_v63 = vrot.slane %v5006_v13, 5 }
 0x134   : > { %7938 = vmatprep.subr.bf16.mxu0 %v8395_v46  ;;  %v5012_v0 = vshll.u32 %v4934_v19, 16  ;;  %v5016_v55 = vshrl.u32 %v4934_v19, 16  ;;  %v9752_v25 = vsel %vm9097_vm14, %v2531_v17, %v2532_v53  ;;  %v4995_v17 = vor.u32 %v4994_v24, %v9732_v45  ;;  %v2430_v22 = vld [vmem:[#allocation2 + $0x78] sm:$0xe] }
 0x135   : > { %v9741_v48 = vsel %vm9097_vm14, %v2524_v49, %v2525_v10  ;;  %10690 = vst [vmem:[#allocation11_spill] sm:$0xff] %v9752_v25  ;;  %v9774_v53 = vrot.slane %v4998_v38, 5  ;;  %v5022_v19 = vshll.u32 %v4935_v29, 16  ;;  %v2543_v13 = vrot.slane %v9619_v8, 5  ;;  %v8495_v25 = vld [vmem:[#allocation2 + $0xa4] sm:$0x1] }
 0x136   : > { %7907 = vmatmul.mubr.bf16.gmra.mrb[4].mxu0 %v8390_v21  ;;  %v4936_v21 = vld [vmem:[#allocation2 + $0x30] sm:$0xf]  ;;  %10688 = vst [vmem:[#allocation9_spill] sm:$0xff] %v9741_v48  ;;  %v9765_v59 = vrot.slane %v5012_v0, 5  ;;  %v5018_v32 = vrot.slane %v5016_v55, 4  ;;  %v5009_v55 = vor.u32 %v5008_v63, %v5005_v54  ;;  %v9782_v38 = vrot.slane %v4995_v17, 4 }
 0x137   : > { %7910 = vmatprep.mubr.bf16.mxu0 %v8394_v23  ;;  %7939 = vmatpush3.bf16.msra.mxu0 %v8395_v46  ;;  %v4985_v46 = vor.u32 %v4984_v43, %v4981_v34  ;;  %v4937_v23 = vld [vmem:[#allocation2 + $0x34] sm:$0xf]  ;;  %v5027_v10 = vshrl.u32 %v4936_v21, 16  ;;  %v5030_v49 = vshll.u32 %v4936_v21, 16  ;;  %v4940_v0 = vld [vmem:[#allocation2 + $0x40] sm:$0xf]  ;;  %v10693_v8 = vcombine.low %v9636_v42, %v9640_v14 }
 0x138   : > { %7940 = vmatprep.subr.bf16.mxu0 %v8401_v61  ;;  %v5040_v24 = vshrl.u32 %v4937_v23, 16  ;;  %v6783_v21 = vrot.slane %v2430_v22, 9  ;;  %v8490_v54 = vld [vmem:[#allocation2 + $0x80] sm:$0x1]  ;;  %v5064_v40 = vshrl.u32 %v4940_v0, 16  ;;  %v2545_v42 = vrot.slane %v2543_v13, 4 }
 0x139   : > { %7687 = vmatmul.mubr.bf16.gmra.mrb[24].mxu1 %v6762_v16  ;;  %v8405_v16 = vld [vmem:[%s10656_s2 + $0x1e0] sm:$0xff]   ;;  %v9776_v47 = vrot.slane %v4985_v46, 4  ;;  %v5029_v4 = vrot.slane %v5027_v10, 4  ;;  %v5032_v43 = vrot.slane %v5030_v49, 5  ;;  %v5019_v46 = vor.u32 %v5018_v32, %v9765_v59  ;;  %v4938_v14 = vld [vmem:[#allocation2 + $0x38] sm:$0x1] }
 0x13a   : > { %7690 = vmatprep.mubr.bf16.mxu1 %v6763_v39  ;;  %v9760_v39 = vsel %vm9097_vm14, %v2538_v9, %v2539_v56  ;;  %v8409_v56 = vld [vmem:[%s10656_s2 + $0x1e8] sm:$0xff]   ;;  %v4939_v9 = vld [vmem:[#allocation2 + $0x3c] sm:$0xf]  ;;  %v2546_v63 = vrot.slane %v8490_v54, 5  ;;  %v5060_v10 = vshll.u32 %v4940_v0, 16  ;;  %v5042_v49 = vrot.slane %v5040_v24, 4 }
 0x13b   : > { %10692 = vst [vmem:[#allocation13_spill] sm:$0xff] %v9760_v39  ;;  %7941 = vmatpush3.bf16.msra.mxu0 %v8401_v61  ;;  %v5036_v61 = vshll.u32 %v4937_v23, 16  ;;  %v5051_v29 = vshrl.u32 %v4939_v9, 16  ;;  %v5054_v34 = vshll.u32 %v4939_v9, 16  ;;  %v2431_v23 = vld [vmem:[#allocation2 + $0x84] sm:$0xe]  ;;  %v9803_v32 = vsel %vm9097_vm14, %v6783_v21, %v2543_v13 }
 0x13c   : > { %7942 = vmatprep.subr.bf16.mxu0 %v8405_v16  ;;  %v9799_v17 = vrot.slane %v5009_v55, 4  ;;  %v2550_v22 = vrot.slane %v9629_v30, 5  ;;  %v4942_v9 = vld [vmem:[#allocation2 + $0x48] sm:$0xf]  ;;  %v8404_v0 = vld [vmem:[#allocation2 + $0x78] sm:$0xff]   ;;  %v6784_v55 = vrot.slane %v2431_v23, 9 }
 0x13d   : > { %v5053_v24 = vrot.slane %v5051_v29, 4  ;;  %v5056_v54 = vrot.slane %v5054_v34, 5  ;;  %v5046_v27 = vshll.u32 %v4938_v14, 16  ;;  %v9812_v13 = vrot.slane %v5060_v10, 5  ;;  %v8407_v30 = vld [vmem:[%s10656_s2 + $0xc8] sm:$0xff]  }
 0x13e   : > { %7911 = vmatmul.mubr.bf16.gmra.mrb[8].mxu0 %v8396_v58  ;;  %v9788_v58 = vrot.slane %v5022_v19, 5  ;;  %v5033_v19 = vor.u32 %v5032_v43, %v5029_v4  ;;  %v5066_v21 = vrot.slane %v5064_v40, 4  ;;  %v9819_v4 = vsel %vm9097_vm14, %v2545_v42, %v2546_v63  ;;  %v8491_v10 = vld [vmem:[#allocation2 + $0x8c] sm:$0x1]  ;;  %v2432_v29 = vld [vmem:[#allocation2 + $0x90] sm:$0xe] }
 0x13f   : > { %7914 = vmatprep.mubr.bf16.mxu0 %v8400_v26  ;;  %7943 = vmatpush3.bf16.msra.mxu0 %v8405_v16  ;;  %v9797_v16 = vrot.slane %v5036_v61, 5  ;;  %v8402_v26 = vld [vmem:[#allocation2 + $0x6c] sm:$0xff]   ;;  %v9810_v61 = vrot.slane %v5019_v46, 4  ;;  %v5075_v46 = vshrl.u32 %v4942_v9, 16  ;;  %v5078_v34 = vshll.u32 %v4942_v9, 16 }
 0x140   : > { %7944 = vmatprep.subr.bf16.mxu0 %v8409_v56  ;;  %v2552_v23 = vrot.slane %v2550_v22, 4  ;;  %v2553_v40 = vrot.slane %v8491_v10, 5  ;;  %v9829_v14 = vrot.slane %v5033_v19, 4  ;;  %v9831_v63 = vld [vmem:[#allocation2 + $0x4c] sm:$0xf]  ;;  %v10695_v42 = vcombine.low %v9653_v31, %v9663_v1  ;;  %v8406_v19 = vld [vmem:[#allocation2 + $0x84] sm:$0xff]  }
 0x141   : > { %7691 = vmatmul.mubr.bf16.gmra.mrb[28].mxu1 %v6764_v36  ;;  %v5043_v43 = vor.u32 %v5042_v49, %v9797_v16  ;;  %10694 = vst [vmem:[#allocation14_spill] sm:$0xff] %v9831_v63  ;;  %v5070_v9 = vshll.u32 %v4941_v41, 16  ;;  %v8492_v36 = vld [vmem:[#allocation2 + $0x94] sm:$0xf]  ;;  %v10696_v10 = vcombine.low %v9667_v15, %v9671_v35  ;;  %v9849_v1 = vsel %vm9097_vm14, %v6784_v55, %v2550_v22  ;;  %v2433_v15 = vld [vmem:[#allocation2 + $0x9c] sm:$0xe] }
 0x142   : > { %7710 = vmatprep.mubr.bf16.mxu1 %v10693_v8  ;;  %v2557_v8 = vrot.slane %v8492_v36, 5  ;;  %v8411_v31 = vld [vmem:[%s10656_s2 + $0xd0] sm:$0xff]   ;;  %v5067_v41 = vor.u32 %v5066_v21, %v9812_v13  ;;  %v8493_v36 = vld [vmem:[#allocation2 + $0xa0] sm:$0xf]  ;;  %v5077_v35 = vrot.slane %v5075_v46, 4  ;;  %v9864_v22 = vsel %vm9097_vm14, %v2552_v23, %v2553_v40 }
 0x143   : > { %7945 = vmatpush3.bf16.msra.mxu0 %v8409_v56  ;;  %v8417_v56 = vld [vmem:[%s10656_s2 + $0x1f8] sm:$0xff]   ;;  %v6785_v55 = vrot.slane %v2432_v29, 9  ;;  %v5088_v21 = vshrl.u32 %v9831_v63, 16  ;;  %v6786_v40 = vrot.slane %v2433_v15, 9  ;;  %v2567_v3 = vrot.slane %v8495_v25, 5 }
 0x144   : > { %7946 = vmatprep.subr.bf16.mxu0 %v8413_v57  ;;  %v8494_v49 = vld [vmem:[#allocation2 + $0x98] sm:$0x1]  ;;  %v5068_v23 = vrot.slane %v5067_v41, 4  ;;  %v9889_v15 = vld [vmem:[#allocation2 + $0x5c] sm:$0x1]  ;;  %v10697_v48 = vshll.u32 %v9469_v44, 16  ;;  %v10700_v44 = vor.u32 %v9611_v52, %v9609_v11 }
 0x145   : > { %v2560_v39 = vrot.slane %v8494_v49, 5  ;;  %v8415_v29 = vld [vmem:[%s10656_s2 + $0xd8] sm:$0xff]   ;;  %v9884_v49 = vld [vmem:[#allocation2 + $0x50] sm:$0x1]  ;;  %v5090_v25 = vrot.slane %v5088_v21, 4  ;;  %v8412_v21 = vld [vmem:[#allocation2 + $0xa8] sm:$0xff]  }
 0x146   : > { %7915 = vmatmul.mubr.bf16.gmra.mrb[12].mxu0 %v8402_v26  ;;  %v5057_v26 = vor.u32 %v5056_v54, %v5053_v24  ;;  %v2564_v24 = vrot.slane %v8493_v36, 5  ;;  %v5080_v54 = vrot.slane %v5078_v34, 5  ;;  %v9873_v34 = vrot.slane %v5070_v9, 5  ;;  %v2434_v52 = vld [vmem:[#allocation2 + $0xa8] sm:$0xe] }
 0x147   : > { %7918 = vmatprep.mubr.bf16.mxu0 %v8404_v0  ;;  %v9851_v0 = vrot.slane %v5046_v27, 5  ;;  %7947 = vmatpush3.bf16.msra.mxu0 %v8413_v57  ;;  %v9860_v27 = vld [vmem:[%s10656_s2 + $0x200] sm:$0xff]   ;;  %v2559_v36 = vrot.slane %v2557_v8, 4 }
 0x148   : > { %7948 = vmatprep.subr.bf16.mxu0 %v8417_v56  ;;  %v9871_v46 = vrot.slane %v5057_v26, 4  ;;  %v2566_v18 = vrot.slane %v2564_v24, 4  ;;  %v5081_v9 = vor.u32 %v5080_v54, %v5077_v35  ;;  %v9906_v35 = vsel %vm9097_vm14, %v6785_v55, %v2557_v8  ;;  %v4957_v11 = vld [vmem:[#allocation2 + $0x84] sm:$0xf] }
 0x149   : > { %7711 = vmatmul.mubr.bf16.vlgmr.msra.gmra.mrb[0].mxu1 %v10695_v42  ;;  %v5084_v42 = vshll.u32 %v9831_v63, 16  ;;  %v5112_v63 = vshrl.u32 %v9875_v5, 16  ;;  %v9910_v54 = vsel %vm9097_vm14, %v2559_v36, %v2560_v39  ;;  %v9925_v8 = vsel %vm9097_vm14, %v6786_v40, %v2564_v24  ;;  %v8410_v24 = vld [vmem:[#allocation2 + $0x9c] sm:$0xff]  }
 0x14a   : > { %7743 = vmatpush3.bf16.msra.mxu1 %v9607_v51  ;;  %7714 = vmatprep.mubr.bf16.mxu1 %v10696_v10  ;;  %v9854_v51 = vrot.slane %v5043_v43, 4  ;;  %v8408_v10 = vld [vmem:[#allocation2 + $0x90] sm:$0xff]   ;;  %v9929_v39 = vsel %vm9097_vm14, %v2566_v18, %v2567_v3 }
 0x14b   : > { %7744 = vmatprep.subr.bf16.mxu1 %v8407_v30  ;;  %v4945_v43 = vld [vmem:[#allocation2 + $0x54] sm:$0xf]  ;;  %7949 = vmatpush3.bf16.msra.mxu0 %v8417_v56  ;;  %v5108_v56 = vshll.u32 %v9875_v5, 16  ;;  %v5114_v3 = vrot.slane %v5112_v63, 4  ;;  %v10705_v63 = vsel %vm8731_vm9, %v9810_v61, %v9788_v58 }
 0x14c   : > { %v5049_v26 = vsel %vm8731_vm9, %v9854_v51, %v9851_v0  ;;  %v5099_v41 = vshrl.u32 %v4945_v43, 16  ;;  %7982 = vmatprep.subr.bf16.mxu0 %v9860_v27  ;;  %v5102_v57 = vshll.u32 %v4945_v43, 16  ;;  %v9895_v0 = vrot.slane %v10697_v48, 5  ;;  %v9980_v61 = vld [vmem:[#allocation2 + $0xb4] sm:$0xe] }
 0x14d   : > { %v10699_v51 = vcombine.low %v9675_v2, %v9679_v33  ;;  %v9915_v48 = vrot.slane %v10700_v44, 4  ;;  %v10702_v2 = vcombine.low %v9683_v6, %v9687_v60  ;;  %v5073_v33 = vsel %vm8731_vm9, %v5068_v23, %v9873_v34  ;;  %v8419_v6 = vld [vmem:[%s10656_s2 + $0xe0] sm:$0xff]   ;;  %v8496_v23 = vld [vmem:[#allocation2 + $0xac] sm:$0xf] }
 0x14e   : > { %7745 = vmatpush3.bf16.msra.mxu1 %v8407_v30  ;;  %v9886_v30 = vrot.slane %v5084_v42, 5  ;;  %7919 = vmatmul.mubr.bf16.gmra.mrb[16].mxu0 %v8406_v19  ;;  %10698 = vst [vmem:[#allocation15_spill] sm:$0xff] %v9895_v0  ;;  %v5063_v19 = vsel %vm8731_vm9, %v9871_v46, %v9812_v13  ;;  %v9934_v60 = vrot.slane %v5081_v9, 4  ;;  %v5094_v13 = vshll.u32 %v9884_v49, 16  ;;  %v4948_v9 = vld [vmem:[#allocation2 + $0x60] sm:$0xf] }
 0x14f   : > { %7746 = vmatprep.subr.bf16.mxu1 %v8411_v31  ;;  %7922 = vmatprep.mubr.bf16.mxu0 %v8408_v10  ;;  %10701 = vst [vmem:[#allocation16_spill] sm:$0xff] %v9915_v48  ;;  %v5118_v42 = vshll.u32 %v9889_v15, 16  ;;  %v5104_v55 = vrot.slane %v5102_v57, 5  ;;  %v9941_v18 = vrot.slane %v5108_v56, 5  ;;  %v10703_v43 = vsel %vm8731_vm9, %v9782_v38, %v9774_v53 }
 0x150   : > { %v5091_v10 = vor.u32 %v5090_v25, %v9886_v30  ;;  %v10704_v46 = vsel %vm8731_vm9, %v9776_v47, %v9732_v45  ;;  %v6787_v57 = vrot.slane %v2434_v52, 9  ;;  %v2571_v40 = vrot.slane %v8496_v23, 5  ;;  %v4951_v25 = vld [vmem:[#allocation2 + $0x6c] sm:$0xf] }
 0x151   : > { %7715 = vmatmul.mubr.bf16.gmra.mrb[4].mxu1 %v10699_v51  ;;  %v9953_v34 = vcombine.low %v10704_v46, %v10703_v43  ;;  %v10706_v53 = vsel %vm8731_vm9, %v9799_v17, %v9765_v59  ;;  %v10707_v38 = vsel %vm8731_vm9, %v9829_v14, %v9797_v16  ;;  %v8421_v59 = vld [vmem:[%s10656_s2 + $0xe8] sm:$0xff]   ;;  %v9985_v17 = vcombine.low %v5063_v19, %v5073_v33  ;;  %v4954_v33 = vld [vmem:[#allocation2 + $0x78] sm:$0xf]  ;;  %v8423_v46 = vld [vmem:[%s10656_s2 + $0xf0] sm:$0xff]  }
 0x152   : > { %7718 = vmatprep.mubr.bf16.mxu1 %v10702_v2  ;;  %7747 = vmatpush3.bf16.msra.mxu1 %v8411_v31  ;;  %v9937_v31 = vrot.slane %v5099_v41, 4  ;;  %v9967_v45 = vcombine.low %v10706_v53, %v10705_v63  ;;  %v9993_v14 = vrot.slane %v5094_v13, 5  ;;  %v5092_v56 = vrot.slane %v5091_v10, 4  ;;  %v10001_v2 = vld [vmem:[#allocation2 + $0x70] sm:$0xf]  ;;  %v8425_v41 = vld [vmem:[%s10656_s2 + $0xf8] sm:$0xff]  }
 0x153   : > { %7748 = vmatprep.subr.bf16.mxu1 %v8415_v29  ;;  %v5115_v19 = vor.u32 %v5114_v3, %v9941_v18  ;;  %v9999_v44 = vrot.slane %v5118_v42, 5  ;;  %v10708_v52 = vcombine.low %v9702_v12, %v9710_v20  ;;  %v10008_v13 = vsel %vm9097_vm14, %v6787_v57, %v2571_v40  ;;  %v8497_v10 = vld [vmem:[#allocation2 + $0xb0] sm:$0x1] }
 0x154   : > { %v5105_v51 = vor.u32 %v5104_v55, %v9937_v31  ;;  %v2574_v43 = vrot.slane %v8497_v10, 5  ;;  %v6788_v31 = vrot.slane %v9980_v61, 9  ;;  %v10011_v55 = vld [vmem:[#allocation2 + $0x7c] sm:$0xf]  ;;  %v10710_v42 = vcombine.low %v9714_v7, %v9721_v28  ;;  %v8414_v7 = vld [vmem:[#allocation2 + $0xb4] sm:$0xff]   ;;  %v8416_v61 = vld [vmem:[#allocation2 + $0xc0] sm:$0xff]  }
 0x155   : > { %10709 = vst [vmem:[#allocation17_spill] sm:$0xff] %v10011_v55  ;;  %v5123_v3 = vshrl.u32 %v4948_v9, 16  ;;  %v5126_v12 = vshll.u32 %v4948_v9, 16  ;;  %v5147_v57 = vshrl.u32 %v4951_v25, 16  ;;  %v5150_v23 = vshll.u32 %v4951_v25, 16 }
 0x156   : > { %7749 = vmatpush3.bf16.msra.mxu1 %v8415_v29  ;;  %v9976_v29 = vcombine.low %v10707_v38, %v5049_v26  ;;  %v9995_v26 = vld [vmem:[#allocation2 + $0x64] sm:$0xf]  ;;  %7923 = vmatmul.mubr.bf16.gmra.mrb[20].mxu0 %v8410_v24  ;;  %v2573_v24 = vrot.slane %v2571_v40, 4  ;;  %v5156_v40 = vshll.u32 %v10001_v2, 16  ;;  %v5160_v63 = vshrl.u32 %v10001_v2, 16 }
 0x157   : > { %7750 = vmatprep.subr.bf16.mxu1 %v8419_v6  ;;  %7926 = vmatprep.mubr.bf16.mxu0 %v8412_v21  ;;  %v5132_v20 = vshll.u32 %v9995_v26, 16  ;;  %v5136_v21 = vshrl.u32 %v9995_v26, 16  ;;  %v5171_v28 = vshrl.u32 %v4954_v33, 16  ;;  %v5180_v53 = vshll.u32 %v10011_v55, 16  ;;  %v8498_v25 = vld [vmem:[#allocation2 + $0xb8] sm:$0xf] }
 0x158   : > { %v5184_v38 = vshrl.u32 %v10011_v55, 16  ;;  %v5097_v9 = vsel %vm8731_vm9, %v5092_v56, %v9993_v14  ;;  %v10030_v10 = vrot.slane %v5115_v19, 4  ;;  %v5125_v58 = vrot.slane %v5123_v3, 4  ;;  %v10039_v14 = vld [vmem:[#allocation2 + $0x74] sm:$0x1] }
 0x159   : > { %7719 = vmatmul.mubr.bf16.gmra.mrb[8].mxu1 %v10708_v52  ;;  %v10028_v52 = vrot.slane %v5105_v51, 4  ;;  %v5128_v47 = vrot.slane %v5126_v12, 5  ;;  %v10037_v36 = vrot.slane %v5132_v20, 5  ;;  %v5138_v16 = vrot.slane %v5136_v21, 4  ;;  %v10045_v3 = vld [vmem:[#allocation2 + $0x88] sm:$0xf] }
 0x15a   : > { %7722 = vmatprep.mubr.bf16.mxu1 %v10710_v42  ;;  %7751 = vmatpush3.bf16.msra.mxu1 %v8419_v6  ;;  %v5174_v6 = vshll.u32 %v4954_v33, 16  ;;  %v2578_v42 = vrot.slane %v8498_v25, 5  ;;  %v10035_v33 = vld [vmem:[#allocation2 + $0x68] sm:$0x1]  ;;  %v5149_v56 = vrot.slane %v5147_v57, 4  ;;  %v5152_v51 = vrot.slane %v5150_v23, 5 }
 0x15b   : > { %7752 = vmatprep.subr.bf16.mxu1 %v8421_v59  ;;  %v10041_v19 = vrot.slane %v5156_v40, 5  ;;  %v5162_v25 = vrot.slane %v5160_v63, 4  ;;  %v5173_v55 = vrot.slane %v5171_v28, 4  ;;  %v10043_v0 = vrot.slane %v5180_v53, 5  ;;  %10711 = vst [vmem:[#allocation18_spill] sm:$0xff] %v10045_v3  ;;  %v10712_v12 = vld [vmem:[#allocation9_spill] sm:$0xff] }
 0x15c   : > { %v5176_v48 = vrot.slane %v5174_v6, 5  ;;  %v10713_v20 = vcombine.low %v9727_v50, %v10712_v12  ;;  %v10714_v21 = vsel %vm8731_vm9, %v9934_v60, %v9886_v30  ;;  %v8499_v23 = vld [vmem:[#allocation2 + $0xbc] sm:$0x1]  ;;  %v10057_v63 = vld [vmem:[#allocation2 + $0x80] sm:$0x1]  ;;  %v5198_v28 = vshll.u32 %v4957_v11, 16 }
 0x15d   : > { %v10055_v57 = vcombine.low %v10714_v21, %v5097_v9  ;;  %v2581_v40 = vrot.slane %v8499_v23, 5  ;;  %v10715_v6 = vld [vmem:[#allocation10_spill] sm:$0xff]  ;;  %v10716_v53 = vld [vmem:[#allocation11_spill] sm:$0xff]  ;;  %v10064_v50 = vsel %vm9097_vm14, %v2573_v24, %v2574_v43  ;;  %v10068_v30 = vsel %vm9097_vm14, %v6788_v31, %v2578_v42 }
 0x15e   : > { %7753 = vmatpush3.bf16.msra.mxu1 %v8421_v59  ;;  %7927 = vmatmul.mubr.bf16.gmra.mrb[24].mxu0 %v8414_v7  ;;  %v5186_v59 = vrot.slane %v5184_v38, 4  ;;  %v5195_v7 = vshrl.u32 %v4957_v11, 16  ;;  %v10717_v38 = vcombine.low %v10715_v6, %v10716_v53  ;;  %v5129_v60 = vor.u32 %v5128_v47, %v5125_v58  ;;  %v1256_v9 = vld [vmem:[#allocation2 + $0xd4] sm:$0x1]  ;;  %v8418_v21 = vld [vmem:[#allocation2 + $0xcc] sm:$0xff]  }
 0x15f   : > { %7754 = vmatprep.subr.bf16.mxu1 %v8423_v46  ;;  %7930 = vmatprep.mubr.bf16.mxu0 %v8416_v61  ;;  %v5142_v61 = vshll.u32 %v10035_v33, 16  ;;  %v5139_v11 = vor.u32 %v5138_v16, %v10037_v36  ;;  %v5153_v12 = vor.u32 %v5152_v51, %v5149_v56  ;;  %v5177_v23 = vor.u32 %v5176_v48, %v5173_v55  ;;  %v4960_v53 = vld [vmem:[#allocation2 + $0x90] sm:$0xf] }
 0x160   : > { %v5187_v24 = vor.u32 %v5186_v59, %v10043_v0  ;;  %v5190_v43 = vshll.u32 %v10057_v63, 16  ;;  %v5204_v31 = vshll.u32 %v10045_v3, 16  ;;  %v5197_v47 = vrot.slane %v5195_v7, 4 }
 0x161   : > { %7723 = vmatmul.mubr.bf16.gmra.mrb[12].mxu1 %v10713_v20  ;;  %v5163_v20 = vor.u32 %v5162_v25, %v10041_v19  ;;  %v5200_v58 = vrot.slane %v5198_v28, 5  ;;  %v5208_v6 = vshrl.u32 %v10045_v3, 16  ;;  %v1257_v16 = vsel %vm8675_vm4, 0, %v1256_v9  ;;  %v10087_v3 = vld [vmem:[%s10656_s2 + $0x100] sm:$0xff]   ;;  %v10090_v9 = vld [vmem:[#allocation2 + $0x94] sm:$0xf] }
 0x162   : > { %7726 = vmatprep.mubr.bf16.mxu1 %v10717_v38  ;;  %7755 = vmatpush3.bf16.msra.mxu1 %v8423_v46  ;;  %v5166_v46 = vshll.u32 %v10039_v14, 16  ;;  %v5111_v56 = vsel %vm8731_vm9, %v10028_v52, %v9941_v18  ;;  %v2580_v48 = vrot.slane %v2578_v42, 4  ;;  %v5130_v55 = vrot.slane %v5129_v60, 4  ;;  %1258 = vst [vmem:[#allocation2 + $0xd4] sm:$0x1] %v1257_v16  ;;  %10719 = vst [vmem:[#allocation9_spill] sm:$0xff] %v10087_v3 }
 0x163   : > { %7756 = vmatprep.subr.bf16.mxu1 %v8425_v41  ;;  %v5144_v51 = vrot.slane %v5142_v61, 5  ;;  %v5140_v25 = vrot.slane %v5139_v11, 4  ;;  %v5154_v59 = vrot.slane %v5153_v12, 4  ;;  %v5164_v7 = vrot.slane %v5163_v20, 4  ;;  %v10721_v60 = vld [vmem:[#allocation12_spill] sm:$0xff]  ;;  %v10722_v61 = vld [vmem:[#allocation13_spill] sm:$0xff] }
 0x164   : > { %v5168_v28 = vrot.slane %v5166_v46, 5  ;;  %v10720_v38 = vmov 0   ;;  %v5178_v18 = vrot.slane %v5177_v23, 4  ;;  %v5192_v52 = vrot.slane %v5190_v43, 5  ;;  %v10097_v20 = vld [vmem:[#allocation2 + $0x8c] sm:$0x1] }
 0x165   : > { %1373 = vst [vmem:[#allocation2 + $0xd4] sm:$0x1] %v10720_v38  ;;  %v5222_v42 = vshll.u32 %v4960_v53, 16  ;;  %v10723_v11 = vcombine.low %v10721_v60, %v10722_v61  ;;  %v5188_v12 = vrot.slane %v5187_v24, 4  ;;  %v5201_v46 = vor.u32 %v5200_v58, %v5197_v47  ;;  %v4963_v47 = vld [vmem:[#allocation2 + $0x9c] sm:$0xf] }
 0x166   : > { %7757 = vmatpush3.bf16.msra.mxu1 %v8425_v41  ;;  %7931 = vmatmul.mubr.bf16.gmra.mrb[28].mxu0 %v8418_v21  ;;  %v5219_v41 = vshrl.u32 %v4960_v53, 16  ;;  %v10099_v16 = vrot.slane %v5204_v31, 5  ;;  %v10724_v21 = vcombine.low %v9803_v32, %v9819_v4  ;;  %v5121_v23 = vsel %vm8731_vm9, %v10030_v10, %v9999_v44  ;;  %v10124_v10 = vld [vmem:[#allocation2 + $0x98] sm:$0x1]  ;;  %v5688_v38 = vld [vmem:[#allocation2 + $0x48] sm:$0xe] }
 0x167   : > { %8030 = vmatprep.subr.bf16.mxu1 %v10087_v3  ;;  %7950 = vmatprep.mubr.bf16.mxu0 %v9953_v34  ;;  %v5210_v3 = vrot.slane %v5208_v6, 4  ;;  %v6819_v43 = vcombine.low %v10008_v13, %v10064_v50  ;;  %v5228_v34 = vshll.u32 %v10090_v9, 16  ;;  %v5232_v24 = vshrl.u32 %v10090_v9, 16  ;;  %v10156_v61 = vld [vmem:[#allocation2 + $0xa0] sm:$0xf] }
 0x168   : > { %v10114_v31 = vsel %vm9097_vm14, %v2580_v48, %v2581_v40  ;;  %v5135_v32 = vsel %vm8731_vm9, %v5130_v55, %v10037_v36  ;;  %v5145_v4 = vsel %vm8731_vm9, %v5140_v25, %v5144_v51  ;;  %v5159_v44 = vsel %vm8731_vm9, %v5154_v59, %v10041_v19  ;;  %v8422_v36 = vld [vmem:[%s10656_s2 + $0x208] sm:$0xff]   ;;  %v8429_v13 = vld [vmem:[%s10656_s2 + $0x220] sm:$0xff]  }
 0x169   : > { %7727 = vmatmul.mubr.bf16.gmra.mrb[16].mxu1 %v10723_v11  ;;  %v5169_v58 = vsel %vm8731_vm9, %v5164_v7, %v5168_v28  ;;  %v5214_v40 = vshll.u32 %v10097_v20, 16  ;;  %v5221_v6 = vrot.slane %v5219_v41, 4  ;;  %v5224_v53 = vrot.slane %v5222_v42, 5 }
 0x16a   : > { %7730 = vmatprep.mubr.bf16.mxu1 %v10724_v21  ;;  %v5183_v48 = vsel %vm8731_vm9, %v5178_v18, %v10043_v0  ;;  %v5193_v19 = vsel %vm8731_vm9, %v5188_v12, %v5192_v52  ;;  %v10137_v55 = vrot.slane %v5201_v46, 4  ;;  %v5211_v51 = vor.u32 %v5210_v3, %v10099_v16  ;;  %v5689_v12 = vld [vmem:[#allocation2 + $0x54] sm:$0xe] }
 0x16b   : > { %v10140_v25 = vrot.slane %v5228_v34, 5  ;;  %v5234_v59 = vrot.slane %v5232_v24, 4  ;;  %v5238_v7 = vshll.u32 %v10124_v10, 16  ;;  %v5243_v28 = vshrl.u32 %v4963_v47, 16 }
 0x16c   : > { %v10143_v41 = vcombine.low %v5111_v56, %v5121_v23  ;;  %v6820_v42 = vcombine.low %v10068_v30, %v10114_v31  ;;  %v10147_v0 = vcombine.low %v5135_v32, %v5145_v4  ;;  %v10149_v18 = vcombine.low %v5159_v44, %v5169_v58  ;;  %v10726_v23 = vld [vmem:[#allocation14_spill] sm:$0xff]  ;;  %v5690_v4 = vld [vmem:[#allocation2 + $0x60] sm:$0xe] }
 0x16d   : > { %v10152_v52 = vcombine.low %v5183_v48, %v5193_v19  ;;  %v10154_v3 = vrot.slane %v5214_v40, 5  ;;  %v5225_v60 = vor.u32 %v5224_v53, %v5221_v6  ;;  %v5246_v11 = vshll.u32 %v4963_v47, 16  ;;  %v5691_v19 = vld [vmem:[#allocation2 + $0x6c] sm:$0xe] }
 0x16e   : > { %7951 = vmatmul.mubr.bf16.vlgmr.msra.gmra.mrb[0].mxu0 %v9967_v45  ;;  %v10725_v56 = vcombine.low %v9849_v1, %v9864_v22  ;;  %v5207_v45 = vsel %vm8731_vm9, %v10137_v55, %v10099_v16  ;;  %v10166_v46 = vrot.slane %v5211_v51, 4  ;;  %v7049_v21 = vrot.slane %v5688_v38, 9  ;;  %v10209_v38 = vld [vmem:[#allocation2 + $0xa4] sm:$0x1] }
 0x16f   : > { %7983 = vmatpush3.bf16.msra.mxu0 %v9860_v27  ;;  %v5778_v34 = vrot.slane %v10726_v23, 5  ;;  %7954 = vmatprep.mubr.bf16.mxu0 %v9976_v29  ;;  %v8424_v27 = vld [vmem:[%s10656_s2 + $0x210] sm:$0xff]   ;;  %v5235_v1 = vor.u32 %v5234_v59, %v10140_v25  ;;  %v10174_v22 = vrot.slane %v5238_v7, 5  ;;  %v10176_v24 = vrot.slane %v5243_v28, 4  ;;  %v8426_v28 = vld [vmem:[%s10656_s2 + $0x218] sm:$0xff]  }
 0x170   : > { %7984 = vmatprep.subr.bf16.mxu0 %v8422_v36  ;;  %v5781_v32 = vrot.slane %v9884_v49, 5  ;;  %v10727_v44 = vcombine.low %v9906_v35, %v9910_v54  ;;  %v5252_v29 = vshll.u32 %v10156_v61, 16  ;;  %v7050_v40 = vrot.slane %v5689_v12, 9 }
 0x171   : > { %7731 = vmatmul.mubr.bf16.gmra.mrb[20].mxu1 %v10725_v56  ;;  %v10185_v47 = vsel %vm9097_vm14, %v7049_v21, %v5778_v34  ;;  %v5780_v58 = vrot.slane %v5778_v34, 4  ;;  %v10187_v6 = vrot.slane %v5225_v60, 4  ;;  %v10189_v53 = vrot.slane %v5246_v11, 5  ;;  %v3318_v34 = vld [vmem:[#allocation2 + $0x78] sm:$0xf] }
 0x172   : > { %7734 = vmatprep.mubr.bf16.mxu1 %v10727_v44  ;;  %v5785_v48 = vrot.slane %v9875_v5, 5  ;;  %v5788_v49 = vrot.slane %v9889_v15, 5  ;;  %v5256_v35 = vshrl.u32 %v10156_v61, 16  ;;  %v7051_v51 = vrot.slane %v5690_v4, 9  ;;  %v10252_v44 = vld [vmem:[#allocation2 + $0xac] sm:$0xf] }
 0x173   : > { %7985 = vmatpush3.bf16.msra.mxu0 %v8422_v36  ;;  %v10196_v54 = vsel %vm9097_vm14, %v5780_v58, %v5781_v32  ;;  %v5792_v59 = vrot.slane %v9995_v26, 5  ;;  %v5795_v36 = vrot.slane %v10035_v33, 5  ;;  %v7052_v11 = vrot.slane %v5691_v19, 9  ;;  %v10732_v19 = vld [vmem:[#allocation18_spill] sm:$0xff] }
 0x174   : > { %7986 = vmatprep.subr.bf16.mxu0 %v8424_v27  ;;  %v7081_v7 = vcombine.low %v10185_v47, %v10196_v54  ;;  %v10203_v5 = vsel %vm9097_vm14, %v7050_v40, %v5785_v48  ;;  %v5787_v15 = vrot.slane %v5785_v48, 4  ;;  %v5799_v12 = vrot.slane %v10001_v2, 5  ;;  %v5692_v40 = vld [vmem:[#allocation2 + $0x78] sm:$0xe] }
 0x175   : > { %v10213_v26 = vsel %vm9097_vm14, %v7051_v51, %v5792_v59  ;;  %v5794_v60 = vrot.slane %v5792_v59, 4  ;;  %v5217_v33 = vsel %vm8731_vm9, %v10166_v46, %v10154_v3  ;;  %v10221_v56 = vrot.slane %v5235_v1, 4  ;;  %v5693_v59 = vld [vmem:[#allocation2 + $0x84] sm:$0xe] }
 0x176   : > { %7955 = vmatmul.mubr.bf16.gmra.mrb[4].mxu0 %v9985_v17  ;;  %v10225_v21 = vsel %vm9097_vm14, %v5787_v15, %v5788_v49  ;;  %v5802_v23 = vrot.slane %v10039_v14, 5  ;;  %v10728_v32 = vcombine.low %v9925_v8, %v9929_v39  ;;  %v4966_v17 = vld [vmem:[#allocation2 + $0xa8] sm:$0xf]  ;;  %v10240_v4 = vsel %vm9097_vm14, %v7052_v11, %v5799_v12  ;;  %v10729_v15 = vld [vmem:[#allocation15_spill] sm:$0xff]  ;;  %v8427_v11 = vld [vmem:[#allocation2 + $0xc] sm:$0xff]  }
 0x177   : > { %7958 = vmatprep.mubr.bf16.mxu0 %v10055_v57  ;;  %v7082_v2 = vcombine.low %v10203_v5, %v10225_v21  ;;  %v10236_v1 = vsel %vm9097_vm14, %v5794_v60, %v5795_v36  ;;  %v5801_v14 = vrot.slane %v5799_v12, 4  ;;  %7987 = vmatpush3.bf16.msra.mxu0 %v8424_v27  ;;  %v5231_v8 = vsel %vm8731_vm9, %v10187_v6, %v10140_v25  ;;  %v10730_v36 = vld [vmem:[#allocation16_spill] sm:$0xff]  ;;  %v8438_v25 = vld [vmem:[%s10656_s2 + $0x238] sm:$0xff]   ;;  %v5694_v6 = vld [vmem:[#allocation2 + $0x90] sm:$0xe] }
 0x178   : > { %v10249_v39 = vrot.slane %v5252_v29, 5  ;;  %v5262_v57 = vshll.u32 %v10209_v38, 16  ;;  %v7083_v58 = vcombine.low %v10213_v26, %v10236_v1  ;;  %7988 = vmatprep.subr.bf16.mxu0 %v8426_v28  ;;  %v5249_v50 = vor.u32 %v10189_v53, %v10176_v24  ;;  %v8525_v26 = vld [vmem:[#allocation2 + $0xb8] sm:$0xf] }
 0x179   : > { %7735 = vmatmul.mubr.bf16.gmra.mrb[24].mxu1 %v10728_v32  ;;  %v10265_v27 = vsel %vm9097_vm14, %v5801_v14, %v5802_v23  ;;  %v3556_v29 = vshrl.u32 %v3318_v34, 16  ;;  %v5241_v48 = vsel %vm8731_vm9, %v10221_v56, %v10174_v22  ;;  %v5267_v49 = vshrl.u32 %v4966_v17, 16  ;;  %v10731_v23 = vld [vmem:[#allocation17_spill] sm:$0xff] }
 0x17a   : > { %7738 = vmatprep.mubr.bf16.mxu1 %v6819_v43  ;;  %v10261_v43 = vrot.slane %v5256_v35, 4  ;;  %v3559_v51 = vshll.u32 %v3318_v34, 16  ;;  %v5270_v24 = vshll.u32 %v4966_v17, 16  ;;  %v5276_v53 = vshll.u32 %v10252_v44, 16  ;;  %v8432_v34 = vld [vmem:[%s10656_s2 + $0x228] sm:$0xff]  }
 0x17b   : > { %v3558_v35 = vrot.slane %v3556_v29, 4  ;;  %v3578_v60 = vsel %vm8731_vm9, %v10730_v36, %v10729_v15  ;;  %7989 = vmatpush3.bf16.msra.mxu0 %v8426_v28  ;;  %v5280_v12 = vshrl.u32 %v10252_v44, 16  ;;  %v7053_v56 = vrot.slane %v5692_v40, 9  ;;  %v10288_v28 = vld [vmem:[#allocation2 + $0xb0] sm:$0x1] }
 0x17c   : > { %v3561_v22 = vrot.slane %v3559_v51, 5  ;;  %v5806_v32 = vrot.slane %v10731_v23, 5  ;;  %7990 = vmatprep.subr.bf16.mxu0 %v8429_v13  ;;  %v10283_v17 = vrot.slane %v5249_v50, 4  ;;  %v5809_v14 = vrot.slane %v10057_v63, 5  ;;  %v4969_v50 = vld [vmem:[#allocation2 + $0xb4] sm:$0xf] }
 0x17d   : > { %v7054_v29 = vrot.slane %v5693_v59, 9  ;;  %v5813_v15 = vrot.slane %v10732_v19, 5  ;;  %v5269_v51 = vrot.slane %v5267_v49, 4  ;;  %v5272_v63 = vrot.slane %v5270_v24, 5 }
 0x17e   : > { %7959 = vmatmul.mubr.bf16.gmra.mrb[8].mxu0 %v10143_v41  ;;  %v3562_v40 = vor.u32 %v3561_v22, %v3558_v35  ;;  %v10292_v36 = vsel %vm9097_vm14, %v7053_v56, %v5806_v32  ;;  %v5808_v23 = vrot.slane %v5806_v32, 4  ;;  %v5816_v49 = vrot.slane %v10097_v20, 5  ;;  %v10305_v22 = vld [vmem:[#allocation2 + $0xb8] sm:$0xf]  ;;  %v8435_v20 = vld [vmem:[%s10656_s2 + $0x230] sm:$0xff]   ;;  %v10733_v32 = vld [vmem:[#allocation8_spill] sm:$0xff] }
 0x17f   : > { %7962 = vmatprep.mubr.bf16.mxu0 %v10147_v0  ;;  %v10300_v41 = vsel %vm9097_vm14, %v7054_v29, %v5813_v15  ;;  %v5815_v19 = vrot.slane %v5813_v15, 4  ;;  %7991 = vmatpush3.bf16.msra.mxu0 %v8429_v13  ;;  %v10303_v59 = vrot.slane %v5276_v53, 5  ;;  %v5282_v35 = vrot.slane %v5280_v12, 4  ;;  %v4972_v12 = vld [vmem:[#allocation2 + $0xc0] sm:$0xf]  ;;  %v8428_v29 = vld [vmem:[#allocation2 + $0x18] sm:$0xff]  }
 0x180   : > { %v3563_v30 = vrot.slane %v3562_v40, 4  ;;  %v10309_v31 = vsel %vm9097_vm14, %v5808_v23, %v5809_v14  ;;  %7992 = vmatprep.subr.bf16.mxu0 %v8432_v34  ;;  %v5286_v0 = vshll.u32 %v10288_v28, 16  ;;  %v5291_v53 = vshrl.u32 %v4969_v50, 16  ;;  %v10323_v56 = vld [vmem:[#allocation2 + $0xc4] sm:$0xf] }
 0x181   : > { %7739 = vmatmul.mubr.bf16.gmra.mrb[28].mxu1 %v6820_v42  ;;  %v5259_v42 = vor.u32 %v10261_v43, %v10249_v39  ;;  %v7085_v13 = vcombine.low %v10292_v36, %v10309_v31  ;;  %v10321_v24 = vsel %vm9097_vm14, %v5815_v19, %v5816_v49  ;;  %v5273_v15 = vor.u32 %v5272_v63, %v5269_v51  ;;  %v8430_v49 = vld [vmem:[#allocation2 + $0x24] sm:$0xff]   ;;  %v8528_v36 = vld [vmem:[#allocation2 + $0xbc] sm:$0x1] }
 0x182   : > { %7758 = vmatprep.mubr.bf16.mxu1 %v8427_v11  ;;  %v5294_v11 = vshll.u32 %v4969_v50, 16  ;;  %v3568_v43 = vsel %vm8731_vm9, %v3563_v30, %v10733_v32  ;;  %v7086_v14 = vcombine.low %v10300_v41, %v10321_v24  ;;  %v5300_v40 = vshll.u32 %v10305_v22, 16  ;;  %v10734_v32 = vld [vmem:[#allocation9_spill] sm:$0xff] }
 0x183   : > { %v5304_v23 = vshrl.u32 %v10305_v22, 16  ;;  %v10332_v19 = vcombine.low %v3568_v43, %v3578_v60  ;;  %v10344_v50 = vcombine.low %v5207_v45, %v5217_v33  ;;  %v10351_v60 = vcombine.low %v5231_v8, %v5241_v48  ;;  %7993 = vmatpush3.bf16.msra.mxu0 %v8432_v34  ;;  %v5695_v34 = vld [vmem:[#allocation2 + $0x9c] sm:$0xe] }
 0x184   : > { %v10355_v51 = vrot.slane %v5262_v57, 5  ;;  %v5283_v3 = vor.u32 %v5282_v35, %v10303_v59  ;;  %v5255_v16 = vsel %vm8731_vm9, %v10283_v17, %v10249_v39  ;;  %7994 = vmatprep.subr.bf16.mxu0 %v8435_v20  ;;  %v5315_v55 = vshrl.u32 %v4972_v12, 16 }
 0x185   : > { %v5318_v45 = vshll.u32 %v4972_v12, 16  ;;  %v5324_v46 = vshll.u32 %v10323_v56, 16  ;;  %v5260_v33 = vrot.slane %v5259_v42, 4  ;;  %v10367_v8 = vrot.slane %v5286_v0, 5 }
 0x186   : > { %7963 = vmatmul.mubr.bf16.gmra.mrb[12].mxu0 %v10149_v18  ;;  %v5293_v57 = vrot.slane %v5291_v53, 4  ;;  %v5328_v48 = vshrl.u32 %v10323_v56, 16  ;;  %v5274_v63 = vrot.slane %v5273_v15, 4  ;;  %v5296_v35 = vrot.slane %v5294_v11, 5  ;;  %v10374_v18 = vld [vmem:[#allocation2 + $0xbc] sm:$0x1] }
 0x187   : > { %7966 = vmatprep.mubr.bf16.mxu0 %v10152_v52  ;;  %v10371_v30 = vrot.slane %v5300_v40, 5  ;;  %v5306_v12 = vrot.slane %v5304_v23, 4  ;;  %v5284_v43 = vrot.slane %v5283_v3, 4  ;;  %v7055_v42 = vrot.slane %v5694_v6, 9  ;;  %v8501_v52 = vld [vmem:[%s10656_s2 + $0x108] sm:$0xff]   ;;  %7995 = vmatpush3.bf16.msra.mxu0 %v8435_v20  ;;  %v8431_v6 = vld [vmem:[#allocation2 + $0x30] sm:$0xff]  }
 0x188   : > { %v5820_v0 = vrot.slane %v10090_v9, 5  ;;  %v5823_v53 = vrot.slane %v10124_v10, 5  ;;  %v5317_v11 = vrot.slane %v5315_v55, 4  ;;  %v10381_v15 = vrot.slane %v5324_v46, 5  ;;  %v10383_v23 = vld [vmem:[#allocation2 + $0xc8] sm:$0x1]  ;;  %7996 = vmatprep.subr.bf16.mxu0 %v8438_v25 }
 0x189   : > { %7759 = vmatmul.mubr.bf16.vlgmr.msra.gmra.mrb[0].mxu1 %v8428_v29  ;;  %v5320_v29 = vrot.slane %v5318_v45, 5  ;;  %v7056_v40 = vrot.slane %v5695_v34, 9  ;;  %v5827_v3 = vrot.slane %v10156_v61, 5  ;;  %v5265_v20 = vsel %vm8731_vm9, %v5260_v33, %v10355_v51  ;;  %v4975_v46 = vld [vmem:[#allocation2 + $0xcc] sm:$0xf] }
 0x18a   : > { %8038 = vmatpush3.bf16.msra.mxu1 %v10734_v32  ;;  %7762 = vmatprep.mubr.bf16.mxu1 %v8430_v49  ;;  %v5330_v49 = vrot.slane %v5328_v48, 4  ;;  %v10387_v9 = vsel %vm9097_vm14, %v7055_v42, %v5820_v0  ;;  %v5822_v10 = vrot.slane %v5820_v0, 4  ;;  %v5297_v55 = vor.u32 %v5296_v35, %v5293_v57  ;;  %v8433_v48 = vld [vmem:[#allocation2 + $0x3c] sm:$0xff]   ;;  %v10402_v0 = vld [vmem:[#allocation2 + $0xd0] sm:$0xf] }
 0x18b   : > { %8031 = vmatprep.subr.bf16.mxu1 %v8501_v52  ;;  %v5310_v45 = vshll.u32 %v10374_v18, 16  ;;  %v5830_v34 = vrot.slane %v10209_v38, 5  ;;  %v5279_v32 = vsel %vm8731_vm9, %v5274_v63, %v10303_v59  ;;  %v5289_v61 = vsel %vm8731_vm9, %v5284_v43, %v10367_v8  ;;  %v8502_v38 = vld [vmem:[%s10656_s2 + $0x110] sm:$0xff]   ;;  %7997 = vmatpush3.bf16.msra.mxu0 %v8438_v25 }
 0x18c   : > { %v5307_v42 = vor.u32 %v5306_v12, %v10371_v30  ;;  %v10406_v51 = vsel %vm9097_vm14, %v5822_v10, %v5823_v53  ;;  %v5334_v33 = vshll.u32 %v10383_v23, 16  ;;  %v10416_v8 = vsel %vm9097_vm14, %v7056_v40, %v5827_v3 }
 0x18d   : > { %v7087_v59 = vcombine.low %v10387_v9, %v10406_v51  ;;  %v5829_v57 = vrot.slane %v5827_v3, 4  ;;  %v5321_v63 = vor.u32 %v5320_v29, %v5317_v11  ;;  %v5331_v35 = vor.u32 %v5330_v49, %v10381_v15  ;;  %v5696_v29 = vld [vmem:[#allocation2 + $0xa8] sm:$0xe]  ;;  %v8503_v3 = vld [vmem:[%s10656_s2 + $0x118] sm:$0xff]  }
 0x18e   : > { %8039 = vmatpush3.bf16.msra.mxu1 %v8501_v52  ;;  %7967 = vmatmul.mubr.bf16.gmra.mrb[16].mxu0 %v10344_v50  ;;  %v5339_v12 = vshrl.u32 %v4975_v46, 16  ;;  %v5342_v43 = vshll.u32 %v4975_v46, 16  ;;  %v5348_v25 = vshll.u32 %v10402_v0, 16  ;;  %v5352_v53 = vshrl.u32 %v10402_v0, 16  ;;  %v8434_v46 = vld [vmem:[#allocation2 + $0x48] sm:$0xff]  }
 0x18f   : > { %8032 = vmatprep.subr.bf16.mxu1 %v8502_v38  ;;  %7970 = vmatprep.mubr.bf16.mxu0 %v10351_v60  ;;  %v10425_v52 = vsel %vm9097_vm14, %v5829_v57, %v5830_v34  ;;  %v7032_v50 = vcombine.low %v5255_v16, %v5265_v20  ;;  %v5298_v11 = vrot.slane %v5297_v55, 4  ;;  %v7033_v40 = vcombine.low %v5279_v32, %v5289_v61  ;;  %v5697_v32 = vld [vmem:[#allocation2 + $0xb4] sm:$0xe]  ;;  %v8504_v57 = vld [vmem:[%s10656_s2 + $0x120] sm:$0xff]  }
 0x190   : > { %v7088_v60 = vcombine.low %v10416_v8, %v10425_v52  ;;  %v5308_v49 = vrot.slane %v5307_v42, 4  ;;  %v5312_v10 = vrot.slane %v5310_v45, 5  ;;  %v5322_v34 = vrot.slane %v5321_v63, 4  ;;  %v8436_v61 = vld [vmem:[#allocation2 + $0x54] sm:$0xff]  }
 0x191   : > { %7763 = vmatmul.mubr.bf16.gmra.mrb[4].mxu1 %v8431_v6  ;;  %v5336_v6 = vrot.slane %v5334_v33, 5  ;;  %v5332_v39 = vrot.slane %v5331_v35, 4  ;;  %v5341_v17 = vrot.slane %v5339_v12, 4  ;;  %v5344_v16 = vrot.slane %v5342_v43, 5  ;;  %v10443_v42 = vld [vmem:[#allocation2 + $0xd4] sm:$0x1] }
 0x192   : > { %7766 = vmatprep.mubr.bf16.mxu1 %v8433_v48  ;;  %8040 = vmatpush3.bf16.msra.mxu1 %v8502_v38  ;;  %v10437_v20 = vrot.slane %v5348_v25, 5  ;;  %v5354_v55 = vrot.slane %v5352_v53, 4  ;;  %v7057_v48 = vrot.slane %v5696_v29, 9  ;;  %v5834_v38 = vrot.slane %v10252_v44, 5 }
 0x193   : > { %8033 = vmatprep.subr.bf16.mxu1 %v8503_v3  ;;  %v5303_v45 = vsel %vm8731_vm9, %v5298_v11, %v10371_v30  ;;  %v5313_v33 = vsel %vm8731_vm9, %v5308_v49, %v5312_v10  ;;  %v5837_v35 = vrot.slane %v10288_v28, 5  ;;  %v5327_v30 = vsel %vm8731_vm9, %v5322_v34, %v10381_v15 }
 0x194   : > { %v10452_v44 = vsel %vm9097_vm14, %v7057_v48, %v5834_v38  ;;  %v5836_v63 = vrot.slane %v5834_v38, 4  ;;  %v5337_v12 = vsel %vm8731_vm9, %v5332_v39, %v5336_v6  ;;  %v5345_v43 = vor.u32 %v5344_v16, %v5341_v17  ;;  %v8437_v39 = vld [vmem:[#allocation2 + $0x60] sm:$0xff]   ;;  %v8439_v48 = vld [vmem:[#allocation2 + $0x6c] sm:$0xff]  }
 0x195   : > { %v7058_v25 = vrot.slane %v5697_v32, 9  ;;  %v5355_v53 = vor.u32 %v5354_v55, %v10437_v20  ;;  %v5358_v11 = vshll.u32 %v10443_v42, 16  ;;  %v5841_v28 = vrot.slane %v10305_v22, 5 }
 0x196   : > { %8041 = vmatpush3.bf16.msra.mxu1 %v8503_v3  ;;  %7971 = vmatmul.mubr.bf16.gmra.mrb[20].mxu0 %v7032_v50  ;;  %v10464_v29 = vsel %vm9097_vm14, %v5836_v63, %v5837_v35  ;;  %v8505_v50 = vld [vmem:[#allocation2 + $0x1c] sm:$0xf]  ;;  %v5844_v10 = vrot.slane %v10374_v18, 5  ;;  %v8506_v3 = vld [vmem:[%s10656_s2 + $0x128] sm:$0xff]   ;;  %v7035_v34 = vcombine.low %v5327_v30, %v5337_v12  ;;  %v5346_v17 = vrot.slane %v5345_v43, 4 }
 0x197   : > { %8034 = vmatprep.subr.bf16.mxu1 %v8504_v57  ;;  %7974 = vmatprep.mubr.bf16.mxu0 %v7033_v40  ;;  %v5750_v15 = vrot.slane %v8505_v50, 5  ;;  %v7089_v49 = vcombine.low %v10452_v44, %v10464_v29  ;;  %v5684_v40 = vld [vmem:[#allocation2 + $0x18] sm:$0xe]  ;;  %v10475_v6 = vsel %vm9097_vm14, %v7058_v25, %v5841_v28  ;;  %v5843_v22 = vrot.slane %v5841_v28, 4  ;;  %v5685_v12 = vld [vmem:[#allocation2 + $0x24] sm:$0xe] }
 0x198   : > { %v5356_v16 = vrot.slane %v5355_v53, 4  ;;  %v5360_v55 = vrot.slane %v5358_v11, 5  ;;  %v7045_v38 = vrot.slane %v5684_v40, 9  ;;  %v5351_v35 = vsel %vm8731_vm9, %v5346_v17, %v10437_v20  ;;  %v8509_v43 = vld [vmem:[#allocation2 + $0x28] sm:$0xf]  ;;  %v8511_v20 = vld [vmem:[%s10656_s2 + $0x138] sm:$0xff]  }
 0x199   : > { %7767 = vmatmul.mubr.bf16.gmra.mrb[8].mxu1 %v8434_v46  ;;  %v7034_v46 = vcombine.low %v5303_v45, %v5313_v33  ;;  %v10479_v18 = vsel %vm9097_vm14, %v5843_v22, %v5844_v10  ;;  %v5752_v32 = vrot.slane %v5750_v15, 4  ;;  %v8508_v45 = vld [vmem:[%s10656_s2 + $0x130] sm:$0xff]   ;;  %v5699_v33 = vld [vmem:[#allocation2 + $0xcc] sm:$0xe]  ;;  %v5757_v25 = vrot.slane %v8509_v43, 5  ;;  %v8440_v17 = vld [vmem:[#allocation2 + $0x78] sm:$0xff]  }
 0x19a   : > { %7770 = vmatprep.mubr.bf16.mxu1 %v8436_v61  ;;  %8042 = vmatpush3.bf16.msra.mxu1 %v8504_v57  ;;  %v8507_v61 = vld [vmem:[#allocation2 + $0x20] sm:$0x1]  ;;  %v5361_v30 = vsel %vm8731_vm9, %v5356_v16, %v5360_v55  ;;  %v5751_v53 = vsel %vm9097_vm14, %v7045_v38, %v5750_v15  ;;  %v5686_v28 = vld [vmem:[#allocation2 + $0x30] sm:$0xe]  ;;  %v8510_v50 = vld [vmem:[#allocation2 + $0x34] sm:$0xf] }
 0x19b   : > { %8035 = vmatprep.subr.bf16.mxu1 %v8506_v3  ;;  %v5753_v57 = vrot.slane %v8507_v61, 5  ;;  %v5764_v10 = vrot.slane %v8510_v50, 5  ;;  %v7060_v40 = vrot.slane %v5699_v33, 9  ;;  %v7046_v22 = vrot.slane %v5685_v12, 9  ;;  %v8515_v50 = vld [vmem:[#allocation2 + $0x40] sm:$0xf] }
 0x19c   : > { %v5855_v15 = vrot.slane %v10402_v0, 5  ;;  %v5759_v55 = vrot.slane %v5757_v25, 4  ;;  %v5858_v38 = vrot.slane %v10443_v42, 5  ;;  %v8514_v0 = vld [vmem:[#allocation2 + $0x70] sm:$0xf]  ;;  %v3685_v1 = vshll.u32 %v8525_v26, 16 }
 0x19d   : > { %v5754_v11 = vsel %vm9097_vm14, %v5752_v32, %v5753_v57  ;;  %v8441_v32 = vld [vmem:[#allocation2 + $0x84] sm:$0xff]   ;;  %v5766_v61 = vrot.slane %v5764_v10, 4  ;;  %v8513_v57 = vld [vmem:[#allocation2 + $0x38] sm:$0x1]  ;;  %v3541_v43 = vshll.u32 %v8514_v0, 16  ;;  %v5758_v42 = vsel %vm9097_vm14, %v7046_v22, %v5757_v25 }
 0x19e   : > { %8043 = vmatpush3.bf16.msra.mxu1 %v8506_v3  ;;  %7975 = vmatmul.mubr.bf16.gmra.mrb[24].mxu0 %v7034_v46  ;;  %v7036_v3 = vcombine.low %v5351_v35, %v5361_v30  ;;  %v8512_v46 = vld [vmem:[#allocation2 + $0x2c] sm:$0x1]  ;;  %v7077_v16 = vcombine.low %v5751_v53, %v5754_v11  ;;  %v10502_v33 = vsel %vm9097_vm14, %v7060_v40, %v5855_v15  ;;  %v5857_v35 = vrot.slane %v5855_v15, 4 }
 0x19f   : > { %8036 = vmatprep.subr.bf16.mxu1 %v8508_v45  ;;  %7978 = vmatprep.mubr.bf16.mxu0 %v7035_v34  ;;  %v5760_v34 = vrot.slane %v8512_v46, 5  ;;  %v3545_v53 = vshrl.u32 %v8514_v0, 16  ;;  %v3543_v25 = vrot.slane %v3541_v43, 5  ;;  %v8518_v43 = vld [vmem:[#allocation2 + $0x88] sm:$0xf]  ;;  %v3695_v31 = vshll.u32 %v8528_v36, 16 }
 0x1a0   : > { %v10506_v11 = vsel %vm9097_vm14, %v5857_v35, %v5858_v38  ;;  %v8442_v38 = vld [vmem:[#allocation2 + $0x90] sm:$0xff]   ;;  %v8516_v35 = vld [vmem:[#allocation2 + $0x44] sm:$0x1]  ;;  %v5848_v41 = vrot.slane %v10323_v56, 5 }
 0x1a1   : > { %7771 = vmatmul.mubr.bf16.gmra.mrb[12].mxu1 %v8437_v39  ;;  %v3315_v39 = vld [vmem:[#allocation2 + $0x6c] sm:$0xf]  ;;  %v3547_v22 = vrot.slane %v3545_v53, 4  ;;  %v5774_v0 = vrot.slane %v8516_v35, 5  ;;  %v3589_v53 = vshll.u32 %v8518_v43, 16  ;;  %v10737_v44 = vcombine.low %v10502_v33, %v10506_v11 }
 0x1a2   : > { %7774 = vmatprep.mubr.bf16.mxu1 %v8439_v48  ;;  %8044 = vmatpush3.bf16.msra.mxu1 %v8508_v45  ;;  %v7047_v48 = vrot.slane %v5686_v28, 9  ;;  %v5767_v45 = vrot.slane %v8513_v57, 5  ;;  %v3532_v30 = vshrl.u32 %v3315_v39, 16  ;;  %v3535_v12 = vshll.u32 %v3315_v39, 16  ;;  %v5687_v39 = vld [vmem:[#allocation2 + $0x3c] sm:$0xe] }
 0x1a3   : > { %8037 = vmatprep.subr.bf16.mxu1 %v8511_v20  ;;  %v5761_v28 = vsel %vm9097_vm14, %v5759_v55, %v5760_v34  ;;  %v7048_v55 = vrot.slane %v5687_v39, 9  ;;  %v3327_v35 = vld [vmem:[#allocation2 + $0x9c] sm:$0xf] }
 0x1a4   : > { %v5768_v46 = vsel %vm9097_vm14, %v5766_v61, %v5767_v45  ;;  %v3534_v15 = vrot.slane %v3532_v30, 4 }
 0x1a6   : > { %8045 = vmatpush3.bf16.msra.mxu1 %v8511_v20  ;;  %7979 = vmatmul.mubr.bf16.gmra.mrb[28].mxu0 %v7036_v3  ;;  %v5771_v20 = vrot.slane %v8515_v50, 5  ;;  %v5765_v3 = vsel %vm9097_vm14, %v7047_v48, %v5764_v10  ;;  %v8443_v50 = vld [vmem:[#allocation2 + $0x9c] sm:$0xff]   ;;  %v3548_v10 = vor.u32 %v3547_v22, %v3543_v25  ;;  %v8517_v48 = vld [vmem:[#allocation2 + $0x74] sm:$0x1] }
 0x1a7   : > { %7998 = vmatprep.mubr.bf16.mxu0 %v7077_v16  ;;  %v7078_v16 = vcombine.low %v5758_v42, %v5761_v28  ;;  %v7079_v34 = vcombine.low %v5765_v3, %v5768_v46  ;;  %v3551_v63 = vshll.u32 %v8517_v48, 16  ;;  %v3593_v42 = vshrl.u32 %v8518_v43, 16  ;;  %v3324_v3 = vld [vmem:[#allocation2 + $0x90] sm:$0xf] }
 0x1a8   : > { %v5773_v57 = vrot.slane %v5771_v20, 4  ;;  %v5772_v61 = vsel %vm9097_vm14, %v7048_v55, %v5771_v20  ;;  %v3549_v39 = vrot.slane %v3548_v10, 4  ;;  %v3604_v55 = vshrl.u32 %v3324_v3, 16 }
 0x1a9   : > { %7775 = vmatmul.mubr.bf16.gmra.mrb[16].mxu1 %v8440_v17  ;;  %v3537_v17 = vrot.slane %v3535_v12, 5  ;;  %v3595_v20 = vrot.slane %v3593_v42, 4 }
 0x1aa   : > { %7778 = vmatprep.mubr.bf16.mxu1 %v8441_v32  ;;  %v3321_v32 = vld [vmem:[#allocation2 + $0x84] sm:$0xf]  ;;  %v5775_v45 = vsel %vm9097_vm14, %v5773_v57, %v5774_v0  ;;  %v3607_v57 = vshll.u32 %v3324_v3, 16  ;;  %v3606_v42 = vrot.slane %v3604_v55, 4 }
 0x1ab   : > { %v3538_v40 = vor.u32 %v3537_v17, %v3534_v15  ;;  %v3580_v30 = vshrl.u32 %v3321_v32, 16  ;;  %v3583_v12 = vshll.u32 %v3321_v32, 16  ;;  %v7080_v46 = vcombine.low %v5772_v61, %v5775_v45  ;;  %v8444_v17 = vld [vmem:[#allocation2 + $0xa8] sm:$0xff]   ;;  %v8446_v3 = vld [vmem:[#allocation2 + $0xc0] sm:$0xff]  }
 0x1ac   : > { %v3553_v15 = vrot.slane %v3551_v63, 5  ;;  %v8520_v63 = vld [vmem:[#allocation2 + $0x94] sm:$0xf]  ;;  %v3628_v61 = vshrl.u32 %v3327_v35, 16  ;;  %v3631_v45 = vshll.u32 %v3327_v35, 16 }
 0x1ad   : > { %v3539_v28 = vrot.slane %v3538_v40, 4  ;;  %v3582_v22 = vrot.slane %v3580_v30, 4  ;;  %v3613_v10 = vshll.u32 %v8520_v63, 16  ;;  %v3617_v48 = vshrl.u32 %v8520_v63, 16  ;;  %v8521_v30 = vld [vmem:[#allocation2 + $0xa0] sm:$0xf] }
 0x1ae   : > { %7999 = vmatmul.mubr.bf16.vlgmr.msra.gmra.mrb[0].mxu0 %v7078_v16  ;;  %v8445_v16 = vld [vmem:[#allocation2 + $0xb4] sm:$0xff]   ;;  %v3554_v40 = vsel %vm8731_vm9, %v3549_v39, %v3553_v15  ;;  %v3641_v43 = vshrl.u32 %v8521_v30, 16  ;;  %v3630_v47 = vrot.slane %v3628_v61, 4  ;;  %v3633_v54 = vrot.slane %v3631_v45, 5  ;;  %v3330_v63 = vld [vmem:[#allocation2 + $0xa8] sm:$0xf] }
 0x1af   : > { %8002 = vmatprep.mubr.bf16.mxu0 %v7079_v34  ;;  %v10522_v34 = vrot.slane %v3589_v53, 5  ;;  %v3544_v0 = vsel %vm8731_vm9, %v3539_v28, %v3543_v25  ;;  %v3609_v28 = vrot.slane %v3607_v57, 5  ;;  %v10532_v39 = vrot.slane %v3613_v10, 5  ;;  %v8523_v55 = vld [vmem:[#allocation2 + $0xa4] sm:$0x1] }
 0x1b0   : > { %v3619_v15 = vrot.slane %v3617_v48, 4  ;;  %v3643_v35 = vrot.slane %v3641_v43, 4  ;;  %v3647_v57 = vshll.u32 %v8523_v55, 16  ;;  %v3333_v10 = vld [vmem:[#allocation2 + $0xb4] sm:$0xf]  ;;  %v3634_v48 = vor.u32 %v3633_v54, %v3630_v47 }
 0x1b1   : > { %7779 = vmatmul.mubr.bf16.gmra.mrb[20].mxu1 %v8442_v38  ;;  %v3585_v38 = vrot.slane %v3583_v12, 5  ;;  %v3637_v12 = vshll.u32 %v8521_v30, 16  ;;  %v3596_v53 = vor.u32 %v3595_v20, %v10522_v34  ;;  %v8524_v61 = vld [vmem:[#allocation2 + $0xac] sm:$0xf] }
 0x1b2   : > { %7782 = vmatprep.mubr.bf16.mxu1 %v8443_v50  ;;  %v8519_v50 = vld [vmem:[#allocation2 + $0x8c] sm:$0x1]  ;;  %v3620_v20 = vor.u32 %v3619_v15, %v10532_v39  ;;  %v3661_v45 = vshll.u32 %v8524_v61, 16 }
 0x1b3   : > { %v3599_v32 = vshll.u32 %v8519_v50, 16  ;;  %v3586_v25 = vor.u32 %v3585_v38, %v3582_v22  ;;  %v3610_v38 = vor.u32 %v3609_v28, %v3606_v42  ;;  %v3649_v28 = vrot.slane %v3647_v57, 5 }
 0x1b4   : > { %v3621_v42 = vrot.slane %v3620_v20, 4  ;;  %v3663_v47 = vrot.slane %v3661_v45, 5 }
 0x1b5   : > { %v3587_v30 = vrot.slane %v3586_v25, 4  ;;  %v3601_v22 = vrot.slane %v3599_v32, 5  ;;  %v3676_v25 = vshrl.u32 %v3333_v10, 16 }
 0x1b6   : > { %8003 = vmatmul.mubr.bf16.gmra.mrb[4].mxu0 %v7080_v46  ;;  %v6893_v46 = vcombine.low %v3544_v0, %v3554_v40  ;;  %v3652_v0 = vshrl.u32 %v3330_v63, 16  ;;  %v3655_v40 = vshll.u32 %v3330_v63, 16 }
 0x1b7   : > { %8006 = vmatprep.mubr.bf16.mxu0 %v7081_v7  ;;  %v10534_v7 = vrot.slane %v3637_v12, 5  ;;  %v3665_v12 = vshrl.u32 %v8524_v61, 16  ;;  %v3592_v5 = vsel %vm8731_vm9, %v3587_v30, %v10522_v34  ;;  %v3678_v34 = vrot.slane %v3676_v25, 4 }
 0x1b8   : > { %v3657_v15 = vrot.slane %v3655_v40, 5  ;;  %v3687_v30 = vrot.slane %v3685_v1, 5 }
 0x1b9   : > { %7783 = vmatmul.mubr.bf16.gmra.mrb[24].mxu1 %v8444_v17  ;;  %v8522_v17 = vld [vmem:[#allocation2 + $0x98] sm:$0x1]  ;;  %v3644_v32 = vor.u32 %v3643_v35, %v10534_v7  ;;  %v3667_v54 = vrot.slane %v3665_v12, 4 }
 0x1ba   : > { %7786 = vmatprep.mubr.bf16.mxu1 %v8445_v16  ;;  %v3623_v50 = vshll.u32 %v8522_v17, 16  ;;  %v3597_v16 = vrot.slane %v3596_v53, 4  ;;  %v3679_v53 = vshll.u32 %v3333_v10, 16  ;;  %v3635_v17 = vrot.slane %v3634_v48, 4  ;;  %v8527_v48 = vld [vmem:[#allocation2 + $0xc4] sm:$0xf] }
 0x1bc   : > { %v3602_v21 = vsel %vm8731_vm9, %v3597_v16, %v3601_v22  ;;  %v3625_v43 = vrot.slane %v3623_v50, 5  ;;  %v3681_v63 = vrot.slane %v3679_v53, 5  ;;  %v3336_v22 = vld [vmem:[#allocation2 + $0xc0] sm:$0xf]  ;;  %v10735_v50 = vcombine.low %v10240_v4, %v10265_v27 }
 0x1bd   : > { %v6895_v35 = vcombine.low %v3592_v5, %v3602_v21  ;;  %v3640_v57 = vsel %vm8731_vm9, %v3635_v17, %v10534_v7  ;;  %v3668_v27 = vor.u32 %v3667_v54, %v3663_v47  ;;  %v3700_v40 = vshrl.u32 %v3336_v22, 16  ;;  %v5698_v54 = vld [vmem:[#allocation2 + $0xc0] sm:$0xe] }
 0x1be   : > { %8007 = vmatmul.mubr.bf16.gmra.mrb[8].mxu0 %v7082_v2  ;;  %v3611_v2 = vrot.slane %v3610_v38, 4  ;;  %v3626_v20 = vsel %vm8731_vm9, %v3621_v42, %v3625_v43  ;;  %v3703_v10 = vshll.u32 %v3336_v22, 16  ;;  %v3682_v61 = vor.u32 %v3681_v63, %v3678_v34 }
 0x1bf   : > { %8010 = vmatprep.mubr.bf16.mxu0 %v7083_v58  ;;  %v3689_v58 = vshrl.u32 %v8525_v26, 16  ;;  %v3669_v7 = vrot.slane %v3668_v27, 4 }
 0x1c0   : > { %v3616_v38 = vsel %vm8731_vm9, %v3611_v2, %v10532_v39  ;;  %v3702_v2 = vrot.slane %v3700_v40, 4  ;;  %v3705_v43 = vrot.slane %v3703_v10, 5  ;;  %v3683_v26 = vrot.slane %v3682_v61, 4 }
 0x1c1   : > { %7787 = vmatmul.mubr.bf16.gmra.mrb[28].mxu1 %v8446_v3  ;;  %v3654_v3 = vrot.slane %v3652_v0, 4  ;;  %v3691_v16 = vrot.slane %v3689_v58, 4  ;;  %v8526_v0 = vld [vmem:[#allocation2 + $0xb0] sm:$0x1]  ;;  %v3697_v58 = vrot.slane %v3695_v31, 5 }
 0x1c2   : > { %7822 = vmatprep.mubr.bf16.mxu1 %v6893_v46  ;;  %v3645_v46 = vrot.slane %v3644_v32, 4  ;;  %v3671_v39 = vshll.u32 %v8526_v0, 16  ;;  %v3709_v32 = vshll.u32 %v8527_v48, 16  ;;  %v3706_v17 = vor.u32 %v3705_v43, %v3702_v2 }
 0x1c3   : > { %v3658_v55 = vor.u32 %v3657_v15, %v3654_v3  ;;  %v3692_v45 = vor.u32 %v3691_v16, %v3687_v30  ;;  %v3688_v24 = vsel %vm8731_vm9, %v3683_v26, %v3687_v30  ;;  %v5850_v16 = vrot.slane %v5848_v41, 4 }
 0x1c4   : > { %v3650_v4 = vsel %vm8731_vm9, %v3645_v46, %v3649_v28  ;;  %v3673_v21 = vrot.slane %v3671_v39, 5  ;;  %v3711_v25 = vrot.slane %v3709_v32, 5  ;;  %v8529_v28 = vld [vmem:[#allocation2 + $0xc8] sm:$0x1]  ;;  %v3707_v34 = vrot.slane %v3706_v17, 4 }
 0x1c5   : > { %v6897_v12 = vcombine.low %v3640_v57, %v3650_v4  ;;  %v3659_v5 = vrot.slane %v3658_v55, 4  ;;  %v3693_v1 = vrot.slane %v3692_v45, 4  ;;  %v3719_v3 = vshll.u32 %v8529_v28, 16 }
 0x1c6   : > { %8011 = vmatmul.mubr.bf16.gmra.mrb[12].mxu0 %v10735_v50  ;;  %v3674_v15 = vsel %vm8731_vm9, %v3669_v7, %v3673_v21  ;;  %v3712_v56 = vsel %vm8731_vm9, %v3707_v34, %v3711_v25 }
 0x1c7   : > { %8014 = vmatprep.mubr.bf16.mxu0 %v7085_v13  ;;  %v6896_v13 = vcombine.low %v3616_v38, %v3626_v20  ;;  %v3664_v42 = vsel %vm8731_vm9, %v3659_v5, %v3663_v47  ;;  %v3721_v51 = vrot.slane %v3719_v3, 5  ;;  %v5851_v47 = vrot.slane %v10383_v23, 5 }
 0x1c8   : > { %v6898_v9 = vcombine.low %v3664_v42, %v3674_v15 }
 0x1c9   : > { %7823 = vmatmul.mubr.bf16.vlgmr.msra.gmra.mrb[16].mxu1 %v10332_v19  ;;  %v3713_v19 = vshrl.u32 %v8527_v48, 16  ;;  %v5852_v22 = vsel %vm9097_vm14, %v5850_v16, %v5851_v47 }
 0x1ca   : > { %7826 = vmatprep.mubr.bf16.mxu1 %v6895_v35 }
 0x1cb   : > { %v3715_v53 = vrot.slane %v3713_v19, 4 }
 0x1cd   : > { %v3716_v46 = vor.u32 %v3715_v53, %v3711_v25 }
 0x1ce   : > { %8015 = vmatmul.mubr.bf16.gmra.mrb[16].mxu0 %v7086_v14  ;;  %v3698_v14 = vsel %vm8731_vm9, %v3693_v1, %v3697_v58 }
 0x1cf   : > { %8018 = vmatprep.mubr.bf16.mxu0 %v7087_v59  ;;  %v7059_v59 = vrot.slane %v5698_v54, 9  ;;  %v6899_v35 = vcombine.low %v3688_v24, %v3698_v14  ;;  %v3717_v63 = vrot.slane %v3716_v46, 4 }
 0x1d1   : > { %7827 = vmatmul.mubr.bf16.gmra.mrb[20].mxu1 %v6896_v13  ;;  %v3722_v23 = vsel %vm8731_vm9, %v3717_v63, %v3721_v51  ;;  %v5849_v30 = vsel %vm9097_vm14, %v7059_v59, %v5848_v41 }
 0x1d2   : > { %7830 = vmatprep.mubr.bf16.mxu1 %v6897_v12  ;;  %v6900_v8 = vcombine.low %v3712_v56, %v3722_v23  ;;  %v7091_v52 = vcombine.low %v5849_v30, %v5852_v22 }
 0x1d6   : > { %8019 = vmatmul.mubr.bf16.gmra.mrb[20].mxu0 %v7088_v60  ;;  %v10736_v60 = vcombine.low %v10475_v6, %v10479_v18 }
 0x1d7   : > { %8022 = vmatprep.mubr.bf16.mxu0 %v7089_v49 }
 0x1d9   : > { %7831 = vmatmul.mubr.bf16.gmra.mrb[24].mxu1 %v6898_v9 }
 0x1da   : > { %7834 = vmatprep.mubr.bf16.mxu1 %v6899_v35 }
 0x1de   : > { %8023 = vmatmul.mubr.bf16.gmra.mrb[24].mxu0 %v10736_v60 }
 0x1df   : > { %8026 = vmatprep.mubr.bf16.mxu0 %v7091_v52 }
 0x1e1   : > { %7835 = vmatmul.mubr.bf16.gmra.mrb[28].mxu1 %v6900_v8 }
 0x1e6   : > { %8027 = vmatmul.mubr.bf16.gmra.mrb[28].mxu0 %v10737_v44 }
 0x25c   : > { %v7760_v62 = vpop.f32.mrb[0].mxu1 }
 0x25d   : > { %v3132_v29 = vpop.f32.mrb[1].mxu1 }
 0x25e   : > { %v7761_v49 = vpop.f32.mrb[2].mxu1 }
 0x25f   : > { %v3135_v50 = vpop.f32.mrb[3].mxu1 }
 0x264   : > { %v7764_v38 = vpop.f32.mrb[4].mxu1 }
 0x265   : > { %v3148_v20 = vpop.f32.mrb[5].mxu1 }
 0x266   : > { %v7765_v37 = vpop.f32.mrb[6].mxu1 }
 0x267   : > { %v3151_v55 = vpop.f32.mrb[7].mxu1 }
 0x26c   : > { %v7768_v57 = vpop.f32.mrb[8].mxu1 }
 0x26d   : > { %v3164_v4 = vpop.f32.mrb[9].mxu1 }
 0x26e   : > { %v7769_v27 = vpop.f32.mrb[10].mxu1 }
 0x26f   : > { %v3167_v6 = vpop.f32.mrb[11].mxu1 }
 0x274   : > { %v10602_v18 = vpop.f32.mrb[12].mxu1 }
 0x275   : > { %v10604_v0 = vpop.f32.mrb[13].mxu1 }
 0x276   : > { %v10606_v39 = vpop.f32.mrb[14].mxu1 }
 0x277   : > { %v10608_v33 = vpop.f32.mrb[15].mxu1 }
 0x281   : > { %v8000_v11 = vpop.f32.mrb[0].mxu0 }
 0x282   : > { %v8046_v40 = vadd.f32 %v8000_v11, %v7760_v62  ;;  %v6023_v10 = vpop.f32.mrb[1].mxu0 }
 0x283   : > { %v8047_v48 = vadd.f32 %v6023_v10, %v3132_v29  ;;  %v8001_v32 = vpop.f32.mrb[2].mxu0 }
 0x284   : > { %v8048_v19 = vadd.f32 %v8001_v32, %v7761_v49  ;;  %v6026_v61 = vpop.f32.mrb[3].mxu0  ;;  %v6382_v7 = vmul.f32 %v8046_v40, %v8046_v40 }
 0x285   : > { %v8049_v45 = vadd.f32 %v6026_v61, %v3135_v50  ;;  %v6380_v31 = vmul.f32 %v8047_v48, %v8047_v48 }
 0x286   : > { %v7280_v36 = vpack.c.bf16 %v8048_v19, %v8046_v40  ;;  %v6383_v26 = vmul.f32 %v8048_v19, %v8048_v19 }
 0x287   : > { %v7275_v13 = vpack.c.bf16 %v8049_v45, %v8047_v48  ;;  %v6342_v12 = vadd.f32 %v8049_v45, %v8047_v48  ;;  %v6381_v5 = vmul.f32 %v8049_v45, %v8049_v45 }
 0x288   : > { %7367 = vst [vmem:[%s10615_s15 + $0x8] sm:$0xff] %v7280_v36  }
 0x289   : > { %7276 = vst [vmem:[%s10615_s15] sm:$0xff] %v7275_v13   ;;  %v6343_v21 = vadd.f32 %v8046_v40, %v6342_v12  ;;  %v6412_v2 = vadd.f32 %v6381_v5, %v6380_v31  ;;  %v8004_v43 = vpop.f32.mrb[4].mxu0 }
 0x28a   : > { %v8050_v25 = vadd.f32 %v8004_v43, %v7764_v38  ;;  %v6039_v53 = vpop.f32.mrb[5].mxu0 }
 0x28b   : > { %v6413_v1 = vadd.f32 %v6412_v2, %v6382_v7  ;;  %v8051_v58 = vadd.f32 %v6039_v53, %v3148_v20  ;;  %v6344_v42 = vadd.f32 %v8048_v19, %v6343_v21  ;;  %v8005_v28 = vpop.f32.mrb[6].mxu0 }
 0x28c   : > { %v8052_v3 = vadd.f32 %v8005_v28, %v7765_v37  ;;  %v6042_v15 = vpop.f32.mrb[7].mxu0  ;;  %v6386_v47 = vmul.f32 %v8050_v25, %v8050_v25 }
 0x28d   : > { %v6345_v17 = vadd.f32 %v8051_v58, %v6344_v42  ;;  %v6384_v46 = vmul.f32 %v8051_v58, %v8051_v58  ;;  %v6414_v54 = vadd.f32 %v6413_v1, %v6383_v26  ;;  %v8053_v41 = vadd.f32 %v6042_v15, %v3151_v55 }
 0x28e   : > { %v7290_v24 = vpack.c.bf16 %v8052_v3, %v8050_v25  ;;  %v6387_v23 = vmul.f32 %v8052_v3, %v8052_v3 }
 0x28f   : > { %v6415_v14 = vadd.f32 %v6414_v54, %v6384_v46  ;;  %v7285_v9 = vpack.c.bf16 %v8053_v41, %v8051_v58  ;;  %v6346_v51 = vadd.f32 %v8053_v41, %v6345_v17  ;;  %v6385_v59 = vmul.f32 %v8053_v41, %v8053_v41 }
 0x290   : > { %7369 = vst [vmem:[%s10615_s15 + $0x18] sm:$0xff] %v7290_v24  }
 0x291   : > { %7368 = vst [vmem:[%s10615_s15 + $0x10] sm:$0xff] %v7285_v9   ;;  %v6347_v35 = vadd.f32 %v8050_v25, %v6346_v51  ;;  %v6416_v34 = vadd.f32 %v6415_v14, %v6385_v59  ;;  %v8008_v63 = vpop.f32.mrb[8].mxu0 }
 0x292   : > { %v8054_v16 = vadd.f32 %v8008_v63, %v7768_v57  ;;  %v6055_v56 = vpop.f32.mrb[9].mxu0 }
 0x293   : > { %v6417_v30 = vadd.f32 %v6416_v34, %v6386_v47  ;;  %v8055_v22 = vadd.f32 %v6055_v56, %v3164_v4  ;;  %v6348_v8 = vadd.f32 %v8052_v3, %v6347_v35  ;;  %v8009_v52 = vpop.f32.mrb[10].mxu0 }
 0x294   : > { %v8056_v60 = vadd.f32 %v8009_v52, %v7769_v27  ;;  %v6058_v44 = vpop.f32.mrb[11].mxu0  ;;  %v6390_v57 = vmul.f32 %v8054_v16, %v8054_v16 }
 0x295   : > { %v6349_v62 = vadd.f32 %v8055_v22, %v6348_v8  ;;  %v6388_v29 = vmul.f32 %v8055_v22, %v8055_v22  ;;  %v6418_v49 = vadd.f32 %v6417_v30, %v6387_v23  ;;  %v8057_v50 = vadd.f32 %v6058_v44, %v3167_v6 }
 0x296   : > { %v7300_v38 = vpack.c.bf16 %v8056_v60, %v8054_v16  ;;  %v6391_v19 = vmul.f32 %v8056_v60, %v8056_v60 }
 0x297   : > { %v6419_v20 = vadd.f32 %v6418_v49, %v6388_v29  ;;  %v7295_v37 = vpack.c.bf16 %v8057_v50, %v8055_v22  ;;  %v6350_v55 = vadd.f32 %v8057_v50, %v6349_v62  ;;  %v6389_v11 = vmul.f32 %v8057_v50, %v8057_v50 }
 0x298   : > { %7371 = vst [vmem:[%s10615_s15 + $0x28] sm:$0xff] %v7300_v38  }
 0x299   : > { %7370 = vst [vmem:[%s10615_s15 + $0x20] sm:$0xff] %v7295_v37   ;;  %v6351_v40 = vadd.f32 %v8054_v16, %v6350_v55  ;;  %v6420_v10 = vadd.f32 %v6419_v20, %v6389_v11  ;;  %v8012_v4 = vpop.f32.mrb[12].mxu0 }
 0x29a   : > { %v8058_v48 = vadd.f32 %v8012_v4, %v10602_v18  ;;  %v6071_v32 = vpop.f32.mrb[13].mxu0 }
 0x29b   : > { %v6421_v61 = vadd.f32 %v6420_v10, %v6390_v57  ;;  %v8059_v45 = vadd.f32 %v6071_v32, %v10604_v0  ;;  %v6352_v6 = vadd.f32 %v8056_v60, %v6351_v40  ;;  %v8013_v36 = vpop.f32.mrb[14].mxu0 }
 0x29c   : > { %v7824_v27 = vpop.f32.mrb[16].mxu1  ;;  %v8060_v13 = vadd.f32 %v8013_v36, %v10606_v39  ;;  %v6074_v12 = vpop.f32.mrb[15].mxu0  ;;  %v6394_v58 = vmul.f32 %v8058_v48, %v8058_v48 }
 0x29d   : > { %v3950_v31 = vpop.f32.mrb[17].mxu1  ;;  %v6353_v7 = vadd.f32 %v8059_v45, %v6352_v6  ;;  %v6392_v21 = vmul.f32 %v8059_v45, %v8059_v45  ;;  %v6422_v2 = vadd.f32 %v6421_v61, %v6391_v19  ;;  %v8061_v18 = vadd.f32 %v6074_v12, %v10608_v33 }
 0x29e   : > { %v7825_v5 = vpop.f32.mrb[18].mxu1  ;;  %v7310_v25 = vpack.c.bf16 %v8060_v13, %v8058_v48  ;;  %v6395_v46 = vmul.f32 %v8060_v13, %v8060_v13 }
 0x29f   : > { %v3953_v43 = vpop.f32.mrb[19].mxu1  ;;  %v6423_v53 = vadd.f32 %v6422_v2, %v6392_v21  ;;  %v7305_v26 = vpack.c.bf16 %v8061_v18, %v8059_v45  ;;  %v6354_v1 = vadd.f32 %v8061_v18, %v6353_v7  ;;  %v6393_v0 = vmul.f32 %v8061_v18, %v8061_v18 }
 0x2a0   : > { %7373 = vst [vmem:[%s10615_s15 + $0x38] sm:$0xff] %v7310_v25  }
 0x2a1   : > { %7372 = vst [vmem:[%s10615_s15 + $0x30] sm:$0xff] %v7305_v26   ;;  %v6355_v42 = vadd.f32 %v8058_v48, %v6354_v1  ;;  %v6424_v28 = vadd.f32 %v6423_v53, %v6393_v0  ;;  %v8016_v3 = vpop.f32.mrb[16].mxu0 }
 0x2a2   : > { %v8062_v39 = vadd.f32 %v8016_v3, %v7824_v27  ;;  %v6087_v15 = vpop.f32.mrb[17].mxu0 }
 0x2a3   : > { %v6425_v54 = vadd.f32 %v6424_v28, %v6394_v58  ;;  %v8063_v41 = vadd.f32 %v6087_v15, %v3950_v31  ;;  %v6356_v24 = vadd.f32 %v8060_v13, %v6355_v42  ;;  %v8017_v33 = vpop.f32.mrb[18].mxu0 }
 0x2a4   : > { %v7828_v17 = vpop.f32.mrb[20].mxu1  ;;  %v8064_v9 = vadd.f32 %v8017_v33, %v7825_v5  ;;  %v6090_v51 = vpop.f32.mrb[19].mxu0  ;;  %v6398_v52 = vmul.f32 %v8062_v39, %v8062_v39 }
 0x2a5   : > { %v3966_v14 = vpop.f32.mrb[21].mxu1  ;;  %v6357_v47 = vadd.f32 %v8063_v41, %v6356_v24  ;;  %v6396_v35 = vmul.f32 %v8063_v41, %v8063_v41  ;;  %v6426_v34 = vadd.f32 %v6425_v54, %v6395_v46  ;;  %v8065_v63 = vadd.f32 %v6090_v51, %v3953_v43 }
 0x2a6   : > { %v7829_v59 = vpop.f32.mrb[22].mxu1  ;;  %v7320_v56 = vpack.c.bf16 %v8064_v9, %v8062_v39  ;;  %v6399_v38 = vmul.f32 %v8064_v9, %v8064_v9 }
 0x2a7   : > { %v3969_v16 = vpop.f32.mrb[23].mxu1  ;;  %v6427_v23 = vadd.f32 %v6426_v34, %v6396_v35  ;;  %v7315_v30 = vpack.c.bf16 %v8065_v63, %v8063_v41  ;;  %v6358_v22 = vadd.f32 %v8065_v63, %v6357_v47  ;;  %v6397_v8 = vmul.f32 %v8065_v63, %v8065_v63 }
 0x2a8   : > { %7375 = vst [vmem:[%s10615_s15 + $0x48] sm:$0xff] %v7320_v56  }
 0x2a9   : > { %7374 = vst [vmem:[%s10615_s15 + $0x40] sm:$0xff] %v7315_v30   ;;  %v6359_v60 = vadd.f32 %v8062_v39, %v6358_v22  ;;  %v6428_v44 = vadd.f32 %v6427_v23, %v6397_v8  ;;  %v8020_v62 = vpop.f32.mrb[20].mxu0 }
 0x2aa   : > { %v8066_v29 = vadd.f32 %v8020_v62, %v7828_v17  ;;  %v6103_v49 = vpop.f32.mrb[21].mxu0 }
 0x2ab   : > { %v6429_v20 = vadd.f32 %v6428_v44, %v6398_v52  ;;  %v8067_v37 = vadd.f32 %v6103_v49, %v3966_v14  ;;  %v6360_v55 = vadd.f32 %v8064_v9, %v6359_v60  ;;  %v8021_v11 = vpop.f32.mrb[22].mxu0 }
 0x2ac   : > { %v7832_v50 = vpop.f32.mrb[24].mxu1  ;;  %v8068_v40 = vadd.f32 %v8021_v11, %v7829_v59  ;;  %v6106_v10 = vpop.f32.mrb[23].mxu0  ;;  %v6402_v12 = vmul.f32 %v8066_v29, %v8066_v29 }
 0x2ad   : > { %v3982_v57 = vpop.f32.mrb[25].mxu1  ;;  %v6361_v48 = vadd.f32 %v8067_v37, %v6360_v55  ;;  %v6400_v32 = vmul.f32 %v8067_v37, %v8067_v37  ;;  %v6430_v27 = vadd.f32 %v6429_v20, %v6399_v38  ;;  %v8069_v19 = vadd.f32 %v6106_v10, %v3969_v16 }
 0x2ae   : > { %v7833_v4 = vpop.f32.mrb[26].mxu1  ;;  %v7330_v45 = vpack.c.bf16 %v8068_v40, %v8066_v29  ;;  %v6403_v25 = vmul.f32 %v8068_v40, %v8068_v40 }
 0x2af   : > { %v3985_v61 = vpop.f32.mrb[27].mxu1  ;;  %v6431_v6 = vadd.f32 %v6430_v27, %v6400_v32  ;;  %v7325_v36 = vpack.c.bf16 %v8069_v19, %v8067_v37  ;;  %v6362_v31 = vadd.f32 %v8069_v19, %v6361_v48  ;;  %v6401_v13 = vmul.f32 %v8069_v19, %v8069_v19 }
 0x2b0   : > { %7377 = vst [vmem:[%s10615_s15 + $0x58] sm:$0xff] %v7330_v45  }
 0x2b1   : > { %7376 = vst [vmem:[%s10615_s15 + $0x50] sm:$0xff] %v7325_v36   ;;  %v6363_v5 = vadd.f32 %v8066_v29, %v6362_v31  ;;  %v6432_v7 = vadd.f32 %v6431_v6, %v6401_v13  ;;  %v8024_v21 = vpop.f32.mrb[24].mxu0 }
 0x2b2   : > { %v8070_v2 = vadd.f32 %v8024_v21, %v7832_v50  ;;  %v6119_v18 = vpop.f32.mrb[25].mxu0 }
 0x2b3   : > { %v6433_v53 = vadd.f32 %v6432_v7, %v6402_v12  ;;  %v8071_v26 = vadd.f32 %v6119_v18, %v3982_v57  ;;  %v6364_v1 = vadd.f32 %v8068_v40, %v6363_v5  ;;  %v8025_v0 = vpop.f32.mrb[26].mxu0 }
 0x2b4   : > { %v7836_v43 = vpop.f32.mrb[28].mxu1  ;;  %v8072_v42 = vadd.f32 %v8025_v0, %v7833_v4  ;;  %v6122_v28 = vpop.f32.mrb[27].mxu0  ;;  %v6406_v51 = vmul.f32 %v8070_v2, %v8070_v2 }
 0x2b5   : > { %v3998_v58 = vpop.f32.mrb[29].mxu1  ;;  %v6365_v39 = vadd.f32 %v8071_v26, %v6364_v1  ;;  %v6404_v15 = vmul.f32 %v8071_v26, %v8071_v26  ;;  %v6434_v17 = vadd.f32 %v6433_v53, %v6403_v25  ;;  %v8073_v46 = vadd.f32 %v6122_v28, %v3985_v61 }
 0x2b6   : > { %v7837_v3 = vpop.f32.mrb[30].mxu1  ;;  %v7340_v41 = vpack.c.bf16 %v8072_v42, %v8070_v2  ;;  %v6407_v16 = vmul.f32 %v8072_v42, %v8072_v42 }
 0x2b7   : > { %v4001_v54 = vpop.f32.mrb[31].mxu1  ;;  %v6435_v24 = vadd.f32 %v6434_v17, %v6404_v15  ;;  %v7335_v33 = vpack.c.bf16 %v8073_v46, %v8071_v26  ;;  %v6366_v14 = vadd.f32 %v8073_v46, %v6365_v39  ;;  %v6405_v9 = vmul.f32 %v8073_v46, %v8073_v46 }
 0x2b8   : > { %7379 = vst [vmem:[%s10615_s15 + $0x68] sm:$0xff] %v7340_v41  }
 0x2b9   : > { %7378 = vst [vmem:[%s10615_s15 + $0x60] sm:$0xff] %v7335_v33   ;;  %v6367_v59 = vadd.f32 %v8070_v2, %v6366_v14  ;;  %v6436_v47 = vadd.f32 %v6435_v24, %v6405_v9  ;;  %v8028_v35 = vpop.f32.mrb[28].mxu0 }
 0x2ba   : > { %v8074_v34 = vadd.f32 %v8028_v35, %v7836_v43  ;;  %v6135_v63 = vpop.f32.mrb[29].mxu0 }
 0x2bb   : > { %v6437_v56 = vadd.f32 %v6436_v47, %v6406_v51  ;;  %v8075_v23 = vadd.f32 %v6135_v63, %v3998_v58  ;;  %v6368_v30 = vadd.f32 %v8072_v42, %v6367_v59  ;;  %v8029_v22 = vpop.f32.mrb[30].mxu0 }
 0x2bc   : > { %v8076_v8 = vadd.f32 %v8029_v22, %v7837_v3  ;;  %v6138_v52 = vpop.f32.mrb[31].mxu0  ;;  %v6410_v55 = vmul.f32 %v8074_v34, %v8074_v34 }
 0x2bd   : > { %v6369_v60 = vadd.f32 %v8075_v23, %v6368_v30  ;;  %v6408_v44 = vmul.f32 %v8075_v23, %v8075_v23  ;;  %v6438_v62 = vadd.f32 %v6437_v56, %v6407_v16  ;;  %v8077_v29 = vadd.f32 %v6138_v52, %v4001_v54 }
 0x2be   : > { %v7350_v49 = vpack.c.bf16 %v8076_v8, %v8074_v34  ;;  %v6411_v40 = vmul.f32 %v8076_v8, %v8076_v8 }
 0x2bf   : > { %v6439_v50 = vadd.f32 %v6438_v62, %v6408_v44  ;;  %v7345_v38 = vpack.c.bf16 %v8077_v29, %v8075_v23  ;;  %v6370_v20 = vadd.f32 %v8077_v29, %v6369_v60  ;;  %v6409_v37 = vmul.f32 %v8077_v29, %v8077_v29 }
 0x2c0   : > { %7381 = vst [vmem:[%s10615_s15 + $0x78] sm:$0xff] %v7350_v49  }
 0x2c1   : > { %7380 = vst [vmem:[%s10615_s15 + $0x70] sm:$0xff] %v7345_v38   ;;  %v6371_v11 = vadd.f32 %v8074_v34, %v6370_v20  ;;  %v6440_v57 = vadd.f32 %v6439_v50, %v6409_v37 }
 0x2c3   : > { %v6372_v10 = vadd.f32 %v8076_v8, %v6371_v11  ;;  %v6441_v4 = vadd.f32 %v6440_v57, %v6410_v55 }
 0x2c5   : > { %v6373_v48 = vrot.slane %v6372_v10, 4  ;;  %v6442_v32 = vadd.f32 %v6441_v4, %v6411_v40 }
 0x2c7   : > { %v6374_v27 = vadd.f32 %v6373_v48, %v6372_v10  ;;  %v6443_v19 = vrot.slane %v6442_v32, 4 }
 0x2c9   : > { %v6375_v61 = vrot.slane %v6374_v27, 2  ;;  %v6444_v45 = vadd.f32 %v6443_v19, %v6442_v32 }
 0x2cb   : > { %v6376_v6 = vadd.f32 %v6375_v61, %v6374_v27  ;;  %v6445_v36 = vrot.slane %v6444_v45, 2 }
 0x2cd   : > { %v6377_v31 = vrot.slane %v6376_v6, 1  ;;  %v6446_v13 = vadd.f32 %v6445_v36, %v6444_v45 }
 0x2cf   : > { %v6378_v12 = vadd.f32 %v6377_v31, %v6376_v6  ;;  %v6447_v5 = vrot.slane %v6446_v13, 1 }
 0x2d1   : > { %6379 = vst [vmem:[%s323_s17] sm:$0x1] %v6378_v12  ;;  %v6448_v7 = vadd.f32 %v6447_v5, %v6446_v13 }
 0x2d3   : > { %6449 = vst [vmem:[%s329_s20] sm:$0x1] %v6448_v7 }
 0x2d4 PF: > { %s18_s25 = sadd.s32 1, %s8552_s25   ;;  %s10738_s24 = smov %s8548_s1 }
 0x2d5   : > { %p15_p5 = scmp.ge.s32.totalorder %s18_s25, 4   ;;  %s10739_s1 = smov %s10741_s26 }
 0x2d7   :  { %17 = sbr.rel (!%p15_p5) target bundleno = 2 (0x2), region = 217 }
 0x2de   :  { %6518 = vsyncmov [#allocation4] }
 0x2e1   :  { %s6519_s21 = vpop.sfrf %6518 }
 0x2e2   :  { %p7135_p6 = scmp.ne.s32.totalorder %s6519_s21, 0 }
 0x2e4   :  { %6523 = shalt.err (%p7135_p6)  }
 0x2e5   :  { %6525 = vsyncmov [#allocation4 + $0x1] }
 0x2e8   :  { %s6526_s23 = vpop.sfrf %6525 }
 0x2e9   :  { %p7136_p7 = scmp.ne.s32.totalorder %s6526_s23, 0 }
 0x2eb   :  { %6530 = shalt.err (%p7136_p7)  }

</bundles_post_ra>
